<compile_context>
chip_gen: v7x
topology: tpu7x:2x2x1
jax: 0.10.0
libtpu: 0.0.40
codegen_flags: <defaults>
</compile_context>

<pallas_src>
import functools

import jax
import jax.numpy as jnp
from jax import lax
from jax.experimental import pallas as pl
from jax.experimental.pallas import tpu as pltpu


def _round_up(x, m):
    return (x + m - 1) // m * m


# ---------------------------------------------------------------------------
# Pallas tiled matmul kernel (bf16 in, f32 acc) with fused per-channel
# sum / sum-of-squares epilogue for BatchNorm batch statistics.
# ---------------------------------------------------------------------------
def _mm_stats_kernel(a_ref, b_ref, o_ref, sum_ref, sq_ref, acc_ref):
    @pl.when(pl.program_id(2) == 0)
    def _():
        acc_ref[...] = jnp.zeros_like(acc_ref)

    acc_ref[...] += jnp.dot(a_ref[...], b_ref[...],
                            preferred_element_type=jnp.float32)

    @pl.when(pl.program_id(2) == pl.num_programs(2) - 1)
    def _():
        acc = acc_ref[...]
        o_ref[...] = acc.astype(o_ref.dtype)
        cs = jnp.sum(acc, axis=0, keepdims=True)           # (1, tn)
        ss = jnp.sum(acc * acc, axis=0, keepdims=True)     # (1, tn)
        sum_ref[0] = jnp.broadcast_to(cs, sum_ref.shape[1:])
        sq_ref[0] = jnp.broadcast_to(ss, sq_ref.shape[1:])


def matmul_stats(a, b):
    """a: (M, K), b: (K, N) -> (out_padded (Mp, Np) bf16,
    per-column sums (Np,) f32, per-column sum-of-squares (Np,) f32)."""
    M, K = a.shape
    K2, N = b.shape
    assert K == K2
    tm = min(256, _round_up(M, 16))
    tk = min(512, _round_up(K, 128))
    tn = min(256, _round_up(N, 128))
    Mp, Kp, Np = _round_up(M, tm), _round_up(K, tk), _round_up(N, tn)
    a_p = jnp.pad(a.astype(jnp.bfloat16), ((0, Mp - M), (0, Kp - K)))
    b_p = jnp.pad(b.astype(jnp.bfloat16), ((0, Kp - K), (0, Np - N)))
    gi, gj, gk = Mp // tm, Np // tn, Kp // tk

    out, sum_p, sq_p = pl.pallas_call(
        _mm_stats_kernel,
        out_shape=(jax.ShapeDtypeStruct((Mp, Np), jnp.bfloat16),
                   jax.ShapeDtypeStruct((gi, 8, Np), jnp.float32),
                   jax.ShapeDtypeStruct((gi, 8, Np), jnp.float32)),
        grid=(gi, gj, gk),
        in_specs=[pl.BlockSpec((tm, tk), lambda i, j, k: (i, k)),
                  pl.BlockSpec((tk, tn), lambda i, j, k: (k, j))],
        out_specs=(pl.BlockSpec((tm, tn), lambda i, j, k: (i, j)),
                   pl.BlockSpec((1, 8, tn), lambda i, j, k: (i, 0, j)),
                   pl.BlockSpec((1, 8, tn), lambda i, j, k: (i, 0, j))),
        scratch_shapes=[pltpu.VMEM((tm, tn), jnp.float32)],
        compiler_params=pltpu.CompilerParams(
            dimension_semantics=("parallel", "parallel", "arbitrary")),
    )(a_p, b_p)

    # tiny reductions over the per-M-tile partials (gi x Np elements)
    sums = jnp.sum(sum_p[:, 0, :], axis=0)
    sumsq = jnp.sum(sq_p[:, 0, :], axis=0)
    return out, sums, sumsq


# ---------------------------------------------------------------------------
# Pallas fused BatchNorm (batch stats) + optional residual + optional ReLU.
# Operates on (M, C) channels-last slabs, gridded over M, C lane-dense.
# ---------------------------------------------------------------------------
def _bn_act_kernel(*refs, relu, has_res):
    if has_res:
        y_ref, scale_ref, shift_ref, res_ref, o_ref = refs
    else:
        y_ref, scale_ref, shift_ref, o_ref = refs
        res_ref = None
    y = y_ref[...].astype(jnp.float32)
    out = y * scale_ref[...] + shift_ref[...]
    if res_ref is not None:
        out = out + res_ref[...].astype(jnp.float32)
    if relu:
        out = jnp.maximum(out, 0.0)
    o_ref[...] = out.astype(o_ref.dtype)


def bn_act(y_pad, count, c_real, sums, sumsq, gamma, beta,
           residual_pad=None, relu=True, eps=1e-5):
    """y_pad: (Mp, Cp) bf16 conv output (zero padded rows/cols); count = number
    of real rows (padded rows contribute exactly zero to sums/sumsq)."""
    Mp, Cp = y_pad.shape
    inv_n = 1.0 / float(count)
    mean = sums * inv_n
    var = jnp.maximum(sumsq * inv_n - mean * mean, 0.0)     # biased var (PyTorch BN)
    gamma_p = jnp.pad(gamma.astype(jnp.float32), (0, Cp - c_real))
    beta_p = jnp.pad(beta.astype(jnp.float32), (0, Cp - c_real))
    scale_v = gamma_p * lax.rsqrt(var + eps)
    shift_v = beta_p - mean * scale_v
    scale = scale_v.reshape(1, Cp)
    shift = shift_v.reshape(1, Cp)

    tm = min(256, Mp)                     # Mp is always a multiple of tm
    row_spec = pl.BlockSpec((tm, Cp), lambda i: (i, 0))
    vec_spec = pl.BlockSpec((1, Cp), lambda i: (0, 0))
    args = [y_pad, scale, shift]
    specs = [row_spec, vec_spec, vec_spec]
    if residual_pad is not None:
        args.append(residual_pad)
        specs.append(row_spec)

    return pl.pallas_call(
        functools.partial(_bn_act_kernel, relu=relu,
                          has_res=residual_pad is not None),
        out_shape=jax.ShapeDtypeStruct((Mp, Cp), jnp.bfloat16),
        grid=(Mp // tm,),
        in_specs=specs,
        out_specs=row_spec,
        compiler_params=pltpu.CompilerParams(
            dimension_semantics=("parallel",)),
    )(*args)


# ---------------------------------------------------------------------------
# Convolution = im2col (static-stride glue) + Pallas matmul with stats epilogue
# ---------------------------------------------------------------------------
def _im2col(x, kh, kw, stride, padding):
    """x: NHWC -> (N*Hout*Wout, kh*kw*C), K ordered (dy, dx, cin) to match HWIO.
    TODO(synk): still materializes the kh*kw-expanded patch matrix in HBM; a
    direct Pallas conv accumulating kh*kw K-steps would cut input traffic ~9x."""
    N, H, W, C = x.shape
    if padding:
        x = jnp.pad(x, ((0, 0), (padding, padding), (padding, padding), (0, 0)))
    Hp, Wp = H + 2 * padding, W + 2 * padding
    Hout = (Hp - kh) // stride + 1
    Wout = (Wp - kw) // stride + 1
    cols = []
    for dy in range(kh):
        for dx in range(kw):
            patch = x[:, dy: dy + stride * (Hout - 1) + 1: stride,
                         dx: dx + stride * (Wout - 1) + 1: stride, :]
            cols.append(patch.reshape(N * Hout * Wout, C))
    cols_mat = jnp.concatenate(cols, axis=1) if len(cols) > 1 else cols[0]
    return cols_mat, Hout, Wout


def conv2d_stats(x, w_hwio, stride, padding):
    N, H, W, Cin = x.shape
    kh, kw, _, Cout = w_hwio.shape
    cols, Hout, Wout = _im2col(x, kh, kw, stride, padding)
    wmat = w_hwio.reshape(kh * kw * Cin, Cout)
    y_pad, sums, sumsq = matmul_stats(cols, wmat)
    return y_pad, sums, sumsq, (N, Hout, Wout, Cout)


def maxpool2d(x, k=3, stride=2, padding=1):
    # TODO(synk): max-pool stays in lax.reduce_window (window-reduction glue).
    return lax.reduce_window(
        x, jnp.array(-jnp.inf, x.dtype), lax.max,
        window_dimensions=(1, k, k, 1),
        window_strides=(1, stride, stride, 1),
        padding=((0, 0), (padding, padding), (padding, padding), (0, 0)))


# ---------------------------------------------------------------------------
# ResNet18 structure: static config + array-only params (fixes tracer bug)
# ---------------------------------------------------------------------------
LAYER_CFG = (
    ((64, 64, 1, False), (64, 64, 1, False)),
    ((64, 128, 2, True), (128, 128, 1, False)),
    ((128, 256, 2, True), (256, 256, 1, False)),
    ((256, 512, 2, True), (512, 512, 1, False)),
)


def init_params(key):
    keys = iter(jax.random.split(key, 64))

    def conv_w(kh, kw, cin, cout):   # HWIO layout
        return jax.random.normal(next(keys), (kh, kw, cin, cout), jnp.float32) * 0.05

    def bn_p(c):
        return jnp.ones((c,), jnp.float32), jnp.zeros((c,), jnp.float32)

    params = {
        "pre_w": jax.random.normal(next(keys), (3,), jnp.float32) * 0.5,
        "pre_b": jnp.zeros((3,), jnp.float32),
        "conv1_w": conv_w(7, 7, 3, 64),
    }
    params["bn1_g"], params["bn1_b"] = bn_p(64)

    layers = []
    for cfg in LAYER_CFG:
        blocks = []
        for (cin, cout, _stride, down) in cfg:
            blk = {
                "conv1_w": conv_w(3, 3, cin, cout),
                "conv2_w": conv_w(3, 3, cout, cout),
            }
            blk["bn1_g"], blk["bn1_b"] = bn_p(cout)
            blk["bn2_g"], blk["bn2_b"] = bn_p(cout)
            if down:
                blk["down_w"] = conv_w(1, 1, cin, cout)
                blk["down_g"], blk["down_b"] = bn_p(cout)
            blocks.append(blk)
        layers.append(blocks)
    params["layers"] = layers

    params["fc_w"] = jax.random.normal(next(keys), (1, 512), jnp.float32) * 0.05
    params["fc_b"] = jnp.zeros((1,), jnp.float32)
    return params


def basic_block(x, p, stride, has_down):
    y1, s1, q1, shp1 = conv2d_stats(x, p["conv1_w"], stride, 1)
    m1 = shp1[0] * shp1[1] * shp1[2]
    a1 = bn_act(y1, m1, shp1[3], s1, q1, p["bn1_g"], p["bn1_b"], relu=True)
    a1 = a1[:m1, :shp1[3]].reshape(shp1)

    y2, s2, q2, shp2 = conv2d_stats(a1, p["conv2_w"], 1, 1)
    m2 = shp2[0] * shp2[1] * shp2[2]
    c2 = shp2[3]

    if has_down:
        yd, sd, qd, _ = conv2d_stats(x, p["down_w"], stride, 0)
        identity = bn_act(yd, m2, c2, sd, qd, p["down_g"], p["down_b"], relu=False)
    else:
        ident = x.reshape(m2, c2).astype(jnp.bfloat16)
        identity = jnp.pad(ident, ((0, y2.shape[0] - m2), (0, y2.shape[1] - c2)))

    # bn2 + residual add + ReLU fused in one Pallas pass
    out = bn_act(y2, m2, c2, s2, q2, p["bn2_g"], p["bn2_b"],
                 residual_pad=identity, relu=True)
    return out[:m2, :c2].reshape(shp2)


def forward(params, x):
    # x: NCHW like the PyTorch module; switch to channels-last immediately.
    n = x.shape[0]
    x = jnp.transpose(x, (0, 2, 3, 1))                       # NHWC

    # feature_extractor.conv1[0]: Conv2d(1, 3, 1) with Cin=1 is a per-pixel
    # broadcast multiply-add -> done as glue (a K=1 MXU matmul would be waste).
    # TODO(synk): trivial 1x1 Cin=1 conv kept outside Pallas per perf review.
    x = (x * params["pre_w"].reshape(1, 1, 1, 3)
         + params["pre_b"].reshape(1, 1, 1, 3)).astype(jnp.bfloat16)

    # conv1 (7x7, s2, p3) + BN + ReLU
    y, s, q, shp = conv2d_stats(x, params["conv1_w"], 2, 3)
    m = shp[0] * shp[1] * shp[2]
    a = bn_act(y, m, shp[3], s, q, params["bn1_g"], params["bn1_b"], relu=True)
    x = a[:m, :shp[3]].reshape(shp)

    x = maxpool2d(x, 3, 2, 1)

    for blocks, cfg in zip(params["layers"], LAYER_CFG):
        for blk, (_, _, stride, has_down) in zip(blocks, cfg):
            x = basic_block(x, blk, stride, has_down)

    # Adaptive avg-pool to 1x1, then fc(512->1) folded with the batch sum:
    # sum_n (W p_n + b) = W (sum_n p_n) + n*b   (tiny glue, avoids padded N=1 matmul)
    pooled = jnp.mean(x.astype(jnp.float32), axis=(1, 2))    # (N, 512)
    feat_sum = jnp.sum(pooled, axis=0)                       # (512,)
    out = jnp.dot(params["fc_w"], feat_sum) + n * params["fc_b"]
    return out.reshape(1, 1)                                 # matches torch.sum(features, 0)


if __name__ == "__main__":
    key = jax.random.PRNGKey(0)
    pkey, xkey = jax.random.split(key)
    params = init_params(pkey)
    x = jax.random.normal(xkey, (2, 1, 16, 16), jnp.float32)   # NCHW, 1 input channel

    out = jax.jit(forward)(params, x)
    out = jax.block_until_ready(out)
    assert out.shape == (1, 1), out.shape
    assert bool(jnp.all(jnp.isfinite(out)))
    print("KERNEL_OK")
</pallas_src>

<mosaic_0001>
module attributes {stable_mosaic.version = 11 : i64} {
  func.func @_bn_act_kernel(%arg0: i32, %arg1: memref<128x128xbf16, #tpu.memory_space<vmem>>, %arg2: memref<1x128xf32, #tpu.memory_space<vmem>>, %arg3: memref<1x128xf32, #tpu.memory_space<vmem>>, %arg4: memref<128x128xbf16, #tpu.memory_space<vmem>>) attributes {dimension_semantics = [#tpu.dimension_semantics<parallel>], iteration_bounds = array<i64: 1>, scalar_prefetch = 0 : i64, scratch_operands = 0 : i64, tpu.core_type = #tpu.core_type<tc>, window_params = [{transform_indices = @transform_0, window_bounds = array<i64: 128, 128>}, {pipeline_mode = #tpu.pipeline_mode<synchronous>, transform_indices = @transform_1, window_bounds = array<i64: 1, 128>}, {pipeline_mode = #tpu.pipeline_mode<synchronous>, transform_indices = @transform_2, window_bounds = array<i64: 1, 128>}, {transform_indices = @transform_3, window_bounds = array<i64: 128, 128>}]} {
    %c0 = arith.constant 0 : index
    %c0_0 = arith.constant 0 : index
    %0 = vector.load %arg1[%c0, %c0_0] : memref<128x128xbf16, #tpu.memory_space<vmem>>, vector<128x128xbf16>
    %1 = arith.extf %0 : vector<128x128xbf16> to vector<128x128xf32>
    %c0_1 = arith.constant 0 : index
    %c0_2 = arith.constant 0 : index
    %2 = vector.load %arg2[%c0_1, %c0_2] : memref<1x128xf32, #tpu.memory_space<vmem>>, vector<1x128xf32>
    %3 = vector.broadcast %2 : vector<1x128xf32> to vector<128x128xf32>
    %4 = arith.mulf %1, %3 : vector<128x128xf32>
    %c0_3 = arith.constant 0 : index
    %c0_4 = arith.constant 0 : index
    %5 = vector.load %arg3[%c0_3, %c0_4] : memref<1x128xf32, #tpu.memory_space<vmem>>, vector<1x128xf32>
    %6 = vector.broadcast %5 : vector<1x128xf32> to vector<128x128xf32>
    %7 = arith.addf %4, %6 : vector<128x128xf32>
    %cst = arith.constant 0.000000e+00 : f32
    %8 = vector.broadcast %cst : f32 to vector<128x128xf32>
    %9 = arith.maximumf %7, %8 : vector<128x128xf32>
    %10 = arith.truncf %9 : vector<128x128xf32> to vector<128x128xbf16>
    %c0_5 = arith.constant 0 : index
    %c0_6 = arith.constant 0 : index
    %11 = vector.load %arg4[%c0_5, %c0_6] : memref<128x128xbf16, #tpu.memory_space<vmem>>, vector<128x128xbf16>
    tpu.vector_store %arg4[%c0_5, %c0_6], %10 {strides = array<i32>} : memref<128x128xbf16, #tpu.memory_space<vmem>>, vector<128x128xbf16>,
    return
  }
  func.func @transform_0(%arg0: i32) -> (i32, i32) {
    %c0_i32 = arith.constant 0 : i32
    %c0_i32_0 = arith.constant 0 : i32
    return %arg0, %c0_i32 : i32, i32
  }
  func.func @transform_1(%arg0: i32) -> (i32, i32) {
    %c0_i32 = arith.constant 0 : i32
    %c0_i32_0 = arith.constant 0 : i32
    %c0_i32_1 = arith.constant 0 : i32
    return %c0_i32, %c0_i32_0 : i32, i32
  }
  func.func @transform_2(%arg0: i32) -> (i32, i32) {
    %c0_i32 = arith.constant 0 : i32
    %c0_i32_0 = arith.constant 0 : i32
    %c0_i32_1 = arith.constant 0 : i32
    return %c0_i32, %c0_i32_0 : i32, i32
  }
  func.func @transform_3(%arg0: i32) -> (i32, i32) {
    %c0_i32 = arith.constant 0 : i32
    %c0_i32_0 = arith.constant 0 : i32
    return %arg0, %c0_i32 : i32, i32
  }
}

module attributes {stable_mosaic.version = 11 : i64} {
  func.func @_mm_stats_kernel(%arg0: i32, %arg1: i32, %arg2: i32, %arg3: memref<128x256xbf16, #tpu.memory_space<vmem>>, %arg4: memref<256x128xbf16, #tpu.memory_space<vmem>>, %arg5: memref<128x128xbf16, #tpu.memory_space<vmem>>, %arg6: memref<1x8x128xf32, #tpu.memory_space<vmem>>, %arg7: memref<1x8x128xf32, #tpu.memory_space<vmem>>, %arg8: memref<128x128xf32, #tpu.memory_space<vmem>>) attributes {dimension_semantics = [#tpu.dimension_semantics<parallel>, #tpu.dimension_semantics<parallel>, #tpu.dimension_semantics<arbitrary>], iteration_bounds = array<i64: 1, 1, 1>, scalar_prefetch = 0 : i64, scratch_operands = 1 : i64, tpu.core_type = #tpu.core_type<tc>, window_params = [{transform_indices = @transform_0, window_bounds = array<i64: 128, 256>}, {transform_indices = @transform_1, window_bounds = array<i64: 256, 128>}, {transform_indices = @transform_2, window_bounds = array<i64: 128, 128>}, {transform_indices = @transform_3, window_bounds = array<i64: 1, 8, 128>}, {transform_indices = @transform_4, window_bounds = array<i64: 1, 8, 128>}]} {
    %c0_i32 = arith.constant 0 : i32
    %0 = arith.cmpi eq, %arg2, %c0_i32 : i32
    %1 = arith.extui %0 : i1 to i32
    %c0_i32_0 = arith.constant 0 : i32
    %2 = arith.cmpi ne, %1, %c0_i32_0 : i32
    scf.if %2 {
      %cst_10 = arith.constant 0.000000e+00 : f32
      %12 = vector.broadcast %cst_10 : f32 to vector<128x128xf32>
      %c0_11 = arith.constant 0 : index
      %c0_12 = arith.constant 0 : index
      %13 = vector.load %arg8[%c0_11, %c0_12] : memref<128x128xf32, #tpu.memory_space<vmem>>, vector<128x128xf32>
      tpu.vector_store %arg8[%c0_11, %c0_12], %12 {strides = array<i32>} : memref<128x128xf32, #tpu.memory_space<vmem>>, vector<128x128xf32>,
    } else {
    }
    %c0 = arith.constant 0 : index
    %c0_1 = arith.constant 0 : index
    %3 = vector.load %arg8[%c0, %c0_1] : memref<128x128xf32, #tpu.memory_space<vmem>>, vector<128x128xf32>
    %c0_2 = arith.constant 0 : index
    %c0_3 = arith.constant 0 : index
    %4 = vector.load %arg3[%c0_2, %c0_3] : memref<128x256xbf16, #tpu.memory_space<vmem>>, vector<128x256xbf16>
    %c0_4 = arith.constant 0 : index
    %c0_5 = arith.constant 0 : index
    %5 = vector.load %arg4[%c0_4, %c0_5] : memref<256x128xbf16, #tpu.memory_space<vmem>>, vector<256x128xbf16>
    %cst = arith.constant dense<0.000000e+00> : vector<128x128xf32>
    %6 = tpu.matmul %4, %5, %cst {dimension_numbers = #tpu.dot_dimension_numbers<[1], [0], [0], [1], [0, 0, 1, 1], [], []>} : vector<128x256xbf16>, vector<256x128xbf16>, vector<128x128xf32> -> vector<128x128xf32>
    %7 = arith.addf %3, %6 : vector<128x128xf32>
    %c0_6 = arith.constant 0 : index
    %c0_7 = arith.constant 0 : index
    %8 = vector.load %arg8[%c0_6, %c0_7] : memref<128x128xf32, #tpu.memory_space<vmem>>, vector<128x128xf32>
    tpu.vector_store %arg8[%c0_6, %c0_7], %7 {strides = array<i32>} : memref<128x128xf32, #tpu.memory_space<vmem>>, vector<128x128xf32>,
    %c0_i32_8 = arith.constant 0 : i32
    %9 = arith.cmpi eq, %arg2, %c0_i32_8 : i32
    %10 = arith.extui %9 : i1 to i32
    %c0_i32_9 = arith.constant 0 : i32
    %11 = arith.cmpi ne, %10, %c0_i32_9 : i32
    scf.if %11 {
      %c0_10 = arith.constant 0 : index
      %c0_11 = arith.constant 0 : index
      %12 = vector.load %arg8[%c0_10, %c0_11] : memref<128x128xf32, #tpu.memory_space<vmem>>, vector<128x128xf32>
      %13 = arith.truncf %12 : vector<128x128xf32> to vector<128x128xbf16>
      %c0_12 = arith.constant 0 : index
      %c0_13 = arith.constant 0 : index
      %14 = vector.load %arg5[%c0_12, %c0_13] : memref<128x128xbf16, #tpu.memory_space<vmem>>, vector<128x128xbf16>
      tpu.vector_store %arg5[%c0_12, %c0_13], %13 {strides = array<i32>} : memref<128x128xbf16, #tpu.memory_space<vmem>>, vector<128x128xbf16>,
      %cst_14 = arith.constant dense<0.000000e+00> : vector<128xf32>
      %15 = vector.multi_reduction <add>, %12, %cst_14 [0] : vector<128x128xf32> to vector<128xf32>
      %16 = vector.shape_cast %15 : vector<128xf32> to vector<1x128xf32>
      %17 = arith.mulf %12, %12 : vector<128x128xf32>
      %cst_15 = arith.constant dense<0.000000e+00> : vector<128xf32>
      %18 = vector.multi_reduction <add>, %17, %cst_15 [0] : vector<128x128xf32> to vector<128xf32>
      %19 = vector.shape_cast %18 : vector<128xf32> to vector<1x128xf32>
      %20 = vector.shape_cast %16 : vector<1x128xf32> to vector<1x128xf32>
      %21 = vector.broadcast %20 : vector<1x128xf32> to vector<8x128xf32>
      %c0_16 = arith.constant 0 : index
      %c0_17 = arith.constant 0 : index
      %c0_18 = arith.constant 0 : index
      %22 = vector.load %arg6[%c0_16, %c0_17, %c0_18] : memref<1x8x128xf32, #tpu.memory_space<vmem>>, vector<1x8x128xf32>
      %23 = vector.shape_cast %22 : vector<1x8x128xf32> to vector<8x128xf32>
      %24 = vector.shape_cast %21 : vector<8x128xf32> to vector<1x8x128xf32>
      tpu.vector_store %arg6[%c0_16, %c0_17, %c0_18], %24 {strides = array<i32>} : memref<1x8x128xf32, #tpu.memory_space<vmem>>, vector<1x8x128xf32>,
      %25 = vector.shape_cast %19 : vector<1x128xf32> to vector<1x128xf32>
      %26 = vector.broadcast %25 : vector<1x128xf32> to vector<8x128xf32>
      %c0_19 = arith.constant 0 : index
      %c0_20 = arith.constant 0 : index
      %c0_21 = arith.constant 0 : index
      %27 = vector.load %arg7[%c0_19, %c0_20, %c0_21] : memref<1x8x128xf32, #tpu.memory_space<vmem>>, vector<1x8x128xf32>
      %28 = vector.shape_cast %27 : vector<1x8x128xf32> to vector<8x128xf32>
      %29 = vector.shape_cast %26 : vector<8x128xf32> to vector<1x8x128xf32>
      tpu.vector_store %arg7[%c0_19, %c0_20, %c0_21], %29 {strides = array<i32>} : memref<1x8x128xf32, #tpu.memory_space<vmem>>, vector<1x8x128xf32>,
    } else {
    }
    return
  }
  func.func @transform_0(%arg0: i32, %arg1: i32, %arg2: i32) -> (i32, i32) {
    %c0_i32 = arith.constant 0 : i32
    return %arg0, %arg2 : i32, i32
  }
  func.func @transform_1(%arg0: i32, %arg1: i32, %arg2: i32) -> (i32, i32) {
    %c0_i32 = arith.constant 0 : i32
    return %arg2, %arg1 : i32, i32
  }
  func.func @transform_2(%arg0: i32, %arg1: i32, %arg2: i32) -> (i32, i32) {
    %c0_i32 = arith.constant 0 : i32
    return %arg0, %arg1 : i32, i32
  }
  func.func @transform_3(%arg0: i32, %arg1: i32, %arg2: i32) -> (i32, i32, i32) {
    %c0_i32 = arith.constant 0 : i32
    %c0_i32_0 = arith.constant 0 : i32
    return %arg0, %c0_i32, %arg1 : i32, i32, i32
  }
  func.func @transform_4(%arg0: i32, %arg1: i32, %arg2: i32) -> (i32, i32, i32) {
    %c0_i32 = arith.constant 0 : i32
    %c0_i32_0 = arith.constant 0 : i32
    return %arg0, %c0_i32, %arg1 : i32, i32, i32
  }
}

module attributes {stable_mosaic.version = 11 : i64} {
  func.func @_mm_stats_kernel(%arg0: i32, %arg1: i32, %arg2: i32, %arg3: memref<32x512xbf16, #tpu.memory_space<vmem>>, %arg4: memref<512x128xbf16, #tpu.memory_space<vmem>>, %arg5: memref<32x128xbf16, #tpu.memory_space<vmem>>, %arg6: memref<1x8x128xf32, #tpu.memory_space<vmem>>, %arg7: memref<1x8x128xf32, #tpu.memory_space<vmem>>, %arg8: memref<32x128xf32, #tpu.memory_space<vmem>>) attributes {dimension_semantics = [#tpu.dimension_semantics<parallel>, #tpu.dimension_semantics<parallel>, #tpu.dimension_semantics<arbitrary>], iteration_bounds = array<i64: 1, 1, 2>, scalar_prefetch = 0 : i64, scratch_operands = 1 : i64, tpu.core_type = #tpu.core_type<tc>, window_params = [{transform_indices = @transform_0, window_bounds = array<i64: 32, 512>}, {transform_indices = @transform_1, window_bounds = array<i64: 512, 128>}, {transform_indices = @transform_2, window_bounds = array<i64: 32, 128>}, {transform_indices = @transform_3, window_bounds = array<i64: 1, 8, 128>}, {transform_indices = @transform_4, window_bounds = array<i64: 1, 8, 128>}]} {
    %c0_i32 = arith.constant 0 : i32
    %0 = arith.cmpi eq, %arg2, %c0_i32 : i32
    %1 = arith.extui %0 : i1 to i32
    %c0_i32_0 = arith.constant 0 : i32
    %2 = arith.cmpi ne, %1, %c0_i32_0 : i32
    scf.if %2 {
      %cst_9 = arith.constant 0.000000e+00 : f32
      %12 = vector.broadcast %cst_9 : f32 to vector<32x128xf32>
      %c0_10 = arith.constant 0 : index
      %c0_11 = arith.constant 0 : index
      %13 = vector.load %arg8[%c0_10, %c0_11] : memref<32x128xf32, #tpu.memory_space<vmem>>, vector<32x128xf32>
      tpu.vector_store %arg8[%c0_10, %c0_11], %12 {strides = array<i32>} : memref<32x128xf32, #tpu.memory_space<vmem>>, vector<32x128xf32>,
    } else {
    }
    %c0 = arith.constant 0 : index
    %c0_1 = arith.constant 0 : index
    %3 = vector.load %arg8[%c0, %c0_1] : memref<32x128xf32, #tpu.memory_space<vmem>>, vector<32x128xf32>
    %c0_2 = arith.constant 0 : index
    %c0_3 = arith.constant 0 : index
    %4 = vector.load %arg3[%c0_2, %c0_3] : memref<32x512xbf16, #tpu.memory_space<vmem>>, vector<32x512xbf16>
    %c0_4 = arith.constant 0 : index
    %c0_5 = arith.constant 0 : index
    %5 = vector.load %arg4[%c0_4, %c0_5] : memref<512x128xbf16, #tpu.memory_space<vmem>>, vector<512x128xbf16>
    %cst = arith.constant dense<0.000000e+00> : vector<32x128xf32>
    %6 = tpu.matmul %4, %5, %cst {dimension_numbers = #tpu.dot_dimension_numbers<[1], [0], [0], [1], [0, 0, 1, 1], [], []>} : vector<32x512xbf16>, vector<512x128xbf16>, vector<32x128xf32> -> vector<32x128xf32>
    %7 = arith.addf %3, %6 : vector<32x128xf32>
    %c0_6 = arith.constant 0 : index
    %c0_7 = arith.constant 0 : index
    %8 = vector.load %arg8[%c0_6, %c0_7] : memref<32x128xf32, #tpu.memory_space<vmem>>, vector<32x128xf32>
    tpu.vector_store %arg8[%c0_6, %c0_7], %7 {strides = array<i32>} : memref<32x128xf32, #tpu.memory_space<vmem>>, vector<32x128xf32>,
    %c1_i32 = arith.constant 1 : i32
    %9 = arith.cmpi eq, %arg2, %c1_i32 : i32
    %10 = arith.extui %9 : i1 to i32
    %c0_i32_8 = arith.constant 0 : i32
    %11 = arith.cmpi ne, %10, %c0_i32_8 : i32
    scf.if %11 {
      %c0_9 = arith.constant 0 : index
      %c0_10 = arith.constant 0 : index
      %12 = vector.load %arg8[%c0_9, %c0_10] : memref<32x128xf32, #tpu.memory_space<vmem>>, vector<32x128xf32>
      %13 = arith.truncf %12 : vector<32x128xf32> to vector<32x128xbf16>
      %c0_11 = arith.constant 0 : index
      %c0_12 = arith.constant 0 : index
      %14 = vector.load %arg5[%c0_11, %c0_12] : memref<32x128xbf16, #tpu.memory_space<vmem>>, vector<32x128xbf16>
      tpu.vector_store %arg5[%c0_11, %c0_12], %13 {strides = array<i32>} : memref<32x128xbf16, #tpu.memory_space<vmem>>, vector<32x128xbf16>,
      %cst_13 = arith.constant dense<0.000000e+00> : vector<128xf32>
      %15 = vector.multi_reduction <add>, %12, %cst_13 [0] : vector<32x128xf32> to vector<128xf32>
      %16 = vector.shape_cast %15 : vector<128xf32> to vector<1x128xf32>
      %17 = arith.mulf %12, %12 : vector<32x128xf32>
      %cst_14 = arith.constant dense<0.000000e+00> : vector<128xf32>
      %18 = vector.multi_reduction <add>, %17, %cst_14 [0] : vector<32x128xf32> to vector<128xf32>
      %19 = vector.shape_cast %18 : vector<128xf32> to vector<1x128xf32>
      %20 = vector.shape_cast %16 : vector<1x128xf32> to vector<1x128xf32>
      %21 = vector.broadcast %20 : vector<1x128xf32> to vector<8x128xf32>
      %c0_15 = arith.constant 0 : index
      %c0_16 = arith.constant 0 : index
      %c0_17 = arith.constant 0 : index
      %22 = vector.load %arg6[%c0_15, %c0_16, %c0_17] : memref<1x8x128xf32, #tpu.memory_space<vmem>>, vector<1x8x128xf32>
      %23 = vector.shape_cast %22 : vector<1x8x128xf32> to vector<8x128xf32>
      %24 = vector.shape_cast %21 : vector<8x128xf32> to vector<1x8x128xf32>
      tpu.vector_store %arg6[%c0_15, %c0_16, %c0_17], %24 {strides = array<i32>} : memref<1x8x128xf32, #tpu.memory_space<vmem>>, vector<1x8x128xf32>,
      %25 = vector.shape_cast %19 : vector<1x128xf32> to vector<1x128xf32>
      %26 = vector.broadcast %25 : vector<1x128xf32> to vector<8x128xf32>
      %c0_18 = arith.constant 0 : index
      %c0_19 = arith.constant 0 : index
      %c0_20 = arith.constant 0 : index
      %27 = vector.load %arg7[%c0_18, %c0_19, %c0_20] : memref<1x8x128xf32, #tpu.memory_space<vmem>>, vector<1x8x128xf32>
      %28 = vector.shape_cast %27 : vector<1x8x128xf32> to vector<8x128xf32>
      %29 = vector.shape_cast %26 : vector<8x128xf32> to vector<1x8x128xf32>
      tpu.vector_store %arg7[%c0_18, %c0_19, %c0_20], %29 {strides = array<i32>} : memref<1x8x128xf32, #tpu.memory_space<vmem>>, vector<1x8x128xf32>,
    } else {
    }
    return
  }
  func.func @transform_0(%arg0: i32, %arg1: i32, %arg2: i32) -> (i32, i32) {
    %c0_i32 = arith.constant 0 : i32
    return %arg0, %arg2 : i32, i32
  }
  func.func @transform_1(%arg0: i32, %arg1: i32, %arg2: i32) -> (i32, i32) {
    %c0_i32 = arith.constant 0 : i32
    return %arg2, %arg1 : i32, i32
  }
  func.func @transform_2(%arg0: i32, %arg1: i32, %arg2: i32) -> (i32, i32) {
    %c0_i32 = arith.constant 0 : i32
    return %arg0, %arg1 : i32, i32
  }
  func.func @transform_3(%arg0: i32, %arg1: i32, %arg2: i32) -> (i32, i32, i32) {
    %c0_i32 = arith.constant 0 : i32
    %c0_i32_0 = arith.constant 0 : i32
    return %arg0, %c0_i32, %arg1 : i32, i32, i32
  }
  func.func @transform_4(%arg0: i32, %arg1: i32, %arg2: i32) -> (i32, i32, i32) {
    %c0_i32 = arith.constant 0 : i32
    %c0_i32_0 = arith.constant 0 : i32
    return %arg0, %c0_i32, %arg1 : i32, i32, i32
  }
}

module attributes {stable_mosaic.version = 11 : i64} {
  func.func @_bn_act_kernel(%arg0: i32, %arg1: memref<32x128xbf16, #tpu.memory_space<vmem>>, %arg2: memref<1x128xf32, #tpu.memory_space<vmem>>, %arg3: memref<1x128xf32, #tpu.memory_space<vmem>>, %arg4: memref<32x128xbf16, #tpu.memory_space<vmem>>, %arg5: memref<32x128xbf16, #tpu.memory_space<vmem>>) attributes {dimension_semantics = [#tpu.dimension_semantics<parallel>], iteration_bounds = array<i64: 1>, scalar_prefetch = 0 : i64, scratch_operands = 0 : i64, tpu.core_type = #tpu.core_type<tc>, window_params = [{transform_indices = @transform_0, window_bounds = array<i64: 32, 128>}, {pipeline_mode = #tpu.pipeline_mode<synchronous>, transform_indices = @transform_1, window_bounds = array<i64: 1, 128>}, {pipeline_mode = #tpu.pipeline_mode<synchronous>, transform_indices = @transform_2, window_bounds = array<i64: 1, 128>}, {transform_indices = @transform_3, window_bounds = array<i64: 32, 128>}, {transform_indices = @transform_4, window_bounds = array<i64: 32, 128>}]} {
    %c0 = arith.constant 0 : index
    %c0_0 = arith.constant 0 : index
    %0 = vector.load %arg1[%c0, %c0_0] : memref<32x128xbf16, #tpu.memory_space<vmem>>, vector<32x128xbf16>
    %1 = arith.extf %0 : vector<32x128xbf16> to vector<32x128xf32>
    %c0_1 = arith.constant 0 : index
    %c0_2 = arith.constant 0 : index
    %2 = vector.load %arg2[%c0_1, %c0_2] : memref<1x128xf32, #tpu.memory_space<vmem>>, vector<1x128xf32>
    %3 = vector.broadcast %2 : vector<1x128xf32> to vector<32x128xf32>
    %4 = arith.mulf %1, %3 : vector<32x128xf32>
    %c0_3 = arith.constant 0 : index
    %c0_4 = arith.constant 0 : index
    %5 = vector.load %arg3[%c0_3, %c0_4] : memref<1x128xf32, #tpu.memory_space<vmem>>, vector<1x128xf32>
    %6 = vector.broadcast %5 : vector<1x128xf32> to vector<32x128xf32>
    %7 = arith.addf %4, %6 : vector<32x128xf32>
    %c0_5 = arith.constant 0 : index
    %c0_6 = arith.constant 0 : index
    %8 = vector.load %arg4[%c0_5, %c0_6] : memref<32x128xbf16, #tpu.memory_space<vmem>>, vector<32x128xbf16>
    %9 = arith.extf %8 : vector<32x128xbf16> to vector<32x128xf32>
    %10 = arith.addf %7, %9 : vector<32x128xf32>
    %cst = arith.constant 0.000000e+00 : f32
    %11 = vector.broadcast %cst : f32 to vector<32x128xf32>
    %12 = arith.maximumf %10, %11 : vector<32x128xf32>
    %13 = arith.truncf %12 : vector<32x128xf32> to vector<32x128xbf16>
    %c0_7 = arith.constant 0 : index
    %c0_8 = arith.constant 0 : index
    %14 = vector.load %arg5[%c0_7, %c0_8] : memref<32x128xbf16, #tpu.memory_space<vmem>>, vector<32x128xbf16>
    tpu.vector_store %arg5[%c0_7, %c0_8], %13 {strides = array<i32>} : memref<32x128xbf16, #tpu.memory_space<vmem>>, vector<32x128xbf16>,
    return
  }
  func.func @transform_0(%arg0: i32) -> (i32, i32) {
    %c0_i32 = arith.constant 0 : i32
    %c0_i32_0 = arith.constant 0 : i32
    return %arg0, %c0_i32 : i32, i32
  }
  func.func @transform_1(%arg0: i32) -> (i32, i32) {
    %c0_i32 = arith.constant 0 : i32
    %c0_i32_0 = arith.constant 0 : i32
    %c0_i32_1 = arith.constant 0 : i32
    return %c0_i32, %c0_i32_0 : i32, i32
  }
  func.func @transform_2(%arg0: i32) -> (i32, i32) {
    %c0_i32 = arith.constant 0 : i32
    %c0_i32_0 = arith.constant 0 : i32
    %c0_i32_1 = arith.constant 0 : i32
    return %c0_i32, %c0_i32_0 : i32, i32
  }
  func.func @transform_3(%arg0: i32) -> (i32, i32) {
    %c0_i32 = arith.constant 0 : i32
    %c0_i32_0 = arith.constant 0 : i32
    return %arg0, %c0_i32 : i32, i32
  }
  func.func @transform_4(%arg0: i32) -> (i32, i32) {
    %c0_i32 = arith.constant 0 : i32
    %c0_i32_0 = arith.constant 0 : i32
    return %arg0, %c0_i32 : i32, i32
  }
}

module attributes {stable_mosaic.version = 11 : i64} {
  func.func @_bn_act_kernel(%arg0: i32, %arg1: memref<32x128xbf16, #tpu.memory_space<vmem>>, %arg2: memref<1x128xf32, #tpu.memory_space<vmem>>, %arg3: memref<1x128xf32, #tpu.memory_space<vmem>>, %arg4: memref<32x128xbf16, #tpu.memory_space<vmem>>) attributes {dimension_semantics = [#tpu.dimension_semantics<parallel>], iteration_bounds = array<i64: 1>, scalar_prefetch = 0 : i64, scratch_operands = 0 : i64, tpu.core_type = #tpu.core_type<tc>, window_params = [{transform_indices = @transform_0, window_bounds = array<i64: 32, 128>}, {pipeline_mode = #tpu.pipeline_mode<synchronous>, transform_indices = @transform_1, window_bounds = array<i64: 1, 128>}, {pipeline_mode = #tpu.pipeline_mode<synchronous>, transform_indices = @transform_2, window_bounds = array<i64: 1, 128>}, {transform_indices = @transform_3, window_bounds = array<i64: 32, 128>}]} {
    %c0 = arith.constant 0 : index
    %c0_0 = arith.constant 0 : index
    %0 = vector.load %arg1[%c0, %c0_0] : memref<32x128xbf16, #tpu.memory_space<vmem>>, vector<32x128xbf16>
    %1 = arith.extf %0 : vector<32x128xbf16> to vector<32x128xf32>
    %c0_1 = arith.constant 0 : index
    %c0_2 = arith.constant 0 : index
    %2 = vector.load %arg2[%c0_1, %c0_2] : memref<1x128xf32, #tpu.memory_space<vmem>>, vector<1x128xf32>
    %3 = vector.broadcast %2 : vector<1x128xf32> to vector<32x128xf32>
    %4 = arith.mulf %1, %3 : vector<32x128xf32>
    %c0_3 = arith.constant 0 : index
    %c0_4 = arith.constant 0 : index
    %5 = vector.load %arg3[%c0_3, %c0_4] : memref<1x128xf32, #tpu.memory_space<vmem>>, vector<1x128xf32>
    %6 = vector.broadcast %5 : vector<1x128xf32> to vector<32x128xf32>
    %7 = arith.addf %4, %6 : vector<32x128xf32>
    %cst = arith.constant 0.000000e+00 : f32
    %8 = vector.broadcast %cst : f32 to vector<32x128xf32>
    %9 = arith.maximumf %7, %8 : vector<32x128xf32>
    %10 = arith.truncf %9 : vector<32x128xf32> to vector<32x128xbf16>
    %c0_5 = arith.constant 0 : index
    %c0_6 = arith.constant 0 : index
    %11 = vector.load %arg4[%c0_5, %c0_6] : memref<32x128xbf16, #tpu.memory_space<vmem>>, vector<32x128xbf16>
    tpu.vector_store %arg4[%c0_5, %c0_6], %10 {strides = array<i32>} : memref<32x128xbf16, #tpu.memory_space<vmem>>, vector<32x128xbf16>,
    return
  }
  func.func @transform_0(%arg0: i32) -> (i32, i32) {
    %c0_i32 = arith.constant 0 : i32
    %c0_i32_0 = arith.constant 0 : i32
    return %arg0, %c0_i32 : i32, i32
  }
  func.func @transform_1(%arg0: i32) -> (i32, i32) {
    %c0_i32 = arith.constant 0 : i32
    %c0_i32_0 = arith.constant 0 : i32
    %c0_i32_1 = arith.constant 0 : i32
    return %c0_i32, %c0_i32_0 : i32, i32
  }
  func.func @transform_2(%arg0: i32) -> (i32, i32) {
    %c0_i32 = arith.constant 0 : i32
    %c0_i32_0 = arith.constant 0 : i32
    %c0_i32_1 = arith.constant 0 : i32
    return %c0_i32, %c0_i32_0 : i32, i32
  }
  func.func @transform_3(%arg0: i32) -> (i32, i32) {
    %c0_i32 = arith.constant 0 : i32
    %c0_i32_0 = arith.constant 0 : i32
    return %arg0, %c0_i32 : i32, i32
  }
}

module attributes {stable_mosaic.version = 11 : i64} {
  func.func @_bn_act_kernel(%arg0: i32, %arg1: memref<16x128xbf16, #tpu.memory_space<vmem>>, %arg2: memref<1x128xf32, #tpu.memory_space<vmem>>, %arg3: memref<1x128xf32, #tpu.memory_space<vmem>>, %arg4: memref<16x128xbf16, #tpu.memory_space<vmem>>) attributes {dimension_semantics = [#tpu.dimension_semantics<parallel>], iteration_bounds = array<i64: 1>, scalar_prefetch = 0 : i64, scratch_operands = 0 : i64, tpu.core_type = #tpu.core_type<tc>, window_params = [{transform_indices = @transform_0, window_bounds = array<i64: 16, 128>}, {pipeline_mode = #tpu.pipeline_mode<synchronous>, transform_indices = @transform_1, window_bounds = array<i64: 1, 128>}, {pipeline_mode = #tpu.pipeline_mode<synchronous>, transform_indices = @transform_2, window_bounds = array<i64: 1, 128>}, {transform_indices = @transform_3, window_bounds = array<i64: 16, 128>}]} {
    %c0 = arith.constant 0 : index
    %c0_0 = arith.constant 0 : index
    %0 = vector.load %arg1[%c0, %c0_0] : memref<16x128xbf16, #tpu.memory_space<vmem>>, vector<16x128xbf16>
    %1 = arith.extf %0 : vector<16x128xbf16> to vector<16x128xf32>
    %c0_1 = arith.constant 0 : index
    %c0_2 = arith.constant 0 : index
    %2 = vector.load %arg2[%c0_1, %c0_2] : memref<1x128xf32, #tpu.memory_space<vmem>>, vector<1x128xf32>
    %3 = vector.broadcast %2 : vector<1x128xf32> to vector<16x128xf32>
    %4 = arith.mulf %1, %3 : vector<16x128xf32>
    %c0_3 = arith.constant 0 : index
    %c0_4 = arith.constant 0 : index
    %5 = vector.load %arg3[%c0_3, %c0_4] : memref<1x128xf32, #tpu.memory_space<vmem>>, vector<1x128xf32>
    %6 = vector.broadcast %5 : vector<1x128xf32> to vector<16x128xf32>
    %7 = arith.addf %4, %6 : vector<16x128xf32>
    %8 = arith.truncf %7 : vector<16x128xf32> to vector<16x128xbf16>
    %c0_5 = arith.constant 0 : index
    %c0_6 = arith.constant 0 : index
    %9 = vector.load %arg4[%c0_5, %c0_6] : memref<16x128xbf16, #tpu.memory_space<vmem>>, vector<16x128xbf16>
    tpu.vector_store %arg4[%c0_5, %c0_6], %8 {strides = array<i32>} : memref<16x128xbf16, #tpu.memory_space<vmem>>, vector<16x128xbf16>,
    return
  }
  func.func @transform_0(%arg0: i32) -> (i32, i32) {
    %c0_i32 = arith.constant 0 : i32
    %c0_i32_0 = arith.constant 0 : i32
    return %arg0, %c0_i32 : i32, i32
  }
  func.func @transform_1(%arg0: i32) -> (i32, i32) {
    %c0_i32 = arith.constant 0 : i32
    %c0_i32_0 = arith.constant 0 : i32
    %c0_i32_1 = arith.constant 0 : i32
    return %c0_i32, %c0_i32_0 : i32, i32
  }
  func.func @transform_2(%arg0: i32) -> (i32, i32) {
    %c0_i32 = arith.constant 0 : i32
    %c0_i32_0 = arith.constant 0 : i32
    %c0_i32_1 = arith.constant 0 : i32
    return %c0_i32, %c0_i32_0 : i32, i32
  }
  func.func @transform_3(%arg0: i32) -> (i32, i32) {
    %c0_i32 = arith.constant 0 : i32
    %c0_i32_0 = arith.constant 0 : i32
    return %arg0, %c0_i32 : i32, i32
  }
}

module attributes {stable_mosaic.version = 11 : i64} {
  func.func @_mm_stats_kernel(%arg0: i32, %arg1: i32, %arg2: i32, %arg3: memref<16x128xbf16, #tpu.memory_space<vmem>>, %arg4: memref<128x128xbf16, #tpu.memory_space<vmem>>, %arg5: memref<16x128xbf16, #tpu.memory_space<vmem>>, %arg6: memref<1x8x128xf32, #tpu.memory_space<vmem>>, %arg7: memref<1x8x128xf32, #tpu.memory_space<vmem>>, %arg8: memref<16x128xf32, #tpu.memory_space<vmem>>) attributes {dimension_semantics = [#tpu.dimension_semantics<parallel>, #tpu.dimension_semantics<parallel>, #tpu.dimension_semantics<arbitrary>], iteration_bounds = array<i64: 1, 1, 1>, scalar_prefetch = 0 : i64, scratch_operands = 1 : i64, tpu.core_type = #tpu.core_type<tc>, window_params = [{transform_indices = @transform_0, window_bounds = array<i64: 16, 128>}, {transform_indices = @transform_1, window_bounds = array<i64: 128, 128>}, {transform_indices = @transform_2, window_bounds = array<i64: 16, 128>}, {transform_indices = @transform_3, window_bounds = array<i64: 1, 8, 128>}, {transform_indices = @transform_4, window_bounds = array<i64: 1, 8, 128>}]} {
    %c0_i32 = arith.constant 0 : i32
    %0 = arith.cmpi eq, %arg2, %c0_i32 : i32
    %1 = arith.extui %0 : i1 to i32
    %c0_i32_0 = arith.constant 0 : i32
    %2 = arith.cmpi ne, %1, %c0_i32_0 : i32
    scf.if %2 {
      %cst_10 = arith.constant 0.000000e+00 : f32
      %12 = vector.broadcast %cst_10 : f32 to vector<16x128xf32>
      %c0_11 = arith.constant 0 : index
      %c0_12 = arith.constant 0 : index
      %13 = vector.load %arg8[%c0_11, %c0_12] : memref<16x128xf32, #tpu.memory_space<vmem>>, vector<16x128xf32>
      tpu.vector_store %arg8[%c0_11, %c0_12], %12 {strides = array<i32>} : memref<16x128xf32, #tpu.memory_space<vmem>>, vector<16x128xf32>,
    } else {
    }
    %c0 = arith.constant 0 : index
    %c0_1 = arith.constant 0 : index
    %3 = vector.load %arg8[%c0, %c0_1] : memref<16x128xf32, #tpu.memory_space<vmem>>, vector<16x128xf32>
    %c0_2 = arith.constant 0 : index
    %c0_3 = arith.constant 0 : index
    %4 = vector.load %arg3[%c0_2, %c0_3] : memref<16x128xbf16, #tpu.memory_space<vmem>>, vector<16x128xbf16>
    %c0_4 = arith.constant 0 : index
    %c0_5 = arith.constant 0 : index
    %5 = vector.load %arg4[%c0_4, %c0_5] : memref<128x128xbf16, #tpu.memory_space<vmem>>, vector<128x128xbf16>
    %cst = arith.constant dense<0.000000e+00> : vector<16x128xf32>
    %6 = tpu.matmul %4, %5, %cst {dimension_numbers = #tpu.dot_dimension_numbers<[1], [0], [0], [1], [0, 0, 1, 1], [], []>} : vector<16x128xbf16>, vector<128x128xbf16>, vector<16x128xf32> -> vector<16x128xf32>
    %7 = arith.addf %3, %6 : vector<16x128xf32>
    %c0_6 = arith.constant 0 : index
    %c0_7 = arith.constant 0 : index
    %8 = vector.load %arg8[%c0_6, %c0_7] : memref<16x128xf32, #tpu.memory_space<vmem>>, vector<16x128xf32>
    tpu.vector_store %arg8[%c0_6, %c0_7], %7 {strides = array<i32>} : memref<16x128xf32, #tpu.memory_space<vmem>>, vector<16x128xf32>,
    %c0_i32_8 = arith.constant 0 : i32
    %9 = arith.cmpi eq, %arg2, %c0_i32_8 : i32
    %10 = arith.extui %9 : i1 to i32
    %c0_i32_9 = arith.constant 0 : i32
    %11 = arith.cmpi ne, %10, %c0_i32_9 : i32
    scf.if %11 {
      %c0_10 = arith.constant 0 : index
      %c0_11 = arith.constant 0 : index
      %12 = vector.load %arg8[%c0_10, %c0_11] : memref<16x128xf32, #tpu.memory_space<vmem>>, vector<16x128xf32>
      %13 = arith.truncf %12 : vector<16x128xf32> to vector<16x128xbf16>
      %c0_12 = arith.constant 0 : index
      %c0_13 = arith.constant 0 : index
      %14 = vector.load %arg5[%c0_12, %c0_13] : memref<16x128xbf16, #tpu.memory_space<vmem>>, vector<16x128xbf16>
      tpu.vector_store %arg5[%c0_12, %c0_13], %13 {strides = array<i32>} : memref<16x128xbf16, #tpu.memory_space<vmem>>, vector<16x128xbf16>,
      %cst_14 = arith.constant dense<0.000000e+00> : vector<128xf32>
      %15 = vector.multi_reduction <add>, %12, %cst_14 [0] : vector<16x128xf32> to vector<128xf32>
      %16 = vector.shape_cast %15 : vector<128xf32> to vector<1x128xf32>
      %17 = arith.mulf %12, %12 : vector<16x128xf32>
      %cst_15 = arith.constant dense<0.000000e+00> : vector<128xf32>
      %18 = vector.multi_reduction <add>, %17, %cst_15 [0] : vector<16x128xf32> to vector<128xf32>
      %19 = vector.shape_cast %18 : vector<128xf32> to vector<1x128xf32>
      %20 = vector.shape_cast %16 : vector<1x128xf32> to vector<1x128xf32>
      %21 = vector.broadcast %20 : vector<1x128xf32> to vector<8x128xf32>
      %c0_16 = arith.constant 0 : index
      %c0_17 = arith.constant 0 : index
      %c0_18 = arith.constant 0 : index
      %22 = vector.load %arg6[%c0_16, %c0_17, %c0_18] : memref<1x8x128xf32, #tpu.memory_space<vmem>>, vector<1x8x128xf32>
      %23 = vector.shape_cast %22 : vector<1x8x128xf32> to vector<8x128xf32>
      %24 = vector.shape_cast %21 : vector<8x128xf32> to vector<1x8x128xf32>
      tpu.vector_store %arg6[%c0_16, %c0_17, %c0_18], %24 {strides = array<i32>} : memref<1x8x128xf32, #tpu.memory_space<vmem>>, vector<1x8x128xf32>,
      %25 = vector.shape_cast %19 : vector<1x128xf32> to vector<1x128xf32>
      %26 = vector.broadcast %25 : vector<1x128xf32> to vector<8x128xf32>
      %c0_19 = arith.constant 0 : index
      %c0_20 = arith.constant 0 : index
      %c0_21 = arith.constant 0 : index
      %27 = vector.load %arg7[%c0_19, %c0_20, %c0_21] : memref<1x8x128xf32, #tpu.memory_space<vmem>>, vector<1x8x128xf32>
      %28 = vector.shape_cast %27 : vector<1x8x128xf32> to vector<8x128xf32>
      %29 = vector.shape_cast %26 : vector<8x128xf32> to vector<1x8x128xf32>
      tpu.vector_store %arg7[%c0_19, %c0_20, %c0_21], %29 {strides = array<i32>} : memref<1x8x128xf32, #tpu.memory_space<vmem>>, vector<1x8x128xf32>,
    } else {
    }
    return
  }
  func.func @transform_0(%arg0: i32, %arg1: i32, %arg2: i32) -> (i32, i32) {
    %c0_i32 = arith.constant 0 : i32
    return %arg0, %arg2 : i32, i32
  }
  func.func @transform_1(%arg0: i32, %arg1: i32, %arg2: i32) -> (i32, i32) {
    %c0_i32 = arith.constant 0 : i32
    return %arg2, %arg1 : i32, i32
  }
  func.func @transform_2(%arg0: i32, %arg1: i32, %arg2: i32) -> (i32, i32) {
    %c0_i32 = arith.constant 0 : i32
    return %arg0, %arg1 : i32, i32
  }
  func.func @transform_3(%arg0: i32, %arg1: i32, %arg2: i32) -> (i32, i32, i32) {
    %c0_i32 = arith.constant 0 : i32
    %c0_i32_0 = arith.constant 0 : i32
    return %arg0, %c0_i32, %arg1 : i32, i32, i32
  }
  func.func @transform_4(%arg0: i32, %arg1: i32, %arg2: i32) -> (i32, i32, i32) {
    %c0_i32 = arith.constant 0 : i32
    %c0_i32_0 = arith.constant 0 : i32
    return %arg0, %c0_i32, %arg1 : i32, i32, i32
  }
}

module attributes {stable_mosaic.version = 11 : i64} {
  func.func @_mm_stats_kernel(%arg0: i32, %arg1: i32, %arg2: i32, %arg3: memref<16x512xbf16, #tpu.memory_space<vmem>>, %arg4: memref<512x128xbf16, #tpu.memory_space<vmem>>, %arg5: memref<16x128xbf16, #tpu.memory_space<vmem>>, %arg6: memref<1x8x128xf32, #tpu.memory_space<vmem>>, %arg7: memref<1x8x128xf32, #tpu.memory_space<vmem>>, %arg8: memref<16x128xf32, #tpu.memory_space<vmem>>) attributes {dimension_semantics = [#tpu.dimension_semantics<parallel>, #tpu.dimension_semantics<parallel>, #tpu.dimension_semantics<arbitrary>], iteration_bounds = array<i64: 1, 1, 2>, scalar_prefetch = 0 : i64, scratch_operands = 1 : i64, tpu.core_type = #tpu.core_type<tc>, window_params = [{transform_indices = @transform_0, window_bounds = array<i64: 16, 512>}, {transform_indices = @transform_1, window_bounds = array<i64: 512, 128>}, {transform_indices = @transform_2, window_bounds = array<i64: 16, 128>}, {transform_indices = @transform_3, window_bounds = array<i64: 1, 8, 128>}, {transform_indices = @transform_4, window_bounds = array<i64: 1, 8, 128>}]} {
    %c0_i32 = arith.constant 0 : i32
    %0 = arith.cmpi eq, %arg2, %c0_i32 : i32
    %1 = arith.extui %0 : i1 to i32
    %c0_i32_0 = arith.constant 0 : i32
    %2 = arith.cmpi ne, %1, %c0_i32_0 : i32
    scf.if %2 {
      %cst_9 = arith.constant 0.000000e+00 : f32
      %12 = vector.broadcast %cst_9 : f32 to vector<16x128xf32>
      %c0_10 = arith.constant 0 : index
      %c0_11 = arith.constant 0 : index
      %13 = vector.load %arg8[%c0_10, %c0_11] : memref<16x128xf32, #tpu.memory_space<vmem>>, vector<16x128xf32>
      tpu.vector_store %arg8[%c0_10, %c0_11], %12 {strides = array<i32>} : memref<16x128xf32, #tpu.memory_space<vmem>>, vector<16x128xf32>,
    } else {
    }
    %c0 = arith.constant 0 : index
    %c0_1 = arith.constant 0 : index
    %3 = vector.load %arg8[%c0, %c0_1] : memref<16x128xf32, #tpu.memory_space<vmem>>, vector<16x128xf32>
    %c0_2 = arith.constant 0 : index
    %c0_3 = arith.constant 0 : index
    %4 = vector.load %arg3[%c0_2, %c0_3] : memref<16x512xbf16, #tpu.memory_space<vmem>>, vector<16x512xbf16>
    %c0_4 = arith.constant 0 : index
    %c0_5 = arith.constant 0 : index
    %5 = vector.load %arg4[%c0_4, %c0_5] : memref<512x128xbf16, #tpu.memory_space<vmem>>, vector<512x128xbf16>
    %cst = arith.constant dense<0.000000e+00> : vector<16x128xf32>
    %6 = tpu.matmul %4, %5, %cst {dimension_numbers = #tpu.dot_dimension_numbers<[1], [0], [0], [1], [0, 0, 1, 1], [], []>} : vector<16x512xbf16>, vector<512x128xbf16>, vector<16x128xf32> -> vector<16x128xf32>
    %7 = arith.addf %3, %6 : vector<16x128xf32>
    %c0_6 = arith.constant 0 : index
    %c0_7 = arith.constant 0 : index
    %8 = vector.load %arg8[%c0_6, %c0_7] : memref<16x128xf32, #tpu.memory_space<vmem>>, vector<16x128xf32>
    tpu.vector_store %arg8[%c0_6, %c0_7], %7 {strides = array<i32>} : memref<16x128xf32, #tpu.memory_space<vmem>>, vector<16x128xf32>,
    %c1_i32 = arith.constant 1 : i32
    %9 = arith.cmpi eq, %arg2, %c1_i32 : i32
    %10 = arith.extui %9 : i1 to i32
    %c0_i32_8 = arith.constant 0 : i32
    %11 = arith.cmpi ne, %10, %c0_i32_8 : i32
    scf.if %11 {
      %c0_9 = arith.constant 0 : index
      %c0_10 = arith.constant 0 : index
      %12 = vector.load %arg8[%c0_9, %c0_10] : memref<16x128xf32, #tpu.memory_space<vmem>>, vector<16x128xf32>
      %13 = arith.truncf %12 : vector<16x128xf32> to vector<16x128xbf16>
      %c0_11 = arith.constant 0 : index
      %c0_12 = arith.constant 0 : index
      %14 = vector.load %arg5[%c0_11, %c0_12] : memref<16x128xbf16, #tpu.memory_space<vmem>>, vector<16x128xbf16>
      tpu.vector_store %arg5[%c0_11, %c0_12], %13 {strides = array<i32>} : memref<16x128xbf16, #tpu.memory_space<vmem>>, vector<16x128xbf16>,
      %cst_13 = arith.constant dense<0.000000e+00> : vector<128xf32>
      %15 = vector.multi_reduction <add>, %12, %cst_13 [0] : vector<16x128xf32> to vector<128xf32>
      %16 = vector.shape_cast %15 : vector<128xf32> to vector<1x128xf32>
      %17 = arith.mulf %12, %12 : vector<16x128xf32>
      %cst_14 = arith.constant dense<0.000000e+00> : vector<128xf32>
      %18 = vector.multi_reduction <add>, %17, %cst_14 [0] : vector<16x128xf32> to vector<128xf32>
      %19 = vector.shape_cast %18 : vector<128xf32> to vector<1x128xf32>
      %20 = vector.shape_cast %16 : vector<1x128xf32> to vector<1x128xf32>
      %21 = vector.broadcast %20 : vector<1x128xf32> to vector<8x128xf32>
      %c0_15 = arith.constant 0 : index
      %c0_16 = arith.constant 0 : index
      %c0_17 = arith.constant 0 : index
      %22 = vector.load %arg6[%c0_15, %c0_16, %c0_17] : memref<1x8x128xf32, #tpu.memory_space<vmem>>, vector<1x8x128xf32>
      %23 = vector.shape_cast %22 : vector<1x8x128xf32> to vector<8x128xf32>
      %24 = vector.shape_cast %21 : vector<8x128xf32> to vector<1x8x128xf32>
      tpu.vector_store %arg6[%c0_15, %c0_16, %c0_17], %24 {strides = array<i32>} : memref<1x8x128xf32, #tpu.memory_space<vmem>>, vector<1x8x128xf32>,
      %25 = vector.shape_cast %19 : vector<1x128xf32> to vector<1x128xf32>
      %26 = vector.broadcast %25 : vector<1x128xf32> to vector<8x128xf32>
      %c0_18 = arith.constant 0 : index
      %c0_19 = arith.constant 0 : index
      %c0_20 = arith.constant 0 : index
      %27 = vector.load %arg7[%c0_18, %c0_19, %c0_20] : memref<1x8x128xf32, #tpu.memory_space<vmem>>, vector<1x8x128xf32>
      %28 = vector.shape_cast %27 : vector<1x8x128xf32> to vector<8x128xf32>
      %29 = vector.shape_cast %26 : vector<8x128xf32> to vector<1x8x128xf32>
      tpu.vector_store %arg7[%c0_18, %c0_19, %c0_20], %29 {strides = array<i32>} : memref<1x8x128xf32, #tpu.memory_space<vmem>>, vector<1x8x128xf32>,
    } else {
    }
    return
  }
  func.func @transform_0(%arg0: i32, %arg1: i32, %arg2: i32) -> (i32, i32) {
    %c0_i32 = arith.constant 0 : i32
    return %arg0, %arg2 : i32, i32
  }
  func.func @transform_1(%arg0: i32, %arg1: i32, %arg2: i32) -> (i32, i32) {
    %c0_i32 = arith.constant 0 : i32
    return %arg2, %arg1 : i32, i32
  }
  func.func @transform_2(%arg0: i32, %arg1: i32, %arg2: i32) -> (i32, i32) {
    %c0_i32 = arith.constant 0 : i32
    return %arg0, %arg1 : i32, i32
  }
  func.func @transform_3(%arg0: i32, %arg1: i32, %arg2: i32) -> (i32, i32, i32) {
    %c0_i32 = arith.constant 0 : i32
    %c0_i32_0 = arith.constant 0 : i32
    return %arg0, %c0_i32, %arg1 : i32, i32, i32
  }
  func.func @transform_4(%arg0: i32, %arg1: i32, %arg2: i32) -> (i32, i32, i32) {
    %c0_i32 = arith.constant 0 : i32
    %c0_i32_0 = arith.constant 0 : i32
    return %arg0, %c0_i32, %arg1 : i32, i32, i32
  }
}

module attributes {stable_mosaic.version = 11 : i64} {
  func.func @_bn_act_kernel(%arg0: i32, %arg1: memref<16x128xbf16, #tpu.memory_space<vmem>>, %arg2: memref<1x128xf32, #tpu.memory_space<vmem>>, %arg3: memref<1x128xf32, #tpu.memory_space<vmem>>, %arg4: memref<16x128xbf16, #tpu.memory_space<vmem>>) attributes {dimension_semantics = [#tpu.dimension_semantics<parallel>], iteration_bounds = array<i64: 1>, scalar_prefetch = 0 : i64, scratch_operands = 0 : i64, tpu.core_type = #tpu.core_type<tc>, window_params = [{transform_indices = @transform_0, window_bounds = array<i64: 16, 128>}, {pipeline_mode = #tpu.pipeline_mode<synchronous>, transform_indices = @transform_1, window_bounds = array<i64: 1, 128>}, {pipeline_mode = #tpu.pipeline_mode<synchronous>, transform_indices = @transform_2, window_bounds = array<i64: 1, 128>}, {transform_indices = @transform_3, window_bounds = array<i64: 16, 128>}]} {
    %c0 = arith.constant 0 : index
    %c0_0 = arith.constant 0 : index
    %0 = vector.load %arg1[%c0, %c0_0] : memref<16x128xbf16, #tpu.memory_space<vmem>>, vector<16x128xbf16>
    %1 = arith.extf %0 : vector<16x128xbf16> to vector<16x128xf32>
    %c0_1 = arith.constant 0 : index
    %c0_2 = arith.constant 0 : index
    %2 = vector.load %arg2[%c0_1, %c0_2] : memref<1x128xf32, #tpu.memory_space<vmem>>, vector<1x128xf32>
    %3 = vector.broadcast %2 : vector<1x128xf32> to vector<16x128xf32>
    %4 = arith.mulf %1, %3 : vector<16x128xf32>
    %c0_3 = arith.constant 0 : index
    %c0_4 = arith.constant 0 : index
    %5 = vector.load %arg3[%c0_3, %c0_4] : memref<1x128xf32, #tpu.memory_space<vmem>>, vector<1x128xf32>
    %6 = vector.broadcast %5 : vector<1x128xf32> to vector<16x128xf32>
    %7 = arith.addf %4, %6 : vector<16x128xf32>
    %cst = arith.constant 0.000000e+00 : f32
    %8 = vector.broadcast %cst : f32 to vector<16x128xf32>
    %9 = arith.maximumf %7, %8 : vector<16x128xf32>
    %10 = arith.truncf %9 : vector<16x128xf32> to vector<16x128xbf16>
    %c0_5 = arith.constant 0 : index
    %c0_6 = arith.constant 0 : index
    %11 = vector.load %arg4[%c0_5, %c0_6] : memref<16x128xbf16, #tpu.memory_space<vmem>>, vector<16x128xbf16>
    tpu.vector_store %arg4[%c0_5, %c0_6], %10 {strides = array<i32>} : memref<16x128xbf16, #tpu.memory_space<vmem>>, vector<16x128xbf16>,
    return
  }
  func.func @transform_0(%arg0: i32) -> (i32, i32) {
    %c0_i32 = arith.constant 0 : i32
    %c0_i32_0 = arith.constant 0 : i32
    return %arg0, %c0_i32 : i32, i32
  }
  func.func @transform_1(%arg0: i32) -> (i32, i32) {
    %c0_i32 = arith.constant 0 : i32
    %c0_i32_0 = arith.constant 0 : i32
    %c0_i32_1 = arith.constant 0 : i32
    return %c0_i32, %c0_i32_0 : i32, i32
  }
  func.func @transform_2(%arg0: i32) -> (i32, i32) {
    %c0_i32 = arith.constant 0 : i32
    %c0_i32_0 = arith.constant 0 : i32
    %c0_i32_1 = arith.constant 0 : i32
    return %c0_i32, %c0_i32_0 : i32, i32
  }
  func.func @transform_3(%arg0: i32) -> (i32, i32) {
    %c0_i32 = arith.constant 0 : i32
    %c0_i32_0 = arith.constant 0 : i32
    return %arg0, %c0_i32 : i32, i32
  }
}

module attributes {stable_mosaic.version = 11 : i64} {
  func.func @_mm_stats_kernel(%arg0: i32, %arg1: i32, %arg2: i32, %arg3: memref<16x512xbf16, #tpu.memory_space<vmem>>, %arg4: memref<512x128xbf16, #tpu.memory_space<vmem>>, %arg5: memref<16x128xbf16, #tpu.memory_space<vmem>>, %arg6: memref<1x8x128xf32, #tpu.memory_space<vmem>>, %arg7: memref<1x8x128xf32, #tpu.memory_space<vmem>>, %arg8: memref<16x128xf32, #tpu.memory_space<vmem>>) attributes {dimension_semantics = [#tpu.dimension_semantics<parallel>, #tpu.dimension_semantics<parallel>, #tpu.dimension_semantics<arbitrary>], iteration_bounds = array<i64: 1, 1, 3>, scalar_prefetch = 0 : i64, scratch_operands = 1 : i64, tpu.core_type = #tpu.core_type<tc>, window_params = [{transform_indices = @transform_0, window_bounds = array<i64: 16, 512>}, {transform_indices = @transform_1, window_bounds = array<i64: 512, 128>}, {transform_indices = @transform_2, window_bounds = array<i64: 16, 128>}, {transform_indices = @transform_3, window_bounds = array<i64: 1, 8, 128>}, {transform_indices = @transform_4, window_bounds = array<i64: 1, 8, 128>}]} {
    %c0_i32 = arith.constant 0 : i32
    %0 = arith.cmpi eq, %arg2, %c0_i32 : i32
    %1 = arith.extui %0 : i1 to i32
    %c0_i32_0 = arith.constant 0 : i32
    %2 = arith.cmpi ne, %1, %c0_i32_0 : i32
    scf.if %2 {
      %cst_9 = arith.constant 0.000000e+00 : f32
      %12 = vector.broadcast %cst_9 : f32 to vector<16x128xf32>
      %c0_10 = arith.constant 0 : index
      %c0_11 = arith.constant 0 : index
      %13 = vector.load %arg8[%c0_10, %c0_11] : memref<16x128xf32, #tpu.memory_space<vmem>>, vector<16x128xf32>
      tpu.vector_store %arg8[%c0_10, %c0_11], %12 {strides = array<i32>} : memref<16x128xf32, #tpu.memory_space<vmem>>, vector<16x128xf32>,
    } else {
    }
    %c0 = arith.constant 0 : index
    %c0_1 = arith.constant 0 : index
    %3 = vector.load %arg8[%c0, %c0_1] : memref<16x128xf32, #tpu.memory_space<vmem>>, vector<16x128xf32>
    %c0_2 = arith.constant 0 : index
    %c0_3 = arith.constant 0 : index
    %4 = vector.load %arg3[%c0_2, %c0_3] : memref<16x512xbf16, #tpu.memory_space<vmem>>, vector<16x512xbf16>
    %c0_4 = arith.constant 0 : index
    %c0_5 = arith.constant 0 : index
    %5 = vector.load %arg4[%c0_4, %c0_5] : memref<512x128xbf16, #tpu.memory_space<vmem>>, vector<512x128xbf16>
    %cst = arith.constant dense<0.000000e+00> : vector<16x128xf32>
    %6 = tpu.matmul %4, %5, %cst {dimension_numbers = #tpu.dot_dimension_numbers<[1], [0], [0], [1], [0, 0, 1, 1], [], []>} : vector<16x512xbf16>, vector<512x128xbf16>, vector<16x128xf32> -> vector<16x128xf32>
    %7 = arith.addf %3, %6 : vector<16x128xf32>
    %c0_6 = arith.constant 0 : index
    %c0_7 = arith.constant 0 : index
    %8 = vector.load %arg8[%c0_6, %c0_7] : memref<16x128xf32, #tpu.memory_space<vmem>>, vector<16x128xf32>
    tpu.vector_store %arg8[%c0_6, %c0_7], %7 {strides = array<i32>} : memref<16x128xf32, #tpu.memory_space<vmem>>, vector<16x128xf32>,
    %c2_i32 = arith.constant 2 : i32
    %9 = arith.cmpi eq, %arg2, %c2_i32 : i32
    %10 = arith.extui %9 : i1 to i32
    %c0_i32_8 = arith.constant 0 : i32
    %11 = arith.cmpi ne, %10, %c0_i32_8 : i32
    scf.if %11 {
      %c0_9 = arith.constant 0 : index
      %c0_10 = arith.constant 0 : index
      %12 = vector.load %arg8[%c0_9, %c0_10] : memref<16x128xf32, #tpu.memory_space<vmem>>, vector<16x128xf32>
      %13 = arith.truncf %12 : vector<16x128xf32> to vector<16x128xbf16>
      %c0_11 = arith.constant 0 : index
      %c0_12 = arith.constant 0 : index
      %14 = vector.load %arg5[%c0_11, %c0_12] : memref<16x128xbf16, #tpu.memory_space<vmem>>, vector<16x128xbf16>
      tpu.vector_store %arg5[%c0_11, %c0_12], %13 {strides = array<i32>} : memref<16x128xbf16, #tpu.memory_space<vmem>>, vector<16x128xbf16>,
      %cst_13 = arith.constant dense<0.000000e+00> : vector<128xf32>
      %15 = vector.multi_reduction <add>, %12, %cst_13 [0] : vector<16x128xf32> to vector<128xf32>
      %16 = vector.shape_cast %15 : vector<128xf32> to vector<1x128xf32>
      %17 = arith.mulf %12, %12 : vector<16x128xf32>
      %cst_14 = arith.constant dense<0.000000e+00> : vector<128xf32>
      %18 = vector.multi_reduction <add>, %17, %cst_14 [0] : vector<16x128xf32> to vector<128xf32>
      %19 = vector.shape_cast %18 : vector<128xf32> to vector<1x128xf32>
      %20 = vector.shape_cast %16 : vector<1x128xf32> to vector<1x128xf32>
      %21 = vector.broadcast %20 : vector<1x128xf32> to vector<8x128xf32>
      %c0_15 = arith.constant 0 : index
      %c0_16 = arith.constant 0 : index
      %c0_17 = arith.constant 0 : index
      %22 = vector.load %arg6[%c0_15, %c0_16, %c0_17] : memref<1x8x128xf32, #tpu.memory_space<vmem>>, vector<1x8x128xf32>
      %23 = vector.shape_cast %22 : vector<1x8x128xf32> to vector<8x128xf32>
      %24 = vector.shape_cast %21 : vector<8x128xf32> to vector<1x8x128xf32>
      tpu.vector_store %arg6[%c0_15, %c0_16, %c0_17], %24 {strides = array<i32>} : memref<1x8x128xf32, #tpu.memory_space<vmem>>, vector<1x8x128xf32>,
      %25 = vector.shape_cast %19 : vector<1x128xf32> to vector<1x128xf32>
      %26 = vector.broadcast %25 : vector<1x128xf32> to vector<8x128xf32>
      %c0_18 = arith.constant 0 : index
      %c0_19 = arith.constant 0 : index
      %c0_20 = arith.constant 0 : index
      %27 = vector.load %arg7[%c0_18, %c0_19, %c0_20] : memref<1x8x128xf32, #tpu.memory_space<vmem>>, vector<1x8x128xf32>
      %28 = vector.shape_cast %27 : vector<1x8x128xf32> to vector<8x128xf32>
      %29 = vector.shape_cast %26 : vector<8x128xf32> to vector<1x8x128xf32>
      tpu.vector_store %arg7[%c0_18, %c0_19, %c0_20], %29 {strides = array<i32>} : memref<1x8x128xf32, #tpu.memory_space<vmem>>, vector<1x8x128xf32>,
    } else {
    }
    return
  }
  func.func @transform_0(%arg0: i32, %arg1: i32, %arg2: i32) -> (i32, i32) {
    %c0_i32 = arith.constant 0 : i32
    return %arg0, %arg2 : i32, i32
  }
  func.func @transform_1(%arg0: i32, %arg1: i32, %arg2: i32) -> (i32, i32) {
    %c0_i32 = arith.constant 0 : i32
    return %arg2, %arg1 : i32, i32
  }
  func.func @transform_2(%arg0: i32, %arg1: i32, %arg2: i32) -> (i32, i32) {
    %c0_i32 = arith.constant 0 : i32
    return %arg0, %arg1 : i32, i32
  }
  func.func @transform_3(%arg0: i32, %arg1: i32, %arg2: i32) -> (i32, i32, i32) {
    %c0_i32 = arith.constant 0 : i32
    %c0_i32_0 = arith.constant 0 : i32
    return %arg0, %c0_i32, %arg1 : i32, i32, i32
  }
  func.func @transform_4(%arg0: i32, %arg1: i32, %arg2: i32) -> (i32, i32, i32) {
    %c0_i32 = arith.constant 0 : i32
    %c0_i32_0 = arith.constant 0 : i32
    return %arg0, %c0_i32, %arg1 : i32, i32, i32
  }
}

module attributes {stable_mosaic.version = 11 : i64} {
  func.func @_bn_act_kernel(%arg0: i32, %arg1: memref<16x128xbf16, #tpu.memory_space<vmem>>, %arg2: memref<1x128xf32, #tpu.memory_space<vmem>>, %arg3: memref<1x128xf32, #tpu.memory_space<vmem>>, %arg4: memref<16x128xbf16, #tpu.memory_space<vmem>>, %arg5: memref<16x128xbf16, #tpu.memory_space<vmem>>) attributes {dimension_semantics = [#tpu.dimension_semantics<parallel>], iteration_bounds = array<i64: 1>, scalar_prefetch = 0 : i64, scratch_operands = 0 : i64, tpu.core_type = #tpu.core_type<tc>, window_params = [{transform_indices = @transform_0, window_bounds = array<i64: 16, 128>}, {pipeline_mode = #tpu.pipeline_mode<synchronous>, transform_indices = @transform_1, window_bounds = array<i64: 1, 128>}, {pipeline_mode = #tpu.pipeline_mode<synchronous>, transform_indices = @transform_2, window_bounds = array<i64: 1, 128>}, {transform_indices = @transform_3, window_bounds = array<i64: 16, 128>}, {transform_indices = @transform_4, window_bounds = array<i64: 16, 128>}]} {
    %c0 = arith.constant 0 : index
    %c0_0 = arith.constant 0 : index
    %0 = vector.load %arg1[%c0, %c0_0] : memref<16x128xbf16, #tpu.memory_space<vmem>>, vector<16x128xbf16>
    %1 = arith.extf %0 : vector<16x128xbf16> to vector<16x128xf32>
    %c0_1 = arith.constant 0 : index
    %c0_2 = arith.constant 0 : index
    %2 = vector.load %arg2[%c0_1, %c0_2] : memref<1x128xf32, #tpu.memory_space<vmem>>, vector<1x128xf32>
    %3 = vector.broadcast %2 : vector<1x128xf32> to vector<16x128xf32>
    %4 = arith.mulf %1, %3 : vector<16x128xf32>
    %c0_3 = arith.constant 0 : index
    %c0_4 = arith.constant 0 : index
    %5 = vector.load %arg3[%c0_3, %c0_4] : memref<1x128xf32, #tpu.memory_space<vmem>>, vector<1x128xf32>
    %6 = vector.broadcast %5 : vector<1x128xf32> to vector<16x128xf32>
    %7 = arith.addf %4, %6 : vector<16x128xf32>
    %c0_5 = arith.constant 0 : index
    %c0_6 = arith.constant 0 : index
    %8 = vector.load %arg4[%c0_5, %c0_6] : memref<16x128xbf16, #tpu.memory_space<vmem>>, vector<16x128xbf16>
    %9 = arith.extf %8 : vector<16x128xbf16> to vector<16x128xf32>
    %10 = arith.addf %7, %9 : vector<16x128xf32>
    %cst = arith.constant 0.000000e+00 : f32
    %11 = vector.broadcast %cst : f32 to vector<16x128xf32>
    %12 = arith.maximumf %10, %11 : vector<16x128xf32>
    %13 = arith.truncf %12 : vector<16x128xf32> to vector<16x128xbf16>
    %c0_7 = arith.constant 0 : index
    %c0_8 = arith.constant 0 : index
    %14 = vector.load %arg5[%c0_7, %c0_8] : memref<16x128xbf16, #tpu.memory_space<vmem>>, vector<16x128xbf16>
    tpu.vector_store %arg5[%c0_7, %c0_8], %13 {strides = array<i32>} : memref<16x128xbf16, #tpu.memory_space<vmem>>, vector<16x128xbf16>,
    return
  }
  func.func @transform_0(%arg0: i32) -> (i32, i32) {
    %c0_i32 = arith.constant 0 : i32
    %c0_i32_0 = arith.constant 0 : i32
    return %arg0, %c0_i32 : i32, i32
  }
  func.func @transform_1(%arg0: i32) -> (i32, i32) {
    %c0_i32 = arith.constant 0 : i32
    %c0_i32_0 = arith.constant 0 : i32
    %c0_i32_1 = arith.constant 0 : i32
    return %c0_i32, %c0_i32_0 : i32, i32
  }
  func.func @transform_2(%arg0: i32) -> (i32, i32) {
    %c0_i32 = arith.constant 0 : i32
    %c0_i32_0 = arith.constant 0 : i32
    %c0_i32_1 = arith.constant 0 : i32
    return %c0_i32, %c0_i32_0 : i32, i32
  }
  func.func @transform_3(%arg0: i32) -> (i32, i32) {
    %c0_i32 = arith.constant 0 : i32
    %c0_i32_0 = arith.constant 0 : i32
    return %arg0, %c0_i32 : i32, i32
  }
  func.func @transform_4(%arg0: i32) -> (i32, i32) {
    %c0_i32 = arith.constant 0 : i32
    %c0_i32_0 = arith.constant 0 : i32
    return %arg0, %c0_i32 : i32, i32
  }
}

module attributes {stable_mosaic.version = 11 : i64} {
  func.func @_mm_stats_kernel(%arg0: i32, %arg1: i32, %arg2: i32, %arg3: memref<16x128xbf16, #tpu.memory_space<vmem>>, %arg4: memref<128x256xbf16, #tpu.memory_space<vmem>>, %arg5: memref<16x256xbf16, #tpu.memory_space<vmem>>, %arg6: memref<1x8x256xf32, #tpu.memory_space<vmem>>, %arg7: memref<1x8x256xf32, #tpu.memory_space<vmem>>, %arg8: memref<16x256xf32, #tpu.memory_space<vmem>>) attributes {dimension_semantics = [#tpu.dimension_semantics<parallel>, #tpu.dimension_semantics<parallel>, #tpu.dimension_semantics<arbitrary>], iteration_bounds = array<i64: 1, 1, 1>, scalar_prefetch = 0 : i64, scratch_operands = 1 : i64, tpu.core_type = #tpu.core_type<tc>, window_params = [{transform_indices = @transform_0, window_bounds = array<i64: 16, 128>}, {transform_indices = @transform_1, window_bounds = array<i64: 128, 256>}, {transform_indices = @transform_2, window_bounds = array<i64: 16, 256>}, {transform_indices = @transform_3, window_bounds = array<i64: 1, 8, 256>}, {transform_indices = @transform_4, window_bounds = array<i64: 1, 8, 256>}]} {
    %c0_i32 = arith.constant 0 : i32
    %0 = arith.cmpi eq, %arg2, %c0_i32 : i32
    %1 = arith.extui %0 : i1 to i32
    %c0_i32_0 = arith.constant 0 : i32
    %2 = arith.cmpi ne, %1, %c0_i32_0 : i32
    scf.if %2 {
      %cst_10 = arith.constant 0.000000e+00 : f32
      %12 = vector.broadcast %cst_10 : f32 to vector<16x256xf32>
      %c0_11 = arith.constant 0 : index
      %c0_12 = arith.constant 0 : index
      %13 = vector.load %arg8[%c0_11, %c0_12] : memref<16x256xf32, #tpu.memory_space<vmem>>, vector<16x256xf32>
      tpu.vector_store %arg8[%c0_11, %c0_12], %12 {strides = array<i32>} : memref<16x256xf32, #tpu.memory_space<vmem>>, vector<16x256xf32>,
    } else {
    }
    %c0 = arith.constant 0 : index
    %c0_1 = arith.constant 0 : index
    %3 = vector.load %arg8[%c0, %c0_1] : memref<16x256xf32, #tpu.memory_space<vmem>>, vector<16x256xf32>
    %c0_2 = arith.constant 0 : index
    %c0_3 = arith.constant 0 : index
    %4 = vector.load %arg3[%c0_2, %c0_3] : memref<16x128xbf16, #tpu.memory_space<vmem>>, vector<16x128xbf16>
    %c0_4 = arith.constant 0 : index
    %c0_5 = arith.constant 0 : index
    %5 = vector.load %arg4[%c0_4, %c0_5] : memref<128x256xbf16, #tpu.memory_space<vmem>>, vector<128x256xbf16>
    %cst = arith.constant dense<0.000000e+00> : vector<16x256xf32>
    %6 = tpu.matmul %4, %5, %cst {dimension_numbers = #tpu.dot_dimension_numbers<[1], [0], [0], [1], [0, 0, 1, 1], [], []>} : vector<16x128xbf16>, vector<128x256xbf16>, vector<16x256xf32> -> vector<16x256xf32>
    %7 = arith.addf %3, %6 : vector<16x256xf32>
    %c0_6 = arith.constant 0 : index
    %c0_7 = arith.constant 0 : index
    %8 = vector.load %arg8[%c0_6, %c0_7] : memref<16x256xf32, #tpu.memory_space<vmem>>, vector<16x256xf32>
    tpu.vector_store %arg8[%c0_6, %c0_7], %7 {strides = array<i32>} : memref<16x256xf32, #tpu.memory_space<vmem>>, vector<16x256xf32>,
    %c0_i32_8 = arith.constant 0 : i32
    %9 = arith.cmpi eq, %arg2, %c0_i32_8 : i32
    %10 = arith.extui %9 : i1 to i32
    %c0_i32_9 = arith.constant 0 : i32
    %11 = arith.cmpi ne, %10, %c0_i32_9 : i32
    scf.if %11 {
      %c0_10 = arith.constant 0 : index
      %c0_11 = arith.constant 0 : index
      %12 = vector.load %arg8[%c0_10, %c0_11] : memref<16x256xf32, #tpu.memory_space<vmem>>, vector<16x256xf32>
      %13 = arith.truncf %12 : vector<16x256xf32> to vector<16x256xbf16>
      %c0_12 = arith.constant 0 : index
      %c0_13 = arith.constant 0 : index
      %14 = vector.load %arg5[%c0_12, %c0_13] : memref<16x256xbf16, #tpu.memory_space<vmem>>, vector<16x256xbf16>
      tpu.vector_store %arg5[%c0_12, %c0_13], %13 {strides = array<i32>} : memref<16x256xbf16, #tpu.memory_space<vmem>>, vector<16x256xbf16>,
      %cst_14 = arith.constant dense<0.000000e+00> : vector<256xf32>
      %15 = vector.multi_reduction <add>, %12, %cst_14 [0] : vector<16x256xf32> to vector<256xf32>
      %16 = vector.shape_cast %15 : vector<256xf32> to vector<1x256xf32>
      %17 = arith.mulf %12, %12 : vector<16x256xf32>
      %cst_15 = arith.constant dense<0.000000e+00> : vector<256xf32>
      %18 = vector.multi_reduction <add>, %17, %cst_15 [0] : vector<16x256xf32> to vector<256xf32>
      %19 = vector.shape_cast %18 : vector<256xf32> to vector<1x256xf32>
      %20 = vector.shape_cast %16 : vector<1x256xf32> to vector<1x256xf32>
      %21 = vector.broadcast %20 : vector<1x256xf32> to vector<8x256xf32>
      %c0_16 = arith.constant 0 : index
      %c0_17 = arith.constant 0 : index
      %c0_18 = arith.constant 0 : index
      %22 = vector.load %arg6[%c0_16, %c0_17, %c0_18] : memref<1x8x256xf32, #tpu.memory_space<vmem>>, vector<1x8x256xf32>
      %23 = vector.shape_cast %22 : vector<1x8x256xf32> to vector<8x256xf32>
      %24 = vector.shape_cast %21 : vector<8x256xf32> to vector<1x8x256xf32>
      tpu.vector_store %arg6[%c0_16, %c0_17, %c0_18], %24 {strides = array<i32>} : memref<1x8x256xf32, #tpu.memory_space<vmem>>, vector<1x8x256xf32>,
      %25 = vector.shape_cast %19 : vector<1x256xf32> to vector<1x256xf32>
      %26 = vector.broadcast %25 : vector<1x256xf32> to vector<8x256xf32>
      %c0_19 = arith.constant 0 : index
      %c0_20 = arith.constant 0 : index
      %c0_21 = arith.constant 0 : index
      %27 = vector.load %arg7[%c0_19, %c0_20, %c0_21] : memref<1x8x256xf32, #tpu.memory_space<vmem>>, vector<1x8x256xf32>
      %28 = vector.shape_cast %27 : vector<1x8x256xf32> to vector<8x256xf32>
      %29 = vector.shape_cast %26 : vector<8x256xf32> to vector<1x8x256xf32>
      tpu.vector_store %arg7[%c0_19, %c0_20, %c0_21], %29 {strides = array<i32>} : memref<1x8x256xf32, #tpu.memory_space<vmem>>, vector<1x8x256xf32>,
    } else {
    }
    return
  }
  func.func @transform_0(%arg0: i32, %arg1: i32, %arg2: i32) -> (i32, i32) {
    %c0_i32 = arith.constant 0 : i32
    return %arg0, %arg2 : i32, i32
  }
  func.func @transform_1(%arg0: i32, %arg1: i32, %arg2: i32) -> (i32, i32) {
    %c0_i32 = arith.constant 0 : i32
    return %arg2, %arg1 : i32, i32
  }
  func.func @transform_2(%arg0: i32, %arg1: i32, %arg2: i32) -> (i32, i32) {
    %c0_i32 = arith.constant 0 : i32
    return %arg0, %arg1 : i32, i32
  }
  func.func @transform_3(%arg0: i32, %arg1: i32, %arg2: i32) -> (i32, i32, i32) {
    %c0_i32 = arith.constant 0 : i32
    %c0_i32_0 = arith.constant 0 : i32
    return %arg0, %c0_i32, %arg1 : i32, i32, i32
  }
  func.func @transform_4(%arg0: i32, %arg1: i32, %arg2: i32) -> (i32, i32, i32) {
    %c0_i32 = arith.constant 0 : i32
    %c0_i32_0 = arith.constant 0 : i32
    return %arg0, %c0_i32, %arg1 : i32, i32, i32
  }
}

module attributes {stable_mosaic.version = 11 : i64} {
  func.func @_bn_act_kernel(%arg0: i32, %arg1: memref<16x256xbf16, #tpu.memory_space<vmem>>, %arg2: memref<1x256xf32, #tpu.memory_space<vmem>>, %arg3: memref<1x256xf32, #tpu.memory_space<vmem>>, %arg4: memref<16x256xbf16, #tpu.memory_space<vmem>>) attributes {dimension_semantics = [#tpu.dimension_semantics<parallel>], iteration_bounds = array<i64: 1>, scalar_prefetch = 0 : i64, scratch_operands = 0 : i64, tpu.core_type = #tpu.core_type<tc>, window_params = [{transform_indices = @transform_0, window_bounds = array<i64: 16, 256>}, {pipeline_mode = #tpu.pipeline_mode<synchronous>, transform_indices = @transform_1, window_bounds = array<i64: 1, 256>}, {pipeline_mode = #tpu.pipeline_mode<synchronous>, transform_indices = @transform_2, window_bounds = array<i64: 1, 256>}, {transform_indices = @transform_3, window_bounds = array<i64: 16, 256>}]} {
    %c0 = arith.constant 0 : index
    %c0_0 = arith.constant 0 : index
    %0 = vector.load %arg1[%c0, %c0_0] : memref<16x256xbf16, #tpu.memory_space<vmem>>, vector<16x256xbf16>
    %1 = arith.extf %0 : vector<16x256xbf16> to vector<16x256xf32>
    %c0_1 = arith.constant 0 : index
    %c0_2 = arith.constant 0 : index
    %2 = vector.load %arg2[%c0_1, %c0_2] : memref<1x256xf32, #tpu.memory_space<vmem>>, vector<1x256xf32>
    %3 = vector.broadcast %2 : vector<1x256xf32> to vector<16x256xf32>
    %4 = arith.mulf %1, %3 : vector<16x256xf32>
    %c0_3 = arith.constant 0 : index
    %c0_4 = arith.constant 0 : index
    %5 = vector.load %arg3[%c0_3, %c0_4] : memref<1x256xf32, #tpu.memory_space<vmem>>, vector<1x256xf32>
    %6 = vector.broadcast %5 : vector<1x256xf32> to vector<16x256xf32>
    %7 = arith.addf %4, %6 : vector<16x256xf32>
    %8 = arith.truncf %7 : vector<16x256xf32> to vector<16x256xbf16>
    %c0_5 = arith.constant 0 : index
    %c0_6 = arith.constant 0 : index
    %9 = vector.load %arg4[%c0_5, %c0_6] : memref<16x256xbf16, #tpu.memory_space<vmem>>, vector<16x256xbf16>
    tpu.vector_store %arg4[%c0_5, %c0_6], %8 {strides = array<i32>} : memref<16x256xbf16, #tpu.memory_space<vmem>>, vector<16x256xbf16>,
    return
  }
  func.func @transform_0(%arg0: i32) -> (i32, i32) {
    %c0_i32 = arith.constant 0 : i32
    %c0_i32_0 = arith.constant 0 : i32
    return %arg0, %c0_i32 : i32, i32
  }
  func.func @transform_1(%arg0: i32) -> (i32, i32) {
    %c0_i32 = arith.constant 0 : i32
    %c0_i32_0 = arith.constant 0 : i32
    %c0_i32_1 = arith.constant 0 : i32
    return %c0_i32, %c0_i32_0 : i32, i32
  }
  func.func @transform_2(%arg0: i32) -> (i32, i32) {
    %c0_i32 = arith.constant 0 : i32
    %c0_i32_0 = arith.constant 0 : i32
    %c0_i32_1 = arith.constant 0 : i32
    return %c0_i32, %c0_i32_0 : i32, i32
  }
  func.func @transform_3(%arg0: i32) -> (i32, i32) {
    %c0_i32 = arith.constant 0 : i32
    %c0_i32_0 = arith.constant 0 : i32
    return %arg0, %c0_i32 : i32, i32
  }
}

module attributes {stable_mosaic.version = 11 : i64} {
  func.func @_bn_act_kernel(%arg0: i32, %arg1: memref<16x256xbf16, #tpu.memory_space<vmem>>, %arg2: memref<1x256xf32, #tpu.memory_space<vmem>>, %arg3: memref<1x256xf32, #tpu.memory_space<vmem>>, %arg4: memref<16x256xbf16, #tpu.memory_space<vmem>>) attributes {dimension_semantics = [#tpu.dimension_semantics<parallel>], iteration_bounds = array<i64: 1>, scalar_prefetch = 0 : i64, scratch_operands = 0 : i64, tpu.core_type = #tpu.core_type<tc>, window_params = [{transform_indices = @transform_0, window_bounds = array<i64: 16, 256>}, {pipeline_mode = #tpu.pipeline_mode<synchronous>, transform_indices = @transform_1, window_bounds = array<i64: 1, 256>}, {pipeline_mode = #tpu.pipeline_mode<synchronous>, transform_indices = @transform_2, window_bounds = array<i64: 1, 256>}, {transform_indices = @transform_3, window_bounds = array<i64: 16, 256>}]} {
    %c0 = arith.constant 0 : index
    %c0_0 = arith.constant 0 : index
    %0 = vector.load %arg1[%c0, %c0_0] : memref<16x256xbf16, #tpu.memory_space<vmem>>, vector<16x256xbf16>
    %1 = arith.extf %0 : vector<16x256xbf16> to vector<16x256xf32>
    %c0_1 = arith.constant 0 : index
    %c0_2 = arith.constant 0 : index
    %2 = vector.load %arg2[%c0_1, %c0_2] : memref<1x256xf32, #tpu.memory_space<vmem>>, vector<1x256xf32>
    %3 = vector.broadcast %2 : vector<1x256xf32> to vector<16x256xf32>
    %4 = arith.mulf %1, %3 : vector<16x256xf32>
    %c0_3 = arith.constant 0 : index
    %c0_4 = arith.constant 0 : index
    %5 = vector.load %arg3[%c0_3, %c0_4] : memref<1x256xf32, #tpu.memory_space<vmem>>, vector<1x256xf32>
    %6 = vector.broadcast %5 : vector<1x256xf32> to vector<16x256xf32>
    %7 = arith.addf %4, %6 : vector<16x256xf32>
    %cst = arith.constant 0.000000e+00 : f32
    %8 = vector.broadcast %cst : f32 to vector<16x256xf32>
    %9 = arith.maximumf %7, %8 : vector<16x256xf32>
    %10 = arith.truncf %9 : vector<16x256xf32> to vector<16x256xbf16>
    %c0_5 = arith.constant 0 : index
    %c0_6 = arith.constant 0 : index
    %11 = vector.load %arg4[%c0_5, %c0_6] : memref<16x256xbf16, #tpu.memory_space<vmem>>, vector<16x256xbf16>
    tpu.vector_store %arg4[%c0_5, %c0_6], %10 {strides = array<i32>} : memref<16x256xbf16, #tpu.memory_space<vmem>>, vector<16x256xbf16>,
    return
  }
  func.func @transform_0(%arg0: i32) -> (i32, i32) {
    %c0_i32 = arith.constant 0 : i32
    %c0_i32_0 = arith.constant 0 : i32
    return %arg0, %c0_i32 : i32, i32
  }
  func.func @transform_1(%arg0: i32) -> (i32, i32) {
    %c0_i32 = arith.constant 0 : i32
    %c0_i32_0 = arith.constant 0 : i32
    %c0_i32_1 = arith.constant 0 : i32
    return %c0_i32, %c0_i32_0 : i32, i32
  }
  func.func @transform_2(%arg0: i32) -> (i32, i32) {
    %c0_i32 = arith.constant 0 : i32
    %c0_i32_0 = arith.constant 0 : i32
    %c0_i32_1 = arith.constant 0 : i32
    return %c0_i32, %c0_i32_0 : i32, i32
  }
  func.func @transform_3(%arg0: i32) -> (i32, i32) {
    %c0_i32 = arith.constant 0 : i32
    %c0_i32_0 = arith.constant 0 : i32
    return %arg0, %c0_i32 : i32, i32
  }
}

module attributes {stable_mosaic.version = 11 : i64} {
  func.func @_mm_stats_kernel(%arg0: i32, %arg1: i32, %arg2: i32, %arg3: memref<16x512xbf16, #tpu.memory_space<vmem>>, %arg4: memref<512x256xbf16, #tpu.memory_space<vmem>>, %arg5: memref<16x256xbf16, #tpu.memory_space<vmem>>, %arg6: memref<1x8x256xf32, #tpu.memory_space<vmem>>, %arg7: memref<1x8x256xf32, #tpu.memory_space<vmem>>, %arg8: memref<16x256xf32, #tpu.memory_space<vmem>>) attributes {dimension_semantics = [#tpu.dimension_semantics<parallel>, #tpu.dimension_semantics<parallel>, #tpu.dimension_semantics<arbitrary>], iteration_bounds = array<i64: 1, 1, 3>, scalar_prefetch = 0 : i64, scratch_operands = 1 : i64, tpu.core_type = #tpu.core_type<tc>, window_params = [{transform_indices = @transform_0, window_bounds = array<i64: 16, 512>}, {transform_indices = @transform_1, window_bounds = array<i64: 512, 256>}, {transform_indices = @transform_2, window_bounds = array<i64: 16, 256>}, {transform_indices = @transform_3, window_bounds = array<i64: 1, 8, 256>}, {transform_indices = @transform_4, window_bounds = array<i64: 1, 8, 256>}]} {
    %c0_i32 = arith.constant 0 : i32
    %0 = arith.cmpi eq, %arg2, %c0_i32 : i32
    %1 = arith.extui %0 : i1 to i32
    %c0_i32_0 = arith.constant 0 : i32
    %2 = arith.cmpi ne, %1, %c0_i32_0 : i32
    scf.if %2 {
      %cst_9 = arith.constant 0.000000e+00 : f32
      %12 = vector.broadcast %cst_9 : f32 to vector<16x256xf32>
      %c0_10 = arith.constant 0 : index
      %c0_11 = arith.constant 0 : index
      %13 = vector.load %arg8[%c0_10, %c0_11] : memref<16x256xf32, #tpu.memory_space<vmem>>, vector<16x256xf32>
      tpu.vector_store %arg8[%c0_10, %c0_11], %12 {strides = array<i32>} : memref<16x256xf32, #tpu.memory_space<vmem>>, vector<16x256xf32>,
    } else {
    }
    %c0 = arith.constant 0 : index
    %c0_1 = arith.constant 0 : index
    %3 = vector.load %arg8[%c0, %c0_1] : memref<16x256xf32, #tpu.memory_space<vmem>>, vector<16x256xf32>
    %c0_2 = arith.constant 0 : index
    %c0_3 = arith.constant 0 : index
    %4 = vector.load %arg3[%c0_2, %c0_3] : memref<16x512xbf16, #tpu.memory_space<vmem>>, vector<16x512xbf16>
    %c0_4 = arith.constant 0 : index
    %c0_5 = arith.constant 0 : index
    %5 = vector.load %arg4[%c0_4, %c0_5] : memref<512x256xbf16, #tpu.memory_space<vmem>>, vector<512x256xbf16>
    %cst = arith.constant dense<0.000000e+00> : vector<16x256xf32>
    %6 = tpu.matmul %4, %5, %cst {dimension_numbers = #tpu.dot_dimension_numbers<[1], [0], [0], [1], [0, 0, 1, 1], [], []>} : vector<16x512xbf16>, vector<512x256xbf16>, vector<16x256xf32> -> vector<16x256xf32>
    %7 = arith.addf %3, %6 : vector<16x256xf32>
    %c0_6 = arith.constant 0 : index
    %c0_7 = arith.constant 0 : index
    %8 = vector.load %arg8[%c0_6, %c0_7] : memref<16x256xf32, #tpu.memory_space<vmem>>, vector<16x256xf32>
    tpu.vector_store %arg8[%c0_6, %c0_7], %7 {strides = array<i32>} : memref<16x256xf32, #tpu.memory_space<vmem>>, vector<16x256xf32>,
    %c2_i32 = arith.constant 2 : i32
    %9 = arith.cmpi eq, %arg2, %c2_i32 : i32
    %10 = arith.extui %9 : i1 to i32
    %c0_i32_8 = arith.constant 0 : i32
    %11 = arith.cmpi ne, %10, %c0_i32_8 : i32
    scf.if %11 {
      %c0_9 = arith.constant 0 : index
      %c0_10 = arith.constant 0 : index
      %12 = vector.load %arg8[%c0_9, %c0_10] : memref<16x256xf32, #tpu.memory_space<vmem>>, vector<16x256xf32>
      %13 = arith.truncf %12 : vector<16x256xf32> to vector<16x256xbf16>
      %c0_11 = arith.constant 0 : index
      %c0_12 = arith.constant 0 : index
      %14 = vector.load %arg5[%c0_11, %c0_12] : memref<16x256xbf16, #tpu.memory_space<vmem>>, vector<16x256xbf16>
      tpu.vector_store %arg5[%c0_11, %c0_12], %13 {strides = array<i32>} : memref<16x256xbf16, #tpu.memory_space<vmem>>, vector<16x256xbf16>,
      %cst_13 = arith.constant dense<0.000000e+00> : vector<256xf32>
      %15 = vector.multi_reduction <add>, %12, %cst_13 [0] : vector<16x256xf32> to vector<256xf32>
      %16 = vector.shape_cast %15 : vector<256xf32> to vector<1x256xf32>
      %17 = arith.mulf %12, %12 : vector<16x256xf32>
      %cst_14 = arith.constant dense<0.000000e+00> : vector<256xf32>
      %18 = vector.multi_reduction <add>, %17, %cst_14 [0] : vector<16x256xf32> to vector<256xf32>
      %19 = vector.shape_cast %18 : vector<256xf32> to vector<1x256xf32>
      %20 = vector.shape_cast %16 : vector<1x256xf32> to vector<1x256xf32>
      %21 = vector.broadcast %20 : vector<1x256xf32> to vector<8x256xf32>
      %c0_15 = arith.constant 0 : index
      %c0_16 = arith.constant 0 : index
      %c0_17 = arith.constant 0 : index
      %22 = vector.load %arg6[%c0_15, %c0_16, %c0_17] : memref<1x8x256xf32, #tpu.memory_space<vmem>>, vector<1x8x256xf32>
      %23 = vector.shape_cast %22 : vector<1x8x256xf32> to vector<8x256xf32>
      %24 = vector.shape_cast %21 : vector<8x256xf32> to vector<1x8x256xf32>
      tpu.vector_store %arg6[%c0_15, %c0_16, %c0_17], %24 {strides = array<i32>} : memref<1x8x256xf32, #tpu.memory_space<vmem>>, vector<1x8x256xf32>,
      %25 = vector.shape_cast %19 : vector<1x256xf32> to vector<1x256xf32>
      %26 = vector.broadcast %25 : vector<1x256xf32> to vector<8x256xf32>
      %c0_18 = arith.constant 0 : index
      %c0_19 = arith.constant 0 : index
      %c0_20 = arith.constant 0 : index
      %27 = vector.load %arg7[%c0_18, %c0_19, %c0_20] : memref<1x8x256xf32, #tpu.memory_space<vmem>>, vector<1x8x256xf32>
      %28 = vector.shape_cast %27 : vector<1x8x256xf32> to vector<8x256xf32>
      %29 = vector.shape_cast %26 : vector<8x256xf32> to vector<1x8x256xf32>
      tpu.vector_store %arg7[%c0_18, %c0_19, %c0_20], %29 {strides = array<i32>} : memref<1x8x256xf32, #tpu.memory_space<vmem>>, vector<1x8x256xf32>,
    } else {
    }
    return
  }
  func.func @transform_0(%arg0: i32, %arg1: i32, %arg2: i32) -> (i32, i32) {
    %c0_i32 = arith.constant 0 : i32
    return %arg0, %arg2 : i32, i32
  }
  func.func @transform_1(%arg0: i32, %arg1: i32, %arg2: i32) -> (i32, i32) {
    %c0_i32 = arith.constant 0 : i32
    return %arg2, %arg1 : i32, i32
  }
  func.func @transform_2(%arg0: i32, %arg1: i32, %arg2: i32) -> (i32, i32) {
    %c0_i32 = arith.constant 0 : i32
    return %arg0, %arg1 : i32, i32
  }
  func.func @transform_3(%arg0: i32, %arg1: i32, %arg2: i32) -> (i32, i32, i32) {
    %c0_i32 = arith.constant 0 : i32
    %c0_i32_0 = arith.constant 0 : i32
    return %arg0, %c0_i32, %arg1 : i32, i32, i32
  }
  func.func @transform_4(%arg0: i32, %arg1: i32, %arg2: i32) -> (i32, i32, i32) {
    %c0_i32 = arith.constant 0 : i32
    %c0_i32_0 = arith.constant 0 : i32
    return %arg0, %c0_i32, %arg1 : i32, i32, i32
  }
}

module attributes {stable_mosaic.version = 11 : i64} {
  func.func @_mm_stats_kernel(%arg0: i32, %arg1: i32, %arg2: i32, %arg3: memref<16x512xbf16, #tpu.memory_space<vmem>>, %arg4: memref<512x256xbf16, #tpu.memory_space<vmem>>, %arg5: memref<16x256xbf16, #tpu.memory_space<vmem>>, %arg6: memref<1x8x256xf32, #tpu.memory_space<vmem>>, %arg7: memref<1x8x256xf32, #tpu.memory_space<vmem>>, %arg8: memref<16x256xf32, #tpu.memory_space<vmem>>) attributes {dimension_semantics = [#tpu.dimension_semantics<parallel>, #tpu.dimension_semantics<parallel>, #tpu.dimension_semantics<arbitrary>], iteration_bounds = array<i64: 1, 1, 5>, scalar_prefetch = 0 : i64, scratch_operands = 1 : i64, tpu.core_type = #tpu.core_type<tc>, window_params = [{transform_indices = @transform_0, window_bounds = array<i64: 16, 512>}, {transform_indices = @transform_1, window_bounds = array<i64: 512, 256>}, {transform_indices = @transform_2, window_bounds = array<i64: 16, 256>}, {transform_indices = @transform_3, window_bounds = array<i64: 1, 8, 256>}, {transform_indices = @transform_4, window_bounds = array<i64: 1, 8, 256>}]} {
    %c0_i32 = arith.constant 0 : i32
    %0 = arith.cmpi eq, %arg2, %c0_i32 : i32
    %1 = arith.extui %0 : i1 to i32
    %c0_i32_0 = arith.constant 0 : i32
    %2 = arith.cmpi ne, %1, %c0_i32_0 : i32
    scf.if %2 {
      %cst_9 = arith.constant 0.000000e+00 : f32
      %12 = vector.broadcast %cst_9 : f32 to vector<16x256xf32>
      %c0_10 = arith.constant 0 : index
      %c0_11 = arith.constant 0 : index
      %13 = vector.load %arg8[%c0_10, %c0_11] : memref<16x256xf32, #tpu.memory_space<vmem>>, vector<16x256xf32>
      tpu.vector_store %arg8[%c0_10, %c0_11], %12 {strides = array<i32>} : memref<16x256xf32, #tpu.memory_space<vmem>>, vector<16x256xf32>,
    } else {
    }
    %c0 = arith.constant 0 : index
    %c0_1 = arith.constant 0 : index
    %3 = vector.load %arg8[%c0, %c0_1] : memref<16x256xf32, #tpu.memory_space<vmem>>, vector<16x256xf32>
    %c0_2 = arith.constant 0 : index
    %c0_3 = arith.constant 0 : index
    %4 = vector.load %arg3[%c0_2, %c0_3] : memref<16x512xbf16, #tpu.memory_space<vmem>>, vector<16x512xbf16>
    %c0_4 = arith.constant 0 : index
    %c0_5 = arith.constant 0 : index
    %5 = vector.load %arg4[%c0_4, %c0_5] : memref<512x256xbf16, #tpu.memory_space<vmem>>, vector<512x256xbf16>
    %cst = arith.constant dense<0.000000e+00> : vector<16x256xf32>
    %6 = tpu.matmul %4, %5, %cst {dimension_numbers = #tpu.dot_dimension_numbers<[1], [0], [0], [1], [0, 0, 1, 1], [], []>} : vector<16x512xbf16>, vector<512x256xbf16>, vector<16x256xf32> -> vector<16x256xf32>
    %7 = arith.addf %3, %6 : vector<16x256xf32>
    %c0_6 = arith.constant 0 : index
    %c0_7 = arith.constant 0 : index
    %8 = vector.load %arg8[%c0_6, %c0_7] : memref<16x256xf32, #tpu.memory_space<vmem>>, vector<16x256xf32>
    tpu.vector_store %arg8[%c0_6, %c0_7], %7 {strides = array<i32>} : memref<16x256xf32, #tpu.memory_space<vmem>>, vector<16x256xf32>,
    %c4_i32 = arith.constant 4 : i32
    %9 = arith.cmpi eq, %arg2, %c4_i32 : i32
    %10 = arith.extui %9 : i1 to i32
    %c0_i32_8 = arith.constant 0 : i32
    %11 = arith.cmpi ne, %10, %c0_i32_8 : i32
    scf.if %11 {
      %c0_9 = arith.constant 0 : index
      %c0_10 = arith.constant 0 : index
      %12 = vector.load %arg8[%c0_9, %c0_10] : memref<16x256xf32, #tpu.memory_space<vmem>>, vector<16x256xf32>
      %13 = arith.truncf %12 : vector<16x256xf32> to vector<16x256xbf16>
      %c0_11 = arith.constant 0 : index
      %c0_12 = arith.constant 0 : index
      %14 = vector.load %arg5[%c0_11, %c0_12] : memref<16x256xbf16, #tpu.memory_space<vmem>>, vector<16x256xbf16>
      tpu.vector_store %arg5[%c0_11, %c0_12], %13 {strides = array<i32>} : memref<16x256xbf16, #tpu.memory_space<vmem>>, vector<16x256xbf16>,
      %cst_13 = arith.constant dense<0.000000e+00> : vector<256xf32>
      %15 = vector.multi_reduction <add>, %12, %cst_13 [0] : vector<16x256xf32> to vector<256xf32>
      %16 = vector.shape_cast %15 : vector<256xf32> to vector<1x256xf32>
      %17 = arith.mulf %12, %12 : vector<16x256xf32>
      %cst_14 = arith.constant dense<0.000000e+00> : vector<256xf32>
      %18 = vector.multi_reduction <add>, %17, %cst_14 [0] : vector<16x256xf32> to vector<256xf32>
      %19 = vector.shape_cast %18 : vector<256xf32> to vector<1x256xf32>
      %20 = vector.shape_cast %16 : vector<1x256xf32> to vector<1x256xf32>
      %21 = vector.broadcast %20 : vector<1x256xf32> to vector<8x256xf32>
      %c0_15 = arith.constant 0 : index
      %c0_16 = arith.constant 0 : index
      %c0_17 = arith.constant 0 : index
      %22 = vector.load %arg6[%c0_15, %c0_16, %c0_17] : memref<1x8x256xf32, #tpu.memory_space<vmem>>, vector<1x8x256xf32>
      %23 = vector.shape_cast %22 : vector<1x8x256xf32> to vector<8x256xf32>
      %24 = vector.shape_cast %21 : vector<8x256xf32> to vector<1x8x256xf32>
      tpu.vector_store %arg6[%c0_15, %c0_16, %c0_17], %24 {strides = array<i32>} : memref<1x8x256xf32, #tpu.memory_space<vmem>>, vector<1x8x256xf32>,
      %25 = vector.shape_cast %19 : vector<1x256xf32> to vector<1x256xf32>
      %26 = vector.broadcast %25 : vector<1x256xf32> to vector<8x256xf32>
      %c0_18 = arith.constant 0 : index
      %c0_19 = arith.constant 0 : index
      %c0_20 = arith.constant 0 : index
      %27 = vector.load %arg7[%c0_18, %c0_19, %c0_20] : memref<1x8x256xf32, #tpu.memory_space<vmem>>, vector<1x8x256xf32>
      %28 = vector.shape_cast %27 : vector<1x8x256xf32> to vector<8x256xf32>
      %29 = vector.shape_cast %26 : vector<8x256xf32> to vector<1x8x256xf32>
      tpu.vector_store %arg7[%c0_18, %c0_19, %c0_20], %29 {strides = array<i32>} : memref<1x8x256xf32, #tpu.memory_space<vmem>>, vector<1x8x256xf32>,
    } else {
    }
    return
  }
  func.func @transform_0(%arg0: i32, %arg1: i32, %arg2: i32) -> (i32, i32) {
    %c0_i32 = arith.constant 0 : i32
    return %arg0, %arg2 : i32, i32
  }
  func.func @transform_1(%arg0: i32, %arg1: i32, %arg2: i32) -> (i32, i32) {
    %c0_i32 = arith.constant 0 : i32
    return %arg2, %arg1 : i32, i32
  }
  func.func @transform_2(%arg0: i32, %arg1: i32, %arg2: i32) -> (i32, i32) {
    %c0_i32 = arith.constant 0 : i32
    return %arg0, %arg1 : i32, i32
  }
  func.func @transform_3(%arg0: i32, %arg1: i32, %arg2: i32) -> (i32, i32, i32) {
    %c0_i32 = arith.constant 0 : i32
    %c0_i32_0 = arith.constant 0 : i32
    return %arg0, %c0_i32, %arg1 : i32, i32, i32
  }
  func.func @transform_4(%arg0: i32, %arg1: i32, %arg2: i32) -> (i32, i32, i32) {
    %c0_i32 = arith.constant 0 : i32
    %c0_i32_0 = arith.constant 0 : i32
    return %arg0, %c0_i32, %arg1 : i32, i32, i32
  }
}

module attributes {stable_mosaic.version = 11 : i64} {
  func.func @_bn_act_kernel(%arg0: i32, %arg1: memref<16x256xbf16, #tpu.memory_space<vmem>>, %arg2: memref<1x256xf32, #tpu.memory_space<vmem>>, %arg3: memref<1x256xf32, #tpu.memory_space<vmem>>, %arg4: memref<16x256xbf16, #tpu.memory_space<vmem>>, %arg5: memref<16x256xbf16, #tpu.memory_space<vmem>>) attributes {dimension_semantics = [#tpu.dimension_semantics<parallel>], iteration_bounds = array<i64: 1>, scalar_prefetch = 0 : i64, scratch_operands = 0 : i64, tpu.core_type = #tpu.core_type<tc>, window_params = [{transform_indices = @transform_0, window_bounds = array<i64: 16, 256>}, {pipeline_mode = #tpu.pipeline_mode<synchronous>, transform_indices = @transform_1, window_bounds = array<i64: 1, 256>}, {pipeline_mode = #tpu.pipeline_mode<synchronous>, transform_indices = @transform_2, window_bounds = array<i64: 1, 256>}, {transform_indices = @transform_3, window_bounds = array<i64: 16, 256>}, {transform_indices = @transform_4, window_bounds = array<i64: 16, 256>}]} {
    %c0 = arith.constant 0 : index
    %c0_0 = arith.constant 0 : index
    %0 = vector.load %arg1[%c0, %c0_0] : memref<16x256xbf16, #tpu.memory_space<vmem>>, vector<16x256xbf16>
    %1 = arith.extf %0 : vector<16x256xbf16> to vector<16x256xf32>
    %c0_1 = arith.constant 0 : index
    %c0_2 = arith.constant 0 : index
    %2 = vector.load %arg2[%c0_1, %c0_2] : memref<1x256xf32, #tpu.memory_space<vmem>>, vector<1x256xf32>
    %3 = vector.broadcast %2 : vector<1x256xf32> to vector<16x256xf32>
    %4 = arith.mulf %1, %3 : vector<16x256xf32>
    %c0_3 = arith.constant 0 : index
    %c0_4 = arith.constant 0 : index
    %5 = vector.load %arg3[%c0_3, %c0_4] : memref<1x256xf32, #tpu.memory_space<vmem>>, vector<1x256xf32>
    %6 = vector.broadcast %5 : vector<1x256xf32> to vector<16x256xf32>
    %7 = arith.addf %4, %6 : vector<16x256xf32>
    %c0_5 = arith.constant 0 : index
    %c0_6 = arith.constant 0 : index
    %8 = vector.load %arg4[%c0_5, %c0_6] : memref<16x256xbf16, #tpu.memory_space<vmem>>, vector<16x256xbf16>
    %9 = arith.extf %8 : vector<16x256xbf16> to vector<16x256xf32>
    %10 = arith.addf %7, %9 : vector<16x256xf32>
    %cst = arith.constant 0.000000e+00 : f32
    %11 = vector.broadcast %cst : f32 to vector<16x256xf32>
    %12 = arith.maximumf %10, %11 : vector<16x256xf32>
    %13 = arith.truncf %12 : vector<16x256xf32> to vector<16x256xbf16>
    %c0_7 = arith.constant 0 : index
    %c0_8 = arith.constant 0 : index
    %14 = vector.load %arg5[%c0_7, %c0_8] : memref<16x256xbf16, #tpu.memory_space<vmem>>, vector<16x256xbf16>
    tpu.vector_store %arg5[%c0_7, %c0_8], %13 {strides = array<i32>} : memref<16x256xbf16, #tpu.memory_space<vmem>>, vector<16x256xbf16>,
    return
  }
  func.func @transform_0(%arg0: i32) -> (i32, i32) {
    %c0_i32 = arith.constant 0 : i32
    %c0_i32_0 = arith.constant 0 : i32
    return %arg0, %c0_i32 : i32, i32
  }
  func.func @transform_1(%arg0: i32) -> (i32, i32) {
    %c0_i32 = arith.constant 0 : i32
    %c0_i32_0 = arith.constant 0 : i32
    %c0_i32_1 = arith.constant 0 : i32
    return %c0_i32, %c0_i32_0 : i32, i32
  }
  func.func @transform_2(%arg0: i32) -> (i32, i32) {
    %c0_i32 = arith.constant 0 : i32
    %c0_i32_0 = arith.constant 0 : i32
    %c0_i32_1 = arith.constant 0 : i32
    return %c0_i32, %c0_i32_0 : i32, i32
  }
  func.func @transform_3(%arg0: i32) -> (i32, i32) {
    %c0_i32 = arith.constant 0 : i32
    %c0_i32_0 = arith.constant 0 : i32
    return %arg0, %c0_i32 : i32, i32
  }
  func.func @transform_4(%arg0: i32) -> (i32, i32) {
    %c0_i32 = arith.constant 0 : i32
    %c0_i32_0 = arith.constant 0 : i32
    return %arg0, %c0_i32 : i32, i32
  }
}

module attributes {stable_mosaic.version = 11 : i64} {
  func.func @_mm_stats_kernel(%arg0: i32, %arg1: i32, %arg2: i32, %arg3: memref<16x256xbf16, #tpu.memory_space<vmem>>, %arg4: memref<256x256xbf16, #tpu.memory_space<vmem>>, %arg5: memref<16x256xbf16, #tpu.memory_space<vmem>>, %arg6: memref<1x8x256xf32, #tpu.memory_space<vmem>>, %arg7: memref<1x8x256xf32, #tpu.memory_space<vmem>>, %arg8: memref<16x256xf32, #tpu.memory_space<vmem>>) attributes {dimension_semantics = [#tpu.dimension_semantics<parallel>, #tpu.dimension_semantics<parallel>, #tpu.dimension_semantics<arbitrary>], iteration_bounds = array<i64: 1, 2, 1>, scalar_prefetch = 0 : i64, scratch_operands = 1 : i64, tpu.core_type = #tpu.core_type<tc>, window_params = [{transform_indices = @transform_0, window_bounds = array<i64: 16, 256>}, {transform_indices = @transform_1, window_bounds = array<i64: 256, 256>}, {transform_indices = @transform_2, window_bounds = array<i64: 16, 256>}, {transform_indices = @transform_3, window_bounds = array<i64: 1, 8, 256>}, {transform_indices = @transform_4, window_bounds = array<i64: 1, 8, 256>}]} {
    %c0_i32 = arith.constant 0 : i32
    %0 = arith.cmpi eq, %arg2, %c0_i32 : i32
    %1 = arith.extui %0 : i1 to i32
    %c0_i32_0 = arith.constant 0 : i32
    %2 = arith.cmpi ne, %1, %c0_i32_0 : i32
    scf.if %2 {
      %cst_10 = arith.constant 0.000000e+00 : f32
      %12 = vector.broadcast %cst_10 : f32 to vector<16x256xf32>
      %c0_11 = arith.constant 0 : index
      %c0_12 = arith.constant 0 : index
      %13 = vector.load %arg8[%c0_11, %c0_12] : memref<16x256xf32, #tpu.memory_space<vmem>>, vector<16x256xf32>
      tpu.vector_store %arg8[%c0_11, %c0_12], %12 {strides = array<i32>} : memref<16x256xf32, #tpu.memory_space<vmem>>, vector<16x256xf32>,
    } else {
    }
    %c0 = arith.constant 0 : index
    %c0_1 = arith.constant 0 : index
    %3 = vector.load %arg8[%c0, %c0_1] : memref<16x256xf32, #tpu.memory_space<vmem>>, vector<16x256xf32>
    %c0_2 = arith.constant 0 : index
    %c0_3 = arith.constant 0 : index
    %4 = vector.load %arg3[%c0_2, %c0_3] : memref<16x256xbf16, #tpu.memory_space<vmem>>, vector<16x256xbf16>
    %c0_4 = arith.constant 0 : index
    %c0_5 = arith.constant 0 : index
    %5 = vector.load %arg4[%c0_4, %c0_5] : memref<256x256xbf16, #tpu.memory_space<vmem>>, vector<256x256xbf16>
    %cst = arith.constant dense<0.000000e+00> : vector<16x256xf32>
    %6 = tpu.matmul %4, %5, %cst {dimension_numbers = #tpu.dot_dimension_numbers<[1], [0], [0], [1], [0, 0, 1, 1], [], []>} : vector<16x256xbf16>, vector<256x256xbf16>, vector<16x256xf32> -> vector<16x256xf32>
    %7 = arith.addf %3, %6 : vector<16x256xf32>
    %c0_6 = arith.constant 0 : index
    %c0_7 = arith.constant 0 : index
    %8 = vector.load %arg8[%c0_6, %c0_7] : memref<16x256xf32, #tpu.memory_space<vmem>>, vector<16x256xf32>
    tpu.vector_store %arg8[%c0_6, %c0_7], %7 {strides = array<i32>} : memref<16x256xf32, #tpu.memory_space<vmem>>, vector<16x256xf32>,
    %c0_i32_8 = arith.constant 0 : i32
    %9 = arith.cmpi eq, %arg2, %c0_i32_8 : i32
    %10 = arith.extui %9 : i1 to i32
    %c0_i32_9 = arith.constant 0 : i32
    %11 = arith.cmpi ne, %10, %c0_i32_9 : i32
    scf.if %11 {
      %c0_10 = arith.constant 0 : index
      %c0_11 = arith.constant 0 : index
      %12 = vector.load %arg8[%c0_10, %c0_11] : memref<16x256xf32, #tpu.memory_space<vmem>>, vector<16x256xf32>
      %13 = arith.truncf %12 : vector<16x256xf32> to vector<16x256xbf16>
      %c0_12 = arith.constant 0 : index
      %c0_13 = arith.constant 0 : index
      %14 = vector.load %arg5[%c0_12, %c0_13] : memref<16x256xbf16, #tpu.memory_space<vmem>>, vector<16x256xbf16>
      tpu.vector_store %arg5[%c0_12, %c0_13], %13 {strides = array<i32>} : memref<16x256xbf16, #tpu.memory_space<vmem>>, vector<16x256xbf16>,
      %cst_14 = arith.constant dense<0.000000e+00> : vector<256xf32>
      %15 = vector.multi_reduction <add>, %12, %cst_14 [0] : vector<16x256xf32> to vector<256xf32>
      %16 = vector.shape_cast %15 : vector<256xf32> to vector<1x256xf32>
      %17 = arith.mulf %12, %12 : vector<16x256xf32>
      %cst_15 = arith.constant dense<0.000000e+00> : vector<256xf32>
      %18 = vector.multi_reduction <add>, %17, %cst_15 [0] : vector<16x256xf32> to vector<256xf32>
      %19 = vector.shape_cast %18 : vector<256xf32> to vector<1x256xf32>
      %20 = vector.shape_cast %16 : vector<1x256xf32> to vector<1x256xf32>
      %21 = vector.broadcast %20 : vector<1x256xf32> to vector<8x256xf32>
      %c0_16 = arith.constant 0 : index
      %c0_17 = arith.constant 0 : index
      %c0_18 = arith.constant 0 : index
      %22 = vector.load %arg6[%c0_16, %c0_17, %c0_18] : memref<1x8x256xf32, #tpu.memory_space<vmem>>, vector<1x8x256xf32>
      %23 = vector.shape_cast %22 : vector<1x8x256xf32> to vector<8x256xf32>
      %24 = vector.shape_cast %21 : vector<8x256xf32> to vector<1x8x256xf32>
      tpu.vector_store %arg6[%c0_16, %c0_17, %c0_18], %24 {strides = array<i32>} : memref<1x8x256xf32, #tpu.memory_space<vmem>>, vector<1x8x256xf32>,
      %25 = vector.shape_cast %19 : vector<1x256xf32> to vector<1x256xf32>
      %26 = vector.broadcast %25 : vector<1x256xf32> to vector<8x256xf32>
      %c0_19 = arith.constant 0 : index
      %c0_20 = arith.constant 0 : index
      %c0_21 = arith.constant 0 : index
      %27 = vector.load %arg7[%c0_19, %c0_20, %c0_21] : memref<1x8x256xf32, #tpu.memory_space<vmem>>, vector<1x8x256xf32>
      %28 = vector.shape_cast %27 : vector<1x8x256xf32> to vector<8x256xf32>
      %29 = vector.shape_cast %26 : vector<8x256xf32> to vector<1x8x256xf32>
      tpu.vector_store %arg7[%c0_19, %c0_20, %c0_21], %29 {strides = array<i32>} : memref<1x8x256xf32, #tpu.memory_space<vmem>>, vector<1x8x256xf32>,
    } else {
    }
    return
  }
  func.func @transform_0(%arg0: i32, %arg1: i32, %arg2: i32) -> (i32, i32) {
    %c0_i32 = arith.constant 0 : i32
    return %arg0, %arg2 : i32, i32
  }
  func.func @transform_1(%arg0: i32, %arg1: i32, %arg2: i32) -> (i32, i32) {
    %c0_i32 = arith.constant 0 : i32
    return %arg2, %arg1 : i32, i32
  }
  func.func @transform_2(%arg0: i32, %arg1: i32, %arg2: i32) -> (i32, i32) {
    %c0_i32 = arith.constant 0 : i32
    return %arg0, %arg1 : i32, i32
  }
  func.func @transform_3(%arg0: i32, %arg1: i32, %arg2: i32) -> (i32, i32, i32) {
    %c0_i32 = arith.constant 0 : i32
    %c0_i32_0 = arith.constant 0 : i32
    return %arg0, %c0_i32, %arg1 : i32, i32, i32
  }
  func.func @transform_4(%arg0: i32, %arg1: i32, %arg2: i32) -> (i32, i32, i32) {
    %c0_i32 = arith.constant 0 : i32
    %c0_i32_0 = arith.constant 0 : i32
    return %arg0, %c0_i32, %arg1 : i32, i32, i32
  }
}

module attributes {stable_mosaic.version = 11 : i64} {
  func.func @_bn_act_kernel(%arg0: i32, %arg1: memref<16x512xbf16, #tpu.memory_space<vmem>>, %arg2: memref<1x512xf32, #tpu.memory_space<vmem>>, %arg3: memref<1x512xf32, #tpu.memory_space<vmem>>, %arg4: memref<16x512xbf16, #tpu.memory_space<vmem>>) attributes {dimension_semantics = [#tpu.dimension_semantics<parallel>], iteration_bounds = array<i64: 1>, scalar_prefetch = 0 : i64, scratch_operands = 0 : i64, tpu.core_type = #tpu.core_type<tc>, window_params = [{transform_indices = @transform_0, window_bounds = array<i64: 16, 512>}, {pipeline_mode = #tpu.pipeline_mode<synchronous>, transform_indices = @transform_1, window_bounds = array<i64: 1, 512>}, {pipeline_mode = #tpu.pipeline_mode<synchronous>, transform_indices = @transform_2, window_bounds = array<i64: 1, 512>}, {transform_indices = @transform_3, window_bounds = array<i64: 16, 512>}]} {
    %c0 = arith.constant 0 : index
    %c0_0 = arith.constant 0 : index
    %0 = vector.load %arg1[%c0, %c0_0] : memref<16x512xbf16, #tpu.memory_space<vmem>>, vector<16x512xbf16>
    %1 = arith.extf %0 : vector<16x512xbf16> to vector<16x512xf32>
    %c0_1 = arith.constant 0 : index
    %c0_2 = arith.constant 0 : index
    %2 = vector.load %arg2[%c0_1, %c0_2] : memref<1x512xf32, #tpu.memory_space<vmem>>, vector<1x512xf32>
    %3 = vector.broadcast %2 : vector<1x512xf32> to vector<16x512xf32>
    %4 = arith.mulf %1, %3 : vector<16x512xf32>
    %c0_3 = arith.constant 0 : index
    %c0_4 = arith.constant 0 : index
    %5 = vector.load %arg3[%c0_3, %c0_4] : memref<1x512xf32, #tpu.memory_space<vmem>>, vector<1x512xf32>
    %6 = vector.broadcast %5 : vector<1x512xf32> to vector<16x512xf32>
    %7 = arith.addf %4, %6 : vector<16x512xf32>
    %8 = arith.truncf %7 : vector<16x512xf32> to vector<16x512xbf16>
    %c0_5 = arith.constant 0 : index
    %c0_6 = arith.constant 0 : index
    %9 = vector.load %arg4[%c0_5, %c0_6] : memref<16x512xbf16, #tpu.memory_space<vmem>>, vector<16x512xbf16>
    tpu.vector_store %arg4[%c0_5, %c0_6], %8 {strides = array<i32>} : memref<16x512xbf16, #tpu.memory_space<vmem>>, vector<16x512xbf16>,
    return
  }
  func.func @transform_0(%arg0: i32) -> (i32, i32) {
    %c0_i32 = arith.constant 0 : i32
    %c0_i32_0 = arith.constant 0 : i32
    return %arg0, %c0_i32 : i32, i32
  }
  func.func @transform_1(%arg0: i32) -> (i32, i32) {
    %c0_i32 = arith.constant 0 : i32
    %c0_i32_0 = arith.constant 0 : i32
    %c0_i32_1 = arith.constant 0 : i32
    return %c0_i32, %c0_i32_0 : i32, i32
  }
  func.func @transform_2(%arg0: i32) -> (i32, i32) {
    %c0_i32 = arith.constant 0 : i32
    %c0_i32_0 = arith.constant 0 : i32
    %c0_i32_1 = arith.constant 0 : i32
    return %c0_i32, %c0_i32_0 : i32, i32
  }
  func.func @transform_3(%arg0: i32) -> (i32, i32) {
    %c0_i32 = arith.constant 0 : i32
    %c0_i32_0 = arith.constant 0 : i32
    return %arg0, %c0_i32 : i32, i32
  }
}

module attributes {stable_mosaic.version = 11 : i64} {
  func.func @_mm_stats_kernel(%arg0: i32, %arg1: i32, %arg2: i32, %arg3: memref<16x512xbf16, #tpu.memory_space<vmem>>, %arg4: memref<512x256xbf16, #tpu.memory_space<vmem>>, %arg5: memref<16x256xbf16, #tpu.memory_space<vmem>>, %arg6: memref<1x8x256xf32, #tpu.memory_space<vmem>>, %arg7: memref<1x8x256xf32, #tpu.memory_space<vmem>>, %arg8: memref<16x256xf32, #tpu.memory_space<vmem>>) attributes {dimension_semantics = [#tpu.dimension_semantics<parallel>, #tpu.dimension_semantics<parallel>, #tpu.dimension_semantics<arbitrary>], iteration_bounds = array<i64: 1, 2, 5>, scalar_prefetch = 0 : i64, scratch_operands = 1 : i64, tpu.core_type = #tpu.core_type<tc>, window_params = [{transform_indices = @transform_0, window_bounds = array<i64: 16, 512>}, {transform_indices = @transform_1, window_bounds = array<i64: 512, 256>}, {transform_indices = @transform_2, window_bounds = array<i64: 16, 256>}, {transform_indices = @transform_3, window_bounds = array<i64: 1, 8, 256>}, {transform_indices = @transform_4, window_bounds = array<i64: 1, 8, 256>}]} {
    %c0_i32 = arith.constant 0 : i32
    %0 = arith.cmpi eq, %arg2, %c0_i32 : i32
    %1 = arith.extui %0 : i1 to i32
    %c0_i32_0 = arith.constant 0 : i32
    %2 = arith.cmpi ne, %1, %c0_i32_0 : i32
    scf.if %2 {
      %cst_9 = arith.constant 0.000000e+00 : f32
      %12 = vector.broadcast %cst_9 : f32 to vector<16x256xf32>
      %c0_10 = arith.constant 0 : index
      %c0_11 = arith.constant 0 : index
      %13 = vector.load %arg8[%c0_10, %c0_11] : memref<16x256xf32, #tpu.memory_space<vmem>>, vector<16x256xf32>
      tpu.vector_store %arg8[%c0_10, %c0_11], %12 {strides = array<i32>} : memref<16x256xf32, #tpu.memory_space<vmem>>, vector<16x256xf32>,
    } else {
    }
    %c0 = arith.constant 0 : index
    %c0_1 = arith.constant 0 : index
    %3 = vector.load %arg8[%c0, %c0_1] : memref<16x256xf32, #tpu.memory_space<vmem>>, vector<16x256xf32>
    %c0_2 = arith.constant 0 : index
    %c0_3 = arith.constant 0 : index
    %4 = vector.load %arg3[%c0_2, %c0_3] : memref<16x512xbf16, #tpu.memory_space<vmem>>, vector<16x512xbf16>
    %c0_4 = arith.constant 0 : index
    %c0_5 = arith.constant 0 : index
    %5 = vector.load %arg4[%c0_4, %c0_5] : memref<512x256xbf16, #tpu.memory_space<vmem>>, vector<512x256xbf16>
    %cst = arith.constant dense<0.000000e+00> : vector<16x256xf32>
    %6 = tpu.matmul %4, %5, %cst {dimension_numbers = #tpu.dot_dimension_numbers<[1], [0], [0], [1], [0, 0, 1, 1], [], []>} : vector<16x512xbf16>, vector<512x256xbf16>, vector<16x256xf32> -> vector<16x256xf32>
    %7 = arith.addf %3, %6 : vector<16x256xf32>
    %c0_6 = arith.constant 0 : index
    %c0_7 = arith.constant 0 : index
    %8 = vector.load %arg8[%c0_6, %c0_7] : memref<16x256xf32, #tpu.memory_space<vmem>>, vector<16x256xf32>
    tpu.vector_store %arg8[%c0_6, %c0_7], %7 {strides = array<i32>} : memref<16x256xf32, #tpu.memory_space<vmem>>, vector<16x256xf32>,
    %c4_i32 = arith.constant 4 : i32
    %9 = arith.cmpi eq, %arg2, %c4_i32 : i32
    %10 = arith.extui %9 : i1 to i32
    %c0_i32_8 = arith.constant 0 : i32
    %11 = arith.cmpi ne, %10, %c0_i32_8 : i32
    scf.if %11 {
      %c0_9 = arith.constant 0 : index
      %c0_10 = arith.constant 0 : index
      %12 = vector.load %arg8[%c0_9, %c0_10] : memref<16x256xf32, #tpu.memory_space<vmem>>, vector<16x256xf32>
      %13 = arith.truncf %12 : vector<16x256xf32> to vector<16x256xbf16>
      %c0_11 = arith.constant 0 : index
      %c0_12 = arith.constant 0 : index
      %14 = vector.load %arg5[%c0_11, %c0_12] : memref<16x256xbf16, #tpu.memory_space<vmem>>, vector<16x256xbf16>
      tpu.vector_store %arg5[%c0_11, %c0_12], %13 {strides = array<i32>} : memref<16x256xbf16, #tpu.memory_space<vmem>>, vector<16x256xbf16>,
      %cst_13 = arith.constant dense<0.000000e+00> : vector<256xf32>
      %15 = vector.multi_reduction <add>, %12, %cst_13 [0] : vector<16x256xf32> to vector<256xf32>
      %16 = vector.shape_cast %15 : vector<256xf32> to vector<1x256xf32>
      %17 = arith.mulf %12, %12 : vector<16x256xf32>
      %cst_14 = arith.constant dense<0.000000e+00> : vector<256xf32>
      %18 = vector.multi_reduction <add>, %17, %cst_14 [0] : vector<16x256xf32> to vector<256xf32>
      %19 = vector.shape_cast %18 : vector<256xf32> to vector<1x256xf32>
      %20 = vector.shape_cast %16 : vector<1x256xf32> to vector<1x256xf32>
      %21 = vector.broadcast %20 : vector<1x256xf32> to vector<8x256xf32>
      %c0_15 = arith.constant 0 : index
      %c0_16 = arith.constant 0 : index
      %c0_17 = arith.constant 0 : index
      %22 = vector.load %arg6[%c0_15, %c0_16, %c0_17] : memref<1x8x256xf32, #tpu.memory_space<vmem>>, vector<1x8x256xf32>
      %23 = vector.shape_cast %22 : vector<1x8x256xf32> to vector<8x256xf32>
      %24 = vector.shape_cast %21 : vector<8x256xf32> to vector<1x8x256xf32>
      tpu.vector_store %arg6[%c0_15, %c0_16, %c0_17], %24 {strides = array<i32>} : memref<1x8x256xf32, #tpu.memory_space<vmem>>, vector<1x8x256xf32>,
      %25 = vector.shape_cast %19 : vector<1x256xf32> to vector<1x256xf32>
      %26 = vector.broadcast %25 : vector<1x256xf32> to vector<8x256xf32>
      %c0_18 = arith.constant 0 : index
      %c0_19 = arith.constant 0 : index
      %c0_20 = arith.constant 0 : index
      %27 = vector.load %arg7[%c0_18, %c0_19, %c0_20] : memref<1x8x256xf32, #tpu.memory_space<vmem>>, vector<1x8x256xf32>
      %28 = vector.shape_cast %27 : vector<1x8x256xf32> to vector<8x256xf32>
      %29 = vector.shape_cast %26 : vector<8x256xf32> to vector<1x8x256xf32>
      tpu.vector_store %arg7[%c0_18, %c0_19, %c0_20], %29 {strides = array<i32>} : memref<1x8x256xf32, #tpu.memory_space<vmem>>, vector<1x8x256xf32>,
    } else {
    }
    return
  }
  func.func @transform_0(%arg0: i32, %arg1: i32, %arg2: i32) -> (i32, i32) {
    %c0_i32 = arith.constant 0 : i32
    return %arg0, %arg2 : i32, i32
  }
  func.func @transform_1(%arg0: i32, %arg1: i32, %arg2: i32) -> (i32, i32) {
    %c0_i32 = arith.constant 0 : i32
    return %arg2, %arg1 : i32, i32
  }
  func.func @transform_2(%arg0: i32, %arg1: i32, %arg2: i32) -> (i32, i32) {
    %c0_i32 = arith.constant 0 : i32
    return %arg0, %arg1 : i32, i32
  }
  func.func @transform_3(%arg0: i32, %arg1: i32, %arg2: i32) -> (i32, i32, i32) {
    %c0_i32 = arith.constant 0 : i32
    %c0_i32_0 = arith.constant 0 : i32
    return %arg0, %c0_i32, %arg1 : i32, i32, i32
  }
  func.func @transform_4(%arg0: i32, %arg1: i32, %arg2: i32) -> (i32, i32, i32) {
    %c0_i32 = arith.constant 0 : i32
    %c0_i32_0 = arith.constant 0 : i32
    return %arg0, %c0_i32, %arg1 : i32, i32, i32
  }
}

module attributes {stable_mosaic.version = 11 : i64} {
  func.func @_bn_act_kernel(%arg0: i32, %arg1: memref<16x512xbf16, #tpu.memory_space<vmem>>, %arg2: memref<1x512xf32, #tpu.memory_space<vmem>>, %arg3: memref<1x512xf32, #tpu.memory_space<vmem>>, %arg4: memref<16x512xbf16, #tpu.memory_space<vmem>>) attributes {dimension_semantics = [#tpu.dimension_semantics<parallel>], iteration_bounds = array<i64: 1>, scalar_prefetch = 0 : i64, scratch_operands = 0 : i64, tpu.core_type = #tpu.core_type<tc>, window_params = [{transform_indices = @transform_0, window_bounds = array<i64: 16, 512>}, {pipeline_mode = #tpu.pipeline_mode<synchronous>, transform_indices = @transform_1, window_bounds = array<i64: 1, 512>}, {pipeline_mode = #tpu.pipeline_mode<synchronous>, transform_indices = @transform_2, window_bounds = array<i64: 1, 512>}, {transform_indices = @transform_3, window_bounds = array<i64: 16, 512>}]} {
    %c0 = arith.constant 0 : index
    %c0_0 = arith.constant 0 : index
    %0 = vector.load %arg1[%c0, %c0_0] : memref<16x512xbf16, #tpu.memory_space<vmem>>, vector<16x512xbf16>
    %1 = arith.extf %0 : vector<16x512xbf16> to vector<16x512xf32>
    %c0_1 = arith.constant 0 : index
    %c0_2 = arith.constant 0 : index
    %2 = vector.load %arg2[%c0_1, %c0_2] : memref<1x512xf32, #tpu.memory_space<vmem>>, vector<1x512xf32>
    %3 = vector.broadcast %2 : vector<1x512xf32> to vector<16x512xf32>
    %4 = arith.mulf %1, %3 : vector<16x512xf32>
    %c0_3 = arith.constant 0 : index
    %c0_4 = arith.constant 0 : index
    %5 = vector.load %arg3[%c0_3, %c0_4] : memref<1x512xf32, #tpu.memory_space<vmem>>, vector<1x512xf32>
    %6 = vector.broadcast %5 : vector<1x512xf32> to vector<16x512xf32>
    %7 = arith.addf %4, %6 : vector<16x512xf32>
    %cst = arith.constant 0.000000e+00 : f32
    %8 = vector.broadcast %cst : f32 to vector<16x512xf32>
    %9 = arith.maximumf %7, %8 : vector<16x512xf32>
    %10 = arith.truncf %9 : vector<16x512xf32> to vector<16x512xbf16>
    %c0_5 = arith.constant 0 : index
    %c0_6 = arith.constant 0 : index
    %11 = vector.load %arg4[%c0_5, %c0_6] : memref<16x512xbf16, #tpu.memory_space<vmem>>, vector<16x512xbf16>
    tpu.vector_store %arg4[%c0_5, %c0_6], %10 {strides = array<i32>} : memref<16x512xbf16, #tpu.memory_space<vmem>>, vector<16x512xbf16>,
    return
  }
  func.func @transform_0(%arg0: i32) -> (i32, i32) {
    %c0_i32 = arith.constant 0 : i32
    %c0_i32_0 = arith.constant 0 : i32
    return %arg0, %c0_i32 : i32, i32
  }
  func.func @transform_1(%arg0: i32) -> (i32, i32) {
    %c0_i32 = arith.constant 0 : i32
    %c0_i32_0 = arith.constant 0 : i32
    %c0_i32_1 = arith.constant 0 : i32
    return %c0_i32, %c0_i32_0 : i32, i32
  }
  func.func @transform_2(%arg0: i32) -> (i32, i32) {
    %c0_i32 = arith.constant 0 : i32
    %c0_i32_0 = arith.constant 0 : i32
    %c0_i32_1 = arith.constant 0 : i32
    return %c0_i32, %c0_i32_0 : i32, i32
  }
  func.func @transform_3(%arg0: i32) -> (i32, i32) {
    %c0_i32 = arith.constant 0 : i32
    %c0_i32_0 = arith.constant 0 : i32
    return %arg0, %c0_i32 : i32, i32
  }
}

module attributes {stable_mosaic.version = 11 : i64} {
  func.func @_mm_stats_kernel(%arg0: i32, %arg1: i32, %arg2: i32, %arg3: memref<16x512xbf16, #tpu.memory_space<vmem>>, %arg4: memref<512x256xbf16, #tpu.memory_space<vmem>>, %arg5: memref<16x256xbf16, #tpu.memory_space<vmem>>, %arg6: memref<1x8x256xf32, #tpu.memory_space<vmem>>, %arg7: memref<1x8x256xf32, #tpu.memory_space<vmem>>, %arg8: memref<16x256xf32, #tpu.memory_space<vmem>>) attributes {dimension_semantics = [#tpu.dimension_semantics<parallel>, #tpu.dimension_semantics<parallel>, #tpu.dimension_semantics<arbitrary>], iteration_bounds = array<i64: 1, 2, 9>, scalar_prefetch = 0 : i64, scratch_operands = 1 : i64, tpu.core_type = #tpu.core_type<tc>, window_params = [{transform_indices = @transform_0, window_bounds = array<i64: 16, 512>}, {transform_indices = @transform_1, window_bounds = array<i64: 512, 256>}, {transform_indices = @transform_2, window_bounds = array<i64: 16, 256>}, {transform_indices = @transform_3, window_bounds = array<i64: 1, 8, 256>}, {transform_indices = @transform_4, window_bounds = array<i64: 1, 8, 256>}]} {
    %c0_i32 = arith.constant 0 : i32
    %0 = arith.cmpi eq, %arg2, %c0_i32 : i32
    %1 = arith.extui %0 : i1 to i32
    %c0_i32_0 = arith.constant 0 : i32
    %2 = arith.cmpi ne, %1, %c0_i32_0 : i32
    scf.if %2 {
      %cst_9 = arith.constant 0.000000e+00 : f32
      %12 = vector.broadcast %cst_9 : f32 to vector<16x256xf32>
      %c0_10 = arith.constant 0 : index
      %c0_11 = arith.constant 0 : index
      %13 = vector.load %arg8[%c0_10, %c0_11] : memref<16x256xf32, #tpu.memory_space<vmem>>, vector<16x256xf32>
      tpu.vector_store %arg8[%c0_10, %c0_11], %12 {strides = array<i32>} : memref<16x256xf32, #tpu.memory_space<vmem>>, vector<16x256xf32>,
    } else {
    }
    %c0 = arith.constant 0 : index
    %c0_1 = arith.constant 0 : index
    %3 = vector.load %arg8[%c0, %c0_1] : memref<16x256xf32, #tpu.memory_space<vmem>>, vector<16x256xf32>
    %c0_2 = arith.constant 0 : index
    %c0_3 = arith.constant 0 : index
    %4 = vector.load %arg3[%c0_2, %c0_3] : memref<16x512xbf16, #tpu.memory_space<vmem>>, vector<16x512xbf16>
    %c0_4 = arith.constant 0 : index
    %c0_5 = arith.constant 0 : index
    %5 = vector.load %arg4[%c0_4, %c0_5] : memref<512x256xbf16, #tpu.memory_space<vmem>>, vector<512x256xbf16>
    %cst = arith.constant dense<0.000000e+00> : vector<16x256xf32>
    %6 = tpu.matmul %4, %5, %cst {dimension_numbers = #tpu.dot_dimension_numbers<[1], [0], [0], [1], [0, 0, 1, 1], [], []>} : vector<16x512xbf16>, vector<512x256xbf16>, vector<16x256xf32> -> vector<16x256xf32>
    %7 = arith.addf %3, %6 : vector<16x256xf32>
    %c0_6 = arith.constant 0 : index
    %c0_7 = arith.constant 0 : index
    %8 = vector.load %arg8[%c0_6, %c0_7] : memref<16x256xf32, #tpu.memory_space<vmem>>, vector<16x256xf32>
    tpu.vector_store %arg8[%c0_6, %c0_7], %7 {strides = array<i32>} : memref<16x256xf32, #tpu.memory_space<vmem>>, vector<16x256xf32>,
    %c8_i32 = arith.constant 8 : i32
    %9 = arith.cmpi eq, %arg2, %c8_i32 : i32
    %10 = arith.extui %9 : i1 to i32
    %c0_i32_8 = arith.constant 0 : i32
    %11 = arith.cmpi ne, %10, %c0_i32_8 : i32
    scf.if %11 {
      %c0_9 = arith.constant 0 : index
      %c0_10 = arith.constant 0 : index
      %12 = vector.load %arg8[%c0_9, %c0_10] : memref<16x256xf32, #tpu.memory_space<vmem>>, vector<16x256xf32>
      %13 = arith.truncf %12 : vector<16x256xf32> to vector<16x256xbf16>
      %c0_11 = arith.constant 0 : index
      %c0_12 = arith.constant 0 : index
      %14 = vector.load %arg5[%c0_11, %c0_12] : memref<16x256xbf16, #tpu.memory_space<vmem>>, vector<16x256xbf16>
      tpu.vector_store %arg5[%c0_11, %c0_12], %13 {strides = array<i32>} : memref<16x256xbf16, #tpu.memory_space<vmem>>, vector<16x256xbf16>,
      %cst_13 = arith.constant dense<0.000000e+00> : vector<256xf32>
      %15 = vector.multi_reduction <add>, %12, %cst_13 [0] : vector<16x256xf32> to vector<256xf32>
      %16 = vector.shape_cast %15 : vector<256xf32> to vector<1x256xf32>
      %17 = arith.mulf %12, %12 : vector<16x256xf32>
      %cst_14 = arith.constant dense<0.000000e+00> : vector<256xf32>
      %18 = vector.multi_reduction <add>, %17, %cst_14 [0] : vector<16x256xf32> to vector<256xf32>
      %19 = vector.shape_cast %18 : vector<256xf32> to vector<1x256xf32>
      %20 = vector.shape_cast %16 : vector<1x256xf32> to vector<1x256xf32>
      %21 = vector.broadcast %20 : vector<1x256xf32> to vector<8x256xf32>
      %c0_15 = arith.constant 0 : index
      %c0_16 = arith.constant 0 : index
      %c0_17 = arith.constant 0 : index
      %22 = vector.load %arg6[%c0_15, %c0_16, %c0_17] : memref<1x8x256xf32, #tpu.memory_space<vmem>>, vector<1x8x256xf32>
      %23 = vector.shape_cast %22 : vector<1x8x256xf32> to vector<8x256xf32>
      %24 = vector.shape_cast %21 : vector<8x256xf32> to vector<1x8x256xf32>
      tpu.vector_store %arg6[%c0_15, %c0_16, %c0_17], %24 {strides = array<i32>} : memref<1x8x256xf32, #tpu.memory_space<vmem>>, vector<1x8x256xf32>,
      %25 = vector.shape_cast %19 : vector<1x256xf32> to vector<1x256xf32>
      %26 = vector.broadcast %25 : vector<1x256xf32> to vector<8x256xf32>
      %c0_18 = arith.constant 0 : index
      %c0_19 = arith.constant 0 : index
      %c0_20 = arith.constant 0 : index
      %27 = vector.load %arg7[%c0_18, %c0_19, %c0_20] : memref<1x8x256xf32, #tpu.memory_space<vmem>>, vector<1x8x256xf32>
      %28 = vector.shape_cast %27 : vector<1x8x256xf32> to vector<8x256xf32>
      %29 = vector.shape_cast %26 : vector<8x256xf32> to vector<1x8x256xf32>
      tpu.vector_store %arg7[%c0_18, %c0_19, %c0_20], %29 {strides = array<i32>} : memref<1x8x256xf32, #tpu.memory_space<vmem>>, vector<1x8x256xf32>,
    } else {
    }
    return
  }
  func.func @transform_0(%arg0: i32, %arg1: i32, %arg2: i32) -> (i32, i32) {
    %c0_i32 = arith.constant 0 : i32
    return %arg0, %arg2 : i32, i32
  }
  func.func @transform_1(%arg0: i32, %arg1: i32, %arg2: i32) -> (i32, i32) {
    %c0_i32 = arith.constant 0 : i32
    return %arg2, %arg1 : i32, i32
  }
  func.func @transform_2(%arg0: i32, %arg1: i32, %arg2: i32) -> (i32, i32) {
    %c0_i32 = arith.constant 0 : i32
    return %arg0, %arg1 : i32, i32
  }
  func.func @transform_3(%arg0: i32, %arg1: i32, %arg2: i32) -> (i32, i32, i32) {
    %c0_i32 = arith.constant 0 : i32
    %c0_i32_0 = arith.constant 0 : i32
    return %arg0, %c0_i32, %arg1 : i32, i32, i32
  }
  func.func @transform_4(%arg0: i32, %arg1: i32, %arg2: i32) -> (i32, i32, i32) {
    %c0_i32 = arith.constant 0 : i32
    %c0_i32_0 = arith.constant 0 : i32
    return %arg0, %c0_i32, %arg1 : i32, i32, i32
  }
}

module attributes {stable_mosaic.version = 11 : i64} {
  func.func @_bn_act_kernel(%arg0: i32, %arg1: memref<16x512xbf16, #tpu.memory_space<vmem>>, %arg2: memref<1x512xf32, #tpu.memory_space<vmem>>, %arg3: memref<1x512xf32, #tpu.memory_space<vmem>>, %arg4: memref<16x512xbf16, #tpu.memory_space<vmem>>, %arg5: memref<16x512xbf16, #tpu.memory_space<vmem>>) attributes {dimension_semantics = [#tpu.dimension_semantics<parallel>], iteration_bounds = array<i64: 1>, scalar_prefetch = 0 : i64, scratch_operands = 0 : i64, tpu.core_type = #tpu.core_type<tc>, window_params = [{transform_indices = @transform_0, window_bounds = array<i64: 16, 512>}, {pipeline_mode = #tpu.pipeline_mode<synchronous>, transform_indices = @transform_1, window_bounds = array<i64: 1, 512>}, {pipeline_mode = #tpu.pipeline_mode<synchronous>, transform_indices = @transform_2, window_bounds = array<i64: 1, 512>}, {transform_indices = @transform_3, window_bounds = array<i64: 16, 512>}, {transform_indices = @transform_4, window_bounds = array<i64: 16, 512>}]} {
    %c0 = arith.constant 0 : index
    %c0_0 = arith.constant 0 : index
    %0 = vector.load %arg1[%c0, %c0_0] : memref<16x512xbf16, #tpu.memory_space<vmem>>, vector<16x512xbf16>
    %1 = arith.extf %0 : vector<16x512xbf16> to vector<16x512xf32>
    %c0_1 = arith.constant 0 : index
    %c0_2 = arith.constant 0 : index
    %2 = vector.load %arg2[%c0_1, %c0_2] : memref<1x512xf32, #tpu.memory_space<vmem>>, vector<1x512xf32>
    %3 = vector.broadcast %2 : vector<1x512xf32> to vector<16x512xf32>
    %4 = arith.mulf %1, %3 : vector<16x512xf32>
    %c0_3 = arith.constant 0 : index
    %c0_4 = arith.constant 0 : index
    %5 = vector.load %arg3[%c0_3, %c0_4] : memref<1x512xf32, #tpu.memory_space<vmem>>, vector<1x512xf32>
    %6 = vector.broadcast %5 : vector<1x512xf32> to vector<16x512xf32>
    %7 = arith.addf %4, %6 : vector<16x512xf32>
    %c0_5 = arith.constant 0 : index
    %c0_6 = arith.constant 0 : index
    %8 = vector.load %arg4[%c0_5, %c0_6] : memref<16x512xbf16, #tpu.memory_space<vmem>>, vector<16x512xbf16>
    %9 = arith.extf %8 : vector<16x512xbf16> to vector<16x512xf32>
    %10 = arith.addf %7, %9 : vector<16x512xf32>
    %cst = arith.constant 0.000000e+00 : f32
    %11 = vector.broadcast %cst : f32 to vector<16x512xf32>
    %12 = arith.maximumf %10, %11 : vector<16x512xf32>
    %13 = arith.truncf %12 : vector<16x512xf32> to vector<16x512xbf16>
    %c0_7 = arith.constant 0 : index
    %c0_8 = arith.constant 0 : index
    %14 = vector.load %arg5[%c0_7, %c0_8] : memref<16x512xbf16, #tpu.memory_space<vmem>>, vector<16x512xbf16>
    tpu.vector_store %arg5[%c0_7, %c0_8], %13 {strides = array<i32>} : memref<16x512xbf16, #tpu.memory_space<vmem>>, vector<16x512xbf16>,
    return
  }
  func.func @transform_0(%arg0: i32) -> (i32, i32) {
    %c0_i32 = arith.constant 0 : i32
    %c0_i32_0 = arith.constant 0 : i32
    return %arg0, %c0_i32 : i32, i32
  }
  func.func @transform_1(%arg0: i32) -> (i32, i32) {
    %c0_i32 = arith.constant 0 : i32
    %c0_i32_0 = arith.constant 0 : i32
    %c0_i32_1 = arith.constant 0 : i32
    return %c0_i32, %c0_i32_0 : i32, i32
  }
  func.func @transform_2(%arg0: i32) -> (i32, i32) {
    %c0_i32 = arith.constant 0 : i32
    %c0_i32_0 = arith.constant 0 : i32
    %c0_i32_1 = arith.constant 0 : i32
    return %c0_i32, %c0_i32_0 : i32, i32
  }
  func.func @transform_3(%arg0: i32) -> (i32, i32) {
    %c0_i32 = arith.constant 0 : i32
    %c0_i32_0 = arith.constant 0 : i32
    return %arg0, %c0_i32 : i32, i32
  }
  func.func @transform_4(%arg0: i32) -> (i32, i32) {
    %c0_i32 = arith.constant 0 : i32
    %c0_i32_0 = arith.constant 0 : i32
    return %arg0, %c0_i32 : i32, i32
  }
}

</mosaic_0001>

<bundles_post_ra>
// kernel: forward.41
= control target key start
LH: loop header
LB: loop body
LE: loop exit
PB: predicated region body
PF: predicated region fallthrough
CT: control target
= control target key end

     0   :  { %s422_s0 = inlined_call_operand.vmem [shape: bf16[128,128], index: 0, kind: input, shape index: {}]   ;;  %s423_s1 = inlined_call_operand.vmem [shape: f32[1,128], index: 1, kind: input, shape index: {}]   ;;  %s424_s2 = inlined_call_operand.vmem [shape: f32[1,128], index: 2, kind: input, shape index: {}]   ;;  %s425_s3 = inlined_call_operand.vmem [shape: bf16[128,128], index: 3, kind: output, shape index: {}]  }
   0x1   :  { %v227_v0 = vld [vmem:[%s422_s0] sm:$0xff]   ;;  %v298_v4 = vld [vmem:[%s422_s0 + $0x8] sm:$0xff]   ;;  %v299_v5 = vld [vmem:[%s422_s0 + $0x10] sm:$0xff]  }
   0x2   :  { %v338_v1 = vld [vmem:[%s423_s1] ss:$0 sm:$0xff]  ;;  %v228_v2 = vunpack.c.l.bf16 %v227_v0  ;;  %v229_v3 = vunpack.c.h.bf16 %v227_v0  ;;  %v300_v6 = vld [vmem:[%s422_s0 + $0x18] sm:$0xff]   ;;  %v232_v8 = vunpack.c.l.bf16 %v298_v4  ;;  %v233_v9 = vunpack.c.h.bf16 %v298_v4  ;;  %v302_v33 = vld [vmem:[%s422_s0 + $0x28] sm:$0xff]  }
   0x3   :  { %v352_v7 = vld [vmem:[%s424_s2] ss:$0 sm:$0xff]  ;;  %v236_v10 = vunpack.c.l.bf16 %v299_v5  ;;  %v237_v11 = vunpack.c.h.bf16 %v299_v5  ;;  %v240_v14 = vunpack.c.l.bf16 %v300_v6  ;;  %v241_v15 = vunpack.c.h.bf16 %v300_v6  ;;  %v303_v38 = vld [vmem:[%s422_s0 + $0x30] sm:$0xff]   ;;  %v304_v43 = vld [vmem:[%s422_s0 + $0x38] sm:$0xff]  }
   0x4   :  { %v53_v12 = vmul.f32 %v228_v2, %v338_v1  ;;  %v54_v13 = vmul.f32 %v229_v3, %v338_v1  ;;  %v55_v16 = vmul.f32 %v232_v8, %v338_v1  ;;  %v56_v17 = vmul.f32 %v233_v9, %v338_v1  ;;  %v301_v28 = vld [vmem:[%s422_s0 + $0x20] sm:$0xff]  }
   0x5   :  { %v57_v18 = vmul.f32 %v236_v10, %v338_v1  ;;  %v58_v19 = vmul.f32 %v237_v11, %v338_v1  ;;  %v59_v22 = vmul.f32 %v240_v14, %v338_v1  ;;  %v60_v23 = vmul.f32 %v241_v15, %v338_v1 }
   0x6   :  { %v76_v20 = vadd.f32 %v352_v7, %v53_v12  ;;  %v77_v21 = vadd.f32 %v352_v7, %v54_v13  ;;  %v78_v24 = vadd.f32 %v352_v7, %v55_v16  ;;  %v79_v25 = vadd.f32 %v352_v7, %v56_v17 }
   0x7   :  { %v80_v26 = vadd.f32 %v352_v7, %v57_v18  ;;  %v81_v27 = vadd.f32 %v352_v7, %v58_v19  ;;  %v82_v31 = vadd.f32 %v352_v7, %v59_v22  ;;  %v83_v32 = vadd.f32 %v352_v7, %v60_v23 }
   0x8   :  { %v92_v29 = vmax.f32 %v76_v20, 0.0  ;;  %v93_v30 = vmax.f32 %v77_v21, 0.0  ;;  %v94_v34 = vmax.f32 %v78_v24, 0.0  ;;  %v95_v35 = vmax.f32 %v79_v25, 0.0 }
   0x9   :  { %v96_v36 = vmax.f32 %v80_v26, 0.0  ;;  %v97_v37 = vmax.f32 %v81_v27, 0.0  ;;  %v98_v40 = vmax.f32 %v82_v31, 0.0  ;;  %v99_v41 = vmax.f32 %v83_v32, 0.0 }
   0xa   :  { %v261_v39 = vpack.c.bf16 %v93_v30, %v92_v29  ;;  %v244_v42 = vunpack.c.l.bf16 %v301_v28  ;;  %v266_v44 = vpack.c.bf16 %v95_v35, %v94_v34  ;;  %v245_v46 = vunpack.c.h.bf16 %v301_v28 }
   0xb   :  { %v271_v45 = vpack.c.bf16 %v97_v37, %v96_v36  ;;  %v248_v47 = vunpack.c.l.bf16 %v302_v33  ;;  %v276_v48 = vpack.c.bf16 %v99_v41, %v98_v40  ;;  %v249_v50 = vunpack.c.h.bf16 %v302_v33 }
   0xc   :  { %262 = vst [vmem:[%s425_s3] sm:$0xff] %v261_v39   ;;  %v61_v49 = vmul.f32 %v244_v42, %v338_v1  ;;  %v252_v51 = vunpack.c.l.bf16 %v303_v38  ;;  %305 = vst [vmem:[%s425_s3 + $0x8] sm:$0xff] %v266_v44   ;;  %v62_v52 = vmul.f32 %v245_v46, %v338_v1  ;;  %v253_v54 = vunpack.c.h.bf16 %v303_v38 }
   0xd   :  { %306 = vst [vmem:[%s425_s3 + $0x10] sm:$0xff] %v271_v45   ;;  %v63_v53 = vmul.f32 %v248_v47, %v338_v1  ;;  %v256_v55 = vunpack.c.l.bf16 %v304_v43  ;;  %307 = vst [vmem:[%s425_s3 + $0x18] sm:$0xff] %v276_v48   ;;  %v64_v57 = vmul.f32 %v249_v50, %v338_v1  ;;  %v257_v59 = vunpack.c.h.bf16 %v304_v43 }
   0xe   :  { %v84_v56 = vadd.f32 %v352_v7, %v61_v49  ;;  %v65_v58 = vmul.f32 %v252_v51, %v338_v1  ;;  %v85_v60 = vadd.f32 %v352_v7, %v62_v52  ;;  %v66_v62 = vmul.f32 %v253_v54, %v338_v1 }
   0xf   :  { %v86_v61 = vadd.f32 %v352_v7, %v63_v53  ;;  %v67_v63 = vmul.f32 %v256_v55, %v338_v1  ;;  %v87_v2 = vadd.f32 %v352_v7, %v64_v57  ;;  %v68_v4 = vmul.f32 %v257_v59, %v338_v1 }
  0x10   :  { %v100_v0 = vmax.f32 %v84_v56, 0.0  ;;  %v88_v3 = vadd.f32 %v352_v7, %v65_v58  ;;  %v101_v5 = vmax.f32 %v85_v60, 0.0  ;;  %v89_v8 = vadd.f32 %v352_v7, %v66_v62 }
  0x11   :  { %v102_v6 = vmax.f32 %v86_v61, 0.0  ;;  %v90_v9 = vadd.f32 %v352_v7, %v67_v63  ;;  %v103_v10 = vmax.f32 %v87_v2, 0.0  ;;  %v91_v12 = vadd.f32 %v352_v7, %v68_v4 }
  0x12   :  { %v104_v11 = vmax.f32 %v88_v3, 0.0  ;;  %v281_v13 = vpack.c.bf16 %v101_v5, %v100_v0  ;;  %v105_v14 = vmax.f32 %v89_v8, 0.0 }
  0x13   :  { %v106_v15 = vmax.f32 %v90_v9, 0.0  ;;  %v286_v16 = vpack.c.bf16 %v103_v10, %v102_v6  ;;  %v107_v17 = vmax.f32 %v91_v12, 0.0 }
  0x14   :  { %308 = vst [vmem:[%s425_s3 + $0x20] sm:$0xff] %v281_v13   ;;  %v291_v1 = vpack.c.bf16 %v105_v14, %v104_v11 }
  0x15   :  { %309 = vst [vmem:[%s425_s3 + $0x28] sm:$0xff] %v286_v16   ;;  %v296_v18 = vpack.c.bf16 %v107_v17, %v106_v15 }
  0x16   :  { %310 = vst [vmem:[%s425_s3 + $0x30] sm:$0xff] %v291_v1  }
  0x17   :  { %311 = vst [vmem:[%s425_s3 + $0x38] sm:$0xff] %v296_v18  }

// kernel: forward.40
= control target key start
LH: loop header
LB: loop body
LE: loop exit
PB: predicated region body
PF: predicated region fallthrough
CT: control target
= control target key end

     0   :  { %s975_s1 = inlined_call_operand.vmem [shape: bf16[256,128], index: 1, kind: input, shape index: {}]   ;;  %s976_s0 = inlined_call_operand.vmem [shape: bf16[128,256], index: 0, kind: input, shape index: {}]   ;;  %s977_s2 = inlined_call_operand.vmem [shape: bf16[128,128], index: 2, kind: output, shape index: {0}]   ;;  %s978_s3 = inlined_call_operand.vmem [shape: f32[1,8,128], index: 3, kind: output, shape index: {1}]   ;;  %s979_s4 = inlined_call_operand.vmem [shape: f32[1,8,128], index: 4, kind: output, shape index: {2}]  }
   0x1   :  { %v766_v0 = vld [vmem:[%s975_s1 + $0x40] sm:$0xff]   ;;  %v768_v2 = vld [vmem:[%s975_s1 + $0x48] sm:$0xff]   ;;  %v770_v4 = vld [vmem:[%s975_s1 + $0x50] sm:$0xff]  }
   0x2   :  { %v767_v1 = vld [vmem:[%s975_s1] sm:$0xff]   ;;  %686 = vmatprep.subr.bf16.mxu0 %v766_v0  ;;  %750 = vmatprep.subr.bf16.mxu1 %v766_v0  ;;  %v769_v3 = vld [vmem:[%s975_s1 + $0x8] sm:$0xff]   ;;  %v771_v5 = vld [vmem:[%s975_s1 + $0x10] sm:$0xff]  }
   0x3   :  { %687 = vmatpush3.bf16.msra.mxu0 %v767_v1  ;;  %758 = vmatpush3.bf16.msra.mxu1 %v767_v1  ;;  %v772_v6 = vld [vmem:[%s975_s1 + $0x58] sm:$0xff]   ;;  %v774_v8 = vld [vmem:[%s975_s1 + $0x60] sm:$0xff]   ;;  %v776_v10 = vld [vmem:[%s975_s1 + $0x68] sm:$0xff]  }
   0x4   :  { %688 = vmatprep.subr.bf16.mxu0 %v768_v2  ;;  %751 = vmatprep.subr.bf16.mxu1 %v768_v2  ;;  %v773_v7 = vld [vmem:[%s975_s1 + $0x18] sm:$0xff]   ;;  %v775_v9 = vld [vmem:[%s975_s1 + $0x20] sm:$0xff]   ;;  %v777_v12 = vld [vmem:[%s975_s1 + $0x28] sm:$0xff]  }
   0x5   :  { %v784_v11 = vld [vmem:[%s976_s0 + $0x4] ss:$8 sps:$4 sm:$0xff]   ;;  %v778_v14 = vld [vmem:[%s975_s1 + $0x70] sm:$0xff]   ;;  %v780_v16 = vld [vmem:[%s975_s1 + $0x78] sm:$0xff]  }
   0x6   :  { %v790_v13 = vld [vmem:[%s976_s0 + $0x44] ss:$8 sps:$4 sm:$0xff]   ;;  %307 = vmatprep.mubr.bf16.mxu0 %v784_v11  ;;  %v779_v15 = vld [vmem:[%s975_s1 + $0x30] sm:$0xff]   ;;  %v781_v17 = vld [vmem:[%s975_s1 + $0x38] sm:$0xff]  }
   0x7   :  { %689 = vmatpush3.bf16.msra.mxu0 %v769_v3  ;;  %759 = vmatpush3.bf16.msra.mxu1 %v769_v3  ;;  %v782_v18 = vld [vmem:[%s976_s0] ss:$8 sps:$4 sm:$0xff]   ;;  %v785_v20 = vld [vmem:[%s976_s0 + $0x14] ss:$8 sps:$4 sm:$0xff]   ;;  %v787_v22 = vld [vmem:[%s976_s0 + $0x10] ss:$8 sps:$4 sm:$0xff]  }
   0x8   :  { %690 = vmatprep.subr.bf16.mxu0 %v770_v4  ;;  %752 = vmatprep.subr.bf16.mxu1 %v770_v4  ;;  %v788_v19 = vld [vmem:[%s976_s0 + $0x40] ss:$8 sps:$4 sm:$0xff]   ;;  %v794_v21 = vld [vmem:[%s976_s0 + $0x54] ss:$8 sps:$4 sm:$0xff]   ;;  %v796_v23 = vld [vmem:[%s976_s0 + $0x50] ss:$8 sps:$4 sm:$0xff]  }
   0x9   :  { %339 = vmatprep.mubr.bf16.mxu1 %v790_v13  ;;  %v791_v24 = vld [vmem:[%s976_s0 + $0x24] ss:$8 sps:$4 sm:$0xff]   ;;  %v793_v26 = vld [vmem:[%s976_s0 + $0x20] ss:$8 sps:$4 sm:$0xff]   ;;  %v797_v28 = vld [vmem:[%s976_s0 + $0x34] ss:$8 sps:$4 sm:$0xff]  }
   0xa   :  { %v800_v25 = vld [vmem:[%s976_s0 + $0x64] ss:$8 sps:$4 sm:$0xff]   ;;  %v802_v27 = vld [vmem:[%s976_s0 + $0x60] ss:$8 sps:$4 sm:$0xff]   ;;  %v803_v29 = vld [vmem:[%s976_s0 + $0x74] ss:$8 sps:$4 sm:$0xff]  }
   0xb   :  { %691 = vmatpush3.bf16.msra.mxu0 %v771_v5  ;;  %760 = vmatpush3.bf16.msra.mxu1 %v771_v5  ;;  %v799_v30 = vld [vmem:[%s976_s0 + $0x30] ss:$8 sps:$4 sm:$0xff]  }
   0xc   :  { %692 = vmatprep.subr.bf16.mxu0 %v772_v6  ;;  %753 = vmatprep.subr.bf16.mxu1 %v772_v6  ;;  %v805_v31 = vld [vmem:[%s976_s0 + $0x70] ss:$8 sps:$4 sm:$0xff]  }
   0xf   :  { %693 = vmatpush3.bf16.msra.mxu0 %v773_v7  ;;  %761 = vmatpush3.bf16.msra.mxu1 %v773_v7 }
  0x10   :  { %694 = vmatprep.subr.bf16.mxu0 %v774_v8  ;;  %754 = vmatprep.subr.bf16.mxu1 %v774_v8 }
  0x13   :  { %695 = vmatpush3.bf16.msra.mxu0 %v775_v9  ;;  %762 = vmatpush3.bf16.msra.mxu1 %v775_v9 }
  0x14   :  { %696 = vmatprep.subr.bf16.mxu0 %v776_v10  ;;  %755 = vmatprep.subr.bf16.mxu1 %v776_v10 }
  0x17   :  { %697 = vmatpush3.bf16.msra.mxu0 %v777_v12  ;;  %763 = vmatpush3.bf16.msra.mxu1 %v777_v12 }
  0x18   :  { %698 = vmatprep.subr.bf16.mxu0 %v778_v14  ;;  %756 = vmatprep.subr.bf16.mxu1 %v778_v14 }
  0x1b   :  { %699 = vmatpush3.bf16.msra.mxu0 %v779_v15  ;;  %764 = vmatpush3.bf16.msra.mxu1 %v779_v15 }
  0x1c   :  { %700 = vmatprep.subr.bf16.mxu0 %v780_v16  ;;  %757 = vmatprep.subr.bf16.mxu1 %v780_v16 }
  0x1f   :  { %701 = vmatpush3.bf16.msra.mxu0 %v781_v17  ;;  %765 = vmatpush3.bf16.msra.mxu1 %v781_v17 }
  0x22   :  { %308 = vmatmul.mubr.bf16.vlgmr.msra.gmra.mrb[0].mxu0 %v782_v18  ;;  %340 = vmatmul.mubr.bf16.vlgmr.msra.gmra.mrb[0].mxu1 %v788_v19 }
  0x23   :  { %315 = vmatprep.mubr.bf16.mxu0 %v785_v20  ;;  %347 = vmatprep.mubr.bf16.mxu1 %v794_v21 }
  0x2a   :  { %316 = vmatmul.mubr.bf16.gmra.mrb[4].mxu0 %v787_v22  ;;  %348 = vmatmul.mubr.bf16.gmra.mrb[4].mxu1 %v796_v23 }
  0x2b   :  { %323 = vmatprep.mubr.bf16.mxu0 %v791_v24  ;;  %355 = vmatprep.mubr.bf16.mxu1 %v800_v25 }
  0x32   :  { %324 = vmatmul.mubr.bf16.gmra.mrb[8].mxu0 %v793_v26  ;;  %356 = vmatmul.mubr.bf16.gmra.mrb[8].mxu1 %v802_v27 }
  0x33   :  { %331 = vmatprep.mubr.bf16.mxu0 %v797_v28  ;;  %363 = vmatprep.mubr.bf16.mxu1 %v803_v29 }
  0x3a   :  { %332 = vmatmul.mubr.bf16.gmra.mrb[12].mxu0 %v799_v30  ;;  %364 = vmatmul.mubr.bf16.gmra.mrb[12].mxu1 %v805_v31 }
  0xf5   :  { %v702_v32 = vpop.f32.mrb[0].mxu0  ;;  %v726_v33 = vpop.f32.mrb[0].mxu1 }
  0xf6   :  { %v703_v34 = vpop.f32.mrb[1].mxu0  ;;  %v727_v35 = vpop.f32.mrb[1].mxu1 }
  0xf7   :  { %v704_v36 = vadd.f32 %v703_v34, %v702_v32  ;;  %v705_v37 = vpop.f32.mrb[2].mxu0  ;;  %v927_v38 = vadd.f32 %v727_v35, %v726_v33  ;;  %v729_v39 = vpop.f32.mrb[2].mxu1 }
  0xf8   :  { %v706_v40 = vpop.f32.mrb[3].mxu0  ;;  %v730_v41 = vpop.f32.mrb[3].mxu1 }
  0xf9   :  { %v707_v42 = vadd.f32 %v706_v40, %v705_v37  ;;  %v929_v43 = vadd.f32 %v730_v41, %v729_v39  ;;  %v524_v44 = vmul.f32 %v704_v36, %v704_v36 }
  0xfb   :  { %v642_v45 = vpack.c.bf16 %v707_v42, %v704_v36  ;;  %v503_v46 = vadd.f32 %v707_v42, %v704_v36  ;;  %v525_v47 = vmul.f32 %v707_v42, %v707_v42  ;;  %v662_v48 = vpack.c.bf16 %v929_v43, %v927_v38 }
  0xfd   :  { %643 = vst [vmem:[%s977_s2] sm:$0xff] %v642_v45   ;;  %v540_v49 = vadd.f32 %v525_v47, %v524_v44  ;;  %v708_v50 = vpop.f32.mrb[4].mxu0  ;;  %682 = vst [vmem:[%s977_s2 + $0x20] sm:$0xff] %v662_v48   ;;  %v732_v51 = vpop.f32.mrb[4].mxu1  ;;  %v532_v47 = vmul.f32 %v927_v38, %v927_v38 }
  0xfe   :  { %v709_v52 = vpop.f32.mrb[5].mxu0  ;;  %v733_v53 = vpop.f32.mrb[5].mxu1 }
  0xff   :  { %v710_v54 = vadd.f32 %v709_v52, %v708_v50  ;;  %v711_v55 = vpop.f32.mrb[6].mxu0  ;;  %v939_v56 = vadd.f32 %v733_v53, %v732_v51  ;;  %v735_v57 = vpop.f32.mrb[6].mxu1  ;;  %v533_v50 = vmul.f32 %v929_v43, %v929_v43 }
 0x100   :  { %v712_v58 = vpop.f32.mrb[7].mxu0  ;;  %v736_v59 = vpop.f32.mrb[7].mxu1 }
 0x101   :  { %v504_v60 = vadd.f32 %v710_v54, %v503_v46  ;;  %v526_v61 = vmul.f32 %v710_v54, %v710_v54  ;;  %v713_v62 = vadd.f32 %v712_v58, %v711_v55  ;;  %v737_v63 = vadd.f32 %v736_v59, %v735_v57 }
 0x102   :  { %v534_v53 = vmul.f32 %v939_v56, %v939_v56 }
 0x103   :  { %v541_v0 = vadd.f32 %v540_v49, %v526_v61  ;;  %v647_v1 = vpack.c.bf16 %v713_v62, %v710_v54  ;;  %v505_v2 = vadd.f32 %v713_v62, %v504_v60  ;;  %v527_v3 = vmul.f32 %v713_v62, %v713_v62 }
 0x104   :  { %v667_v4 = vpack.c.bf16 %v737_v63, %v939_v56  ;;  %v535_v57 = vmul.f32 %v737_v63, %v737_v63 }
 0x105   :  { %679 = vst [vmem:[%s977_s2 + $0x8] sm:$0xff] %v647_v1   ;;  %v542_v5 = vadd.f32 %v541_v0, %v527_v3  ;;  %v714_v6 = vpop.f32.mrb[8].mxu0  ;;  %v738_v7 = vpop.f32.mrb[8].mxu1 }
 0x106   :  { %v715_v8 = vpop.f32.mrb[9].mxu0  ;;  %683 = vst [vmem:[%s977_s2 + $0x28] sm:$0xff] %v667_v4   ;;  %v739_v9 = vpop.f32.mrb[9].mxu1 }
 0x107   :  { %v716_v10 = vadd.f32 %v715_v8, %v714_v6  ;;  %v717_v11 = vpop.f32.mrb[10].mxu0  ;;  %v740_v12 = vadd.f32 %v739_v9, %v738_v7  ;;  %v741_v13 = vpop.f32.mrb[10].mxu1 }
 0x108   :  { %v718_v14 = vpop.f32.mrb[11].mxu0  ;;  %v742_v15 = vpop.f32.mrb[11].mxu1 }
 0x109   :  { %v506_v16 = vadd.f32 %v716_v10, %v505_v2  ;;  %v528_v17 = vmul.f32 %v716_v10, %v716_v10  ;;  %v719_v18 = vadd.f32 %v718_v14, %v717_v11  ;;  %v743_v19 = vadd.f32 %v742_v15, %v741_v13 }
 0x10a   :  { %v536_v60 = vmul.f32 %v740_v12, %v740_v12 }
 0x10b   :  { %v543_v20 = vadd.f32 %v542_v5, %v528_v17  ;;  %v652_v21 = vpack.c.bf16 %v719_v18, %v716_v10  ;;  %v507_v22 = vadd.f32 %v719_v18, %v506_v16  ;;  %v529_v23 = vmul.f32 %v719_v18, %v719_v18 }
 0x10c   :  { %v672_v24 = vpack.c.bf16 %v743_v19, %v740_v12  ;;  %v537_v1 = vmul.f32 %v743_v19, %v743_v19 }
 0x10d   :  { %680 = vst [vmem:[%s977_s2 + $0x10] sm:$0xff] %v652_v21   ;;  %v544_v25 = vadd.f32 %v543_v20, %v529_v23  ;;  %v720_v26 = vpop.f32.mrb[12].mxu0  ;;  %v744_v27 = vpop.f32.mrb[12].mxu1 }
 0x10e   :  { %v721_v28 = vpop.f32.mrb[13].mxu0  ;;  %684 = vst [vmem:[%s977_s2 + $0x30] sm:$0xff] %v672_v24   ;;  %v745_v29 = vpop.f32.mrb[13].mxu1 }
 0x10f   :  { %v722_v30 = vadd.f32 %v721_v28, %v720_v26  ;;  %v723_v31 = vpop.f32.mrb[14].mxu0  ;;  %v746_v32 = vadd.f32 %v745_v29, %v744_v27  ;;  %v747_v33 = vpop.f32.mrb[14].mxu1 }
 0x110   :  { %v724_v34 = vpop.f32.mrb[15].mxu0  ;;  %v748_v35 = vpop.f32.mrb[15].mxu1 }
 0x111   :  { %v508_v36 = vadd.f32 %v722_v30, %v507_v22  ;;  %v530_v37 = vmul.f32 %v722_v30, %v722_v30  ;;  %v725_v39 = vadd.f32 %v724_v34, %v723_v31  ;;  %v749_v40 = vadd.f32 %v748_v35, %v747_v33 }
 0x112   :  { %v538_v2 = vmul.f32 %v746_v32, %v746_v32 }
 0x113   :  { %v545_v41 = vadd.f32 %v544_v25, %v530_v37  ;;  %v657_v42 = vpack.c.bf16 %v725_v39, %v722_v30  ;;  %v509_v44 = vadd.f32 %v725_v39, %v508_v36  ;;  %v531_v45 = vmul.f32 %v725_v39, %v725_v39 }
 0x114   :  { %v677_v46 = vpack.c.bf16 %v749_v40, %v746_v32  ;;  %v539_v6 = vmul.f32 %v749_v40, %v749_v40 }
 0x115   :  { %681 = vst [vmem:[%s977_s2 + $0x18] sm:$0xff] %v657_v42   ;;  %v510_v48 = vadd.f32 %v927_v38, %v509_v44  ;;  %v546_v49 = vadd.f32 %v545_v41, %v531_v45 }
 0x116   :  { %685 = vst [vmem:[%s977_s2 + $0x38] sm:$0xff] %v677_v46  }
 0x117   :  { %v511_v51 = vadd.f32 %v929_v43, %v510_v48  ;;  %v547_v52 = vadd.f32 %v546_v49, %v532_v47 }
 0x119   :  { %v548_v54 = vadd.f32 %v547_v52, %v533_v50  ;;  %v512_v55 = vadd.f32 %v939_v56, %v511_v51 }
 0x11b   :  { %v513_v58 = vadd.f32 %v737_v63, %v512_v55  ;;  %v549_v38 = vadd.f32 %v548_v54, %v534_v53 }
 0x11d   :  { %v514_v59 = vadd.f32 %v740_v12, %v513_v58  ;;  %v550_v61 = vadd.f32 %v549_v38, %v535_v57 }
 0x11f   :  { %v551_v62 = vadd.f32 %v550_v61, %v536_v60  ;;  %v515_v0 = vadd.f32 %v743_v19, %v514_v59 }
 0x121   :  { %v552_v3 = vadd.f32 %v551_v62, %v537_v1  ;;  %v516_v4 = vadd.f32 %v746_v32, %v515_v0 }
 0x123   :  { %v553_v43 = vadd.f32 %v552_v3, %v538_v2  ;;  %v517_v5 = vadd.f32 %v749_v40, %v516_v4 }
 0x125   :  { %v518_v7 = vrot.slane %v517_v5, 4  ;;  %v554_v8 = vadd.f32 %v553_v43, %v539_v6 }
 0x127   :  { %v519_v9 = vadd.f32 %v518_v7, %v517_v5  ;;  %v555_v10 = vrot.slane %v554_v8, 4 }
 0x129   :  { %v520_v56 = vrot.slane %v519_v9, 2  ;;  %v556_v11 = vadd.f32 %v555_v10, %v554_v8 }
 0x12b   :  { %v521_v63 = vadd.f32 %v520_v56, %v519_v9  ;;  %v557_v13 = vrot.slane %v556_v11, 2 }
 0x12d   :  { %v522_v14 = vrot.slane %v521_v63, 1  ;;  %v558_v12 = vadd.f32 %v557_v13, %v556_v11 }
 0x12f   :  { %v523_v15 = vadd.f32 %v522_v14, %v521_v63  ;;  %v559_v16 = vrot.slane %v558_v12, 1 }
 0x131   :  { %v560_v17 = vadd.f32 %v559_v16, %v558_v12  ;;  %561 = vst [vmem:[%s978_s3] sm:$0xff] %v523_v15 }
 0x133   :  { %562 = vst [vmem:[%s979_s4] sm:$0xff] %v560_v17 }

// kernel: forward.45
= control target key start
LH: loop header
LB: loop body
LE: loop exit
PB: predicated region body
PF: predicated region fallthrough
CT: control target
= control target key end

     0   :  { %s175_s0 = inlined_call_operand.vmem [shape: bf16[32,128], index: 0, kind: input, shape index: {}]   ;;  %s176_s1 = inlined_call_operand.vmem [shape: f32[1,128], index: 1, kind: input, shape index: {}]   ;;  %s177_s2 = inlined_call_operand.vmem [shape: f32[1,128], index: 2, kind: input, shape index: {}]   ;;  %s178_s3 = inlined_call_operand.vmem [shape: bf16[32,128], index: 3, kind: input, shape index: {}]   ;;  %s179_s4 = inlined_call_operand.vmem [shape: bf16[32,128], index: 4, kind: output, shape index: {}]  }
   0x1   :  { %v98_v0 = vld [vmem:[%s175_s0] sm:$0xff]   ;;  %v123_v5 = vld [vmem:[%s175_s0 + $0x8] sm:$0xff]  }
   0x2   :  { %v87_v1 = vld [vmem:[%s176_s1] ss:$0 sm:$0xff]  ;;  %v99_v2 = vunpack.c.l.bf16 %v98_v0  ;;  %v100_v3 = vunpack.c.h.bf16 %v98_v0  ;;  %v124_v6 = vld [vmem:[%s178_s3 + $0x8] sm:$0xff]   ;;  %v103_v8 = vunpack.c.l.bf16 %v123_v5  ;;  %v104_v9 = vunpack.c.h.bf16 %v123_v5 }
   0x3   :  { %v106_v4 = vld [vmem:[%s178_s3] sm:$0xff]   ;;  %v111_v16 = vunpack.c.l.bf16 %v124_v6  ;;  %v112_v17 = vunpack.c.h.bf16 %v124_v6 }
   0x4   :  { %v88_v7 = vld [vmem:[%s177_s2] ss:$0 sm:$0xff]  ;;  %v32_v10 = vmul.f32 %v99_v2, %v87_v1  ;;  %v33_v11 = vmul.f32 %v100_v3, %v87_v1  ;;  %v107_v12 = vunpack.c.l.bf16 %v106_v4  ;;  %v108_v13 = vunpack.c.h.bf16 %v106_v4 }
   0x5   :  { %v34_v14 = vmul.f32 %v103_v8, %v87_v1  ;;  %v35_v15 = vmul.f32 %v104_v9, %v87_v1 }
   0x6   :  { %v43_v18 = vadd.f32 %v88_v7, %v32_v10  ;;  %v44_v19 = vadd.f32 %v88_v7, %v33_v11 }
   0x7   :  { %v45_v20 = vadd.f32 %v88_v7, %v34_v14  ;;  %v46_v21 = vadd.f32 %v88_v7, %v35_v15 }
   0x8   :  { %v55_v22 = vadd.f32 %v107_v12, %v43_v18  ;;  %v56_v23 = vadd.f32 %v108_v13, %v44_v19 }
   0x9   :  { %v57_v24 = vadd.f32 %v111_v16, %v45_v20  ;;  %v58_v25 = vadd.f32 %v112_v17, %v46_v21 }
   0xa   :  { %v59_v26 = vmax.f32 %v55_v22, 0.0  ;;  %v60_v27 = vmax.f32 %v56_v23, 0.0 }
   0xb   :  { %v61_v28 = vmax.f32 %v57_v24, 0.0  ;;  %v62_v29 = vmax.f32 %v58_v25, 0.0 }
   0xc   :  { %v116_v30 = vpack.c.bf16 %v60_v27, %v59_v26 }
   0xd   :  { %v121_v31 = vpack.c.bf16 %v62_v29, %v61_v28 }
   0xe   :  { %117 = vst [vmem:[%s179_s4] sm:$0xff] %v116_v30  }
   0xf   :  { %125 = vst [vmem:[%s179_s4 + $0x8] sm:$0xff] %v121_v31  }

// kernel: forward.43
= control target key start
LH: loop header
LB: loop body
LE: loop exit
PB: predicated region body
PF: predicated region fallthrough
CT: control target
= control target key end

     0   :  { %s140_s0 = inlined_call_operand.vmem [shape: bf16[32,128], index: 0, kind: input, shape index: {}]   ;;  %s141_s1 = inlined_call_operand.vmem [shape: f32[1,128], index: 1, kind: input, shape index: {}]   ;;  %s142_s2 = inlined_call_operand.vmem [shape: f32[1,128], index: 2, kind: input, shape index: {}]   ;;  %s143_s3 = inlined_call_operand.vmem [shape: bf16[32,128], index: 3, kind: output, shape index: {}]  }
   0x1   :  { %v83_v0 = vld [vmem:[%s140_s0] sm:$0xff]   ;;  %v100_v4 = vld [vmem:[%s140_s0 + $0x8] sm:$0xff]  }
   0x2   :  { %v72_v1 = vld [vmem:[%s141_s1] ss:$0 sm:$0xff]  ;;  %v84_v2 = vunpack.c.l.bf16 %v83_v0  ;;  %v85_v3 = vunpack.c.h.bf16 %v83_v0  ;;  %v88_v6 = vunpack.c.l.bf16 %v100_v4  ;;  %v89_v7 = vunpack.c.h.bf16 %v100_v4 }
   0x3   :  { %v73_v5 = vld [vmem:[%s142_s2] ss:$0 sm:$0xff] }
   0x4   :  { %v29_v8 = vmul.f32 %v84_v2, %v72_v1  ;;  %v30_v9 = vmul.f32 %v85_v3, %v72_v1  ;;  %v31_v10 = vmul.f32 %v88_v6, %v72_v1  ;;  %v32_v11 = vmul.f32 %v89_v7, %v72_v1 }
   0x6   :  { %v40_v12 = vadd.f32 %v73_v5, %v29_v8  ;;  %v41_v13 = vadd.f32 %v73_v5, %v30_v9  ;;  %v42_v14 = vadd.f32 %v73_v5, %v31_v10  ;;  %v43_v15 = vadd.f32 %v73_v5, %v32_v11 }
   0x8   :  { %v44_v16 = vmax.f32 %v40_v12, 0.0  ;;  %v45_v17 = vmax.f32 %v41_v13, 0.0  ;;  %v46_v18 = vmax.f32 %v42_v14, 0.0  ;;  %v47_v19 = vmax.f32 %v43_v15, 0.0 }
   0xa   :  { %v93_v20 = vpack.c.bf16 %v45_v17, %v44_v16  ;;  %v98_v21 = vpack.c.bf16 %v47_v19, %v46_v18 }
   0xc   :  { %94 = vst [vmem:[%s143_s3] sm:$0xff] %v93_v20   ;;  %101 = vst [vmem:[%s143_s3 + $0x8] sm:$0xff] %v98_v21  }

// kernel: forward.42
= control target key start
LH: loop header
LB: loop body
LE: loop exit
PB: predicated region body
PF: predicated region fallthrough
CT: control target
= control target key end

     0   :  { %s1272_s15 = smov 0   ;;  %s1274_s16 = smov 0   ;;  %s1395_s0 = inlined_call_operand.vmem [shape: bf16[32,1024], index: 0, kind: input, shape index: {}]   ;;  %s1396_s1 = inlined_call_operand.vmem [shape: bf16[1024,128], index: 1, kind: input, shape index: {}]   ;;  %s1397_s2 = inlined_call_operand.vmem [shape: bf16[32,128], index: 2, kind: output, shape index: {0}]   ;;  %s1398_s3 = inlined_call_operand.vmem [shape: f32[1,8,128], index: 3, kind: output, shape index: {1}]   ;;  %s1399_s4 = inlined_call_operand.vmem [shape: f32[1,8,128], index: 4, kind: output, shape index: {2}]  }
   0x1   :  { %s1276_s17 = smov 0   ;;  %s1278_s18 = smov 0  }
   0x2   :  { %s1280_s19 = smov 0  }
   0x3 LB: > { %s27_s20 = sadd.s32 1, %s1240_s18  ;;  %p50_p1 = scmp.ne.s32.totalorder %s1232_s16, %s1228_s15  ;;  %s1244_s19 = sphi %s1280_s19, %s15_s19   ;;  %s1240_s18 = sphi %s1278_s18, %s1403_s18   ;;  %s1236_s17 = sphi %s1276_s17, %s1402_s17   ;;  %s1232_s16 = sphi %s1274_s16, %s1401_s16   ;;  %s1228_s15 = sphi %s1272_s15, %s1400_s15  }
   0x4   : > { %p28_p0 = scmp.ge.s32.totalorder %s27_s20, 2  ;;  %p51_p2 = scmp.eq.s32.totalorder %s1244_s19, 0 }
   0x5   : > { %s43_s22 = sadd.s32 1, %s1232_s16  ;;  %p989_p5 = scmp.ge.s32.totalorder %s1244_s19, 2 }
   0x6   : > { %s1405_s20 = smov (%p28_p0, %s27_s20), 0  ;;  %p52_p3 = por %p51_p2, %p50_p1 }
   0x7   : > { %s39_s21 = ssub.s32 %s1240_s18, %s1405_s20  ;;  %188 = sbr.rel (%p989_p5) target bundleno = 22 (0x16), region = 16 }
   0x8   : > { %p41_p4 = scmp.eq.s32.totalorder %s39_s21, 0 }
   0xa   : > { %s1307_s23 = scalar_select %p41_p4, %s1232_s16, %s43_s22  }
   0xe   : > { %191 = sbr.rel (!%p52_p3) target bundleno = 22 (0x16), region = 20  ;;  %s193_s24 = sand.u32 (%p52_p3), 1, %s1232_s16  }
   0xf   : > { %s1049_s25 = sshll.u32 (%p52_p3), %s1240_s18, 4  ;;  %s990_s26 = sshll.u32 (%p52_p3), %s193_s24, 6 }
  0x10   : > { %s201_s29 = scalar_lea.vmem (%p52_p3), %s1395_s0, %s1049_s25  ;;  %s195_s30 = scalar_lea.vmem (%p52_p3), [#allocation3], %s990_s26 }
  0x11   : > { %v214_v0 = vld [vmem:[%s201_s29] sm:$0xff] (%p52_p3)  ;;  %v216_v1 = vld [vmem:[%s201_s29 + $0x8] sm:$0xff] (%p52_p3) }
  0x12   : > { %v218_v2 = vld [vmem:[%s201_s29 + $0x20] sm:$0xff] (%p52_p3)  ;;  %215 = vst [vmem:[%s195_s30] sm:$0xff] (%p52_p3), %v214_v0  ;;  %217 = vst [vmem:[%s195_s30 + $0x8] sm:$0xff] (%p52_p3), %v216_v1  ;;  %v220_v3 = vld [vmem:[%s201_s29 + $0x28] sm:$0xff] (%p52_p3) }
  0x13   : > { %219 = vst [vmem:[%s195_s30 + $0x10] sm:$0xff] (%p52_p3), %v218_v2  ;;  %v222_v4 = vld [vmem:[%s201_s29 + $0x40] sm:$0xff] (%p52_p3)  ;;  %v224_v5 = vld [vmem:[%s201_s29 + $0x48] sm:$0xff] (%p52_p3)  ;;  %221 = vst [vmem:[%s195_s30 + $0x18] sm:$0xff] (%p52_p3), %v220_v3 }
  0x14   : > { %223 = vst [vmem:[%s195_s30 + $0x20] sm:$0xff] (%p52_p3), %v222_v4  ;;  %225 = vst [vmem:[%s195_s30 + $0x28] sm:$0xff] (%p52_p3), %v224_v5  ;;  %v226_v6 = vld [vmem:[%s201_s29 + $0x60] sm:$0xff] (%p52_p3)  ;;  %v228_v7 = vld [vmem:[%s201_s29 + $0x68] sm:$0xff] (%p52_p3) }
  0x15   : > { %227 = vst [vmem:[%s195_s30 + $0x30] sm:$0xff] %v226_v6  ;;  %229 = vst [vmem:[%s195_s30 + $0x38] sm:$0xff] %v228_v7 }
  0x16 PF: > { %p993_p6 = scmp.ge.s32.totalorder %s1244_s19, 1  ;;  %p246_p7 = scmp.lt.s32.totalorder %s1244_s19, 3 }
  0x18   : > { %p247_p8 = pnand %p993_p6, %p246_p7 }
  0x19   : > { %s253_s5 = sand.u32 (!%p247_p8), 1, %s1228_s15   ;;  %s995_s6 = sshll.u32 (!%p247_p8), %s1236_s17, 6 }
  0x1a   : > { %250 = sbr.rel (%p247_p8) target bundleno = 329 (0x149), region = 47  ;;  %s994_s7 = sshll.u32 (!%p247_p8), %s253_s5, 6 }
  0x1b   : > { %p306_p9 = scmp.lt.s32.totalorder (!%p247_p8), %s995_s6, 127  ;;  %s1324_s12 = scalar_lea.vmem (!%p247_p8), [#allocation3], %s994_s7 }
  0x1c   : > { %p997_p10 = scmp.ne.s32.totalorder (!%p247_p8), %s1236_s17, 0 }
  0x21   : > { %s1407_s6 = smov (!%p306_p9, %s995_s6), 127  ;;  %341 = sbr.rel (%p997_p10) target bundleno = 40 (0x28), region = 55 }
  0x22   : > { %s996_s8 = sshll.u32 %s1407_s6, 2  ;;  %v1246_v8 = vmov (!%p997_p10), 0.0  }
  0x23   : > { %s1322_s11 = scalar_lea.vmem %s1396_s1, %s996_s8  ;;  %342 = vst [vmem:[#allocation2] sm:$0xff] (!%p997_p10), %v1246_v8  ;;  %343 = vst [vmem:[#allocation2 + $0x8] sm:$0xff] (!%p997_p10), %v1246_v8 }
  0x24   : > { %344 = vst [vmem:[#allocation2 + $0x10] sm:$0xff] (!%p997_p10), %v1246_v8  ;;  %345 = vst [vmem:[#allocation2 + $0x18] sm:$0xff] (!%p997_p10), %v1246_v8 }
  0x28 PF: > { %v1162_v9 = vld [vmem:[%s1322_s11 + $0x40] sm:$0xff]   ;;  %v1166_v13 = vld [vmem:[%s1322_s11 + $0x48] sm:$0xff]   ;;  %v1170_v17 = vld [vmem:[%s1322_s11 + $0x50] sm:$0xff]   ;;  %p1038_p11 = scmp.ne.s32.totalorder %s1236_s17, 1 }
  0x29   : > { %v1163_v10 = vld [vmem:[%s1322_s11 + $0xc0] sm:$0xff]   ;;  %1065 = vmatprep.subr.bf16.mxu0 %v1162_v9  ;;  %v1167_v14 = vld [vmem:[%s1322_s11 + $0xc8] sm:$0xff]   ;;  %v1171_v18 = vld [vmem:[%s1322_s11 + $0xd0] sm:$0xff]  }
  0x2a   : > { %v1164_v11 = vld [vmem:[%s1322_s11] sm:$0xff]   ;;  %1093 = vmatprep.subr.bf16.mxu1 %v1163_v10  ;;  %v1168_v15 = vld [vmem:[%s1322_s11 + $0x8] sm:$0xff]   ;;  %v1172_v19 = vld [vmem:[%s1322_s11 + $0x10] sm:$0xff]  }
  0x2b   : > { %v1165_v12 = vld [vmem:[%s1322_s11 + $0x80] sm:$0xff]   ;;  %1066 = vmatpush3.bf16.msra.mxu0 %v1164_v11  ;;  %v1169_v16 = vld [vmem:[%s1322_s11 + $0x88] sm:$0xff]   ;;  %v1173_v20 = vld [vmem:[%s1322_s11 + $0x90] sm:$0xff]  }
  0x2c   : > { %1094 = vmatpush3.bf16.msra.mxu1 %v1165_v12  ;;  %1067 = vmatprep.subr.bf16.mxu0 %v1166_v13  ;;  %v1174_v21 = vld [vmem:[%s1322_s11 + $0x58] sm:$0xff]   ;;  %v1178_v25 = vld [vmem:[%s1322_s11 + $0x60] sm:$0xff]   ;;  %v1182_v29 = vld [vmem:[%s1322_s11 + $0x68] sm:$0xff]  }
  0x2d   : > { %1095 = vmatprep.subr.bf16.mxu1 %v1167_v14  ;;  %v1175_v22 = vld [vmem:[%s1322_s11 + $0xd8] sm:$0xff]   ;;  %v1179_v26 = vld [vmem:[%s1322_s11 + $0xe0] sm:$0xff]   ;;  %v1183_v30 = vld [vmem:[%s1322_s11 + $0xe8] sm:$0xff]  }
  0x2e   : > { %v1176_v23 = vld [vmem:[%s1322_s11 + $0x18] sm:$0xff]   ;;  %v1180_v27 = vld [vmem:[%s1322_s11 + $0x20] sm:$0xff]   ;;  %v1184_v31 = vld [vmem:[%s1322_s11 + $0x28] sm:$0xff]  }
  0x2f   : > { %1068 = vmatpush3.bf16.msra.mxu0 %v1168_v15  ;;  %v1177_v24 = vld [vmem:[%s1322_s11 + $0x98] sm:$0xff]   ;;  %v1181_v28 = vld [vmem:[%s1322_s11 + $0xa0] sm:$0xff]   ;;  %v1185_v32 = vld [vmem:[%s1322_s11 + $0xa8] sm:$0xff]  }
  0x30   : > { %1096 = vmatpush3.bf16.msra.mxu1 %v1169_v16  ;;  %1069 = vmatprep.subr.bf16.mxu0 %v1170_v17  ;;  %v1186_v33 = vld [vmem:[%s1322_s11 + $0x70] sm:$0xff]   ;;  %v1190_v37 = vld [vmem:[%s1322_s11 + $0x78] sm:$0xff]   ;;  %v346_v58 = vld [vmem:[#allocation2] sm:$0xff] }
  0x31   : > { %1097 = vmatprep.subr.bf16.mxu1 %v1171_v18  ;;  %v1187_v34 = vld [vmem:[%s1322_s11 + $0xf0] sm:$0xff]   ;;  %v1191_v38 = vld [vmem:[%s1322_s11 + $0xf8] sm:$0xff]   ;;  %v347_v63 = vld [vmem:[#allocation2 + $0x8] sm:$0xff] }
  0x32   : > { %v1188_v35 = vld [vmem:[%s1322_s11 + $0x30] sm:$0xff]   ;;  %v1192_v39 = vld [vmem:[%s1322_s11 + $0x38] sm:$0xff]  }
  0x33   : > { %1070 = vmatpush3.bf16.msra.mxu0 %v1172_v19  ;;  %v1189_v36 = vld [vmem:[%s1322_s11 + $0xb0] sm:$0xff]   ;;  %v1193_v40 = vld [vmem:[%s1322_s11 + $0xb8] sm:$0xff]  }
  0x34   : > { %1098 = vmatpush3.bf16.msra.mxu1 %v1173_v20  ;;  %1071 = vmatprep.subr.bf16.mxu0 %v1174_v21  ;;  %v1194_v41 = vld [vmem:[%s1324_s12] ss:$16 sps:$4 sm:$0xff]   ;;  %v1196_v42 = vld [vmem:[%s1324_s12 + $0x4] ss:$16 sps:$4 sm:$0xff]   ;;  %v1197_v43 = vld [vmem:[%s1324_s12 + $0x8] ss:$16 sps:$4 sm:$0xff]  }
  0x35   : > { %1099 = vmatprep.subr.bf16.mxu1 %v1175_v22  ;;  %v1199_v44 = vld [vmem:[%s1324_s12 + $0xc] ss:$16 sps:$4 sm:$0xff]   ;;  %686 = vmatprep.mubr.bf16.mxu0 %v1196_v42  ;;  %v1200_v45 = vld [vmem:[%s1324_s12 + $0x24] ss:$16 sps:$4 sm:$0xff]   ;;  %v1204_v47 = vld [vmem:[%s1324_s12 + $0x20] ss:$16 sps:$4 sm:$0xff]  }
  0x36   : > { %735 = vmatprep.mubr.bf16.mxu1 %v1199_v44  ;;  %v1202_v46 = vld [vmem:[%s1324_s12 + $0x2c] ss:$16 sps:$4 sm:$0xff]   ;;  %v1205_v48 = vld [vmem:[%s1324_s12 + $0x28] ss:$16 sps:$4 sm:$0xff]   ;;  %v348_v12 = vld [vmem:[#allocation2 + $0x10] sm:$0xff] }
  0x37   : > { %1072 = vmatpush3.bf16.msra.mxu0 %v1176_v23  ;;  %v349_v17 = vld [vmem:[#allocation2 + $0x18] sm:$0xff] }
  0x38   : > { %1100 = vmatpush3.bf16.msra.mxu1 %v1177_v24  ;;  %1073 = vmatprep.subr.bf16.mxu0 %v1178_v25 }
  0x39   : > { %1101 = vmatprep.subr.bf16.mxu1 %v1179_v26 }
  0x3b   : > { %1074 = vmatpush3.bf16.msra.mxu0 %v1180_v27 }
  0x3c   : > { %1102 = vmatpush3.bf16.msra.mxu1 %v1181_v28  ;;  %1075 = vmatprep.subr.bf16.mxu0 %v1182_v29 }
  0x3d   : > { %1103 = vmatprep.subr.bf16.mxu1 %v1183_v30 }
  0x3f   : > { %1076 = vmatpush3.bf16.msra.mxu0 %v1184_v31 }
  0x40   : > { %1104 = vmatpush3.bf16.msra.mxu1 %v1185_v32  ;;  %1077 = vmatprep.subr.bf16.mxu0 %v1186_v33 }
  0x41   : > { %1105 = vmatprep.subr.bf16.mxu1 %v1187_v34 }
  0x43   : > { %1078 = vmatpush3.bf16.msra.mxu0 %v1188_v35 }
  0x44   : > { %1106 = vmatpush3.bf16.msra.mxu1 %v1189_v36  ;;  %1079 = vmatprep.subr.bf16.mxu0 %v1190_v37 }
  0x45   : > { %1107 = vmatprep.subr.bf16.mxu1 %v1191_v38 }
  0x47   : > { %1080 = vmatpush3.bf16.msra.mxu0 %v1192_v39 }
  0x48   : > { %1108 = vmatpush3.bf16.msra.mxu1 %v1193_v40 }
  0x4a   : > { %687 = vmatmul.mubr.bf16.vlgmr.msra.gmra.mrb[0].mxu0 %v1194_v41 }
  0x4b   : > { %736 = vmatmul.mubr.bf16.vlgmr.msra.gmra.mrb[0].mxu1 %v1197_v43  ;;  %694 = vmatprep.mubr.bf16.mxu0 %v1200_v45 }
  0x4c   : > { %743 = vmatprep.mubr.bf16.mxu1 %v1202_v46 }
  0x52   : > { %695 = vmatmul.mubr.bf16.gmra.mrb[4].mxu0 %v1204_v47 }
  0x53   : > { %744 = vmatmul.mubr.bf16.gmra.mrb[4].mxu1 %v1205_v48 }
 0x11d   : > { %v1081_v49 = vpop.f32.mrb[0].mxu0 }
 0x11e   : > { %v1109_v50 = vpop.f32.mrb[0].mxu1  ;;  %v1082_v51 = vpop.f32.mrb[1].mxu0 }
 0x11f   : > { %v1083_v52 = vadd.f32 %v1082_v51, %v1081_v49  ;;  %v1110_v53 = vpop.f32.mrb[1].mxu1  ;;  %v1084_v54 = vpop.f32.mrb[2].mxu0 }
 0x120   : > { %v1111_v55 = vadd.f32 %v1110_v53, %v1109_v50  ;;  %v1112_v56 = vpop.f32.mrb[2].mxu1  ;;  %v1085_v57 = vpop.f32.mrb[3].mxu0 }
 0x121   : > { %v1086_v59 = vadd.f32 %v1085_v57, %v1084_v54  ;;  %v1113_v60 = vpop.f32.mrb[3].mxu1 }
 0x122   : > { %v738_v61 = vadd.f32 %v1111_v55, %v1083_v52  ;;  %v1114_v62 = vadd.f32 %v1113_v60, %v1112_v56 }
 0x124   : > { %v752_v0 = vadd.f32 %v738_v61, %v346_v58  ;;  %v741_v1 = vadd.f32 %v1114_v62, %v1086_v59 }
 0x125   : > { %v1087_v2 = vpop.f32.mrb[4].mxu0 }
 0x126   : > { %756 = vst [vmem:[#allocation2] sm:$0xff] %v752_v0  ;;  %v753_v3 = vadd.f32 %v741_v1, %v347_v63  ;;  %v1115_v4 = vpop.f32.mrb[4].mxu1  ;;  %v1088_v5 = vpop.f32.mrb[5].mxu0 }
 0x127   : > { %v1089_v6 = vadd.f32 %v1088_v5, %v1087_v2  ;;  %v1116_v7 = vpop.f32.mrb[5].mxu1  ;;  %v1090_v8 = vpop.f32.mrb[6].mxu0 }
 0x128   : > { %757 = vst [vmem:[#allocation2 + $0x8] sm:$0xff] %v753_v3  ;;  %v1117_v9 = vadd.f32 %v1116_v7, %v1115_v4  ;;  %v1118_v10 = vpop.f32.mrb[6].mxu1  ;;  %v1091_v11 = vpop.f32.mrb[7].mxu0 }
 0x129   : > { %v1092_v13 = vadd.f32 %v1091_v11, %v1090_v8  ;;  %v1119_v14 = vpop.f32.mrb[7].mxu1 }
 0x12a   : > { %v746_v15 = vadd.f32 %v1117_v9, %v1089_v6  ;;  %v1120_v16 = vadd.f32 %v1119_v14, %v1118_v10  ;;  %763 = sbr.rel (%p1038_p11) target bundleno = 329 (0x149), region = 59 }
 0x12c   : > { %v754_v18 = vadd.f32 %v746_v15, %v348_v12  ;;  %v749_v19 = vadd.f32 %v1120_v16, %v1092_v13 }
 0x12d   : > { %v764_v21 = vld [vmem:[#allocation2] sm:$0xff] (!%p1038_p11) }
 0x12e   : > { %758 = vst [vmem:[#allocation2 + $0x10] sm:$0xff] %v754_v18  ;;  %v755_v20 = vadd.f32 %v749_v19, %v349_v17  ;;  %v797_v26 = vmul.f32 (!%p1038_p11), %v764_v21, %v764_v21 }
 0x12f   : > { %v765_v22 = vld [vmem:[#allocation2 + $0x8] sm:$0xff] (!%p1038_p11) }
 0x130   : > { %759 = vst [vmem:[#allocation2 + $0x18] sm:$0xff] %v755_v20  ;;  %v1057_v24 = vpack.c.bf16 (!%p1038_p11), %v765_v22, %v764_v21  ;;  %v788_v25 = vadd.f32 (!%p1038_p11), %v765_v22, %v764_v21  ;;  %v798_v27 = vmul.f32 (!%p1038_p11), %v765_v22, %v765_v22 }
 0x132   : > { %1058 = vst [vmem:[%s1397_s2] sm:$0xff] %v1057_v24   ;;  %v801_v31 = vadd.f32 %v798_v27, %v797_v26 }
 0x135   : > { %v766_v23 = vld [vmem:[#allocation2 + $0x10] sm:$0xff] }
 0x136   : > { %v799_v30 = vmul.f32 %v766_v23, %v766_v23  ;;  %v789_v32 = vadd.f32 %v788_v25, %v766_v23 }
 0x137   : > { %v767_v28 = vld [vmem:[#allocation2 + $0x18] sm:$0xff] }
 0x138   : > { %v1062_v29 = vpack.c.bf16 %v767_v28, %v766_v23  ;;  %v800_v33 = vmul.f32 %v767_v28, %v767_v28  ;;  %v790_v34 = vadd.f32 %v789_v32, %v767_v28  ;;  %v802_v35 = vadd.f32 %v801_v31, %v799_v30 }
 0x13a   : > { %1064 = vst [vmem:[%s1397_s2 + $0x8] sm:$0xff] %v1062_v29   ;;  %v791_v36 = vrot.slane %v790_v34, 4  ;;  %v803_v37 = vadd.f32 %v802_v35, %v800_v33 }
 0x13c   : > { %v792_v38 = vadd.f32 %v791_v36, %v790_v34  ;;  %v804_v39 = vrot.slane %v803_v37, 4 }
 0x13e   : > { %v793_v40 = vrot.slane %v792_v38, 2  ;;  %v805_v41 = vadd.f32 %v804_v39, %v803_v37 }
 0x140   : > { %v794_v42 = vadd.f32 %v793_v40, %v792_v38  ;;  %v806_v43 = vrot.slane %v805_v41, 2 }
 0x142   : > { %v795_v44 = vrot.slane %v794_v42, 1  ;;  %v807_v45 = vadd.f32 %v806_v43, %v805_v41 }
 0x144   : > { %v796_v46 = vadd.f32 %v795_v44, %v794_v42  ;;  %v808_v47 = vrot.slane %v807_v45, 1 }
 0x146   : > { %810 = vst [vmem:[%s1398_s3] sm:$0xff] %v796_v46  ;;  %v809_v48 = vadd.f32 %v808_v47, %v807_v45 }
 0x148   : > { %811 = vst [vmem:[%s1399_s4] sm:$0xff] %v809_v48 }
 0x149 PF: > { %s15_s19 = sadd.s32 1, %s1244_s19   ;;  %s1400_s15 = smov %s1232_s16 }
 0x14a   : > { %p12_p12 = scmp.ge.s32.totalorder %s15_s19, 4   ;;  %s1401_s16 = smov %s1307_s23 }
 0x14b   : > { %s1402_s17 = smov %s1240_s18  ;;  %s1403_s18 = smov %s1405_s20 }
 0x14c   :  { %14 = sbr.rel (!%p12_p12) target bundleno = 3 (0x3), region = 121 }

// kernel: forward.54
= control target key start
LH: loop header
LB: loop body
LE: loop exit
PB: predicated region body
PF: predicated region fallthrough
CT: control target
= control target key end

     0   :  { %s97_s0 = inlined_call_operand.vmem [shape: bf16[16,128], index: 0, kind: input, shape index: {}]   ;;  %s98_s1 = inlined_call_operand.vmem [shape: f32[1,128], index: 1, kind: input, shape index: {}]   ;;  %s99_s2 = inlined_call_operand.vmem [shape: f32[1,128], index: 2, kind: input, shape index: {}]   ;;  %s100_s3 = inlined_call_operand.vmem [shape: bf16[16,128], index: 3, kind: output, shape index: {}]  }
   0x1   :  { %v57_v0 = vld [vmem:[%s97_s0] sm:$0xff]  }
   0x2   :  { %v50_v1 = vld [vmem:[%s98_s1] ss:$0 sm:$0xff]  ;;  %v58_v2 = vunpack.c.l.bf16 %v57_v0  ;;  %v59_v3 = vunpack.c.h.bf16 %v57_v0 }
   0x3   :  { %v51_v4 = vld [vmem:[%s99_s2] ss:$0 sm:$0xff] }
   0x4   :  { %v25_v5 = vmul.f32 %v58_v2, %v50_v1  ;;  %v26_v6 = vmul.f32 %v59_v3, %v50_v1 }
   0x6   :  { %v34_v7 = vadd.f32 %v51_v4, %v25_v5  ;;  %v35_v8 = vadd.f32 %v51_v4, %v26_v6 }
   0x8   :  { %v63_v9 = vpack.c.bf16 %v35_v8, %v34_v7 }
   0xa   :  { %64 = vst [vmem:[%s100_s3] sm:$0xff] %v63_v9  }

// kernel: forward.53
= control target key start
LH: loop header
LB: loop body
LE: loop exit
PB: predicated region body
PF: predicated region fallthrough
CT: control target
= control target key end

     0   :  { %v243_v0 = vmov 0.0   ;;  %vm244_vm0 = vmmov 0   ;;  %s306_s1 = inlined_call_operand.vmem [shape: bf16[128,128], index: 1, kind: input, shape index: {}]   ;;  %s307_s0 = inlined_call_operand.vmem [shape: bf16[16,128], index: 0, kind: input, shape index: {}]   ;;  %s308_s2 = inlined_call_operand.vmem [shape: bf16[16,128], index: 2, kind: output, shape index: {0}]   ;;  %s309_s3 = inlined_call_operand.vmem [shape: f32[1,8,128], index: 3, kind: output, shape index: {1}]   ;;  %s310_s4 = inlined_call_operand.vmem [shape: f32[1,8,128], index: 4, kind: output, shape index: {2}]  }
   0x1   :  { %212 = vmatprep.subr.bf16.mxu0 %v243_v0  ;;  %v234_v1 = vld [vmem:[%s306_s1] sm:$0xff]   ;;  %228 = vmatprep.mubr.msk.bf16.mxu0 %vm244_vm0, %v243_v0  ;;  %v235_v2 = vld [vmem:[%s306_s1 + $0x8] sm:$0xff]   ;;  %v236_v3 = vld [vmem:[%s306_s1 + $0x10] sm:$0xff]  }
   0x2   :  { %213 = vmatpush3.bf16.msra.mxu0 %v234_v1  ;;  %v237_v4 = vld [vmem:[%s306_s1 + $0x18] sm:$0xff]   ;;  %v238_v5 = vld [vmem:[%s306_s1 + $0x20] sm:$0xff]   ;;  %v239_v6 = vld [vmem:[%s306_s1 + $0x28] sm:$0xff]  }
   0x3   :  { %214 = vmatprep.subr.bf16.mxu0 %v243_v0  ;;  %v240_v7 = vld [vmem:[%s306_s1 + $0x30] sm:$0xff]   ;;  %v241_v8 = vld [vmem:[%s306_s1 + $0x38] sm:$0xff]   ;;  %v242_v9 = vld [vmem:[%s307_s0] sm:$0xff]  }
   0x6   :  { %215 = vmatpush3.bf16.msra.mxu0 %v235_v2 }
   0x7   :  { %216 = vmatprep.subr.bf16.mxu0 %v243_v0 }
   0xa   :  { %217 = vmatpush3.bf16.msra.mxu0 %v236_v3 }
   0xb   :  { %218 = vmatprep.subr.bf16.mxu0 %v243_v0 }
   0xe   :  { %219 = vmatpush3.bf16.msra.mxu0 %v237_v4 }
   0xf   :  { %220 = vmatprep.subr.bf16.mxu0 %v243_v0 }
  0x12   :  { %221 = vmatpush3.bf16.msra.mxu0 %v238_v5 }
  0x13   :  { %222 = vmatprep.subr.bf16.mxu0 %v243_v0 }
  0x16   :  { %223 = vmatpush3.bf16.msra.mxu0 %v239_v6 }
  0x17   :  { %224 = vmatprep.subr.bf16.mxu0 %v243_v0 }
  0x1a   :  { %225 = vmatpush3.bf16.msra.mxu0 %v240_v7 }
  0x1b   :  { %226 = vmatprep.subr.bf16.mxu0 %v243_v0 }
  0x1e   :  { %227 = vmatpush3.bf16.msra.mxu0 %v241_v8 }
  0x21   :  { %229 = vmatmul.mubr.bf16.vlgmr.msra.gmra.mrb[0].mxu0 %v242_v9 }
  0xf4   :  { %v129_v10 = vpop.f32.mrb[0].mxu0 }
  0xf5   :  { %v230_v11 = vpop.f32.mrb[1].mxu0  ;;  %v162_v13 = vmul.f32 %v129_v10, %v129_v10 }
  0xf6   :  { %v132_v12 = vpop.f32.mrb[2].mxu0 }
  0xf7   :  { %v201_v14 = vpack.c.bf16 %v132_v12, %v129_v10  ;;  %v155_v15 = vadd.f32 %v132_v12, %v129_v10  ;;  %v163_v16 = vmul.f32 %v132_v12, %v132_v12  ;;  %v231_v17 = vpop.f32.mrb[3].mxu0 }
  0xf9   :  { %202 = vst [vmem:[%s308_s2] sm:$0xff] %v201_v14   ;;  %v156_v18 = vrot.slane %v155_v15, 4  ;;  %v164_v19 = vadd.f32 %v163_v16, %v162_v13 }
  0xfb   :  { %v157_v20 = vadd.f32 %v156_v18, %v155_v15  ;;  %v165_v21 = vrot.slane %v164_v19, 4 }
  0xfd   :  { %v158_v22 = vrot.slane %v157_v20, 2  ;;  %v166_v23 = vadd.f32 %v165_v21, %v164_v19 }
  0xff   :  { %v159_v24 = vadd.f32 %v158_v22, %v157_v20  ;;  %v167_v25 = vrot.slane %v166_v23, 2 }
 0x101   :  { %v160_v26 = vrot.slane %v159_v24, 1  ;;  %v168_v27 = vadd.f32 %v167_v25, %v166_v23 }
 0x103   :  { %v161_v28 = vadd.f32 %v160_v26, %v159_v24  ;;  %v169_v29 = vrot.slane %v168_v27, 1 }
 0x105   :  { %v170_v30 = vadd.f32 %v169_v29, %v168_v27  ;;  %171 = vst [vmem:[%s309_s3] sm:$0xff] %v161_v28 }
 0x107   :  { %172 = vst [vmem:[%s310_s4] sm:$0xff] %v170_v30 }

// kernel: forward.51
= control target key start
LH: loop header
LB: loop body
LE: loop exit
PB: predicated region body
PF: predicated region fallthrough
CT: control target
= control target key end

     0   :  { %s99_s0 = inlined_call_operand.vmem [shape: bf16[16,128], index: 0, kind: input, shape index: {}]   ;;  %s100_s1 = inlined_call_operand.vmem [shape: f32[1,128], index: 1, kind: input, shape index: {}]   ;;  %s101_s2 = inlined_call_operand.vmem [shape: f32[1,128], index: 2, kind: input, shape index: {}]   ;;  %s102_s3 = inlined_call_operand.vmem [shape: bf16[16,128], index: 3, kind: output, shape index: {}]  }
   0x1   :  { %v59_v0 = vld [vmem:[%s99_s0] sm:$0xff]  }
   0x2   :  { %v52_v1 = vld [vmem:[%s100_s1] ss:$0 sm:$0xff]  ;;  %v60_v2 = vunpack.c.l.bf16 %v59_v0  ;;  %v61_v3 = vunpack.c.h.bf16 %v59_v0 }
   0x3   :  { %v53_v4 = vld [vmem:[%s101_s2] ss:$0 sm:$0xff] }
   0x4   :  { %v25_v5 = vmul.f32 %v60_v2, %v52_v1  ;;  %v26_v6 = vmul.f32 %v61_v3, %v52_v1 }
   0x6   :  { %v34_v7 = vadd.f32 %v53_v4, %v25_v5  ;;  %v35_v8 = vadd.f32 %v53_v4, %v26_v6 }
   0x8   :  { %v36_v9 = vmax.f32 %v34_v7, 0.0  ;;  %v37_v10 = vmax.f32 %v35_v8, 0.0 }
   0xa   :  { %v65_v11 = vpack.c.bf16 %v37_v10, %v36_v9 }
   0xc   :  { %66 = vst [vmem:[%s102_s3] sm:$0xff] %v65_v11  }

// kernel: forward.50
= control target key start
LH: loop header
LB: loop body
LE: loop exit
PB: predicated region body
PF: predicated region fallthrough
CT: control target
= control target key end

     0   :  { %s1166_s15 = smov 0   ;;  %s1168_s16 = smov 0   ;;  %s1282_s0 = inlined_call_operand.vmem [shape: bf16[16,1024], index: 0, kind: input, shape index: {}]   ;;  %s1283_s1 = inlined_call_operand.vmem [shape: bf16[1024,128], index: 1, kind: input, shape index: {}]   ;;  %s1284_s2 = inlined_call_operand.vmem [shape: bf16[16,128], index: 2, kind: output, shape index: {0}]   ;;  %s1285_s3 = inlined_call_operand.vmem [shape: f32[1,8,128], index: 3, kind: output, shape index: {1}]   ;;  %s1286_s4 = inlined_call_operand.vmem [shape: f32[1,8,128], index: 4, kind: output, shape index: {2}]  }
   0x1   :  { %s1170_s17 = smov 0   ;;  %s1172_s18 = smov 0  }
   0x2   :  { %s1174_s19 = smov 0  }
   0x3 LB: > { %s27_s20 = sadd.s32 1, %s1134_s18  ;;  %p50_p1 = scmp.ne.s32.totalorder %s1126_s16, %s1122_s15  ;;  %s1138_s19 = sphi %s1174_s19, %s15_s19   ;;  %s1134_s18 = sphi %s1172_s18, %s1290_s18   ;;  %s1130_s17 = sphi %s1170_s17, %s1289_s17   ;;  %s1126_s16 = sphi %s1168_s16, %s1288_s16   ;;  %s1122_s15 = sphi %s1166_s15, %s1287_s15  }
   0x4   : > { %p28_p0 = scmp.ge.s32.totalorder %s27_s20, 2  ;;  %p51_p2 = scmp.eq.s32.totalorder %s1138_s19, 0 }
   0x5   : > { %s43_s22 = sadd.s32 1, %s1126_s16  ;;  %p915_p5 = scmp.ge.s32.totalorder %s1138_s19, 2 }
   0x6   : > { %s1292_s20 = smov (%p28_p0, %s27_s20), 0  ;;  %p52_p3 = por %p51_p2, %p50_p1 }
   0x7   : > { %s39_s21 = ssub.s32 %s1134_s18, %s1292_s20  ;;  %188 = sbr.rel (%p915_p5) target bundleno = 21 (0x15), region = 16 }
   0x8   : > { %p41_p4 = scmp.eq.s32.totalorder %s39_s21, 0 }
   0xa   : > { %s1201_s23 = scalar_select %p41_p4, %s1126_s16, %s43_s22  }
   0xe   : > { %191 = sbr.rel (!%p52_p3) target bundleno = 21 (0x15), region = 20  ;;  %s193_s24 = sand.u32 (%p52_p3), 1, %s1126_s16  }
   0xf   : > { %s969_s25 = sshll.u32 (%p52_p3), %s1134_s18, 4  ;;  %s916_s26 = sshll.u32 (%p52_p3), %s193_s24, 5 }
  0x10   : > { %s201_s29 = scalar_lea.vmem (%p52_p3), %s1282_s0, %s969_s25  ;;  %s195_s30 = scalar_lea.vmem (%p52_p3), [#allocation3], %s916_s26 }
  0x11   : > { %v214_v0 = vld [vmem:[%s201_s29] sm:$0xff] (%p52_p3)  ;;  %v216_v1 = vld [vmem:[%s201_s29 + $0x8] sm:$0xff] (%p52_p3) }
  0x12   : > { %v218_v2 = vld [vmem:[%s201_s29 + $0x20] sm:$0xff] (%p52_p3)  ;;  %215 = vst [vmem:[%s195_s30] sm:$0xff] (%p52_p3), %v214_v0  ;;  %217 = vst [vmem:[%s195_s30 + $0x8] sm:$0xff] (%p52_p3), %v216_v1  ;;  %v220_v3 = vld [vmem:[%s201_s29 + $0x28] sm:$0xff] (%p52_p3) }
  0x13   : > { %219 = vst [vmem:[%s195_s30 + $0x10] sm:$0xff] (%p52_p3), %v218_v2  ;;  %221 = vst [vmem:[%s195_s30 + $0x18] sm:$0xff] (%p52_p3), %v220_v3 }
  0x15 PF: > { %p919_p6 = scmp.ge.s32.totalorder %s1138_s19, 1  ;;  %p238_p7 = scmp.lt.s32.totalorder %s1138_s19, 3 }
  0x17   : > { %p239_p8 = pnand %p919_p6, %p238_p7 }
  0x18   : > { %s245_s5 = sand.u32 (!%p239_p8), 1, %s1122_s15   ;;  %s921_s6 = sshll.u32 (!%p239_p8), %s1130_s17, 6 }
  0x19   : > { %242 = sbr.rel (%p239_p8) target bundleno = 320 (0x140), region = 47  ;;  %s920_s7 = sshll.u32 (!%p239_p8), %s245_s5, 5 }
  0x1a   : > { %p298_p9 = scmp.lt.s32.totalorder (!%p239_p8), %s921_s6, 127  ;;  %s1218_s12 = scalar_lea.vmem (!%p239_p8), [#allocation3], %s920_s7 }
  0x1b   : > { %p923_p10 = scmp.ne.s32.totalorder (!%p239_p8), %s1130_s17, 0 }
  0x20   : > { %s1294_s6 = smov (!%p298_p9, %s921_s6), 127  ;;  %333 = sbr.rel (%p923_p10) target bundleno = 39 (0x27), region = 55 }
  0x21   : > { %s922_s8 = sshll.u32 %s1294_s6, 2  ;;  %v1140_v4 = vmov (!%p923_p10), 0.0  }
  0x22   : > { %s1216_s11 = scalar_lea.vmem %s1283_s1, %s922_s8  ;;  %334 = vst [vmem:[#allocation2] sm:$0xff] (!%p923_p10), %v1140_v4  ;;  %335 = vst [vmem:[#allocation2 + $0x8] sm:$0xff] (!%p923_p10), %v1140_v4 }
  0x27 PF: > { %v1062_v5 = vld [vmem:[%s1216_s11 + $0x40] sm:$0xff]   ;;  %v1066_v9 = vld [vmem:[%s1216_s11 + $0x48] sm:$0xff]   ;;  %v1070_v13 = vld [vmem:[%s1216_s11 + $0x50] sm:$0xff]   ;;  %p960_p11 = scmp.ne.s32.totalorder %s1130_s17, 1 }
  0x28   : > { %v1063_v6 = vld [vmem:[%s1216_s11 + $0xc0] sm:$0xff]   ;;  %977 = vmatprep.subr.bf16.mxu0 %v1062_v5  ;;  %v1067_v10 = vld [vmem:[%s1216_s11 + $0xc8] sm:$0xff]   ;;  %v1071_v14 = vld [vmem:[%s1216_s11 + $0xd0] sm:$0xff]  }
  0x29   : > { %v1064_v7 = vld [vmem:[%s1216_s11] sm:$0xff]   ;;  %999 = vmatprep.subr.bf16.mxu1 %v1063_v6  ;;  %v1068_v11 = vld [vmem:[%s1216_s11 + $0x8] sm:$0xff]   ;;  %v1072_v15 = vld [vmem:[%s1216_s11 + $0x10] sm:$0xff]  }
  0x2a   : > { %v1065_v8 = vld [vmem:[%s1216_s11 + $0x80] sm:$0xff]   ;;  %978 = vmatpush3.bf16.msra.mxu0 %v1064_v7  ;;  %v1069_v12 = vld [vmem:[%s1216_s11 + $0x88] sm:$0xff]   ;;  %v1073_v16 = vld [vmem:[%s1216_s11 + $0x90] sm:$0xff]  }
  0x2b   : > { %1000 = vmatpush3.bf16.msra.mxu1 %v1065_v8  ;;  %979 = vmatprep.subr.bf16.mxu0 %v1066_v9  ;;  %v1074_v17 = vld [vmem:[%s1216_s11 + $0x58] sm:$0xff]   ;;  %v1078_v21 = vld [vmem:[%s1216_s11 + $0x60] sm:$0xff]   ;;  %v1082_v25 = vld [vmem:[%s1216_s11 + $0x68] sm:$0xff]  }
  0x2c   : > { %1001 = vmatprep.subr.bf16.mxu1 %v1067_v10  ;;  %v1075_v18 = vld [vmem:[%s1216_s11 + $0xd8] sm:$0xff]   ;;  %v1079_v22 = vld [vmem:[%s1216_s11 + $0xe0] sm:$0xff]   ;;  %v1083_v26 = vld [vmem:[%s1216_s11 + $0xe8] sm:$0xff]  }
  0x2d   : > { %v1076_v19 = vld [vmem:[%s1216_s11 + $0x18] sm:$0xff]   ;;  %v1080_v23 = vld [vmem:[%s1216_s11 + $0x20] sm:$0xff]   ;;  %v1084_v27 = vld [vmem:[%s1216_s11 + $0x28] sm:$0xff]  }
  0x2e   : > { %980 = vmatpush3.bf16.msra.mxu0 %v1068_v11  ;;  %v1077_v20 = vld [vmem:[%s1216_s11 + $0x98] sm:$0xff]   ;;  %v1081_v24 = vld [vmem:[%s1216_s11 + $0xa0] sm:$0xff]   ;;  %v1085_v28 = vld [vmem:[%s1216_s11 + $0xa8] sm:$0xff]  }
  0x2f   : > { %1002 = vmatpush3.bf16.msra.mxu1 %v1069_v12  ;;  %981 = vmatprep.subr.bf16.mxu0 %v1070_v13  ;;  %v1086_v29 = vld [vmem:[%s1216_s11 + $0x70] sm:$0xff]   ;;  %v1090_v33 = vld [vmem:[%s1216_s11 + $0x78] sm:$0xff]   ;;  %v336_v50 = vld [vmem:[#allocation2] sm:$0xff] }
  0x30   : > { %1003 = vmatprep.subr.bf16.mxu1 %v1071_v14  ;;  %v1087_v30 = vld [vmem:[%s1216_s11 + $0xf0] sm:$0xff]   ;;  %v1091_v34 = vld [vmem:[%s1216_s11 + $0xf8] sm:$0xff]   ;;  %v337_v55 = vld [vmem:[#allocation2 + $0x8] sm:$0xff] }
  0x31   : > { %v1088_v31 = vld [vmem:[%s1216_s11 + $0x30] sm:$0xff]   ;;  %v1092_v35 = vld [vmem:[%s1216_s11 + $0x38] sm:$0xff]  }
  0x32   : > { %982 = vmatpush3.bf16.msra.mxu0 %v1072_v15  ;;  %v1089_v32 = vld [vmem:[%s1216_s11 + $0xb0] sm:$0xff]   ;;  %v1093_v36 = vld [vmem:[%s1216_s11 + $0xb8] sm:$0xff]  }
  0x33   : > { %1004 = vmatpush3.bf16.msra.mxu1 %v1073_v16  ;;  %983 = vmatprep.subr.bf16.mxu0 %v1074_v17  ;;  %v1094_v37 = vld [vmem:[%s1218_s12] ss:$16 sps:$4 sm:$0xff]   ;;  %v1096_v38 = vld [vmem:[%s1218_s12 + $0x4] ss:$16 sps:$4 sm:$0xff]   ;;  %v1097_v39 = vld [vmem:[%s1218_s12 + $0x8] ss:$16 sps:$4 sm:$0xff]  }
  0x34   : > { %1005 = vmatprep.subr.bf16.mxu1 %v1075_v18  ;;  %v1099_v40 = vld [vmem:[%s1218_s12 + $0xc] ss:$16 sps:$4 sm:$0xff]   ;;  %650 = vmatprep.mubr.bf16.mxu0 %v1096_v38 }
  0x35   : > { %691 = vmatprep.mubr.bf16.mxu1 %v1099_v40 }
  0x36   : > { %984 = vmatpush3.bf16.msra.mxu0 %v1076_v19 }
  0x37   : > { %1006 = vmatpush3.bf16.msra.mxu1 %v1077_v20  ;;  %985 = vmatprep.subr.bf16.mxu0 %v1078_v21 }
  0x38   : > { %1007 = vmatprep.subr.bf16.mxu1 %v1079_v22 }
  0x3a   : > { %986 = vmatpush3.bf16.msra.mxu0 %v1080_v23 }
  0x3b   : > { %1008 = vmatpush3.bf16.msra.mxu1 %v1081_v24  ;;  %987 = vmatprep.subr.bf16.mxu0 %v1082_v25 }
  0x3c   : > { %1009 = vmatprep.subr.bf16.mxu1 %v1083_v26 }
  0x3e   : > { %988 = vmatpush3.bf16.msra.mxu0 %v1084_v27 }
  0x3f   : > { %1010 = vmatpush3.bf16.msra.mxu1 %v1085_v28  ;;  %989 = vmatprep.subr.bf16.mxu0 %v1086_v29 }
  0x40   : > { %1011 = vmatprep.subr.bf16.mxu1 %v1087_v30 }
  0x42   : > { %990 = vmatpush3.bf16.msra.mxu0 %v1088_v31 }
  0x43   : > { %1012 = vmatpush3.bf16.msra.mxu1 %v1089_v32  ;;  %991 = vmatprep.subr.bf16.mxu0 %v1090_v33 }
  0x44   : > { %1013 = vmatprep.subr.bf16.mxu1 %v1091_v34 }
  0x46   : > { %992 = vmatpush3.bf16.msra.mxu0 %v1092_v35 }
  0x47   : > { %1014 = vmatpush3.bf16.msra.mxu1 %v1093_v36 }
  0x49   : > { %651 = vmatmul.mubr.bf16.vlgmr.msra.gmra.mrb[0].mxu0 %v1094_v37 }
  0x4a   : > { %692 = vmatmul.mubr.bf16.vlgmr.msra.gmra.mrb[0].mxu1 %v1097_v39 }
 0x11c   : > { %v993_v41 = vpop.f32.mrb[0].mxu0 }
 0x11d   : > { %v1015_v42 = vpop.f32.mrb[0].mxu1  ;;  %v994_v43 = vpop.f32.mrb[1].mxu0 }
 0x11e   : > { %v995_v44 = vadd.f32 %v994_v43, %v993_v41  ;;  %v1016_v45 = vpop.f32.mrb[1].mxu1  ;;  %v996_v46 = vpop.f32.mrb[2].mxu0 }
 0x11f   : > { %v1017_v47 = vadd.f32 %v1016_v45, %v1015_v42  ;;  %v1018_v48 = vpop.f32.mrb[2].mxu1  ;;  %v997_v49 = vpop.f32.mrb[3].mxu0 }
 0x120   : > { %v998_v51 = vadd.f32 %v997_v49, %v996_v46  ;;  %v1019_v52 = vpop.f32.mrb[3].mxu1 }
 0x121   : > { %v694_v53 = vadd.f32 %v1017_v47, %v995_v44  ;;  %v1020_v54 = vadd.f32 %v1019_v52, %v1018_v48  ;;  %707 = sbr.rel (%p960_p11) target bundleno = 320 (0x140), region = 59 }
 0x123   : > { %v700_v56 = vadd.f32 %v694_v53, %v336_v50  ;;  %v697_v57 = vadd.f32 %v1020_v54, %v998_v51 }
 0x125   : > { %702 = vst [vmem:[#allocation2] sm:$0xff] %v700_v56  ;;  %v701_v58 = vadd.f32 %v697_v57, %v337_v55 }
 0x127   : > { %703 = vst [vmem:[#allocation2 + $0x8] sm:$0xff] %v701_v58 }
 0x12c   : > { %v708_v59 = vld [vmem:[#allocation2] sm:$0xff] }
 0x12d   : > { %v727_v63 = vmul.f32 %v708_v59, %v708_v59 }
 0x12e   : > { %v709_v60 = vld [vmem:[#allocation2 + $0x8] sm:$0xff] }
 0x12f   : > { %v975_v61 = vpack.c.bf16 %v709_v60, %v708_v59  ;;  %v720_v62 = vadd.f32 %v709_v60, %v708_v59  ;;  %v728_v0 = vmul.f32 %v709_v60, %v709_v60 }
 0x131   : > { %976 = vst [vmem:[%s1284_s2] sm:$0xff] %v975_v61   ;;  %v721_v1 = vrot.slane %v720_v62, 4  ;;  %v729_v2 = vadd.f32 %v728_v0, %v727_v63 }
 0x133   : > { %v722_v3 = vadd.f32 %v721_v1, %v720_v62  ;;  %v730_v4 = vrot.slane %v729_v2, 4 }
 0x135   : > { %v723_v5 = vrot.slane %v722_v3, 2  ;;  %v731_v6 = vadd.f32 %v730_v4, %v729_v2 }
 0x137   : > { %v724_v7 = vadd.f32 %v723_v5, %v722_v3  ;;  %v732_v8 = vrot.slane %v731_v6, 2 }
 0x139   : > { %v725_v9 = vrot.slane %v724_v7, 1  ;;  %v733_v10 = vadd.f32 %v732_v8, %v731_v6 }
 0x13b   : > { %v726_v11 = vadd.f32 %v725_v9, %v724_v7  ;;  %v734_v12 = vrot.slane %v733_v10, 1 }
 0x13d   : > { %736 = vst [vmem:[%s1285_s3] sm:$0xff] %v726_v11  ;;  %v735_v13 = vadd.f32 %v734_v12, %v733_v10 }
 0x13f   : > { %737 = vst [vmem:[%s1286_s4] sm:$0xff] %v735_v13 }
 0x140 PF: > { %s15_s19 = sadd.s32 1, %s1138_s19   ;;  %s1287_s15 = smov %s1126_s16 }
 0x141   : > { %p12_p12 = scmp.ge.s32.totalorder %s15_s19, 4   ;;  %s1288_s16 = smov %s1201_s23 }
 0x142   : > { %s1289_s17 = smov %s1134_s18  ;;  %s1290_s18 = smov %s1292_s20 }
 0x143   :  { %14 = sbr.rel (!%p12_p12) target bundleno = 3 (0x3), region = 121 }

// kernel: forward.55
= control target key start
LH: loop header
LB: loop body
LE: loop exit
PB: predicated region body
PF: predicated region fallthrough
CT: control target
= control target key end

     0   :  { %s120_s0 = inlined_call_operand.vmem [shape: bf16[16,128], index: 0, kind: input, shape index: {}]   ;;  %s121_s1 = inlined_call_operand.vmem [shape: f32[1,128], index: 1, kind: input, shape index: {}]   ;;  %s122_s2 = inlined_call_operand.vmem [shape: f32[1,128], index: 2, kind: input, shape index: {}]   ;;  %s123_s3 = inlined_call_operand.vmem [shape: bf16[16,128], index: 3, kind: input, shape index: {}]   ;;  %s124_s4 = inlined_call_operand.vmem [shape: bf16[16,128], index: 4, kind: output, shape index: {}]  }
   0x1   :  { %v68_v0 = vld [vmem:[%s120_s0] sm:$0xff]  }
   0x2   :  { %v61_v1 = vld [vmem:[%s121_s1] ss:$0 sm:$0xff]  ;;  %v69_v2 = vunpack.c.l.bf16 %v68_v0  ;;  %v70_v3 = vunpack.c.h.bf16 %v68_v0 }
   0x3   :  { %v72_v4 = vld [vmem:[%s123_s3] sm:$0xff]  }
   0x4   :  { %v62_v5 = vld [vmem:[%s122_s2] ss:$0 sm:$0xff]  ;;  %v28_v6 = vmul.f32 %v69_v2, %v61_v1  ;;  %v29_v7 = vmul.f32 %v70_v3, %v61_v1  ;;  %v73_v8 = vunpack.c.l.bf16 %v72_v4  ;;  %v74_v9 = vunpack.c.h.bf16 %v72_v4 }
   0x6   :  { %v37_v10 = vadd.f32 %v62_v5, %v28_v6  ;;  %v38_v11 = vadd.f32 %v62_v5, %v29_v7 }
   0x8   :  { %v43_v12 = vadd.f32 %v73_v8, %v37_v10  ;;  %v44_v13 = vadd.f32 %v74_v9, %v38_v11 }
   0xa   :  { %v45_v14 = vmax.f32 %v43_v12, 0.0  ;;  %v46_v15 = vmax.f32 %v44_v13, 0.0 }
   0xc   :  { %v78_v16 = vpack.c.bf16 %v46_v15, %v45_v14 }
   0xe   :  { %79 = vst [vmem:[%s124_s4] sm:$0xff] %v78_v16  }

// kernel: forward.52
= control target key start
LH: loop header
LB: loop body
LE: loop exit
PB: predicated region body
PF: predicated region fallthrough
CT: control target
= control target key end

     0   :  { %s1166_s15 = smov 0   ;;  %s1168_s16 = smov 0   ;;  %s1282_s0 = inlined_call_operand.vmem [shape: bf16[16,1536], index: 0, kind: input, shape index: {}]   ;;  %s1283_s1 = inlined_call_operand.vmem [shape: bf16[1536,128], index: 1, kind: input, shape index: {}]   ;;  %s1284_s2 = inlined_call_operand.vmem [shape: bf16[16,128], index: 2, kind: output, shape index: {0}]   ;;  %s1285_s3 = inlined_call_operand.vmem [shape: f32[1,8,128], index: 3, kind: output, shape index: {1}]   ;;  %s1286_s4 = inlined_call_operand.vmem [shape: f32[1,8,128], index: 4, kind: output, shape index: {2}]  }
   0x1   :  { %s1170_s17 = smov 0   ;;  %s1172_s18 = smov 0  }
   0x2   :  { %s1174_s19 = smov 0  }
   0x3 LB: > { %s27_s20 = sadd.s32 1, %s1134_s18  ;;  %p50_p1 = scmp.ne.s32.totalorder %s1126_s16, %s1122_s15  ;;  %s1138_s19 = sphi %s1174_s19, %s15_s19   ;;  %s1134_s18 = sphi %s1172_s18, %s1290_s18   ;;  %s1130_s17 = sphi %s1170_s17, %s1289_s17   ;;  %s1126_s16 = sphi %s1168_s16, %s1288_s16   ;;  %s1122_s15 = sphi %s1166_s15, %s1287_s15  }
   0x4   : > { %p28_p0 = scmp.ge.s32.totalorder %s27_s20, 3  ;;  %p51_p2 = scmp.eq.s32.totalorder %s1138_s19, 0 }
   0x5   : > { %s43_s22 = sadd.s32 1, %s1126_s16  ;;  %p915_p5 = scmp.ge.s32.totalorder %s1138_s19, 3 }
   0x6   : > { %s1292_s20 = smov (%p28_p0, %s27_s20), 0  ;;  %p52_p3 = por %p51_p2, %p50_p1 }
   0x7   : > { %s39_s21 = ssub.s32 %s1134_s18, %s1292_s20  ;;  %188 = sbr.rel (%p915_p5) target bundleno = 21 (0x15), region = 16 }
   0x8   : > { %p41_p4 = scmp.eq.s32.totalorder %s39_s21, 0 }
   0xa   : > { %s1201_s23 = scalar_select %p41_p4, %s1126_s16, %s43_s22  }
   0xe   : > { %191 = sbr.rel (!%p52_p3) target bundleno = 21 (0x15), region = 20  ;;  %s193_s24 = sand.u32 (%p52_p3), 1, %s1126_s16  }
   0xf   : > { %s969_s25 = sshll.u32 (%p52_p3), %s1134_s18, 4  ;;  %s916_s26 = sshll.u32 (%p52_p3), %s193_s24, 5 }
  0x10   : > { %s201_s29 = scalar_lea.vmem (%p52_p3), %s1282_s0, %s969_s25  ;;  %s195_s30 = scalar_lea.vmem (%p52_p3), [#allocation3], %s916_s26 }
  0x11   : > { %v214_v0 = vld [vmem:[%s201_s29] sm:$0xff] (%p52_p3)  ;;  %v216_v1 = vld [vmem:[%s201_s29 + $0x8] sm:$0xff] (%p52_p3)  ;;  %v218_v2 = vld [vmem:[%s201_s29 + $0x30] sm:$0xff] (%p52_p3) }
  0x12   : > { %215 = vst [vmem:[%s195_s30] sm:$0xff] (%p52_p3), %v214_v0  ;;  %217 = vst [vmem:[%s195_s30 + $0x8] sm:$0xff] (%p52_p3), %v216_v1  ;;  %v220_v3 = vld [vmem:[%s201_s29 + $0x38] sm:$0xff] (%p52_p3) }
  0x13   : > { %219 = vst [vmem:[%s195_s30 + $0x10] sm:$0xff] (%p52_p3), %v218_v2  ;;  %221 = vst [vmem:[%s195_s30 + $0x18] sm:$0xff] (%p52_p3), %v220_v3 }
  0x15 PF: > { %p919_p6 = scmp.ge.s32.totalorder %s1138_s19, 1  ;;  %p238_p7 = scmp.lt.s32.totalorder %s1138_s19, 4 }
  0x17   : > { %p239_p8 = pnand %p919_p6, %p238_p7 }
  0x18   : > { %s245_s5 = sand.u32 (!%p239_p8), 1, %s1122_s15   ;;  %s921_s6 = sshll.u32 (!%p239_p8), %s1130_s17, 6 }
  0x19   : > { %242 = sbr.rel (%p239_p8) target bundleno = 320 (0x140), region = 47  ;;  %s920_s7 = sshll.u32 (!%p239_p8), %s245_s5, 5 }
  0x1a   : > { %p298_p9 = scmp.lt.s32.totalorder (!%p239_p8), %s921_s6, 191  ;;  %s1218_s12 = scalar_lea.vmem (!%p239_p8), [#allocation3], %s920_s7 }
  0x1b   : > { %p923_p10 = scmp.ne.s32.totalorder (!%p239_p8), %s1130_s17, 0 }
  0x20   : > { %s1294_s6 = smov (!%p298_p9, %s921_s6), 191  ;;  %333 = sbr.rel (%p923_p10) target bundleno = 39 (0x27), region = 55 }
  0x21   : > { %s922_s8 = sshll.u32 %s1294_s6, 2  ;;  %v1140_v4 = vmov (!%p923_p10), 0.0  }
  0x22   : > { %s1216_s11 = scalar_lea.vmem %s1283_s1, %s922_s8  ;;  %334 = vst [vmem:[#allocation2] sm:$0xff] (!%p923_p10), %v1140_v4  ;;  %335 = vst [vmem:[#allocation2 + $0x8] sm:$0xff] (!%p923_p10), %v1140_v4 }
  0x27 PF: > { %v1062_v5 = vld [vmem:[%s1216_s11 + $0x40] sm:$0xff]   ;;  %v1066_v9 = vld [vmem:[%s1216_s11 + $0x48] sm:$0xff]   ;;  %v1070_v13 = vld [vmem:[%s1216_s11 + $0x50] sm:$0xff]   ;;  %p960_p11 = scmp.ne.s32.totalorder %s1130_s17, 2 }
  0x28   : > { %v1063_v6 = vld [vmem:[%s1216_s11 + $0xc0] sm:$0xff]   ;;  %977 = vmatprep.subr.bf16.mxu0 %v1062_v5  ;;  %v1067_v10 = vld [vmem:[%s1216_s11 + $0xc8] sm:$0xff]   ;;  %v1071_v14 = vld [vmem:[%s1216_s11 + $0xd0] sm:$0xff]  }
  0x29   : > { %v1064_v7 = vld [vmem:[%s1216_s11] sm:$0xff]   ;;  %999 = vmatprep.subr.bf16.mxu1 %v1063_v6  ;;  %v1068_v11 = vld [vmem:[%s1216_s11 + $0x8] sm:$0xff]   ;;  %v1072_v15 = vld [vmem:[%s1216_s11 + $0x10] sm:$0xff]  }
  0x2a   : > { %v1065_v8 = vld [vmem:[%s1216_s11 + $0x80] sm:$0xff]   ;;  %978 = vmatpush3.bf16.msra.mxu0 %v1064_v7  ;;  %v1069_v12 = vld [vmem:[%s1216_s11 + $0x88] sm:$0xff]   ;;  %v1073_v16 = vld [vmem:[%s1216_s11 + $0x90] sm:$0xff]  }
  0x2b   : > { %1000 = vmatpush3.bf16.msra.mxu1 %v1065_v8  ;;  %979 = vmatprep.subr.bf16.mxu0 %v1066_v9  ;;  %v1074_v17 = vld [vmem:[%s1216_s11 + $0x58] sm:$0xff]   ;;  %v1078_v21 = vld [vmem:[%s1216_s11 + $0x60] sm:$0xff]   ;;  %v1082_v25 = vld [vmem:[%s1216_s11 + $0x68] sm:$0xff]  }
  0x2c   : > { %1001 = vmatprep.subr.bf16.mxu1 %v1067_v10  ;;  %v1075_v18 = vld [vmem:[%s1216_s11 + $0xd8] sm:$0xff]   ;;  %v1079_v22 = vld [vmem:[%s1216_s11 + $0xe0] sm:$0xff]   ;;  %v1083_v26 = vld [vmem:[%s1216_s11 + $0xe8] sm:$0xff]  }
  0x2d   : > { %v1076_v19 = vld [vmem:[%s1216_s11 + $0x18] sm:$0xff]   ;;  %v1080_v23 = vld [vmem:[%s1216_s11 + $0x20] sm:$0xff]   ;;  %v1084_v27 = vld [vmem:[%s1216_s11 + $0x28] sm:$0xff]  }
  0x2e   : > { %980 = vmatpush3.bf16.msra.mxu0 %v1068_v11  ;;  %v1077_v20 = vld [vmem:[%s1216_s11 + $0x98] sm:$0xff]   ;;  %v1081_v24 = vld [vmem:[%s1216_s11 + $0xa0] sm:$0xff]   ;;  %v1085_v28 = vld [vmem:[%s1216_s11 + $0xa8] sm:$0xff]  }
  0x2f   : > { %1002 = vmatpush3.bf16.msra.mxu1 %v1069_v12  ;;  %981 = vmatprep.subr.bf16.mxu0 %v1070_v13  ;;  %v1086_v29 = vld [vmem:[%s1216_s11 + $0x70] sm:$0xff]   ;;  %v1090_v33 = vld [vmem:[%s1216_s11 + $0x78] sm:$0xff]   ;;  %v336_v50 = vld [vmem:[#allocation2] sm:$0xff] }
  0x30   : > { %1003 = vmatprep.subr.bf16.mxu1 %v1071_v14  ;;  %v1087_v30 = vld [vmem:[%s1216_s11 + $0xf0] sm:$0xff]   ;;  %v1091_v34 = vld [vmem:[%s1216_s11 + $0xf8] sm:$0xff]   ;;  %v337_v55 = vld [vmem:[#allocation2 + $0x8] sm:$0xff] }
  0x31   : > { %v1088_v31 = vld [vmem:[%s1216_s11 + $0x30] sm:$0xff]   ;;  %v1092_v35 = vld [vmem:[%s1216_s11 + $0x38] sm:$0xff]  }
  0x32   : > { %982 = vmatpush3.bf16.msra.mxu0 %v1072_v15  ;;  %v1089_v32 = vld [vmem:[%s1216_s11 + $0xb0] sm:$0xff]   ;;  %v1093_v36 = vld [vmem:[%s1216_s11 + $0xb8] sm:$0xff]  }
  0x33   : > { %1004 = vmatpush3.bf16.msra.mxu1 %v1073_v16  ;;  %983 = vmatprep.subr.bf16.mxu0 %v1074_v17  ;;  %v1094_v37 = vld [vmem:[%s1218_s12] ss:$16 sps:$4 sm:$0xff]   ;;  %v1096_v38 = vld [vmem:[%s1218_s12 + $0x4] ss:$16 sps:$4 sm:$0xff]   ;;  %v1097_v39 = vld [vmem:[%s1218_s12 + $0x8] ss:$16 sps:$4 sm:$0xff]  }
  0x34   : > { %1005 = vmatprep.subr.bf16.mxu1 %v1075_v18  ;;  %v1099_v40 = vld [vmem:[%s1218_s12 + $0xc] ss:$16 sps:$4 sm:$0xff]   ;;  %650 = vmatprep.mubr.bf16.mxu0 %v1096_v38 }
  0x35   : > { %691 = vmatprep.mubr.bf16.mxu1 %v1099_v40 }
  0x36   : > { %984 = vmatpush3.bf16.msra.mxu0 %v1076_v19 }
  0x37   : > { %1006 = vmatpush3.bf16.msra.mxu1 %v1077_v20  ;;  %985 = vmatprep.subr.bf16.mxu0 %v1078_v21 }
  0x38   : > { %1007 = vmatprep.subr.bf16.mxu1 %v1079_v22 }
  0x3a   : > { %986 = vmatpush3.bf16.msra.mxu0 %v1080_v23 }
  0x3b   : > { %1008 = vmatpush3.bf16.msra.mxu1 %v1081_v24  ;;  %987 = vmatprep.subr.bf16.mxu0 %v1082_v25 }
  0x3c   : > { %1009 = vmatprep.subr.bf16.mxu1 %v1083_v26 }
  0x3e   : > { %988 = vmatpush3.bf16.msra.mxu0 %v1084_v27 }
  0x3f   : > { %1010 = vmatpush3.bf16.msra.mxu1 %v1085_v28  ;;  %989 = vmatprep.subr.bf16.mxu0 %v1086_v29 }
  0x40   : > { %1011 = vmatprep.subr.bf16.mxu1 %v1087_v30 }
  0x42   : > { %990 = vmatpush3.bf16.msra.mxu0 %v1088_v31 }
  0x43   : > { %1012 = vmatpush3.bf16.msra.mxu1 %v1089_v32  ;;  %991 = vmatprep.subr.bf16.mxu0 %v1090_v33 }
  0x44   : > { %1013 = vmatprep.subr.bf16.mxu1 %v1091_v34 }
  0x46   : > { %992 = vmatpush3.bf16.msra.mxu0 %v1092_v35 }
  0x47   : > { %1014 = vmatpush3.bf16.msra.mxu1 %v1093_v36 }
  0x49   : > { %651 = vmatmul.mubr.bf16.vlgmr.msra.gmra.mrb[0].mxu0 %v1094_v37 }
  0x4a   : > { %692 = vmatmul.mubr.bf16.vlgmr.msra.gmra.mrb[0].mxu1 %v1097_v39 }
 0x11c   : > { %v993_v41 = vpop.f32.mrb[0].mxu0 }
 0x11d   : > { %v1015_v42 = vpop.f32.mrb[0].mxu1  ;;  %v994_v43 = vpop.f32.mrb[1].mxu0 }
 0x11e   : > { %v995_v44 = vadd.f32 %v994_v43, %v993_v41  ;;  %v1016_v45 = vpop.f32.mrb[1].mxu1  ;;  %v996_v46 = vpop.f32.mrb[2].mxu0 }
 0x11f   : > { %v1017_v47 = vadd.f32 %v1016_v45, %v1015_v42  ;;  %v1018_v48 = vpop.f32.mrb[2].mxu1  ;;  %v997_v49 = vpop.f32.mrb[3].mxu0 }
 0x120   : > { %v998_v51 = vadd.f32 %v997_v49, %v996_v46  ;;  %v1019_v52 = vpop.f32.mrb[3].mxu1 }
 0x121   : > { %v694_v53 = vadd.f32 %v1017_v47, %v995_v44  ;;  %v1020_v54 = vadd.f32 %v1019_v52, %v1018_v48  ;;  %707 = sbr.rel (%p960_p11) target bundleno = 320 (0x140), region = 59 }
 0x123   : > { %v700_v56 = vadd.f32 %v694_v53, %v336_v50  ;;  %v697_v57 = vadd.f32 %v1020_v54, %v998_v51 }
 0x125   : > { %702 = vst [vmem:[#allocation2] sm:$0xff] %v700_v56  ;;  %v701_v58 = vadd.f32 %v697_v57, %v337_v55 }
 0x127   : > { %703 = vst [vmem:[#allocation2 + $0x8] sm:$0xff] %v701_v58 }
 0x12c   : > { %v708_v59 = vld [vmem:[#allocation2] sm:$0xff] }
 0x12d   : > { %v727_v63 = vmul.f32 %v708_v59, %v708_v59 }
 0x12e   : > { %v709_v60 = vld [vmem:[#allocation2 + $0x8] sm:$0xff] }
 0x12f   : > { %v975_v61 = vpack.c.bf16 %v709_v60, %v708_v59  ;;  %v720_v62 = vadd.f32 %v709_v60, %v708_v59  ;;  %v728_v0 = vmul.f32 %v709_v60, %v709_v60 }
 0x131   : > { %976 = vst [vmem:[%s1284_s2] sm:$0xff] %v975_v61   ;;  %v721_v1 = vrot.slane %v720_v62, 4  ;;  %v729_v2 = vadd.f32 %v728_v0, %v727_v63 }
 0x133   : > { %v722_v3 = vadd.f32 %v721_v1, %v720_v62  ;;  %v730_v4 = vrot.slane %v729_v2, 4 }
 0x135   : > { %v723_v5 = vrot.slane %v722_v3, 2  ;;  %v731_v6 = vadd.f32 %v730_v4, %v729_v2 }
 0x137   : > { %v724_v7 = vadd.f32 %v723_v5, %v722_v3  ;;  %v732_v8 = vrot.slane %v731_v6, 2 }
 0x139   : > { %v725_v9 = vrot.slane %v724_v7, 1  ;;  %v733_v10 = vadd.f32 %v732_v8, %v731_v6 }
 0x13b   : > { %v726_v11 = vadd.f32 %v725_v9, %v724_v7  ;;  %v734_v12 = vrot.slane %v733_v10, 1 }
 0x13d   : > { %736 = vst [vmem:[%s1285_s3] sm:$0xff] %v726_v11  ;;  %v735_v13 = vadd.f32 %v734_v12, %v733_v10 }
 0x13f   : > { %737 = vst [vmem:[%s1286_s4] sm:$0xff] %v735_v13 }
 0x140 PF: > { %s15_s19 = sadd.s32 1, %s1138_s19   ;;  %s1287_s15 = smov %s1126_s16 }
 0x141   : > { %p12_p12 = scmp.ge.s32.totalorder %s15_s19, 5   ;;  %s1288_s16 = smov %s1201_s23 }
 0x142   : > { %s1289_s17 = smov %s1134_s18  ;;  %s1290_s18 = smov %s1292_s20 }
 0x143   :  { %14 = sbr.rel (!%p12_p12) target bundleno = 3 (0x3), region = 121 }

// kernel: forward.63
= control target key start
LH: loop header
LB: loop body
LE: loop exit
PB: predicated region body
PF: predicated region fallthrough
CT: control target
= control target key end

     0   :  { %v298_v1 = vmov 0   ;;  %s393_s1 = inlined_call_operand.vmem [shape: bf16[128,256], index: 1, kind: input, shape index: {}]   ;;  %s394_s0 = inlined_call_operand.vmem [shape: bf16[16,128], index: 0, kind: input, shape index: {}]   ;;  %s395_s2 = inlined_call_operand.vmem [shape: bf16[16,256], index: 2, kind: output, shape index: {0}]   ;;  %s396_s3 = inlined_call_operand.vmem [shape: f32[1,8,256], index: 3, kind: output, shape index: {1}]   ;;  %s397_s4 = inlined_call_operand.vmem [shape: f32[1,8,256], index: 4, kind: output, shape index: {2}]  }
   0x1   :  { %v273_v0 = vld [vmem:[%s393_s1 + $0x4] ss:$8 sps:$4 sm:$0xff]   ;;  %163 = vmatprep.mubr.bf16.mxu0 %v298_v1  ;;  %v275_v2 = vld [vmem:[%s393_s1] ss:$8 sps:$4 sm:$0xff]   ;;  %v276_v3 = vld [vmem:[%s393_s1 + $0x14] ss:$8 sps:$4 sm:$0xff]  }
   0x2   :  { %131 = vmatprep.subr.bf16.mxu0 %v273_v0  ;;  %v278_v4 = vld [vmem:[%s393_s1 + $0x10] ss:$8 sps:$4 sm:$0xff]   ;;  %v279_v5 = vld [vmem:[%s393_s1 + $0x24] ss:$8 sps:$4 sm:$0xff]   ;;  %v281_v6 = vld [vmem:[%s393_s1 + $0x20] ss:$8 sps:$4 sm:$0xff]  }
   0x3   :  { %132 = vmatpush1.bf16.msra.mxu0 %v275_v2  ;;  %v282_v7 = vld [vmem:[%s393_s1 + $0x34] ss:$8 sps:$4 sm:$0xff]   ;;  %v284_v8 = vld [vmem:[%s393_s1 + $0x30] ss:$8 sps:$4 sm:$0xff]   ;;  %v285_v9 = vld [vmem:[%s393_s1 + $0x44] ss:$8 sps:$4 sm:$0xff]  }
   0x4   :  { %133 = vmatprep.subr.bf16.mxu0 %v276_v3  ;;  %v287_v10 = vld [vmem:[%s393_s1 + $0x40] ss:$8 sps:$4 sm:$0xff]   ;;  %v288_v11 = vld [vmem:[%s393_s1 + $0x54] ss:$8 sps:$4 sm:$0xff]   ;;  %v290_v12 = vld [vmem:[%s393_s1 + $0x50] ss:$8 sps:$4 sm:$0xff]  }
   0x5   :  { %v291_v13 = vld [vmem:[%s393_s1 + $0x64] ss:$8 sps:$4 sm:$0xff]   ;;  %v293_v14 = vld [vmem:[%s393_s1 + $0x60] ss:$8 sps:$4 sm:$0xff]   ;;  %v294_v15 = vld [vmem:[%s393_s1 + $0x74] ss:$8 sps:$4 sm:$0xff]  }
   0x6   :  { %v296_v16 = vld [vmem:[%s393_s1 + $0x70] ss:$8 sps:$4 sm:$0xff]   ;;  %v297_v17 = vld [vmem:[%s394_s0] sm:$0xff]  }
   0x7   :  { %134 = vmatpush1.bf16.msra.mxu0 %v278_v4 }
   0x8   :  { %135 = vmatprep.subr.bf16.mxu0 %v279_v5 }
   0xb   :  { %136 = vmatpush1.bf16.msra.mxu0 %v281_v6 }
   0xc   :  { %137 = vmatprep.subr.bf16.mxu0 %v282_v7 }
   0xf   :  { %138 = vmatpush1.bf16.msra.mxu0 %v284_v8 }
  0x10   :  { %139 = vmatprep.subr.bf16.mxu0 %v285_v9 }
  0x13   :  { %140 = vmatpush1.bf16.msra.mxu0 %v287_v10 }
  0x14   :  { %141 = vmatprep.subr.bf16.mxu0 %v288_v11 }
  0x17   :  { %142 = vmatpush1.bf16.msra.mxu0 %v290_v12 }
  0x18   :  { %143 = vmatprep.subr.bf16.mxu0 %v291_v13 }
  0x1b   :  { %144 = vmatpush1.bf16.msra.mxu0 %v293_v14 }
  0x1c   :  { %145 = vmatprep.subr.bf16.mxu0 %v294_v15 }
  0x1f   :  { %146 = vmatpush1.bf16.msra.mxu0 %v296_v16 }
  0x22   :  { %164 = vmatmul.mubr.bf16.vlgmr.msra.gmra.mrb[0].mxu0 %v297_v17 }
  0xf5   :  { %v165_v18 = vpop.f32.mrb[0].mxu0 }
  0xf6   :  { %v167_v19 = vpop.f32.mrb[1].mxu0  ;;  %v217_v22 = vmul.f32 %v165_v18, %v165_v18 }
  0xf7   :  { %v270_v20 = vpack.c.bf16 %v167_v19, %v165_v18  ;;  %v169_v21 = vpop.f32.mrb[2].mxu0  ;;  %v218_v26 = vmul.f32 %v167_v19, %v167_v19 }
  0xf8   :  { %v203_v23 = vadd.f32 %v169_v21, %v165_v18  ;;  %v219_v24 = vmul.f32 %v169_v21, %v169_v21  ;;  %v171_v25 = vpop.f32.mrb[3].mxu0 }
  0xf9   :  { %v271_v27 = vpack.c.bf16 %v171_v25, %v169_v21  ;;  %201 = vst [vmem:[%s395_s2] sm:$0xff] %v270_v20  ;;  %v210_v28 = vadd.f32 %v171_v25, %v167_v19  ;;  %v220_v29 = vmul.f32 %v171_v25, %v171_v25 }
  0xfa   :  { %v204_v30 = vrot.slane %v203_v23, 4  ;;  %v221_v31 = vadd.f32 %v219_v24, %v217_v22 }
  0xfb   :  { %202 = vst [vmem:[%s395_s2 + $0x8] sm:$0xff] %v271_v27  ;;  %v211_v32 = vrot.slane %v210_v28, 4  ;;  %v228_v33 = vadd.f32 %v220_v29, %v218_v26 }
  0xfc   :  { %v205_v34 = vadd.f32 %v204_v30, %v203_v23  ;;  %v222_v35 = vrot.slane %v221_v31, 4 }
  0xfd   :  { %v212_v36 = vadd.f32 %v211_v32, %v210_v28  ;;  %v229_v37 = vrot.slane %v228_v33, 4 }
  0xfe   :  { %v206_v38 = vrot.slane %v205_v34, 2  ;;  %v223_v39 = vadd.f32 %v222_v35, %v221_v31 }
  0xff   :  { %v213_v40 = vrot.slane %v212_v36, 2  ;;  %v230_v41 = vadd.f32 %v229_v37, %v228_v33 }
 0x100   :  { %v207_v42 = vadd.f32 %v206_v38, %v205_v34  ;;  %v224_v43 = vrot.slane %v223_v39, 2 }
 0x101   :  { %v214_v44 = vadd.f32 %v213_v40, %v212_v36  ;;  %v231_v45 = vrot.slane %v230_v41, 2 }
 0x102   :  { %v208_v46 = vrot.slane %v207_v42, 1  ;;  %v225_v47 = vadd.f32 %v224_v43, %v223_v39 }
 0x103   :  { %v215_v48 = vrot.slane %v214_v44, 1  ;;  %v232_v49 = vadd.f32 %v231_v45, %v230_v41 }
 0x104   :  { %v209_v50 = vadd.f32 %v208_v46, %v207_v42  ;;  %v226_v51 = vrot.slane %v225_v47, 1 }
 0x105   :  { %v216_v52 = vadd.f32 %v215_v48, %v214_v44  ;;  %v233_v53 = vrot.slane %v232_v49, 1 }
 0x106   :  { %v227_v54 = vadd.f32 %v226_v51, %v225_v47  ;;  %235 = vst [vmem:[%s396_s3] sm:$0xff] %v209_v50 }
 0x107   :  { %v234_v55 = vadd.f32 %v233_v53, %v232_v49  ;;  %236 = vst [vmem:[%s396_s3 + $0x8] sm:$0xff] %v216_v52 }
 0x108   :  { %237 = vst [vmem:[%s397_s4] sm:$0xff] %v227_v54 }
 0x109   :  { %238 = vst [vmem:[%s397_s4 + $0x8] sm:$0xff] %v234_v55 }

// kernel: forward.64
= control target key start
LH: loop header
LB: loop body
LE: loop exit
PB: predicated region body
PF: predicated region fallthrough
CT: control target
= control target key end

     0   :  { %v22_v0 = vlaneseq  ;;  %s112_s0 = inlined_call_operand.vmem [shape: bf16[16,256], index: 0, kind: input, shape index: {}]   ;;  %s113_s1 = inlined_call_operand.vmem [shape: f32[1,256], index: 1, kind: input, shape index: {}]   ;;  %s114_s2 = inlined_call_operand.vmem [shape: f32[1,256], index: 2, kind: input, shape index: {}]   ;;  %s115_s3 = inlined_call_operand.vmem [shape: bf16[16,256], index: 3, kind: output, shape index: {}]  }
   0x1   :  { %v14_v1 = vld [vmem:[%s112_s0] sm:$0xff]  ;;  %v15_v3 = vld [vmem:[%s112_s0 + $0x8] sm:$0xff] }
   0x2   :  { %v23_v2 = vshrl.u32 %v22_v0, 7  ;;  %v16_v4 = vunpack.c.l.bf16 %v14_v1  ;;  %v17_v5 = vunpack.c.h.bf16 %v14_v1  ;;  %v20_v6 = vld [vmem:[%s113_s1] sm:$0x3]  ;;  %v18_v10 = vunpack.c.l.bf16 %v15_v3 }
   0x3   :  { %v36_v7 = vld [vmem:[%s114_s2] sm:$0x3]  ;;  %v19_v11 = vunpack.c.h.bf16 %v15_v3 }
   0x4   :  { %v24_v8 = vsub.s32 0, %v23_v2  ;;  %v28_v9 = vsub.s32 1, %v23_v2 }
   0x6   :  { %v25_v12 = vrot.slane %v20_v6, %v24_v8  ;;  %v29_v13 = vrot.slane %v20_v6, %v28_v9  ;;  %v41_v14 = vrot.slane %v36_v7, %v24_v8  ;;  %v45_v15 = vrot.slane %v36_v7, %v28_v9 }
   0x8   :  { %v32_v16 = vmul.f32 %v25_v12, %v16_v4  ;;  %v33_v17 = vmul.f32 %v29_v13, %v17_v5  ;;  %v34_v18 = vmul.f32 %v25_v12, %v18_v10  ;;  %v35_v19 = vmul.f32 %v29_v13, %v19_v11 }
   0xa   :  { %v48_v20 = vadd.f32 %v41_v14, %v32_v16  ;;  %v49_v21 = vadd.f32 %v45_v15, %v33_v17  ;;  %v50_v22 = vadd.f32 %v41_v14, %v34_v18  ;;  %v51_v23 = vadd.f32 %v45_v15, %v35_v19 }
   0xc   :  { %v72_v24 = vpack.c.bf16 %v49_v21, %v48_v20  ;;  %v73_v25 = vpack.c.bf16 %v51_v23, %v50_v22 }
   0xe   :  { %64 = vst [vmem:[%s115_s3] sm:$0xff] %v72_v24  ;;  %65 = vst [vmem:[%s115_s3 + $0x8] sm:$0xff] %v73_v25 }

// kernel: forward.61
= control target key start
LH: loop header
LB: loop body
LE: loop exit
PB: predicated region body
PF: predicated region fallthrough
CT: control target
= control target key end

     0   :  { %v22_v0 = vlaneseq  ;;  %s116_s0 = inlined_call_operand.vmem [shape: bf16[16,256], index: 0, kind: input, shape index: {}]   ;;  %s117_s1 = inlined_call_operand.vmem [shape: f32[1,256], index: 1, kind: input, shape index: {}]   ;;  %s118_s2 = inlined_call_operand.vmem [shape: f32[1,256], index: 2, kind: input, shape index: {}]   ;;  %s119_s3 = inlined_call_operand.vmem [shape: bf16[16,256], index: 3, kind: output, shape index: {}]  }
   0x1   :  { %v14_v1 = vld [vmem:[%s116_s0] sm:$0xff]  ;;  %v15_v3 = vld [vmem:[%s116_s0 + $0x8] sm:$0xff] }
   0x2   :  { %v23_v2 = vshrl.u32 %v22_v0, 7  ;;  %v16_v4 = vunpack.c.l.bf16 %v14_v1  ;;  %v17_v5 = vunpack.c.h.bf16 %v14_v1  ;;  %v20_v6 = vld [vmem:[%s117_s1] sm:$0x3]  ;;  %v18_v10 = vunpack.c.l.bf16 %v15_v3 }
   0x3   :  { %v36_v7 = vld [vmem:[%s118_s2] sm:$0x3]  ;;  %v19_v11 = vunpack.c.h.bf16 %v15_v3 }
   0x4   :  { %v24_v8 = vsub.s32 0, %v23_v2  ;;  %v28_v9 = vsub.s32 1, %v23_v2 }
   0x6   :  { %v25_v12 = vrot.slane %v20_v6, %v24_v8  ;;  %v29_v13 = vrot.slane %v20_v6, %v28_v9  ;;  %v41_v14 = vrot.slane %v36_v7, %v24_v8  ;;  %v45_v15 = vrot.slane %v36_v7, %v28_v9 }
   0x8   :  { %v32_v16 = vmul.f32 %v25_v12, %v16_v4  ;;  %v33_v17 = vmul.f32 %v29_v13, %v17_v5  ;;  %v34_v18 = vmul.f32 %v25_v12, %v18_v10  ;;  %v35_v19 = vmul.f32 %v29_v13, %v19_v11 }
   0xa   :  { %v48_v20 = vadd.f32 %v41_v14, %v32_v16  ;;  %v49_v21 = vadd.f32 %v45_v15, %v33_v17  ;;  %v50_v22 = vadd.f32 %v41_v14, %v34_v18  ;;  %v51_v23 = vadd.f32 %v45_v15, %v35_v19 }
   0xc   :  { %v52_v24 = vmax.f32 %v48_v20, 0.0  ;;  %v53_v25 = vmax.f32 %v49_v21, 0.0  ;;  %v54_v26 = vmax.f32 %v50_v22, 0.0  ;;  %v55_v27 = vmax.f32 %v51_v23, 0.0 }
   0xe   :  { %v76_v28 = vpack.c.bf16 %v53_v25, %v52_v24  ;;  %v77_v29 = vpack.c.bf16 %v55_v27, %v54_v26 }
  0x10   :  { %68 = vst [vmem:[%s119_s3] sm:$0xff] %v76_v28  ;;  %69 = vst [vmem:[%s119_s3 + $0x8] sm:$0xff] %v77_v29 }

// kernel: forward.60
= control target key start
LH: loop header
LB: loop body
LE: loop exit
PB: predicated region body
PF: predicated region fallthrough
CT: control target
= control target key end

     0   :  { %s1437_s15 = smov 0   ;;  %s1439_s16 = smov 0   ;;  %s1594_s0 = inlined_call_operand.vmem [shape: bf16[16,1536], index: 0, kind: input, shape index: {}]   ;;  %s1595_s1 = inlined_call_operand.vmem [shape: bf16[1536,256], index: 1, kind: input, shape index: {}]   ;;  %s1596_s2 = inlined_call_operand.vmem [shape: bf16[16,256], index: 2, kind: output, shape index: {0}]   ;;  %s1597_s3 = inlined_call_operand.vmem [shape: f32[1,8,256], index: 3, kind: output, shape index: {1}]   ;;  %s1598_s4 = inlined_call_operand.vmem [shape: f32[1,8,256], index: 4, kind: output, shape index: {2}]  }
   0x1   :  { %s1441_s17 = smov 0   ;;  %s1443_s18 = smov 0  }
   0x2   :  { %s1445_s19 = smov 0  }
   0x3 LB: > { %s27_s20 = sadd.s32 1, %s1405_s18  ;;  %p50_p1 = scmp.ne.s32.totalorder %s1397_s16, %s1393_s15  ;;  %s1409_s19 = sphi %s1445_s19, %s15_s19   ;;  %s1405_s18 = sphi %s1443_s18, %s1602_s18   ;;  %s1401_s17 = sphi %s1441_s17, %s1601_s17   ;;  %s1397_s16 = sphi %s1439_s16, %s1600_s16   ;;  %s1393_s15 = sphi %s1437_s15, %s1599_s15  }
   0x4   : > { %p28_p0 = scmp.ge.s32.totalorder %s27_s20, 3  ;;  %p51_p2 = scmp.eq.s32.totalorder %s1409_s19, 0 }
   0x5   : > { %s43_s22 = sadd.s32 1, %s1397_s16  ;;  %p1131_p5 = scmp.ge.s32.totalorder %s1409_s19, 3 }
   0x6   : > { %s1604_s20 = smov (%p28_p0, %s27_s20), 0  ;;  %p52_p3 = por %p51_p2, %p50_p1 }
   0x7   : > { %s39_s21 = ssub.s32 %s1405_s18, %s1604_s20  ;;  %188 = sbr.rel (%p1131_p5) target bundleno = 21 (0x15), region = 16 }
   0x8   : > { %p41_p4 = scmp.eq.s32.totalorder %s39_s21, 0 }
   0xa   : > { %s1472_s23 = scalar_select %p41_p4, %s1397_s16, %s43_s22  }
   0xe   : > { %191 = sbr.rel (!%p52_p3) target bundleno = 21 (0x15), region = 20  ;;  %s193_s24 = sand.u32 (%p52_p3), 1, %s1397_s16  }
   0xf   : > { %s1220_s25 = sshll.u32 (%p52_p3), %s1405_s18, 4  ;;  %s1132_s26 = sshll.u32 (%p52_p3), %s193_s24, 5 }
  0x10   : > { %s201_s29 = scalar_lea.vmem (%p52_p3), %s1594_s0, %s1220_s25  ;;  %s195_s30 = scalar_lea.vmem (%p52_p3), [#allocation3], %s1132_s26 }
  0x11   : > { %v214_v0 = vld [vmem:[%s201_s29] sm:$0xff] (%p52_p3)  ;;  %v216_v1 = vld [vmem:[%s201_s29 + $0x8] sm:$0xff] (%p52_p3)  ;;  %v218_v2 = vld [vmem:[%s201_s29 + $0x30] sm:$0xff] (%p52_p3) }
  0x12   : > { %215 = vst [vmem:[%s195_s30] sm:$0xff] (%p52_p3), %v214_v0  ;;  %217 = vst [vmem:[%s195_s30 + $0x8] sm:$0xff] (%p52_p3), %v216_v1  ;;  %v220_v3 = vld [vmem:[%s201_s29 + $0x38] sm:$0xff] (%p52_p3) }
  0x13   : > { %219 = vst [vmem:[%s195_s30 + $0x10] sm:$0xff] (%p52_p3), %v218_v2  ;;  %221 = vst [vmem:[%s195_s30 + $0x18] sm:$0xff] (%p52_p3), %v220_v3 }
  0x15 PF: > { %p1135_p6 = scmp.ge.s32.totalorder %s1409_s19, 1  ;;  %p241_p7 = scmp.lt.s32.totalorder %s1409_s19, 4 }
  0x17   : > { %p242_p8 = pnand %p1135_p6, %p241_p7 }
  0x18   : > { %s248_s5 = sand.u32 (!%p242_p8), 1, %s1393_s15   ;;  %s1137_s6 = sshll.u32 (!%p242_p8), %s1401_s17, 6 }
  0x19   : > { %245 = sbr.rel (%p242_p8) target bundleno = 349 (0x15d), region = 47  ;;  %s1136_s7 = sshll.u32 (!%p242_p8), %s248_s5, 5 }
  0x1a   : > { %p310_p9 = scmp.lt.s32.totalorder (!%p242_p8), %s1137_s6, 191  ;;  %s1489_s12 = scalar_lea.vmem (!%p242_p8), [#allocation3], %s1136_s7 }
  0x1b   : > { %p1140_p10 = scmp.ne.s32.totalorder (!%p242_p8), %s1401_s17, 0 }
  0x20   : > { %s1606_s6 = smov (!%p310_p9, %s1137_s6), 191  ;;  %355 = sbr.rel (%p1140_p10) target bundleno = 39 (0x27), region = 55 }
  0x21   : > { %s1221_s8 = sshll.u32 %s1606_s6, 3  ;;  %v1411_v4 = vmov (!%p1140_p10), 0.0  }
  0x22   : > { %s1487_s11 = scalar_lea.vmem %s1595_s1, %s1221_s8  ;;  %356 = vst [vmem:[#allocation2] sm:$0xff] (!%p1140_p10), %v1411_v4  ;;  %357 = vst [vmem:[#allocation2 + $0x8] sm:$0xff] (!%p1140_p10), %v1411_v4 }
  0x23   : > { %358 = vst [vmem:[#allocation2 + $0x10] sm:$0xff] (!%p1140_p10), %v1411_v4  ;;  %359 = vst [vmem:[#allocation2 + $0x18] sm:$0xff] (!%p1140_p10), %v1411_v4 }
  0x27 PF: > { %v1269_v5 = vld [vmem:[%s1487_s11 + $0x4] ss:$8 sps:$4 sm:$0xff]   ;;  %v1273_v7 = vld [vmem:[%s1487_s11] ss:$8 sps:$4 sm:$0xff]   ;;  %v1275_v9 = vld [vmem:[%s1487_s11 + $0x14] ss:$8 sps:$4 sm:$0xff]  }
  0x28   : > { %v1271_v6 = vld [vmem:[%s1487_s11 + $0x104] ss:$8 sps:$4 sm:$0xff]   ;;  %772 = vmatprep.subr.bf16.mxu1 %v1269_v5  ;;  %v1274_v8 = vld [vmem:[%s1487_s11 + $0x100] ss:$8 sps:$4 sm:$0xff]   ;;  %v1277_v10 = vld [vmem:[%s1487_s11 + $0x114] ss:$8 sps:$4 sm:$0xff]  }
  0x29   : > { %815 = vmatprep.subr.bf16.mxu0 %v1271_v6  ;;  %773 = vmatpush1.bf16.msra.mxu1 %v1273_v7  ;;  %v1279_v11 = vld [vmem:[%s1487_s11 + $0x10] ss:$8 sps:$4 sm:$0xff]   ;;  %v1281_v13 = vld [vmem:[%s1487_s11 + $0x24] ss:$8 sps:$4 sm:$0xff]   ;;  %v1285_v15 = vld [vmem:[%s1487_s11 + $0x20] ss:$8 sps:$4 sm:$0xff]  }
  0x2a   : > { %816 = vmatpush1.bf16.msra.mxu0 %v1274_v8  ;;  %774 = vmatprep.subr.bf16.mxu1 %v1275_v9  ;;  %v1280_v12 = vld [vmem:[%s1487_s11 + $0x110] ss:$8 sps:$4 sm:$0xff]   ;;  %v1283_v14 = vld [vmem:[%s1487_s11 + $0x124] ss:$8 sps:$4 sm:$0xff]   ;;  %v1286_v16 = vld [vmem:[%s1487_s11 + $0x120] ss:$8 sps:$4 sm:$0xff]  }
  0x2b   : > { %817 = vmatprep.subr.bf16.mxu0 %v1277_v10  ;;  %v1287_v17 = vld [vmem:[%s1487_s11 + $0x34] ss:$8 sps:$4 sm:$0xff]   ;;  %v1291_v19 = vld [vmem:[%s1487_s11 + $0x30] ss:$8 sps:$4 sm:$0xff]   ;;  %v1293_v21 = vld [vmem:[%s1487_s11 + $0x44] ss:$8 sps:$4 sm:$0xff]  }
  0x2c   : > { %v1289_v18 = vld [vmem:[%s1487_s11 + $0x134] ss:$8 sps:$4 sm:$0xff]   ;;  %v1292_v20 = vld [vmem:[%s1487_s11 + $0x130] ss:$8 sps:$4 sm:$0xff]   ;;  %v1295_v22 = vld [vmem:[%s1487_s11 + $0x144] ss:$8 sps:$4 sm:$0xff]  }
  0x2d   : > { %775 = vmatpush1.bf16.msra.mxu1 %v1279_v11  ;;  %v1297_v23 = vld [vmem:[%s1487_s11 + $0x40] ss:$8 sps:$4 sm:$0xff]   ;;  %v1299_v25 = vld [vmem:[%s1487_s11 + $0x54] ss:$8 sps:$4 sm:$0xff]   ;;  %v1303_v27 = vld [vmem:[%s1487_s11 + $0x50] ss:$8 sps:$4 sm:$0xff]  }
  0x2e   : > { %818 = vmatpush1.bf16.msra.mxu0 %v1280_v12  ;;  %776 = vmatprep.subr.bf16.mxu1 %v1281_v13  ;;  %v1298_v24 = vld [vmem:[%s1487_s11 + $0x140] ss:$8 sps:$4 sm:$0xff]   ;;  %v1301_v26 = vld [vmem:[%s1487_s11 + $0x154] ss:$8 sps:$4 sm:$0xff]   ;;  %v1304_v28 = vld [vmem:[%s1487_s11 + $0x150] ss:$8 sps:$4 sm:$0xff]  }
  0x2f   : > { %819 = vmatprep.subr.bf16.mxu0 %v1283_v14  ;;  %v1305_v29 = vld [vmem:[%s1487_s11 + $0x64] ss:$8 sps:$4 sm:$0xff]   ;;  %v1309_v31 = vld [vmem:[%s1487_s11 + $0x60] ss:$8 sps:$4 sm:$0xff]   ;;  %v1311_v33 = vld [vmem:[%s1487_s11 + $0x74] ss:$8 sps:$4 sm:$0xff]  }
  0x30   : > { %v1307_v30 = vld [vmem:[%s1487_s11 + $0x164] ss:$8 sps:$4 sm:$0xff]   ;;  %v1310_v32 = vld [vmem:[%s1487_s11 + $0x160] ss:$8 sps:$4 sm:$0xff]   ;;  %v1313_v34 = vld [vmem:[%s1487_s11 + $0x174] ss:$8 sps:$4 sm:$0xff]  }
  0x31   : > { %777 = vmatpush1.bf16.msra.mxu1 %v1285_v15  ;;  %v1315_v35 = vld [vmem:[%s1487_s11 + $0x70] ss:$8 sps:$4 sm:$0xff]   ;;  %v1317_v37 = vld [vmem:[%s1487_s11 + $0x84] ss:$8 sps:$4 sm:$0xff]   ;;  %v1321_v39 = vld [vmem:[%s1487_s11 + $0x80] ss:$8 sps:$4 sm:$0xff]  }
  0x32   : > { %820 = vmatpush1.bf16.msra.mxu0 %v1286_v16  ;;  %778 = vmatprep.subr.bf16.mxu1 %v1287_v17  ;;  %v1316_v36 = vld [vmem:[%s1487_s11 + $0x170] ss:$8 sps:$4 sm:$0xff]   ;;  %v1319_v38 = vld [vmem:[%s1487_s11 + $0x184] ss:$8 sps:$4 sm:$0xff]   ;;  %v1322_v40 = vld [vmem:[%s1487_s11 + $0x180] ss:$8 sps:$4 sm:$0xff]  }
  0x33   : > { %821 = vmatprep.subr.bf16.mxu0 %v1289_v18  ;;  %v1323_v41 = vld [vmem:[%s1487_s11 + $0x94] ss:$8 sps:$4 sm:$0xff]   ;;  %v1327_v43 = vld [vmem:[%s1487_s11 + $0x90] ss:$8 sps:$4 sm:$0xff]   ;;  %v1329_v45 = vld [vmem:[%s1487_s11 + $0xa4] ss:$8 sps:$4 sm:$0xff]  }
  0x34   : > { %v1325_v42 = vld [vmem:[%s1487_s11 + $0x194] ss:$8 sps:$4 sm:$0xff]   ;;  %v1328_v44 = vld [vmem:[%s1487_s11 + $0x190] ss:$8 sps:$4 sm:$0xff]   ;;  %v1331_v46 = vld [vmem:[%s1487_s11 + $0x1a4] ss:$8 sps:$4 sm:$0xff]  }
  0x35   : > { %779 = vmatpush1.bf16.msra.mxu1 %v1291_v19  ;;  %v1333_v47 = vld [vmem:[%s1487_s11 + $0xa0] ss:$8 sps:$4 sm:$0xff]   ;;  %v1335_v49 = vld [vmem:[%s1487_s11 + $0xb4] ss:$8 sps:$4 sm:$0xff]   ;;  %v1339_v51 = vld [vmem:[%s1487_s11 + $0xb0] ss:$8 sps:$4 sm:$0xff]  }
  0x36   : > { %822 = vmatpush1.bf16.msra.mxu0 %v1292_v20  ;;  %780 = vmatprep.subr.bf16.mxu1 %v1293_v21  ;;  %v1334_v48 = vld [vmem:[%s1487_s11 + $0x1a0] ss:$8 sps:$4 sm:$0xff]   ;;  %v1337_v50 = vld [vmem:[%s1487_s11 + $0x1b4] ss:$8 sps:$4 sm:$0xff]   ;;  %v1340_v53 = vld [vmem:[%s1487_s11 + $0x1b0] ss:$8 sps:$4 sm:$0xff]  }
  0x37   : > { %823 = vmatprep.subr.bf16.mxu0 %v1295_v22  ;;  %v1367_v52 = vld [vmem:[%s1489_s12 + $0x4] ss:$16 sps:$4 sm:$0xff]   ;;  %v1370_v56 = vld [vmem:[%s1489_s12 + $0xc] ss:$16 sps:$4 sm:$0xff]   ;;  %v1345_v57 = vld [vmem:[%s1487_s11 + $0xc0] ss:$8 sps:$4 sm:$0xff]  }
  0x38   : > { %v1341_v54 = vld [vmem:[%s1487_s11 + $0xc4] ss:$8 sps:$4 sm:$0xff]   ;;  %804 = vmatprep.mubr.bf16.mxu1 %v1367_v52  ;;  %847 = vmatprep.mubr.bf16.mxu0 %v1370_v56  ;;  %v1346_v58 = vld [vmem:[%s1487_s11 + $0x1c0] ss:$8 sps:$4 sm:$0xff]   ;;  %v1347_v59 = vld [vmem:[%s1487_s11 + $0xd4] ss:$8 sps:$4 sm:$0xff]  }
  0x39   : > { %781 = vmatpush1.bf16.msra.mxu1 %v1297_v23  ;;  %v1343_v55 = vld [vmem:[%s1487_s11 + $0x1c4] ss:$8 sps:$4 sm:$0xff]   ;;  %v1349_v60 = vld [vmem:[%s1487_s11 + $0x1d4] ss:$8 sps:$4 sm:$0xff]   ;;  %v1351_v61 = vld [vmem:[%s1487_s11 + $0xd0] ss:$8 sps:$4 sm:$0xff]  }
  0x3a   : > { %824 = vmatpush1.bf16.msra.mxu0 %v1298_v24  ;;  %782 = vmatprep.subr.bf16.mxu1 %v1299_v25  ;;  %v1352_v62 = vld [vmem:[%s1487_s11 + $0x1d0] ss:$8 sps:$4 sm:$0xff]   ;;  %v1353_v63 = vld [vmem:[%s1487_s11 + $0xe4] ss:$8 sps:$4 sm:$0xff]   ;;  %v1357_v1 = vld [vmem:[%s1487_s11 + $0xe0] ss:$8 sps:$4 sm:$0xff]  }
  0x3b   : > { %825 = vmatprep.subr.bf16.mxu0 %v1301_v26  ;;  %v1355_v0 = vld [vmem:[%s1487_s11 + $0x1e4] ss:$8 sps:$4 sm:$0xff]   ;;  %v1358_v2 = vld [vmem:[%s1487_s11 + $0x1e0] ss:$8 sps:$4 sm:$0xff]   ;;  %v1359_v3 = vld [vmem:[%s1487_s11 + $0xf4] ss:$8 sps:$4 sm:$0xff]  }
  0x3c   : > { %v1361_v4 = vld [vmem:[%s1487_s11 + $0x1f4] ss:$8 sps:$4 sm:$0xff]   ;;  %v1363_v5 = vld [vmem:[%s1487_s11 + $0xf0] ss:$8 sps:$4 sm:$0xff]   ;;  %v360_v10 = vld [vmem:[#allocation2] sm:$0xff]  ;;  %p1209_p11 = scmp.ne.s32.totalorder %s1401_s17, 2 }
  0x3d   : > { %783 = vmatpush1.bf16.msra.mxu1 %v1303_v27  ;;  %v1364_v6 = vld [vmem:[%s1487_s11 + $0x1f0] ss:$8 sps:$4 sm:$0xff]   ;;  %v361_v14 = vld [vmem:[#allocation2 + $0x8] sm:$0xff] }
  0x3e   : > { %826 = vmatpush1.bf16.msra.mxu0 %v1304_v28  ;;  %784 = vmatprep.subr.bf16.mxu1 %v1305_v29  ;;  %v1365_v7 = vld [vmem:[%s1489_s12] ss:$16 sps:$4 sm:$0xff]   ;;  %v1368_v8 = vld [vmem:[%s1489_s12 + $0x8] ss:$16 sps:$4 sm:$0xff]  }
  0x3f   : > { %827 = vmatprep.subr.bf16.mxu0 %v1307_v30  ;;  %v362_v18 = vld [vmem:[#allocation2 + $0x10] sm:$0xff]  ;;  %v363_v23 = vld [vmem:[#allocation2 + $0x18] sm:$0xff] }
  0x41   : > { %785 = vmatpush1.bf16.msra.mxu1 %v1309_v31 }
  0x42   : > { %828 = vmatpush1.bf16.msra.mxu0 %v1310_v32  ;;  %786 = vmatprep.subr.bf16.mxu1 %v1311_v33 }
  0x43   : > { %829 = vmatprep.subr.bf16.mxu0 %v1313_v34 }
  0x45   : > { %787 = vmatpush1.bf16.msra.mxu1 %v1315_v35 }
  0x46   : > { %830 = vmatpush1.bf16.msra.mxu0 %v1316_v36  ;;  %788 = vmatprep.subr.bf16.mxu1 %v1317_v37 }
  0x47   : > { %831 = vmatprep.subr.bf16.mxu0 %v1319_v38 }
  0x49   : > { %789 = vmatpush1.bf16.msra.mxu1 %v1321_v39 }
  0x4a   : > { %832 = vmatpush1.bf16.msra.mxu0 %v1322_v40  ;;  %790 = vmatprep.subr.bf16.mxu1 %v1323_v41 }
  0x4b   : > { %833 = vmatprep.subr.bf16.mxu0 %v1325_v42 }
  0x4d   : > { %791 = vmatpush1.bf16.msra.mxu1 %v1327_v43 }
  0x4e   : > { %834 = vmatpush1.bf16.msra.mxu0 %v1328_v44  ;;  %792 = vmatprep.subr.bf16.mxu1 %v1329_v45 }
  0x4f   : > { %835 = vmatprep.subr.bf16.mxu0 %v1331_v46 }
  0x51   : > { %793 = vmatpush1.bf16.msra.mxu1 %v1333_v47 }
  0x52   : > { %836 = vmatpush1.bf16.msra.mxu0 %v1334_v48  ;;  %794 = vmatprep.subr.bf16.mxu1 %v1335_v49 }
  0x53   : > { %837 = vmatprep.subr.bf16.mxu0 %v1337_v50 }
  0x55   : > { %795 = vmatpush1.bf16.msra.mxu1 %v1339_v51 }
  0x56   : > { %838 = vmatpush1.bf16.msra.mxu0 %v1340_v53  ;;  %796 = vmatprep.subr.bf16.mxu1 %v1341_v54 }
  0x57   : > { %839 = vmatprep.subr.bf16.mxu0 %v1343_v55 }
  0x59   : > { %797 = vmatpush1.bf16.msra.mxu1 %v1345_v57 }
  0x5a   : > { %840 = vmatpush1.bf16.msra.mxu0 %v1346_v58  ;;  %798 = vmatprep.subr.bf16.mxu1 %v1347_v59 }
  0x5b   : > { %841 = vmatprep.subr.bf16.mxu0 %v1349_v60 }
  0x5d   : > { %799 = vmatpush1.bf16.msra.mxu1 %v1351_v61 }
  0x5e   : > { %842 = vmatpush1.bf16.msra.mxu0 %v1352_v62  ;;  %800 = vmatprep.subr.bf16.mxu1 %v1353_v63 }
  0x5f   : > { %843 = vmatprep.subr.bf16.mxu0 %v1355_v0 }
  0x61   : > { %801 = vmatpush1.bf16.msra.mxu1 %v1357_v1 }
  0x62   : > { %844 = vmatpush1.bf16.msra.mxu0 %v1358_v2  ;;  %802 = vmatprep.subr.bf16.mxu1 %v1359_v3 }
  0x63   : > { %845 = vmatprep.subr.bf16.mxu0 %v1361_v4 }
  0x65   : > { %803 = vmatpush1.bf16.msra.mxu1 %v1363_v5 }
  0x66   : > { %846 = vmatpush1.bf16.msra.mxu0 %v1364_v6 }
  0x68   : > { %805 = vmatmul.mubr.bf16.vlgmr.msra.gmra.mrb[0].mxu1 %v1365_v7 }
  0x69   : > { %848 = vmatmul.mubr.bf16.vlgmr.msra.gmra.mrb[0].mxu0 %v1368_v8 }
 0x13b   : > { %v806_v9 = vpop.f32.mrb[0].mxu1 }
 0x13c   : > { %v849_v11 = vpop.f32.mrb[0].mxu0  ;;  %v808_v13 = vpop.f32.mrb[1].mxu1 }
 0x13d   : > { %v850_v12 = vadd.f32 %v849_v11, %v806_v9  ;;  %v851_v15 = vpop.f32.mrb[1].mxu0  ;;  %v810_v17 = vpop.f32.mrb[2].mxu1 }
 0x13e   : > { %v852_v16 = vadd.f32 %v851_v15, %v808_v13  ;;  %v853_v19 = vpop.f32.mrb[2].mxu0  ;;  %v812_v22 = vpop.f32.mrb[3].mxu1  ;;  %869 = sbr.rel (%p1209_p11) target bundleno = 349 (0x15d), region = 59 }
 0x13f   : > { %v858_v20 = vadd.f32 %v850_v12, %v360_v10  ;;  %v854_v21 = vadd.f32 %v853_v19, %v810_v17  ;;  %v855_v24 = vpop.f32.mrb[3].mxu0 }
 0x140   : > { %v859_v25 = vadd.f32 %v852_v16, %v361_v14  ;;  %v856_v26 = vadd.f32 %v855_v24, %v812_v22 }
 0x141   : > { %862 = vst [vmem:[#allocation2] sm:$0xff] %v858_v20  ;;  %v860_v27 = vadd.f32 %v854_v21, %v362_v18 }
 0x142   : > { %863 = vst [vmem:[#allocation2 + $0x8] sm:$0xff] %v859_v25  ;;  %v861_v28 = vadd.f32 %v856_v26, %v363_v23 }
 0x143   : > { %864 = vst [vmem:[#allocation2 + $0x10] sm:$0xff] %v860_v27 }
 0x144   : > { %865 = vst [vmem:[#allocation2 + $0x18] sm:$0xff] %v861_v28 }
 0x148   : > { %v870_v29 = vld [vmem:[#allocation2] sm:$0xff] }
 0x149   : > { %v871_v30 = vld [vmem:[#allocation2 + $0x8] sm:$0xff]  ;;  %v902_v33 = vmul.f32 %v870_v29, %v870_v29 }
 0x14a   : > { %v872_v31 = vld [vmem:[#allocation2 + $0x10] sm:$0xff]  ;;  %v1222_v32 = vpack.c.bf16 %v871_v30, %v870_v29  ;;  %v903_v34 = vmul.f32 %v871_v30, %v871_v30 }
 0x14b   : > { %v873_v35 = vld [vmem:[#allocation2 + $0x18] sm:$0xff]  ;;  %v888_v36 = vadd.f32 %v872_v31, %v870_v29  ;;  %v904_v39 = vmul.f32 %v872_v31, %v872_v31 }
 0x14c   : > { %v1223_v37 = vpack.c.bf16 %v873_v35, %v872_v31  ;;  %v895_v38 = vadd.f32 %v873_v35, %v871_v30  ;;  %v905_v40 = vmul.f32 %v873_v35, %v873_v35  ;;  %886 = vst [vmem:[%s1596_s2] sm:$0xff] %v1222_v32 }
 0x14d   : > { %v889_v41 = vrot.slane %v888_v36, 4  ;;  %v906_v43 = vadd.f32 %v904_v39, %v902_v33 }
 0x14e   : > { %887 = vst [vmem:[%s1596_s2 + $0x8] sm:$0xff] %v1223_v37  ;;  %v896_v42 = vrot.slane %v895_v38, 4  ;;  %v913_v44 = vadd.f32 %v905_v40, %v903_v34 }
 0x14f   : > { %v890_v45 = vadd.f32 %v889_v41, %v888_v36  ;;  %v907_v47 = vrot.slane %v906_v43, 4 }
 0x150   : > { %v897_v46 = vadd.f32 %v896_v42, %v895_v38  ;;  %v914_v48 = vrot.slane %v913_v44, 4 }
 0x151   : > { %v891_v49 = vrot.slane %v890_v45, 2  ;;  %v908_v51 = vadd.f32 %v907_v47, %v906_v43 }
 0x152   : > { %v898_v50 = vrot.slane %v897_v46, 2  ;;  %v915_v52 = vadd.f32 %v914_v48, %v913_v44 }
 0x153   : > { %v892_v53 = vadd.f32 %v891_v49, %v890_v45  ;;  %v909_v55 = vrot.slane %v908_v51, 2 }
 0x154   : > { %v899_v54 = vadd.f32 %v898_v50, %v897_v46  ;;  %v916_v56 = vrot.slane %v915_v52, 2 }
 0x155   : > { %v893_v57 = vrot.slane %v892_v53, 1  ;;  %v910_v59 = vadd.f32 %v909_v55, %v908_v51 }
 0x156   : > { %v900_v58 = vrot.slane %v899_v54, 1  ;;  %v917_v60 = vadd.f32 %v916_v56, %v915_v52 }
 0x157   : > { %v894_v61 = vadd.f32 %v893_v57, %v892_v53  ;;  %v911_v63 = vrot.slane %v910_v59, 1 }
 0x158   : > { %v901_v62 = vadd.f32 %v900_v58, %v899_v54  ;;  %v918_v0 = vrot.slane %v917_v60, 1 }
 0x159   : > { %920 = vst [vmem:[%s1597_s3] sm:$0xff] %v894_v61  ;;  %v912_v1 = vadd.f32 %v911_v63, %v910_v59 }
 0x15a   : > { %921 = vst [vmem:[%s1597_s3 + $0x8] sm:$0xff] %v901_v62  ;;  %v919_v2 = vadd.f32 %v918_v0, %v917_v60 }
 0x15b   : > { %922 = vst [vmem:[%s1598_s4] sm:$0xff] %v912_v1 }
 0x15c   : > { %923 = vst [vmem:[%s1598_s4 + $0x8] sm:$0xff] %v919_v2 }
 0x15d PF: > { %s15_s19 = sadd.s32 1, %s1409_s19   ;;  %s1599_s15 = smov %s1397_s16 }
 0x15e   : > { %p12_p12 = scmp.ge.s32.totalorder %s15_s19, 5   ;;  %s1600_s16 = smov %s1472_s23 }
 0x15f   : > { %s1601_s17 = smov %s1405_s18  ;;  %s1602_s18 = smov %s1604_s20 }
 0x160   :  { %14 = sbr.rel (!%p12_p12) target bundleno = 3 (0x3), region = 121 }

// kernel: forward.62
= control target key start
LH: loop header
LB: loop body
LE: loop exit
PB: predicated region body
PF: predicated region fallthrough
CT: control target
= control target key end

     0   :  { %s1437_s15 = smov 0   ;;  %s1439_s16 = smov 0   ;;  %s1594_s0 = inlined_call_operand.vmem [shape: bf16[16,2560], index: 0, kind: input, shape index: {}]   ;;  %s1595_s1 = inlined_call_operand.vmem [shape: bf16[2560,256], index: 1, kind: input, shape index: {}]   ;;  %s1596_s2 = inlined_call_operand.vmem [shape: bf16[16,256], index: 2, kind: output, shape index: {0}]   ;;  %s1597_s3 = inlined_call_operand.vmem [shape: f32[1,8,256], index: 3, kind: output, shape index: {1}]   ;;  %s1598_s4 = inlined_call_operand.vmem [shape: f32[1,8,256], index: 4, kind: output, shape index: {2}]  }
   0x1   :  { %s1441_s17 = smov 0   ;;  %s1443_s18 = smov 0  }
   0x2   :  { %s1445_s19 = smov 0  }
   0x3 LB: > { %s27_s20 = sadd.s32 1, %s1405_s18  ;;  %p50_p1 = scmp.ne.s32.totalorder %s1397_s16, %s1393_s15  ;;  %s1409_s19 = sphi %s1445_s19, %s15_s19   ;;  %s1405_s18 = sphi %s1443_s18, %s1602_s18   ;;  %s1401_s17 = sphi %s1441_s17, %s1601_s17   ;;  %s1397_s16 = sphi %s1439_s16, %s1600_s16   ;;  %s1393_s15 = sphi %s1437_s15, %s1599_s15  }
   0x4   : > { %p28_p0 = scmp.ge.s32.totalorder %s27_s20, 5  ;;  %p51_p2 = scmp.eq.s32.totalorder %s1409_s19, 0 }
   0x5   : > { %s43_s22 = sadd.s32 1, %s1397_s16  ;;  %p1131_p5 = scmp.ge.s32.totalorder %s1409_s19, 5 }
   0x6   : > { %s1604_s20 = smov (%p28_p0, %s27_s20), 0  ;;  %p52_p3 = por %p51_p2, %p50_p1 }
   0x7   : > { %s39_s21 = ssub.s32 %s1405_s18, %s1604_s20  ;;  %188 = sbr.rel (%p1131_p5) target bundleno = 21 (0x15), region = 16 }
   0x8   : > { %p41_p4 = scmp.eq.s32.totalorder %s39_s21, 0 }
   0xa   : > { %s1472_s23 = scalar_select %p41_p4, %s1397_s16, %s43_s22  }
   0xe   : > { %191 = sbr.rel (!%p52_p3) target bundleno = 21 (0x15), region = 20  ;;  %s193_s24 = sand.u32 (%p52_p3), 1, %s1397_s16  }
   0xf   : > { %s1220_s25 = sshll.u32 (%p52_p3), %s1405_s18, 4  ;;  %s1132_s26 = sshll.u32 (%p52_p3), %s193_s24, 5 }
  0x10   : > { %s201_s29 = scalar_lea.vmem (%p52_p3), %s1594_s0, %s1220_s25  ;;  %s195_s30 = scalar_lea.vmem (%p52_p3), [#allocation3], %s1132_s26 }
  0x11   : > { %v214_v0 = vld [vmem:[%s201_s29] sm:$0xff] (%p52_p3)  ;;  %v216_v1 = vld [vmem:[%s201_s29 + $0x8] sm:$0xff] (%p52_p3)  ;;  %v218_v2 = vld [vmem:[%s201_s29 + $0x50] sm:$0xff] (%p52_p3) }
  0x12   : > { %215 = vst [vmem:[%s195_s30] sm:$0xff] (%p52_p3), %v214_v0  ;;  %217 = vst [vmem:[%s195_s30 + $0x8] sm:$0xff] (%p52_p3), %v216_v1  ;;  %v220_v3 = vld [vmem:[%s201_s29 + $0x58] sm:$0xff] (%p52_p3) }
  0x13   : > { %219 = vst [vmem:[%s195_s30 + $0x10] sm:$0xff] (%p52_p3), %v218_v2  ;;  %221 = vst [vmem:[%s195_s30 + $0x18] sm:$0xff] (%p52_p3), %v220_v3 }
  0x15 PF: > { %p1135_p6 = scmp.ge.s32.totalorder %s1409_s19, 1  ;;  %p241_p7 = scmp.lt.s32.totalorder %s1409_s19, 6 }
  0x17   : > { %p242_p8 = pnand %p1135_p6, %p241_p7 }
  0x18   : > { %s248_s5 = sand.u32 (!%p242_p8), 1, %s1393_s15   ;;  %s1137_s6 = sshll.u32 (!%p242_p8), %s1401_s17, 6 }
  0x19   : > { %245 = sbr.rel (%p242_p8) target bundleno = 349 (0x15d), region = 47  ;;  %s1136_s7 = sshll.u32 (!%p242_p8), %s248_s5, 5 }
  0x1a   : > { %p310_p9 = scmp.lt.s32.totalorder (!%p242_p8), %s1137_s6, 319  ;;  %s1489_s12 = scalar_lea.vmem (!%p242_p8), [#allocation3], %s1136_s7 }
  0x1b   : > { %p1140_p10 = scmp.ne.s32.totalorder (!%p242_p8), %s1401_s17, 0 }
  0x20   : > { %s1606_s6 = smov (!%p310_p9, %s1137_s6), 319  ;;  %355 = sbr.rel (%p1140_p10) target bundleno = 39 (0x27), region = 55 }
  0x21   : > { %s1221_s8 = sshll.u32 %s1606_s6, 3  ;;  %v1411_v4 = vmov (!%p1140_p10), 0.0  }
  0x22   : > { %s1487_s11 = scalar_lea.vmem %s1595_s1, %s1221_s8  ;;  %356 = vst [vmem:[#allocation2] sm:$0xff] (!%p1140_p10), %v1411_v4  ;;  %357 = vst [vmem:[#allocation2 + $0x8] sm:$0xff] (!%p1140_p10), %v1411_v4 }
  0x23   : > { %358 = vst [vmem:[#allocation2 + $0x10] sm:$0xff] (!%p1140_p10), %v1411_v4  ;;  %359 = vst [vmem:[#allocation2 + $0x18] sm:$0xff] (!%p1140_p10), %v1411_v4 }
  0x27 PF: > { %v1269_v5 = vld [vmem:[%s1487_s11 + $0x4] ss:$8 sps:$4 sm:$0xff]   ;;  %v1273_v7 = vld [vmem:[%s1487_s11] ss:$8 sps:$4 sm:$0xff]   ;;  %v1275_v9 = vld [vmem:[%s1487_s11 + $0x14] ss:$8 sps:$4 sm:$0xff]  }
  0x28   : > { %v1271_v6 = vld [vmem:[%s1487_s11 + $0x104] ss:$8 sps:$4 sm:$0xff]   ;;  %772 = vmatprep.subr.bf16.mxu1 %v1269_v5  ;;  %v1274_v8 = vld [vmem:[%s1487_s11 + $0x100] ss:$8 sps:$4 sm:$0xff]   ;;  %v1277_v10 = vld [vmem:[%s1487_s11 + $0x114] ss:$8 sps:$4 sm:$0xff]  }
  0x29   : > { %815 = vmatprep.subr.bf16.mxu0 %v1271_v6  ;;  %773 = vmatpush1.bf16.msra.mxu1 %v1273_v7  ;;  %v1279_v11 = vld [vmem:[%s1487_s11 + $0x10] ss:$8 sps:$4 sm:$0xff]   ;;  %v1281_v13 = vld [vmem:[%s1487_s11 + $0x24] ss:$8 sps:$4 sm:$0xff]   ;;  %v1285_v15 = vld [vmem:[%s1487_s11 + $0x20] ss:$8 sps:$4 sm:$0xff]  }
  0x2a   : > { %816 = vmatpush1.bf16.msra.mxu0 %v1274_v8  ;;  %774 = vmatprep.subr.bf16.mxu1 %v1275_v9  ;;  %v1280_v12 = vld [vmem:[%s1487_s11 + $0x110] ss:$8 sps:$4 sm:$0xff]   ;;  %v1283_v14 = vld [vmem:[%s1487_s11 + $0x124] ss:$8 sps:$4 sm:$0xff]   ;;  %v1286_v16 = vld [vmem:[%s1487_s11 + $0x120] ss:$8 sps:$4 sm:$0xff]  }
  0x2b   : > { %817 = vmatprep.subr.bf16.mxu0 %v1277_v10  ;;  %v1287_v17 = vld [vmem:[%s1487_s11 + $0x34] ss:$8 sps:$4 sm:$0xff]   ;;  %v1291_v19 = vld [vmem:[%s1487_s11 + $0x30] ss:$8 sps:$4 sm:$0xff]   ;;  %v1293_v21 = vld [vmem:[%s1487_s11 + $0x44] ss:$8 sps:$4 sm:$0xff]  }
  0x2c   : > { %v1289_v18 = vld [vmem:[%s1487_s11 + $0x134] ss:$8 sps:$4 sm:$0xff]   ;;  %v1292_v20 = vld [vmem:[%s1487_s11 + $0x130] ss:$8 sps:$4 sm:$0xff]   ;;  %v1295_v22 = vld [vmem:[%s1487_s11 + $0x144] ss:$8 sps:$4 sm:$0xff]  }
  0x2d   : > { %775 = vmatpush1.bf16.msra.mxu1 %v1279_v11  ;;  %v1297_v23 = vld [vmem:[%s1487_s11 + $0x40] ss:$8 sps:$4 sm:$0xff]   ;;  %v1299_v25 = vld [vmem:[%s1487_s11 + $0x54] ss:$8 sps:$4 sm:$0xff]   ;;  %v1303_v27 = vld [vmem:[%s1487_s11 + $0x50] ss:$8 sps:$4 sm:$0xff]  }
  0x2e   : > { %818 = vmatpush1.bf16.msra.mxu0 %v1280_v12  ;;  %776 = vmatprep.subr.bf16.mxu1 %v1281_v13  ;;  %v1298_v24 = vld [vmem:[%s1487_s11 + $0x140] ss:$8 sps:$4 sm:$0xff]   ;;  %v1301_v26 = vld [vmem:[%s1487_s11 + $0x154] ss:$8 sps:$4 sm:$0xff]   ;;  %v1304_v28 = vld [vmem:[%s1487_s11 + $0x150] ss:$8 sps:$4 sm:$0xff]  }
  0x2f   : > { %819 = vmatprep.subr.bf16.mxu0 %v1283_v14  ;;  %v1305_v29 = vld [vmem:[%s1487_s11 + $0x64] ss:$8 sps:$4 sm:$0xff]   ;;  %v1309_v31 = vld [vmem:[%s1487_s11 + $0x60] ss:$8 sps:$4 sm:$0xff]   ;;  %v1311_v33 = vld [vmem:[%s1487_s11 + $0x74] ss:$8 sps:$4 sm:$0xff]  }
  0x30   : > { %v1307_v30 = vld [vmem:[%s1487_s11 + $0x164] ss:$8 sps:$4 sm:$0xff]   ;;  %v1310_v32 = vld [vmem:[%s1487_s11 + $0x160] ss:$8 sps:$4 sm:$0xff]   ;;  %v1313_v34 = vld [vmem:[%s1487_s11 + $0x174] ss:$8 sps:$4 sm:$0xff]  }
  0x31   : > { %777 = vmatpush1.bf16.msra.mxu1 %v1285_v15  ;;  %v1315_v35 = vld [vmem:[%s1487_s11 + $0x70] ss:$8 sps:$4 sm:$0xff]   ;;  %v1317_v37 = vld [vmem:[%s1487_s11 + $0x84] ss:$8 sps:$4 sm:$0xff]   ;;  %v1321_v39 = vld [vmem:[%s1487_s11 + $0x80] ss:$8 sps:$4 sm:$0xff]  }
  0x32   : > { %820 = vmatpush1.bf16.msra.mxu0 %v1286_v16  ;;  %778 = vmatprep.subr.bf16.mxu1 %v1287_v17  ;;  %v1316_v36 = vld [vmem:[%s1487_s11 + $0x170] ss:$8 sps:$4 sm:$0xff]   ;;  %v1319_v38 = vld [vmem:[%s1487_s11 + $0x184] ss:$8 sps:$4 sm:$0xff]   ;;  %v1322_v40 = vld [vmem:[%s1487_s11 + $0x180] ss:$8 sps:$4 sm:$0xff]  }
  0x33   : > { %821 = vmatprep.subr.bf16.mxu0 %v1289_v18  ;;  %v1323_v41 = vld [vmem:[%s1487_s11 + $0x94] ss:$8 sps:$4 sm:$0xff]   ;;  %v1327_v43 = vld [vmem:[%s1487_s11 + $0x90] ss:$8 sps:$4 sm:$0xff]   ;;  %v1329_v45 = vld [vmem:[%s1487_s11 + $0xa4] ss:$8 sps:$4 sm:$0xff]  }
  0x34   : > { %v1325_v42 = vld [vmem:[%s1487_s11 + $0x194] ss:$8 sps:$4 sm:$0xff]   ;;  %v1328_v44 = vld [vmem:[%s1487_s11 + $0x190] ss:$8 sps:$4 sm:$0xff]   ;;  %v1331_v46 = vld [vmem:[%s1487_s11 + $0x1a4] ss:$8 sps:$4 sm:$0xff]  }
  0x35   : > { %779 = vmatpush1.bf16.msra.mxu1 %v1291_v19  ;;  %v1333_v47 = vld [vmem:[%s1487_s11 + $0xa0] ss:$8 sps:$4 sm:$0xff]   ;;  %v1335_v49 = vld [vmem:[%s1487_s11 + $0xb4] ss:$8 sps:$4 sm:$0xff]   ;;  %v1339_v51 = vld [vmem:[%s1487_s11 + $0xb0] ss:$8 sps:$4 sm:$0xff]  }
  0x36   : > { %822 = vmatpush1.bf16.msra.mxu0 %v1292_v20  ;;  %780 = vmatprep.subr.bf16.mxu1 %v1293_v21  ;;  %v1334_v48 = vld [vmem:[%s1487_s11 + $0x1a0] ss:$8 sps:$4 sm:$0xff]   ;;  %v1337_v50 = vld [vmem:[%s1487_s11 + $0x1b4] ss:$8 sps:$4 sm:$0xff]   ;;  %v1340_v53 = vld [vmem:[%s1487_s11 + $0x1b0] ss:$8 sps:$4 sm:$0xff]  }
  0x37   : > { %823 = vmatprep.subr.bf16.mxu0 %v1295_v22  ;;  %v1367_v52 = vld [vmem:[%s1489_s12 + $0x4] ss:$16 sps:$4 sm:$0xff]   ;;  %v1370_v56 = vld [vmem:[%s1489_s12 + $0xc] ss:$16 sps:$4 sm:$0xff]   ;;  %v1345_v57 = vld [vmem:[%s1487_s11 + $0xc0] ss:$8 sps:$4 sm:$0xff]  }
  0x38   : > { %v1341_v54 = vld [vmem:[%s1487_s11 + $0xc4] ss:$8 sps:$4 sm:$0xff]   ;;  %804 = vmatprep.mubr.bf16.mxu1 %v1367_v52  ;;  %847 = vmatprep.mubr.bf16.mxu0 %v1370_v56  ;;  %v1346_v58 = vld [vmem:[%s1487_s11 + $0x1c0] ss:$8 sps:$4 sm:$0xff]   ;;  %v1347_v59 = vld [vmem:[%s1487_s11 + $0xd4] ss:$8 sps:$4 sm:$0xff]  }
  0x39   : > { %781 = vmatpush1.bf16.msra.mxu1 %v1297_v23  ;;  %v1343_v55 = vld [vmem:[%s1487_s11 + $0x1c4] ss:$8 sps:$4 sm:$0xff]   ;;  %v1349_v60 = vld [vmem:[%s1487_s11 + $0x1d4] ss:$8 sps:$4 sm:$0xff]   ;;  %v1351_v61 = vld [vmem:[%s1487_s11 + $0xd0] ss:$8 sps:$4 sm:$0xff]  }
  0x3a   : > { %824 = vmatpush1.bf16.msra.mxu0 %v1298_v24  ;;  %782 = vmatprep.subr.bf16.mxu1 %v1299_v25  ;;  %v1352_v62 = vld [vmem:[%s1487_s11 + $0x1d0] ss:$8 sps:$4 sm:$0xff]   ;;  %v1353_v63 = vld [vmem:[%s1487_s11 + $0xe4] ss:$8 sps:$4 sm:$0xff]   ;;  %v1357_v1 = vld [vmem:[%s1487_s11 + $0xe0] ss:$8 sps:$4 sm:$0xff]  }
  0x3b   : > { %825 = vmatprep.subr.bf16.mxu0 %v1301_v26  ;;  %v1355_v0 = vld [vmem:[%s1487_s11 + $0x1e4] ss:$8 sps:$4 sm:$0xff]   ;;  %v1358_v2 = vld [vmem:[%s1487_s11 + $0x1e0] ss:$8 sps:$4 sm:$0xff]   ;;  %v1359_v3 = vld [vmem:[%s1487_s11 + $0xf4] ss:$8 sps:$4 sm:$0xff]  }
  0x3c   : > { %v1361_v4 = vld [vmem:[%s1487_s11 + $0x1f4] ss:$8 sps:$4 sm:$0xff]   ;;  %v1363_v5 = vld [vmem:[%s1487_s11 + $0xf0] ss:$8 sps:$4 sm:$0xff]   ;;  %v360_v10 = vld [vmem:[#allocation2] sm:$0xff]  ;;  %p1209_p11 = scmp.ne.s32.totalorder %s1401_s17, 4 }
  0x3d   : > { %783 = vmatpush1.bf16.msra.mxu1 %v1303_v27  ;;  %v1364_v6 = vld [vmem:[%s1487_s11 + $0x1f0] ss:$8 sps:$4 sm:$0xff]   ;;  %v361_v14 = vld [vmem:[#allocation2 + $0x8] sm:$0xff] }
  0x3e   : > { %826 = vmatpush1.bf16.msra.mxu0 %v1304_v28  ;;  %784 = vmatprep.subr.bf16.mxu1 %v1305_v29  ;;  %v1365_v7 = vld [vmem:[%s1489_s12] ss:$16 sps:$4 sm:$0xff]   ;;  %v1368_v8 = vld [vmem:[%s1489_s12 + $0x8] ss:$16 sps:$4 sm:$0xff]  }
  0x3f   : > { %827 = vmatprep.subr.bf16.mxu0 %v1307_v30  ;;  %v362_v18 = vld [vmem:[#allocation2 + $0x10] sm:$0xff]  ;;  %v363_v23 = vld [vmem:[#allocation2 + $0x18] sm:$0xff] }
  0x41   : > { %785 = vmatpush1.bf16.msra.mxu1 %v1309_v31 }
  0x42   : > { %828 = vmatpush1.bf16.msra.mxu0 %v1310_v32  ;;  %786 = vmatprep.subr.bf16.mxu1 %v1311_v33 }
  0x43   : > { %829 = vmatprep.subr.bf16.mxu0 %v1313_v34 }
  0x45   : > { %787 = vmatpush1.bf16.msra.mxu1 %v1315_v35 }
  0x46   : > { %830 = vmatpush1.bf16.msra.mxu0 %v1316_v36  ;;  %788 = vmatprep.subr.bf16.mxu1 %v1317_v37 }
  0x47   : > { %831 = vmatprep.subr.bf16.mxu0 %v1319_v38 }
  0x49   : > { %789 = vmatpush1.bf16.msra.mxu1 %v1321_v39 }
  0x4a   : > { %832 = vmatpush1.bf16.msra.mxu0 %v1322_v40  ;;  %790 = vmatprep.subr.bf16.mxu1 %v1323_v41 }
  0x4b   : > { %833 = vmatprep.subr.bf16.mxu0 %v1325_v42 }
  0x4d   : > { %791 = vmatpush1.bf16.msra.mxu1 %v1327_v43 }
  0x4e   : > { %834 = vmatpush1.bf16.msra.mxu0 %v1328_v44  ;;  %792 = vmatprep.subr.bf16.mxu1 %v1329_v45 }
  0x4f   : > { %835 = vmatprep.subr.bf16.mxu0 %v1331_v46 }
  0x51   : > { %793 = vmatpush1.bf16.msra.mxu1 %v1333_v47 }
  0x52   : > { %836 = vmatpush1.bf16.msra.mxu0 %v1334_v48  ;;  %794 = vmatprep.subr.bf16.mxu1 %v1335_v49 }
  0x53   : > { %837 = vmatprep.subr.bf16.mxu0 %v1337_v50 }
  0x55   : > { %795 = vmatpush1.bf16.msra.mxu1 %v1339_v51 }
  0x56   : > { %838 = vmatpush1.bf16.msra.mxu0 %v1340_v53  ;;  %796 = vmatprep.subr.bf16.mxu1 %v1341_v54 }
  0x57   : > { %839 = vmatprep.subr.bf16.mxu0 %v1343_v55 }
  0x59   : > { %797 = vmatpush1.bf16.msra.mxu1 %v1345_v57 }
  0x5a   : > { %840 = vmatpush1.bf16.msra.mxu0 %v1346_v58  ;;  %798 = vmatprep.subr.bf16.mxu1 %v1347_v59 }
  0x5b   : > { %841 = vmatprep.subr.bf16.mxu0 %v1349_v60 }
  0x5d   : > { %799 = vmatpush1.bf16.msra.mxu1 %v1351_v61 }
  0x5e   : > { %842 = vmatpush1.bf16.msra.mxu0 %v1352_v62  ;;  %800 = vmatprep.subr.bf16.mxu1 %v1353_v63 }
  0x5f   : > { %843 = vmatprep.subr.bf16.mxu0 %v1355_v0 }
  0x61   : > { %801 = vmatpush1.bf16.msra.mxu1 %v1357_v1 }
  0x62   : > { %844 = vmatpush1.bf16.msra.mxu0 %v1358_v2  ;;  %802 = vmatprep.subr.bf16.mxu1 %v1359_v3 }
  0x63   : > { %845 = vmatprep.subr.bf16.mxu0 %v1361_v4 }
  0x65   : > { %803 = vmatpush1.bf16.msra.mxu1 %v1363_v5 }
  0x66   : > { %846 = vmatpush1.bf16.msra.mxu0 %v1364_v6 }
  0x68   : > { %805 = vmatmul.mubr.bf16.vlgmr.msra.gmra.mrb[0].mxu1 %v1365_v7 }
  0x69   : > { %848 = vmatmul.mubr.bf16.vlgmr.msra.gmra.mrb[0].mxu0 %v1368_v8 }
 0x13b   : > { %v806_v9 = vpop.f32.mrb[0].mxu1 }
 0x13c   : > { %v849_v11 = vpop.f32.mrb[0].mxu0  ;;  %v808_v13 = vpop.f32.mrb[1].mxu1 }
 0x13d   : > { %v850_v12 = vadd.f32 %v849_v11, %v806_v9  ;;  %v851_v15 = vpop.f32.mrb[1].mxu0  ;;  %v810_v17 = vpop.f32.mrb[2].mxu1 }
 0x13e   : > { %v852_v16 = vadd.f32 %v851_v15, %v808_v13  ;;  %v853_v19 = vpop.f32.mrb[2].mxu0  ;;  %v812_v22 = vpop.f32.mrb[3].mxu1  ;;  %869 = sbr.rel (%p1209_p11) target bundleno = 349 (0x15d), region = 59 }
 0x13f   : > { %v858_v20 = vadd.f32 %v850_v12, %v360_v10  ;;  %v854_v21 = vadd.f32 %v853_v19, %v810_v17  ;;  %v855_v24 = vpop.f32.mrb[3].mxu0 }
 0x140   : > { %v859_v25 = vadd.f32 %v852_v16, %v361_v14  ;;  %v856_v26 = vadd.f32 %v855_v24, %v812_v22 }
 0x141   : > { %862 = vst [vmem:[#allocation2] sm:$0xff] %v858_v20  ;;  %v860_v27 = vadd.f32 %v854_v21, %v362_v18 }
 0x142   : > { %863 = vst [vmem:[#allocation2 + $0x8] sm:$0xff] %v859_v25  ;;  %v861_v28 = vadd.f32 %v856_v26, %v363_v23 }
 0x143   : > { %864 = vst [vmem:[#allocation2 + $0x10] sm:$0xff] %v860_v27 }
 0x144   : > { %865 = vst [vmem:[#allocation2 + $0x18] sm:$0xff] %v861_v28 }
 0x148   : > { %v870_v29 = vld [vmem:[#allocation2] sm:$0xff] }
 0x149   : > { %v871_v30 = vld [vmem:[#allocation2 + $0x8] sm:$0xff]  ;;  %v902_v33 = vmul.f32 %v870_v29, %v870_v29 }
 0x14a   : > { %v872_v31 = vld [vmem:[#allocation2 + $0x10] sm:$0xff]  ;;  %v1222_v32 = vpack.c.bf16 %v871_v30, %v870_v29  ;;  %v903_v34 = vmul.f32 %v871_v30, %v871_v30 }
 0x14b   : > { %v873_v35 = vld [vmem:[#allocation2 + $0x18] sm:$0xff]  ;;  %v888_v36 = vadd.f32 %v872_v31, %v870_v29  ;;  %v904_v39 = vmul.f32 %v872_v31, %v872_v31 }
 0x14c   : > { %v1223_v37 = vpack.c.bf16 %v873_v35, %v872_v31  ;;  %v895_v38 = vadd.f32 %v873_v35, %v871_v30  ;;  %v905_v40 = vmul.f32 %v873_v35, %v873_v35  ;;  %886 = vst [vmem:[%s1596_s2] sm:$0xff] %v1222_v32 }
 0x14d   : > { %v889_v41 = vrot.slane %v888_v36, 4  ;;  %v906_v43 = vadd.f32 %v904_v39, %v902_v33 }
 0x14e   : > { %887 = vst [vmem:[%s1596_s2 + $0x8] sm:$0xff] %v1223_v37  ;;  %v896_v42 = vrot.slane %v895_v38, 4  ;;  %v913_v44 = vadd.f32 %v905_v40, %v903_v34 }
 0x14f   : > { %v890_v45 = vadd.f32 %v889_v41, %v888_v36  ;;  %v907_v47 = vrot.slane %v906_v43, 4 }
 0x150   : > { %v897_v46 = vadd.f32 %v896_v42, %v895_v38  ;;  %v914_v48 = vrot.slane %v913_v44, 4 }
 0x151   : > { %v891_v49 = vrot.slane %v890_v45, 2  ;;  %v908_v51 = vadd.f32 %v907_v47, %v906_v43 }
 0x152   : > { %v898_v50 = vrot.slane %v897_v46, 2  ;;  %v915_v52 = vadd.f32 %v914_v48, %v913_v44 }
 0x153   : > { %v892_v53 = vadd.f32 %v891_v49, %v890_v45  ;;  %v909_v55 = vrot.slane %v908_v51, 2 }
 0x154   : > { %v899_v54 = vadd.f32 %v898_v50, %v897_v46  ;;  %v916_v56 = vrot.slane %v915_v52, 2 }
 0x155   : > { %v893_v57 = vrot.slane %v892_v53, 1  ;;  %v910_v59 = vadd.f32 %v909_v55, %v908_v51 }
 0x156   : > { %v900_v58 = vrot.slane %v899_v54, 1  ;;  %v917_v60 = vadd.f32 %v916_v56, %v915_v52 }
 0x157   : > { %v894_v61 = vadd.f32 %v893_v57, %v892_v53  ;;  %v911_v63 = vrot.slane %v910_v59, 1 }
 0x158   : > { %v901_v62 = vadd.f32 %v900_v58, %v899_v54  ;;  %v918_v0 = vrot.slane %v917_v60, 1 }
 0x159   : > { %920 = vst [vmem:[%s1597_s3] sm:$0xff] %v894_v61  ;;  %v912_v1 = vadd.f32 %v911_v63, %v910_v59 }
 0x15a   : > { %921 = vst [vmem:[%s1597_s3 + $0x8] sm:$0xff] %v901_v62  ;;  %v919_v2 = vadd.f32 %v918_v0, %v917_v60 }
 0x15b   : > { %922 = vst [vmem:[%s1598_s4] sm:$0xff] %v912_v1 }
 0x15c   : > { %923 = vst [vmem:[%s1598_s4 + $0x8] sm:$0xff] %v919_v2 }
 0x15d PF: > { %s15_s19 = sadd.s32 1, %s1409_s19   ;;  %s1599_s15 = smov %s1397_s16 }
 0x15e   : > { %p12_p12 = scmp.ge.s32.totalorder %s15_s19, 7   ;;  %s1600_s16 = smov %s1472_s23 }
 0x15f   : > { %s1601_s17 = smov %s1405_s18  ;;  %s1602_s18 = smov %s1604_s20 }
 0x160   :  { %14 = sbr.rel (!%p12_p12) target bundleno = 3 (0x3), region = 121 }

// kernel: forward.65
= control target key start
LH: loop header
LB: loop body
LE: loop exit
PB: predicated region body
PF: predicated region fallthrough
CT: control target
= control target key end

     0   :  { %v25_v0 = vlaneseq  ;;  %s140_s0 = inlined_call_operand.vmem [shape: bf16[16,256], index: 0, kind: input, shape index: {}]   ;;  %s141_s1 = inlined_call_operand.vmem [shape: f32[1,256], index: 1, kind: input, shape index: {}]   ;;  %s142_s2 = inlined_call_operand.vmem [shape: f32[1,256], index: 2, kind: input, shape index: {}]   ;;  %s143_s3 = inlined_call_operand.vmem [shape: bf16[16,256], index: 3, kind: input, shape index: {}]   ;;  %s144_s4 = inlined_call_operand.vmem [shape: bf16[16,256], index: 4, kind: output, shape index: {}]  }
   0x1   :  { %v17_v1 = vld [vmem:[%s140_s0] sm:$0xff]  ;;  %v18_v3 = vld [vmem:[%s140_s0 + $0x8] sm:$0xff] }
   0x2   :  { %v26_v2 = vshrl.u32 %v25_v0, 7  ;;  %v19_v4 = vunpack.c.l.bf16 %v17_v1  ;;  %v20_v5 = vunpack.c.h.bf16 %v17_v1  ;;  %v23_v6 = vld [vmem:[%s141_s1] sm:$0x3]  ;;  %v21_v11 = vunpack.c.l.bf16 %v18_v3  ;;  %v56_v13 = vld [vmem:[%s143_s3 + $0x8] sm:$0xff] }
   0x3   :  { %v39_v7 = vld [vmem:[%s142_s2] sm:$0x3]  ;;  %v22_v12 = vunpack.c.h.bf16 %v18_v3  ;;  %v59_v20 = vunpack.c.l.bf16 %v56_v13  ;;  %v60_v21 = vunpack.c.h.bf16 %v56_v13 }
   0x4   :  { %v27_v8 = vsub.s32 0, %v26_v2  ;;  %v31_v9 = vsub.s32 1, %v26_v2  ;;  %v55_v10 = vld [vmem:[%s143_s3] sm:$0xff] }
   0x5   :  { %v57_v18 = vunpack.c.l.bf16 %v55_v10  ;;  %v58_v19 = vunpack.c.h.bf16 %v55_v10 }
   0x6   :  { %v28_v14 = vrot.slane %v23_v6, %v27_v8  ;;  %v32_v15 = vrot.slane %v23_v6, %v31_v9  ;;  %v44_v16 = vrot.slane %v39_v7, %v27_v8  ;;  %v48_v17 = vrot.slane %v39_v7, %v31_v9 }
   0x8   :  { %v35_v22 = vmul.f32 %v28_v14, %v19_v4  ;;  %v36_v23 = vmul.f32 %v32_v15, %v20_v5  ;;  %v37_v24 = vmul.f32 %v28_v14, %v21_v11  ;;  %v38_v25 = vmul.f32 %v32_v15, %v22_v12 }
   0xa   :  { %v51_v26 = vadd.f32 %v44_v16, %v35_v22  ;;  %v52_v27 = vadd.f32 %v48_v17, %v36_v23  ;;  %v53_v28 = vadd.f32 %v44_v16, %v37_v24  ;;  %v54_v29 = vadd.f32 %v48_v17, %v38_v25 }
   0xc   :  { %v61_v30 = vadd.f32 %v57_v18, %v51_v26  ;;  %v62_v31 = vadd.f32 %v58_v19, %v52_v27  ;;  %v63_v32 = vadd.f32 %v59_v20, %v53_v28  ;;  %v64_v33 = vadd.f32 %v60_v21, %v54_v29 }
   0xe   :  { %v65_v34 = vmax.f32 %v61_v30, 0.0  ;;  %v66_v35 = vmax.f32 %v62_v31, 0.0  ;;  %v67_v36 = vmax.f32 %v63_v32, 0.0  ;;  %v68_v37 = vmax.f32 %v64_v33, 0.0 }
  0x10   :  { %v89_v38 = vpack.c.bf16 %v66_v35, %v65_v34  ;;  %v90_v39 = vpack.c.bf16 %v68_v37, %v67_v36 }
  0x12   :  { %81 = vst [vmem:[%s144_s4] sm:$0xff] %v89_v38  ;;  %82 = vst [vmem:[%s144_s4 + $0x8] sm:$0xff] %v90_v39 }

// kernel: forward.73
= control target key start
LH: loop header
LB: loop body
LE: loop exit
PB: predicated region body
PF: predicated region fallthrough
CT: control target
= control target key end

     0   :  { %s1253_s15 = smov 0   ;;  %s1255_s16 = smov 0   ;;  %s1456_s0 = inlined_call_operand.vmem [shape: bf16[16,256], index: 0, kind: input, shape index: {}]   ;;  %s1457_s1 = inlined_call_operand.vmem [shape: bf16[256,512], index: 1, kind: input, shape index: {}]   ;;  %s1458_s2 = inlined_call_operand.vmem [shape: bf16[16,512], index: 2, kind: output, shape index: {0}]   ;;  %s1459_s3 = inlined_call_operand.vmem [shape: f32[1,8,512], index: 3, kind: output, shape index: {1}]   ;;  %s1460_s4 = inlined_call_operand.vmem [shape: f32[1,8,512], index: 4, kind: output, shape index: {2}]  }
   0x1   :  { %s1257_s17 = smov 0   ;;  %s1259_s18 = smov 0  }
   0x2   :  { %s1261_s19 = smov 0  }
   0x3 LB: > { %s30_s20 = sadd.s32 1, %s1222_s18  ;;  %s1037_s21 = sadd.s32 4294967295, %s1226_s19   ;;  %s1226_s19 = sphi %s1261_s19, %s15_s19   ;;  %s1222_s18 = sphi %s1259_s18, %s1466_s18   ;;  %s1218_s17 = sphi %s1257_s17, %s1465_s17   ;;  %s1214_s16 = sphi %s1255_s16, %s1464_s16   ;;  %s1210_s15 = sphi %s1253_s15, %s1463_s15  }
   0x4   : > { %p32_p0 = scmp.ge.s32.totalorder %s30_s20, 2  ;;  %p78_p1 = scmp.ne.s32.totalorder %s1214_s16, %s1210_s15 }
   0x5   : > { %p79_p2 = scmp.eq.s32.totalorder %s1226_s19, 0  ;;  %p110_p4 = scmp.eq.s32.totalorder %s1037_s21, 1 }
   0x6   : > { %s1468_s20 = smov (%p32_p0, %s30_s20), 0  ;;  %s71_s23 = sadd.s32 1, %s1214_s16 }
   0x7   : > { %p80_p3 = por %p79_p2, %p78_p1  ;;  %s67_s22 = ssub.s32 %s1222_s18, %s1468_s20 }
   0x8   : > { %p69_p5 = scmp.eq.s32.totalorder %s67_s22, 0  ;;  %p1288_p6 = por %p110_p4, %p78_p1 }
   0x9   : > { %p1041_p7 = scmp.ge.s32.totalorder %s1226_s19, 2 }
   0xa   : > { %s1293_s25 = scalar_select %p69_p5, %s1214_s16, %s71_s23  }
   0xb   : > { %203 = sbr.rel (%p1041_p7) target bundleno = 38 (0x26), region = 20 }
  0x12   : > { %206 = sbr.rel (!%p80_p3) target bundleno = 38 (0x26), region = 24  ;;  %s208_s26 = sand.u32 (%p80_p3), 1, %s1214_s16  }
  0x13   : > { %s1093_s27 = sshll.u32 (%p80_p3), %s1222_s18, 3  ;;  %s1042_s28 = sshll.u32 (%p80_p3), %s208_s26, 8 }
  0x14   : > { %s1301_s5 = scalar_lea.vmem (%p80_p3), %s1457_s1, %s1093_s27  ;;  %s1306_s6 = scalar_lea.vmem (%p80_p3), [#allocation3], %s1042_s28 }
  0x15   : > { %v306_v0 = vld [vmem:[%s1301_s5] sm:$0xff] (%p80_p3)  ;;  %v308_v1 = vld [vmem:[%s1301_s5 + $0x10] sm:$0xff] (%p80_p3) }
  0x16   : > { %v310_v2 = vld [vmem:[%s1301_s5 + $0x20] sm:$0xff] (%p80_p3)  ;;  %307 = vst [vmem:[%s1306_s6] sm:$0xff] (%p80_p3), %v306_v0  ;;  %309 = vst [vmem:[%s1306_s6 + $0x8] sm:$0xff] (%p80_p3), %v308_v1  ;;  %v312_v3 = vld [vmem:[%s1301_s5 + $0x30] sm:$0xff] (%p80_p3) }
  0x17   : > { %311 = vst [vmem:[%s1306_s6 + $0x10] sm:$0xff] (%p80_p3), %v310_v2  ;;  %v314_v4 = vld [vmem:[%s1301_s5 + $0x40] sm:$0xff] (%p80_p3)  ;;  %v316_v5 = vld [vmem:[%s1301_s5 + $0x50] sm:$0xff] (%p80_p3)  ;;  %313 = vst [vmem:[%s1306_s6 + $0x18] sm:$0xff] (%p80_p3), %v312_v3 }
  0x18   : > { %315 = vst [vmem:[%s1306_s6 + $0x20] sm:$0xff] (%p80_p3), %v314_v4  ;;  %317 = vst [vmem:[%s1306_s6 + $0x28] sm:$0xff] (%p80_p3), %v316_v5  ;;  %v318_v6 = vld [vmem:[%s1301_s5 + $0x60] sm:$0xff] (%p80_p3)  ;;  %v320_v7 = vld [vmem:[%s1301_s5 + $0x70] sm:$0xff] (%p80_p3) }
  0x19   : > { %v322_v8 = vld [vmem:[%s1301_s5 + $0x80] sm:$0xff]  ;;  %319 = vst [vmem:[%s1306_s6 + $0x30] sm:$0xff] %v318_v6  ;;  %321 = vst [vmem:[%s1306_s6 + $0x38] sm:$0xff] %v320_v7  ;;  %v324_v9 = vld [vmem:[%s1301_s5 + $0x90] sm:$0xff] }
  0x1a   : > { %323 = vst [vmem:[%s1306_s6 + $0x40] sm:$0xff] %v322_v8  ;;  %v326_v10 = vld [vmem:[%s1301_s5 + $0xa0] sm:$0xff]  ;;  %v328_v11 = vld [vmem:[%s1301_s5 + $0xb0] sm:$0xff]  ;;  %325 = vst [vmem:[%s1306_s6 + $0x48] sm:$0xff] %v324_v9 }
  0x1b   : > { %327 = vst [vmem:[%s1306_s6 + $0x50] sm:$0xff] %v326_v10  ;;  %329 = vst [vmem:[%s1306_s6 + $0x58] sm:$0xff] %v328_v11  ;;  %v330_v12 = vld [vmem:[%s1301_s5 + $0xc0] sm:$0xff]  ;;  %v332_v13 = vld [vmem:[%s1301_s5 + $0xd0] sm:$0xff] }
  0x1c   : > { %v334_v14 = vld [vmem:[%s1301_s5 + $0xe0] sm:$0xff]  ;;  %331 = vst [vmem:[%s1306_s6 + $0x60] sm:$0xff] %v330_v12  ;;  %333 = vst [vmem:[%s1306_s6 + $0x68] sm:$0xff] %v332_v13  ;;  %v336_v15 = vld [vmem:[%s1301_s5 + $0xf0] sm:$0xff] }
  0x1d   : > { %335 = vst [vmem:[%s1306_s6 + $0x70] sm:$0xff] %v334_v14  ;;  %v338_v16 = vld [vmem:[%s1301_s5 + $0x100] sm:$0xff]  ;;  %v340_v17 = vld [vmem:[%s1301_s5 + $0x110] sm:$0xff]  ;;  %337 = vst [vmem:[%s1306_s6 + $0x78] sm:$0xff] %v336_v15 }
  0x1e   : > { %339 = vst [vmem:[%s1306_s6 + $0x80] sm:$0xff] %v338_v16  ;;  %341 = vst [vmem:[%s1306_s6 + $0x88] sm:$0xff] %v340_v17  ;;  %v342_v18 = vld [vmem:[%s1301_s5 + $0x120] sm:$0xff]  ;;  %v344_v19 = vld [vmem:[%s1301_s5 + $0x130] sm:$0xff] }
  0x1f   : > { %v346_v20 = vld [vmem:[%s1301_s5 + $0x140] sm:$0xff]  ;;  %343 = vst [vmem:[%s1306_s6 + $0x90] sm:$0xff] %v342_v18  ;;  %345 = vst [vmem:[%s1306_s6 + $0x98] sm:$0xff] %v344_v19  ;;  %v348_v21 = vld [vmem:[%s1301_s5 + $0x150] sm:$0xff] }
  0x20   : > { %347 = vst [vmem:[%s1306_s6 + $0xa0] sm:$0xff] %v346_v20  ;;  %v350_v22 = vld [vmem:[%s1301_s5 + $0x160] sm:$0xff]  ;;  %v352_v23 = vld [vmem:[%s1301_s5 + $0x170] sm:$0xff]  ;;  %349 = vst [vmem:[%s1306_s6 + $0xa8] sm:$0xff] %v348_v21 }
  0x21   : > { %351 = vst [vmem:[%s1306_s6 + $0xb0] sm:$0xff] %v350_v22  ;;  %353 = vst [vmem:[%s1306_s6 + $0xb8] sm:$0xff] %v352_v23  ;;  %v354_v24 = vld [vmem:[%s1301_s5 + $0x180] sm:$0xff]  ;;  %v356_v25 = vld [vmem:[%s1301_s5 + $0x190] sm:$0xff] }
  0x22   : > { %v358_v26 = vld [vmem:[%s1301_s5 + $0x1a0] sm:$0xff]  ;;  %355 = vst [vmem:[%s1306_s6 + $0xc0] sm:$0xff] %v354_v24  ;;  %357 = vst [vmem:[%s1306_s6 + $0xc8] sm:$0xff] %v356_v25  ;;  %v360_v27 = vld [vmem:[%s1301_s5 + $0x1b0] sm:$0xff] }
  0x23   : > { %359 = vst [vmem:[%s1306_s6 + $0xd0] sm:$0xff] %v358_v26  ;;  %v362_v28 = vld [vmem:[%s1301_s5 + $0x1c0] sm:$0xff]  ;;  %v364_v29 = vld [vmem:[%s1301_s5 + $0x1d0] sm:$0xff]  ;;  %361 = vst [vmem:[%s1306_s6 + $0xd8] sm:$0xff] %v360_v27 }
  0x24   : > { %363 = vst [vmem:[%s1306_s6 + $0xe0] sm:$0xff] %v362_v28  ;;  %365 = vst [vmem:[%s1306_s6 + $0xe8] sm:$0xff] %v364_v29  ;;  %v366_v30 = vld [vmem:[%s1301_s5 + $0x1e0] sm:$0xff]  ;;  %v368_v31 = vld [vmem:[%s1301_s5 + $0x1f0] sm:$0xff] }
  0x25   : > { %367 = vst [vmem:[%s1306_s6 + $0xf0] sm:$0xff] %v366_v30  ;;  %369 = vst [vmem:[%s1306_s6 + $0xf8] sm:$0xff] %v368_v31 }
  0x26 PF: > { %p1045_p8 = scmp.ge.s32.totalorder %s1226_s19, 1  ;;  %p374_p9 = scmp.lt.s32.totalorder %s1226_s19, 3 }
  0x28   : > { %p375_p10 = pnand %p1045_p8, %p374_p9 }
  0x29   : > { %s381_s7 = sand.u32 (!%p375_p10), 1, %s1210_s15   ;;  %v1187_v32 = vld [vmem:[%s1456_s0 + $0x4] ss:$8 sps:$4 sm:$0xff] (!%p375_p10)   ;;  %v1185_v1 = vld [vmem:[%s1456_s0] ss:$8 sps:$4 sm:$0xff] (!%p375_p10)   ;;  %s1048_s21 = sshll.u32 (!%p375_p10), %s1218_s17, 1 }
  0x2a   : > { %378 = sbr.rel (%p375_p10) target bundleno = 341 (0x155), region = 62  ;;  %s1046_s8 = sshll.u32 (!%p375_p10), %s381_s7, 8  ;;  %717 = vmatprep.mubr.bf16.mxu0 (!%p375_p10), %v1187_v32 }
  0x2b   : > { %s1377_s11 = scalar_lea.vmem (!%p375_p10), [#allocation3], %s1046_s8  ;;  %s1047_s14 = sshll.u32 (!%p375_p10), %s381_s7, 4 }
  0x2c   : > { %v1137_v33 = vld [vmem:[%s1377_s11 + $0x4] ss:$8 sps:$4 sm:$0xff] (!%p375_p10)   ;;  %v1139_v34 = vld [vmem:[%s1377_s11] ss:$8 sps:$4 sm:$0xff] (!%p375_p10)   ;;  %v1140_v35 = vld [vmem:[%s1377_s11 + $0x14] ss:$8 sps:$4 sm:$0xff] (!%p375_p10)  }
  0x2d   : > { %685 = vmatprep.subr.bf16.mxu0 (!%p375_p10), %v1137_v33  ;;  %v1142_v36 = vld [vmem:[%s1377_s11 + $0x10] ss:$8 sps:$4 sm:$0xff] (!%p375_p10)   ;;  %v1143_v37 = vld [vmem:[%s1377_s11 + $0x24] ss:$8 sps:$4 sm:$0xff] (!%p375_p10)   ;;  %v1145_v38 = vld [vmem:[%s1377_s11 + $0x20] ss:$8 sps:$4 sm:$0xff] (!%p375_p10)  }
  0x2e   : > { %686 = vmatpush1.bf16.msra.mxu0 (!%p375_p10), %v1139_v34  ;;  %v1146_v39 = vld [vmem:[%s1377_s11 + $0x34] ss:$8 sps:$4 sm:$0xff] (!%p375_p10)   ;;  %v1148_v40 = vld [vmem:[%s1377_s11 + $0x30] ss:$8 sps:$4 sm:$0xff] (!%p375_p10)   ;;  %v1149_v41 = vld [vmem:[%s1377_s11 + $0x44] ss:$8 sps:$4 sm:$0xff] (!%p375_p10)  }
  0x2f   : > { %687 = vmatprep.subr.bf16.mxu0 (!%p375_p10), %v1140_v35  ;;  %v1151_v42 = vld [vmem:[%s1377_s11 + $0x40] ss:$8 sps:$4 sm:$0xff] (!%p375_p10)   ;;  %v1152_v43 = vld [vmem:[%s1377_s11 + $0x54] ss:$8 sps:$4 sm:$0xff] (!%p375_p10)   ;;  %v1154_v44 = vld [vmem:[%s1377_s11 + $0x50] ss:$8 sps:$4 sm:$0xff] (!%p375_p10)  }
  0x30   : > { %v1155_v45 = vld [vmem:[%s1377_s11 + $0x64] ss:$8 sps:$4 sm:$0xff] (!%p375_p10)   ;;  %v1157_v46 = vld [vmem:[%s1377_s11 + $0x60] ss:$8 sps:$4 sm:$0xff] (!%p375_p10)   ;;  %v1158_v47 = vld [vmem:[%s1377_s11 + $0x74] ss:$8 sps:$4 sm:$0xff] (!%p375_p10)  }
  0x31   : > { %v1160_v48 = vld [vmem:[%s1377_s11 + $0x70] ss:$8 sps:$4 sm:$0xff]   ;;  %v1161_v49 = vld [vmem:[%s1377_s11 + $0x84] ss:$8 sps:$4 sm:$0xff]   ;;  %v1163_v50 = vld [vmem:[%s1377_s11 + $0x80] ss:$8 sps:$4 sm:$0xff]  }
  0x32   : > { %688 = vmatpush1.bf16.msra.mxu0 %v1142_v36  ;;  %v1164_v51 = vld [vmem:[%s1377_s11 + $0x94] ss:$8 sps:$4 sm:$0xff]   ;;  %v1166_v52 = vld [vmem:[%s1377_s11 + $0x90] ss:$8 sps:$4 sm:$0xff]   ;;  %v1167_v53 = vld [vmem:[%s1377_s11 + $0xa4] ss:$8 sps:$4 sm:$0xff]  }
  0x33   : > { %689 = vmatprep.subr.bf16.mxu0 %v1143_v37  ;;  %v1169_v54 = vld [vmem:[%s1377_s11 + $0xa0] ss:$8 sps:$4 sm:$0xff]   ;;  %v1170_v55 = vld [vmem:[%s1377_s11 + $0xb4] ss:$8 sps:$4 sm:$0xff]   ;;  %v1172_v56 = vld [vmem:[%s1377_s11 + $0xb0] ss:$8 sps:$4 sm:$0xff]  }
  0x34   : > { %v1173_v57 = vld [vmem:[%s1377_s11 + $0xc4] ss:$8 sps:$4 sm:$0xff]   ;;  %v1175_v58 = vld [vmem:[%s1377_s11 + $0xc0] ss:$8 sps:$4 sm:$0xff]   ;;  %v1176_v59 = vld [vmem:[%s1377_s11 + $0xd4] ss:$8 sps:$4 sm:$0xff]  }
  0x35   : > { %v1178_v60 = vld [vmem:[%s1377_s11 + $0xd0] ss:$8 sps:$4 sm:$0xff]   ;;  %v1179_v61 = vld [vmem:[%s1377_s11 + $0xe4] ss:$8 sps:$4 sm:$0xff]   ;;  %v1181_v62 = vld [vmem:[%s1377_s11 + $0xe0] ss:$8 sps:$4 sm:$0xff]  }
  0x36   : > { %690 = vmatpush1.bf16.msra.mxu0 %v1145_v38  ;;  %v1182_v63 = vld [vmem:[%s1377_s11 + $0xf4] ss:$8 sps:$4 sm:$0xff]   ;;  %v1184_v0 = vld [vmem:[%s1377_s11 + $0xf0] ss:$8 sps:$4 sm:$0xff]   ;;  %p1417_p11 = scmp.lt.s32.totalorder %s1048_s21, 3  ;;  %s1421_s23 = scalar_lea.vmem [#allocation4], %s1047_s14 }
  0x37   : > { %691 = vmatprep.subr.bf16.mxu0 %v1146_v39  ;;  %s1096_s6 = sshll.u32 (%p1288_p6), %s1218_s17, 3 }
  0x38   : > { %s1470_s21 = smov (!%p1417_p11, %s1048_s21), 3  ;;  %s823_s9 = scalar_lea.vmem (%p1288_p6), %s1458_s2, %s1096_s6 }
  0x39   : > { %s1049_s15 = sshll.u32 %s1470_s21, 3 }
  0x3a   : > { %692 = vmatpush1.bf16.msra.mxu0 %v1148_v40  ;;  %s457_s28 = scalar_lea.vmem %s1459_s3, %s1049_s15  ;;  %s467_s5 = scalar_lea.vmem %s1460_s4, %s1049_s15 }
  0x3b   : > { %693 = vmatprep.subr.bf16.mxu0 %v1149_v41 }
  0x3e   : > { %694 = vmatpush1.bf16.msra.mxu0 %v1151_v42 }
  0x3f   : > { %695 = vmatprep.subr.bf16.mxu0 %v1152_v43 }
  0x42   : > { %696 = vmatpush1.bf16.msra.mxu0 %v1154_v44 }
  0x43   : > { %697 = vmatprep.subr.bf16.mxu0 %v1155_v45 }
  0x46   : > { %698 = vmatpush1.bf16.msra.mxu0 %v1157_v46 }
  0x47   : > { %699 = vmatprep.subr.bf16.mxu0 %v1158_v47 }
  0x4a   : > { %700 = vmatpush1.bf16.msra.mxu0 %v1160_v48 }
  0x4b   : > { %701 = vmatprep.subr.bf16.mxu0 %v1161_v49 }
  0x4e   : > { %702 = vmatpush1.bf16.msra.mxu0 %v1163_v50 }
  0x4f   : > { %703 = vmatprep.subr.bf16.mxu0 %v1164_v51 }
  0x52   : > { %704 = vmatpush1.bf16.msra.mxu0 %v1166_v52 }
  0x53   : > { %705 = vmatprep.subr.bf16.mxu0 %v1167_v53 }
  0x56   : > { %706 = vmatpush1.bf16.msra.mxu0 %v1169_v54 }
  0x57   : > { %707 = vmatprep.subr.bf16.mxu0 %v1170_v55 }
  0x5a   : > { %708 = vmatpush1.bf16.msra.mxu0 %v1172_v56 }
  0x5b   : > { %709 = vmatprep.subr.bf16.mxu0 %v1173_v57 }
  0x5e   : > { %710 = vmatpush1.bf16.msra.mxu0 %v1175_v58 }
  0x5f   : > { %711 = vmatprep.subr.bf16.mxu0 %v1176_v59 }
  0x62   : > { %712 = vmatpush1.bf16.msra.mxu0 %v1178_v60 }
  0x63   : > { %713 = vmatprep.subr.bf16.mxu0 %v1179_v61 }
  0x66   : > { %714 = vmatpush1.bf16.msra.mxu0 %v1181_v62 }
  0x67   : > { %715 = vmatprep.subr.bf16.mxu0 %v1182_v63 }
  0x6a   : > { %716 = vmatpush1.bf16.msra.mxu0 %v1184_v0 }
  0x6d   : > { %718 = vmatmul.mubr.bf16.vlgmr.msra.gmra.mrb[0].mxu0 %v1185_v1 }
 0x140   : > { %v719_v2 = vpop.f32.mrb[0].mxu0 }
 0x141   : > { %v721_v3 = vpop.f32.mrb[1].mxu0  ;;  %v771_v6 = vmul.f32 %v719_v2, %v719_v2 }
 0x142   : > { %v1094_v4 = vpack.c.bf16 %v721_v3, %v719_v2  ;;  %v723_v5 = vpop.f32.mrb[2].mxu0  ;;  %v772_v10 = vmul.f32 %v721_v3, %v721_v3 }
 0x143   : > { %v757_v7 = vadd.f32 %v723_v5, %v719_v2  ;;  %v773_v8 = vmul.f32 %v723_v5, %v723_v5  ;;  %v725_v9 = vpop.f32.mrb[3].mxu0 }
 0x144   : > { %v1095_v11 = vpack.c.bf16 %v725_v9, %v723_v5  ;;  %755 = vst [vmem:[%s1421_s23] sm:$0xff] %v1094_v4  ;;  %v764_v12 = vadd.f32 %v725_v9, %v721_v3  ;;  %v774_v13 = vmul.f32 %v725_v9, %v725_v9 }
 0x145   : > { %v758_v14 = vrot.slane %v757_v7, 4  ;;  %v775_v15 = vadd.f32 %v773_v8, %v771_v6 }
 0x146   : > { %756 = vst [vmem:[%s1421_s23 + $0x8] sm:$0xff] %v1095_v11  ;;  %v765_v16 = vrot.slane %v764_v12, 4  ;;  %v782_v17 = vadd.f32 %v774_v13, %v772_v10 }
 0x147   : > { %v759_v18 = vadd.f32 %v758_v14, %v757_v7  ;;  %v776_v19 = vrot.slane %v775_v15, 4 }
 0x148   : > { %v766_v20 = vadd.f32 %v765_v16, %v764_v12  ;;  %v783_v21 = vrot.slane %v782_v17, 4 }
 0x149   : > { %v760_v22 = vrot.slane %v759_v18, 2  ;;  %v777_v23 = vadd.f32 %v776_v19, %v775_v15 }
 0x14a   : > { %v767_v24 = vrot.slane %v766_v20, 2  ;;  %v784_v25 = vadd.f32 %v783_v21, %v782_v17 }
 0x14b   : > { %v761_v26 = vadd.f32 %v760_v22, %v759_v18  ;;  %v778_v27 = vrot.slane %v777_v23, 2  ;;  %v853_v40 = vld [vmem:[%s1421_s23] sm:$0xff] (%p1288_p6) }
 0x14c   : > { %v768_v28 = vadd.f32 %v767_v24, %v766_v20  ;;  %v785_v29 = vrot.slane %v784_v25, 2  ;;  %854 = vst [vmem:[%s823_s9] sm:$0xff] (%p1288_p6), %v853_v40 }
 0x14d   : > { %v762_v30 = vrot.slane %v761_v26, 1  ;;  %v779_v31 = vadd.f32 %v778_v27, %v777_v23  ;;  %v855_v41 = vld [vmem:[%s1421_s23 + $0x8] sm:$0xff] (%p1288_p6) }
 0x14e   : > { %v769_v32 = vrot.slane %v768_v28, 1  ;;  %v786_v33 = vadd.f32 %v785_v29, %v784_v25  ;;  %817 = sbr.rel (!%p1288_p6) target bundleno = 341 (0x155), region = 78  ;;  %856 = vst [vmem:[%s823_s9 + $0x10] sm:$0xff] (%p1288_p6), %v855_v41 }
 0x14f   : > { %v763_v34 = vadd.f32 %v762_v30, %v761_v26  ;;  %v780_v35 = vrot.slane %v779_v31, 1 }
 0x150   : > { %v770_v36 = vadd.f32 %v769_v32, %v768_v28  ;;  %v787_v37 = vrot.slane %v786_v33, 1 }
 0x151   : > { %v781_v38 = vadd.f32 %v780_v35, %v779_v31  ;;  %789 = vst [vmem:[%s457_s28] sm:$0xff] %v763_v34 }
 0x152   : > { %v788_v39 = vadd.f32 %v787_v37, %v786_v33  ;;  %790 = vst [vmem:[%s457_s28 + $0x8] sm:$0xff] %v770_v36 }
 0x153   : > { %791 = vst [vmem:[%s467_s5] sm:$0xff] %v781_v38 }
 0x154   : > { %792 = vst [vmem:[%s467_s5 + $0x8] sm:$0xff] %v788_v39 }
 0x155 PF: > { %s15_s19 = sadd.s32 1, %s1226_s19   ;;  %s1463_s15 = smov %s1214_s16 }
 0x156   : > { %p12_p12 = scmp.ge.s32.totalorder %s15_s19, 4   ;;  %s1464_s16 = smov %s1293_s25 }
 0x157   : > { %s1465_s17 = smov %s1222_s18  ;;  %s1466_s18 = smov %s1468_s20 }
 0x158   :  { %14 = sbr.rel (!%p12_p12) target bundleno = 3 (0x3), region = 174 }

// kernel: forward.74
= control target key start
LH: loop header
LB: loop body
LE: loop exit
PB: predicated region body
PF: predicated region fallthrough
CT: control target
= control target key end

     0   :  { %v28_v0 = vlaneseq  ;;  %s176_s0 = inlined_call_operand.vmem [shape: bf16[16,512], index: 0, kind: input, shape index: {}]   ;;  %s177_s1 = inlined_call_operand.vmem [shape: f32[1,512], index: 1, kind: input, shape index: {}]   ;;  %s178_s2 = inlined_call_operand.vmem [shape: f32[1,512], index: 2, kind: input, shape index: {}]   ;;  %s179_s3 = inlined_call_operand.vmem [shape: bf16[16,512], index: 3, kind: output, shape index: {}]  }
   0x1   :  { %v14_v1 = vld [vmem:[%s176_s0] sm:$0xff]  ;;  %v15_v3 = vld [vmem:[%s176_s0 + $0x8] sm:$0xff]  ;;  %v16_v4 = vld [vmem:[%s176_s0 + $0x10] sm:$0xff] }
   0x2   :  { %v29_v2 = vshrl.u32 %v28_v0, 7  ;;  %v17_v5 = vld [vmem:[%s176_s0 + $0x18] sm:$0xff]  ;;  %v18_v6 = vunpack.c.l.bf16 %v14_v1  ;;  %v19_v7 = vunpack.c.h.bf16 %v14_v1  ;;  %v26_v8 = vld [vmem:[%s177_s1] sm:$0xf]  ;;  %v22_v10 = vunpack.c.l.bf16 %v16_v4 }
   0x3   :  { %v56_v9 = vld [vmem:[%s178_s2] sm:$0xf]  ;;  %v23_v11 = vunpack.c.h.bf16 %v16_v4  ;;  %v20_v16 = vunpack.c.l.bf16 %v15_v3  ;;  %v21_v17 = vunpack.c.h.bf16 %v15_v3  ;;  %v24_v18 = vunpack.c.l.bf16 %v17_v5 }
   0x4   :  { %v30_v12 = vsub.s32 0, %v29_v2  ;;  %v34_v13 = vsub.s32 1, %v29_v2  ;;  %v38_v14 = vsub.s32 2, %v29_v2  ;;  %v42_v15 = vsub.s32 3, %v29_v2 }
   0x5   :  { %v25_v19 = vunpack.c.h.bf16 %v17_v5 }
   0x6   :  { %v31_v20 = vrot.slane %v26_v8, %v30_v12  ;;  %v35_v21 = vrot.slane %v26_v8, %v34_v13  ;;  %v61_v22 = vrot.slane %v56_v9, %v30_v12  ;;  %v65_v23 = vrot.slane %v56_v9, %v34_v13 }
   0x7   :  { %v39_v24 = vrot.slane %v26_v8, %v38_v14  ;;  %v43_v25 = vrot.slane %v26_v8, %v42_v15  ;;  %v69_v26 = vrot.slane %v56_v9, %v38_v14  ;;  %v73_v27 = vrot.slane %v56_v9, %v42_v15 }
   0x8   :  { %v48_v28 = vmul.f32 %v31_v20, %v18_v6  ;;  %v49_v29 = vmul.f32 %v35_v21, %v19_v7  ;;  %v52_v30 = vmul.f32 %v31_v20, %v22_v10  ;;  %v53_v31 = vmul.f32 %v35_v21, %v23_v11 }
   0x9   :  { %v50_v32 = vmul.f32 %v39_v24, %v20_v16  ;;  %v51_v33 = vmul.f32 %v43_v25, %v21_v17  ;;  %v54_v34 = vmul.f32 %v39_v24, %v24_v18  ;;  %v55_v35 = vmul.f32 %v43_v25, %v25_v19 }
   0xa   :  { %v78_v36 = vadd.f32 %v61_v22, %v48_v28  ;;  %v79_v37 = vadd.f32 %v65_v23, %v49_v29  ;;  %v82_v38 = vadd.f32 %v61_v22, %v52_v30  ;;  %v83_v39 = vadd.f32 %v65_v23, %v53_v31 }
   0xb   :  { %v80_v40 = vadd.f32 %v69_v26, %v50_v32  ;;  %v81_v41 = vadd.f32 %v73_v27, %v51_v33  ;;  %v84_v42 = vadd.f32 %v69_v26, %v54_v34  ;;  %v85_v43 = vadd.f32 %v73_v27, %v55_v35 }
   0xc   :  { %v122_v44 = vpack.c.bf16 %v79_v37, %v78_v36  ;;  %v124_v45 = vpack.c.bf16 %v83_v39, %v82_v38 }
   0xd   :  { %v123_v46 = vpack.c.bf16 %v81_v41, %v80_v40  ;;  %v125_v47 = vpack.c.bf16 %v85_v43, %v84_v42 }
   0xe   :  { %110 = vst [vmem:[%s179_s3] sm:$0xff] %v122_v44  ;;  %112 = vst [vmem:[%s179_s3 + $0x10] sm:$0xff] %v124_v45 }
   0xf   :  { %111 = vst [vmem:[%s179_s3 + $0x8] sm:$0xff] %v123_v46  ;;  %113 = vst [vmem:[%s179_s3 + $0x18] sm:$0xff] %v125_v47 }

// kernel: forward.71
= control target key start
LH: loop header
LB: loop body
LE: loop exit
PB: predicated region body
PF: predicated region fallthrough
CT: control target
= control target key end

     0   :  { %v28_v0 = vlaneseq  ;;  %s184_s0 = inlined_call_operand.vmem [shape: bf16[16,512], index: 0, kind: input, shape index: {}]   ;;  %s185_s1 = inlined_call_operand.vmem [shape: f32[1,512], index: 1, kind: input, shape index: {}]   ;;  %s186_s2 = inlined_call_operand.vmem [shape: f32[1,512], index: 2, kind: input, shape index: {}]   ;;  %s187_s3 = inlined_call_operand.vmem [shape: bf16[16,512], index: 3, kind: output, shape index: {}]  }
   0x1   :  { %v14_v1 = vld [vmem:[%s184_s0] sm:$0xff]  ;;  %v15_v3 = vld [vmem:[%s184_s0 + $0x8] sm:$0xff]  ;;  %v16_v4 = vld [vmem:[%s184_s0 + $0x10] sm:$0xff] }
   0x2   :  { %v29_v2 = vshrl.u32 %v28_v0, 7  ;;  %v17_v5 = vld [vmem:[%s184_s0 + $0x18] sm:$0xff]  ;;  %v18_v6 = vunpack.c.l.bf16 %v14_v1  ;;  %v19_v7 = vunpack.c.h.bf16 %v14_v1  ;;  %v26_v8 = vld [vmem:[%s185_s1] sm:$0xf]  ;;  %v22_v10 = vunpack.c.l.bf16 %v16_v4 }
   0x3   :  { %v56_v9 = vld [vmem:[%s186_s2] sm:$0xf]  ;;  %v23_v11 = vunpack.c.h.bf16 %v16_v4  ;;  %v20_v16 = vunpack.c.l.bf16 %v15_v3  ;;  %v21_v17 = vunpack.c.h.bf16 %v15_v3  ;;  %v24_v18 = vunpack.c.l.bf16 %v17_v5 }
   0x4   :  { %v30_v12 = vsub.s32 0, %v29_v2  ;;  %v34_v13 = vsub.s32 1, %v29_v2  ;;  %v38_v14 = vsub.s32 2, %v29_v2  ;;  %v42_v15 = vsub.s32 3, %v29_v2 }
   0x5   :  { %v25_v19 = vunpack.c.h.bf16 %v17_v5 }
   0x6   :  { %v31_v20 = vrot.slane %v26_v8, %v30_v12  ;;  %v35_v21 = vrot.slane %v26_v8, %v34_v13  ;;  %v61_v22 = vrot.slane %v56_v9, %v30_v12  ;;  %v65_v23 = vrot.slane %v56_v9, %v34_v13 }
   0x7   :  { %v39_v24 = vrot.slane %v26_v8, %v38_v14  ;;  %v43_v25 = vrot.slane %v26_v8, %v42_v15  ;;  %v69_v26 = vrot.slane %v56_v9, %v38_v14  ;;  %v73_v27 = vrot.slane %v56_v9, %v42_v15 }
   0x8   :  { %v48_v28 = vmul.f32 %v31_v20, %v18_v6  ;;  %v49_v29 = vmul.f32 %v35_v21, %v19_v7  ;;  %v52_v30 = vmul.f32 %v31_v20, %v22_v10  ;;  %v53_v31 = vmul.f32 %v35_v21, %v23_v11 }
   0x9   :  { %v50_v32 = vmul.f32 %v39_v24, %v20_v16  ;;  %v51_v33 = vmul.f32 %v43_v25, %v21_v17  ;;  %v54_v34 = vmul.f32 %v39_v24, %v24_v18  ;;  %v55_v35 = vmul.f32 %v43_v25, %v25_v19 }
   0xa   :  { %v78_v36 = vadd.f32 %v61_v22, %v48_v28  ;;  %v79_v37 = vadd.f32 %v65_v23, %v49_v29  ;;  %v82_v38 = vadd.f32 %v61_v22, %v52_v30  ;;  %v83_v39 = vadd.f32 %v65_v23, %v53_v31 }
   0xb   :  { %v80_v40 = vadd.f32 %v69_v26, %v50_v32  ;;  %v81_v41 = vadd.f32 %v73_v27, %v51_v33  ;;  %v84_v42 = vadd.f32 %v69_v26, %v54_v34  ;;  %v85_v43 = vadd.f32 %v73_v27, %v55_v35 }
   0xc   :  { %v86_v44 = vmax.f32 %v78_v36, 0.0  ;;  %v87_v45 = vmax.f32 %v79_v37, 0.0  ;;  %v90_v46 = vmax.f32 %v82_v38, 0.0  ;;  %v91_v47 = vmax.f32 %v83_v39, 0.0 }
   0xd   :  { %v88_v48 = vmax.f32 %v80_v40, 0.0  ;;  %v89_v49 = vmax.f32 %v81_v41, 0.0  ;;  %v92_v50 = vmax.f32 %v84_v42, 0.0  ;;  %v93_v51 = vmax.f32 %v85_v43, 0.0 }
   0xe   :  { %v130_v52 = vpack.c.bf16 %v87_v45, %v86_v44  ;;  %v132_v53 = vpack.c.bf16 %v91_v47, %v90_v46 }
   0xf   :  { %v131_v54 = vpack.c.bf16 %v89_v49, %v88_v48  ;;  %v133_v55 = vpack.c.bf16 %v93_v51, %v92_v50 }
  0x10   :  { %118 = vst [vmem:[%s187_s3] sm:$0xff] %v130_v52  ;;  %120 = vst [vmem:[%s187_s3 + $0x10] sm:$0xff] %v132_v53 }
  0x11   :  { %119 = vst [vmem:[%s187_s3 + $0x8] sm:$0xff] %v131_v54  ;;  %121 = vst [vmem:[%s187_s3 + $0x18] sm:$0xff] %v133_v55 }

// kernel: forward.70
= control target key start
LH: loop header
LB: loop body
LE: loop exit
PB: predicated region body
PF: predicated region fallthrough
CT: control target
= control target key end

     0   :  { %s2224_s0 = inlined_call_operand.vmem [shape: bf16[16,2560], index: 0, kind: input, shape index: {}]   ;;  %s2225_s1 = inlined_call_operand.vmem [shape: bf16[2560,512], index: 1, kind: input, shape index: {}]   ;;  %s2226_s2 = inlined_call_operand.vmem [shape: bf16[16,512], index: 2, kind: output, shape index: {0}]   ;;  %s2227_s3 = inlined_call_operand.vmem [shape: f32[1,8,512], index: 3, kind: output, shape index: {1}]   ;;  %s2228_s4 = inlined_call_operand.vmem [shape: f32[1,8,512], index: 4, kind: output, shape index: {2}]  }
   0x1   :  { %2232 = sst [smem:[#allocation9_spill]] %s2224_s0 }
   0x2   :  { %2233 = sst [smem:[#allocation10_spill]] %s2225_s1 }
   0x3   :  { %s1839_s15 = smov 0   ;;  %s1841_s16 = smov 0  }
   0x4   :  { %s1843_s17 = smov 0   ;;  %s1845_s18 = smov 0  }
   0x5   :  { %s1847_s19 = smov 0   ;;  %s1849_s20 = smov 0  }
   0x6   :  { %s1851_s21 = smov 0   ;;  %s1853_s22 = smov 0  }
   0x7   :  { %s1855_s23 = smov 0   ;;  %s1857_s24 = smov 0  }
   0x8   :  { %s1859_s25 = smov 0  }
   0x9 LB: > { %2234 = sst [smem:[#allocation6_spill]] %s1807_s24  ;;  %s1428_s26 = sadd.s32 4294967295, %s1811_s25   ;;  %s1811_s25 = sphi %s1859_s25, %s15_s25   ;;  %s1807_s24 = sphi %s1857_s24, %s2253_s24   ;;  %s1803_s23 = sphi %s1855_s23, %s2252_s23   ;;  %s1799_s22 = sphi %s1853_s22, %s2242_s22   ;;  %s1795_s21 = sphi %s1851_s21, %s2251_s21   ;;  %s1791_s20 = sphi %s1849_s20, %s2250_s20   ;;  %s1787_s19 = sphi %s1847_s19, %s2249_s19   ;;  %s1783_s18 = sphi %s1845_s18, %s2248_s18   ;;  %s1779_s17 = sphi %s1843_s17, %s2247_s17   ;;  %s1775_s16 = sphi %s1841_s16, %s2246_s16   ;;  %s1771_s15 = sphi %s1839_s15, %s2245_s15  }
   0xa   : > { %s27_s27 = sadd.s32 1, %s1803_s23  ;;  %s30_s28 = sadd.s32 1, %s1807_s24 }
   0xb   : > { %p28_p0 = scmp.ge.s32.totalorder %s27_s27, 5  ;;  %s43_s29 = sadd.s32 1, %s1791_s20 }
   0xc   : > { %p50_p1 = scmp.ne.s32.totalorder %s1791_s20, %s1787_s19  ;;  %p51_p2 = scmp.eq.s32.totalorder %s1811_s25, 0 }
   0xd   : > { %s2255_s27 = smov (%p28_p0, %s27_s27), 0  ;;  %s2257_s28 = smov (!%p28_p0, %s30_s28), %s1807_s24 }
   0xe   : > { %2235 = sst [smem:[#allocation7_spill]] %s2255_s27  ;;  %s39_s30 = ssub.s32 %s1803_s23, %s2255_s27 }
   0xf   : > { %p32_p3 = scmp.ge.s32.totalorder %s2257_s28, 2  ;;  %p41_p4 = scmp.eq.s32.totalorder %s39_s30, 0 }
  0x10   : > { %p1906_p5 = por %p51_p2, %p50_p1  ;;  %s71_s6 = sadd.s32 1, %s1783_s18 }
  0x11   : > { %s2259_s28 = smov (%p32_p3, %s2257_s28), 0  ;;  %p78_p6 = scmp.ne.s32.totalorder %s1783_s18, %s1779_s17 }
  0x12   : > { %2237 = sst [smem:[#allocation8_spill]] %s2259_s28  ;;  %s67_s8 = ssub.s32 %s1807_s24, %s2259_s28 }
  0x13   : > { %s1914_s7 = scalar_select %p41_p4, %s1791_s20, %s43_s29  }
  0x14   : > { %s68_s9 = sor.u32 %s67_s8, %s39_s30  ;;  %p97_p7 = scmp.eq.s32.totalorder %s67_s8, 0 }
  0x15   : > { %p69_p8 = scmp.eq.s32.totalorder %s68_s9, 0  ;;  %p1920_p9 = por %p78_p6, %p51_p2 }
  0x16   : > { %s99_s11 = sadd.s32 1, %s1775_s16  ;;  %p109_p10 = scmp.ne.s32.totalorder %s1775_s16, %s1771_s15 }
  0x17   : > { %s1928_s12 = scalar_select %p69_p8, %s1783_s18, %s71_s6  }
  0x18   : > { %s1931_s13 = scalar_select %p97_p7, %s1775_s16, %s99_s11  }
  0x19   : > { %p110_p11 = scmp.eq.s32.totalorder %s1428_s26, 9  ;;  %p1431_p13 = scmp.ge.s32.totalorder %s1811_s25, 10 }
  0x1b   : > { %p1933_p12 = por %p110_p11, %p109_p10  ;;  %188 = sbr.rel (%p1431_p13) target bundleno = 88 (0x58), region = 16 }
  0x22   : > { %191 = sbr.rel (!%p1906_p5) target bundleno = 46 (0x2e), region = 20  ;;  %s193_s29 = sand.u32 (%p1906_p5), 1, %s1791_s20  }
  0x23   : > { %s1525_s30 = sshll.u32 (%p1906_p5), %s1803_s23, 4  ;;  %s1432_s8 = sshll.u32 (%p1906_p5), %s193_s29, 5 }
  0x24   : > { %s2240_s0 = sld [smem:[#allocation9_spill]] (%p1906_p5)  ;;  %s195_s26 = scalar_lea.vmem (%p1906_p5), [#allocation3], %s1432_s8 }
  0x2a   : > { %s201_s11 = scalar_lea.vmem %s2240_s0, %s1525_s30 }
  0x2b   : > { %v214_v0 = vld [vmem:[%s201_s11] sm:$0xff]  ;;  %v216_v1 = vld [vmem:[%s201_s11 + $0x8] sm:$0xff]  ;;  %v218_v2 = vld [vmem:[%s201_s11 + $0x50] sm:$0xff] }
  0x2c   : > { %215 = vst [vmem:[%s195_s26] sm:$0xff] %v214_v0  ;;  %217 = vst [vmem:[%s195_s26 + $0x8] sm:$0xff] %v216_v1  ;;  %v220_v3 = vld [vmem:[%s201_s11 + $0x58] sm:$0xff] }
  0x2d   : > { %219 = vst [vmem:[%s195_s26 + $0x10] sm:$0xff] %v218_v2  ;;  %221 = vst [vmem:[%s195_s26 + $0x18] sm:$0xff] %v220_v3 }
  0x2e PF: > { %227 = sbr.rel (!%p1920_p9) target bundleno = 88 (0x58), region = 43  ;;  %s229_s5 = sand.u32 (%p1920_p9), 1, %s1783_s18  }
  0x2f   : > { %s1437_s29 = sshll.u32 (%p1920_p9), %s1807_s24, 1  ;;  %s1435_s6 = sshll.u32 (%p1920_p9), %s229_s5, 9 }
  0x30   : > { %s1526_s30 = sshll.u32 (%p1920_p9), %s1803_s23, 8  ;;  %s2241_s1 = sld [smem:[#allocation10_spill]] (%p1920_p9) }
  0x31   : > { %s235_s9 = sadd.s32 (%p1920_p9), %s1526_s30, %s1437_s29  ;;  %s1958_s10 = scalar_lea.vmem (%p1920_p9), [#allocation4], %s1435_s6 }
  0x32   : > { %s1439_s0 = sshll.u32 (%p1920_p9), %s235_s9, 2 }
  0x36   : > { %s1953_s27 = scalar_lea.vmem %s2241_s1, %s1439_s0 }
  0x37   : > { %v391_v4 = vld [vmem:[%s1953_s27] sm:$0xff]  ;;  %v393_v5 = vld [vmem:[%s1953_s27 + $0x10] sm:$0xff] }
  0x38   : > { %v395_v6 = vld [vmem:[%s1953_s27 + $0x20] sm:$0xff]  ;;  %392 = vst [vmem:[%s1958_s10] sm:$0xff] %v391_v4  ;;  %394 = vst [vmem:[%s1958_s10 + $0x8] sm:$0xff] %v393_v5  ;;  %v397_v7 = vld [vmem:[%s1953_s27 + $0x30] sm:$0xff] }
  0x39   : > { %396 = vst [vmem:[%s1958_s10 + $0x10] sm:$0xff] %v395_v6  ;;  %v399_v8 = vld [vmem:[%s1953_s27 + $0x40] sm:$0xff]  ;;  %v401_v9 = vld [vmem:[%s1953_s27 + $0x50] sm:$0xff]  ;;  %398 = vst [vmem:[%s1958_s10 + $0x18] sm:$0xff] %v397_v7 }
  0x3a   : > { %400 = vst [vmem:[%s1958_s10 + $0x20] sm:$0xff] %v399_v8  ;;  %402 = vst [vmem:[%s1958_s10 + $0x28] sm:$0xff] %v401_v9  ;;  %v403_v10 = vld [vmem:[%s1953_s27 + $0x60] sm:$0xff]  ;;  %v405_v11 = vld [vmem:[%s1953_s27 + $0x70] sm:$0xff] }
  0x3b   : > { %v407_v12 = vld [vmem:[%s1953_s27 + $0x80] sm:$0xff]  ;;  %404 = vst [vmem:[%s1958_s10 + $0x30] sm:$0xff] %v403_v10  ;;  %406 = vst [vmem:[%s1958_s10 + $0x38] sm:$0xff] %v405_v11  ;;  %v409_v13 = vld [vmem:[%s1953_s27 + $0x90] sm:$0xff] }
  0x3c   : > { %408 = vst [vmem:[%s1958_s10 + $0x40] sm:$0xff] %v407_v12  ;;  %v411_v14 = vld [vmem:[%s1953_s27 + $0xa0] sm:$0xff]  ;;  %v413_v15 = vld [vmem:[%s1953_s27 + $0xb0] sm:$0xff]  ;;  %410 = vst [vmem:[%s1958_s10 + $0x48] sm:$0xff] %v409_v13 }
  0x3d   : > { %412 = vst [vmem:[%s1958_s10 + $0x50] sm:$0xff] %v411_v14  ;;  %414 = vst [vmem:[%s1958_s10 + $0x58] sm:$0xff] %v413_v15  ;;  %v415_v16 = vld [vmem:[%s1953_s27 + $0xc0] sm:$0xff]  ;;  %v417_v17 = vld [vmem:[%s1953_s27 + $0xd0] sm:$0xff] }
  0x3e   : > { %v419_v18 = vld [vmem:[%s1953_s27 + $0xe0] sm:$0xff]  ;;  %416 = vst [vmem:[%s1958_s10 + $0x60] sm:$0xff] %v415_v16  ;;  %418 = vst [vmem:[%s1958_s10 + $0x68] sm:$0xff] %v417_v17  ;;  %v421_v19 = vld [vmem:[%s1953_s27 + $0xf0] sm:$0xff] }
  0x3f   : > { %420 = vst [vmem:[%s1958_s10 + $0x70] sm:$0xff] %v419_v18  ;;  %v423_v20 = vld [vmem:[%s1953_s27 + $0x100] sm:$0xff]  ;;  %v425_v21 = vld [vmem:[%s1953_s27 + $0x110] sm:$0xff]  ;;  %422 = vst [vmem:[%s1958_s10 + $0x78] sm:$0xff] %v421_v19 }
  0x40   : > { %424 = vst [vmem:[%s1958_s10 + $0x80] sm:$0xff] %v423_v20  ;;  %426 = vst [vmem:[%s1958_s10 + $0x88] sm:$0xff] %v425_v21  ;;  %v427_v22 = vld [vmem:[%s1953_s27 + $0x120] sm:$0xff]  ;;  %v429_v23 = vld [vmem:[%s1953_s27 + $0x130] sm:$0xff] }
  0x41   : > { %v431_v24 = vld [vmem:[%s1953_s27 + $0x140] sm:$0xff]  ;;  %428 = vst [vmem:[%s1958_s10 + $0x90] sm:$0xff] %v427_v22  ;;  %430 = vst [vmem:[%s1958_s10 + $0x98] sm:$0xff] %v429_v23  ;;  %v433_v25 = vld [vmem:[%s1953_s27 + $0x150] sm:$0xff] }
  0x42   : > { %432 = vst [vmem:[%s1958_s10 + $0xa0] sm:$0xff] %v431_v24  ;;  %v435_v26 = vld [vmem:[%s1953_s27 + $0x160] sm:$0xff]  ;;  %v437_v27 = vld [vmem:[%s1953_s27 + $0x170] sm:$0xff]  ;;  %434 = vst [vmem:[%s1958_s10 + $0xa8] sm:$0xff] %v433_v25 }
  0x43   : > { %436 = vst [vmem:[%s1958_s10 + $0xb0] sm:$0xff] %v435_v26  ;;  %438 = vst [vmem:[%s1958_s10 + $0xb8] sm:$0xff] %v437_v27  ;;  %v439_v28 = vld [vmem:[%s1953_s27 + $0x180] sm:$0xff]  ;;  %v441_v29 = vld [vmem:[%s1953_s27 + $0x190] sm:$0xff] }
  0x44   : > { %v443_v30 = vld [vmem:[%s1953_s27 + $0x1a0] sm:$0xff]  ;;  %440 = vst [vmem:[%s1958_s10 + $0xc0] sm:$0xff] %v439_v28  ;;  %442 = vst [vmem:[%s1958_s10 + $0xc8] sm:$0xff] %v441_v29  ;;  %v445_v31 = vld [vmem:[%s1953_s27 + $0x1b0] sm:$0xff] }
  0x45   : > { %444 = vst [vmem:[%s1958_s10 + $0xd0] sm:$0xff] %v443_v30  ;;  %v447_v32 = vld [vmem:[%s1953_s27 + $0x1c0] sm:$0xff]  ;;  %v449_v33 = vld [vmem:[%s1953_s27 + $0x1d0] sm:$0xff]  ;;  %446 = vst [vmem:[%s1958_s10 + $0xd8] sm:$0xff] %v445_v31 }
  0x46   : > { %448 = vst [vmem:[%s1958_s10 + $0xe0] sm:$0xff] %v447_v32  ;;  %450 = vst [vmem:[%s1958_s10 + $0xe8] sm:$0xff] %v449_v33  ;;  %v451_v34 = vld [vmem:[%s1953_s27 + $0x1e0] sm:$0xff]  ;;  %v453_v35 = vld [vmem:[%s1953_s27 + $0x1f0] sm:$0xff] }
  0x47   : > { %v455_v36 = vld [vmem:[%s1953_s27 + $0x200] sm:$0xff]  ;;  %452 = vst [vmem:[%s1958_s10 + $0xf0] sm:$0xff] %v451_v34  ;;  %454 = vst [vmem:[%s1958_s10 + $0xf8] sm:$0xff] %v453_v35  ;;  %v457_v37 = vld [vmem:[%s1953_s27 + $0x210] sm:$0xff] }
  0x48   : > { %456 = vst [vmem:[%s1958_s10 + $0x100] sm:$0xff] %v455_v36  ;;  %v459_v38 = vld [vmem:[%s1953_s27 + $0x220] sm:$0xff]  ;;  %v461_v39 = vld [vmem:[%s1953_s27 + $0x230] sm:$0xff]  ;;  %458 = vst [vmem:[%s1958_s10 + $0x108] sm:$0xff] %v457_v37 }
  0x49   : > { %460 = vst [vmem:[%s1958_s10 + $0x110] sm:$0xff] %v459_v38  ;;  %462 = vst [vmem:[%s1958_s10 + $0x118] sm:$0xff] %v461_v39  ;;  %v463_v40 = vld [vmem:[%s1953_s27 + $0x240] sm:$0xff]  ;;  %v465_v41 = vld [vmem:[%s1953_s27 + $0x250] sm:$0xff] }
  0x4a   : > { %v467_v42 = vld [vmem:[%s1953_s27 + $0x260] sm:$0xff]  ;;  %464 = vst [vmem:[%s1958_s10 + $0x120] sm:$0xff] %v463_v40  ;;  %466 = vst [vmem:[%s1958_s10 + $0x128] sm:$0xff] %v465_v41  ;;  %v469_v43 = vld [vmem:[%s1953_s27 + $0x270] sm:$0xff] }
  0x4b   : > { %468 = vst [vmem:[%s1958_s10 + $0x130] sm:$0xff] %v467_v42  ;;  %v471_v44 = vld [vmem:[%s1953_s27 + $0x280] sm:$0xff]  ;;  %v473_v45 = vld [vmem:[%s1953_s27 + $0x290] sm:$0xff]  ;;  %470 = vst [vmem:[%s1958_s10 + $0x138] sm:$0xff] %v469_v43 }
  0x4c   : > { %472 = vst [vmem:[%s1958_s10 + $0x140] sm:$0xff] %v471_v44  ;;  %474 = vst [vmem:[%s1958_s10 + $0x148] sm:$0xff] %v473_v45  ;;  %v475_v46 = vld [vmem:[%s1953_s27 + $0x2a0] sm:$0xff]  ;;  %v477_v47 = vld [vmem:[%s1953_s27 + $0x2b0] sm:$0xff] }
  0x4d   : > { %v479_v48 = vld [vmem:[%s1953_s27 + $0x2c0] sm:$0xff]  ;;  %476 = vst [vmem:[%s1958_s10 + $0x150] sm:$0xff] %v475_v46  ;;  %478 = vst [vmem:[%s1958_s10 + $0x158] sm:$0xff] %v477_v47  ;;  %v481_v49 = vld [vmem:[%s1953_s27 + $0x2d0] sm:$0xff] }
  0x4e   : > { %480 = vst [vmem:[%s1958_s10 + $0x160] sm:$0xff] %v479_v48  ;;  %v483_v50 = vld [vmem:[%s1953_s27 + $0x2e0] sm:$0xff]  ;;  %v485_v51 = vld [vmem:[%s1953_s27 + $0x2f0] sm:$0xff]  ;;  %482 = vst [vmem:[%s1958_s10 + $0x168] sm:$0xff] %v481_v49 }
  0x4f   : > { %484 = vst [vmem:[%s1958_s10 + $0x170] sm:$0xff] %v483_v50  ;;  %486 = vst [vmem:[%s1958_s10 + $0x178] sm:$0xff] %v485_v51  ;;  %v487_v52 = vld [vmem:[%s1953_s27 + $0x300] sm:$0xff]  ;;  %v489_v53 = vld [vmem:[%s1953_s27 + $0x310] sm:$0xff] }
  0x50   : > { %v491_v54 = vld [vmem:[%s1953_s27 + $0x320] sm:$0xff]  ;;  %488 = vst [vmem:[%s1958_s10 + $0x180] sm:$0xff] %v487_v52  ;;  %490 = vst [vmem:[%s1958_s10 + $0x188] sm:$0xff] %v489_v53  ;;  %v493_v55 = vld [vmem:[%s1953_s27 + $0x330] sm:$0xff] }
  0x51   : > { %492 = vst [vmem:[%s1958_s10 + $0x190] sm:$0xff] %v491_v54  ;;  %v495_v56 = vld [vmem:[%s1953_s27 + $0x340] sm:$0xff]  ;;  %v497_v57 = vld [vmem:[%s1953_s27 + $0x350] sm:$0xff]  ;;  %494 = vst [vmem:[%s1958_s10 + $0x198] sm:$0xff] %v493_v55 }
  0x52   : > { %496 = vst [vmem:[%s1958_s10 + $0x1a0] sm:$0xff] %v495_v56  ;;  %498 = vst [vmem:[%s1958_s10 + $0x1a8] sm:$0xff] %v497_v57  ;;  %v499_v58 = vld [vmem:[%s1953_s27 + $0x360] sm:$0xff]  ;;  %v501_v59 = vld [vmem:[%s1953_s27 + $0x370] sm:$0xff] }
  0x53   : > { %v503_v60 = vld [vmem:[%s1953_s27 + $0x380] sm:$0xff]  ;;  %500 = vst [vmem:[%s1958_s10 + $0x1b0] sm:$0xff] %v499_v58  ;;  %502 = vst [vmem:[%s1958_s10 + $0x1b8] sm:$0xff] %v501_v59  ;;  %v505_v61 = vld [vmem:[%s1953_s27 + $0x390] sm:$0xff] }
  0x54   : > { %504 = vst [vmem:[%s1958_s10 + $0x1c0] sm:$0xff] %v503_v60  ;;  %v507_v62 = vld [vmem:[%s1953_s27 + $0x3a0] sm:$0xff]  ;;  %v509_v63 = vld [vmem:[%s1953_s27 + $0x3b0] sm:$0xff]  ;;  %506 = vst [vmem:[%s1958_s10 + $0x1c8] sm:$0xff] %v505_v61 }
  0x55   : > { %508 = vst [vmem:[%s1958_s10 + $0x1d0] sm:$0xff] %v507_v62  ;;  %510 = vst [vmem:[%s1958_s10 + $0x1d8] sm:$0xff] %v509_v63  ;;  %v511_v0 = vld [vmem:[%s1953_s27 + $0x3c0] sm:$0xff]  ;;  %v513_v1 = vld [vmem:[%s1953_s27 + $0x3d0] sm:$0xff] }
  0x56   : > { %v515_v2 = vld [vmem:[%s1953_s27 + $0x3e0] sm:$0xff]  ;;  %512 = vst [vmem:[%s1958_s10 + $0x1e0] sm:$0xff] %v511_v0  ;;  %514 = vst [vmem:[%s1958_s10 + $0x1e8] sm:$0xff] %v513_v1  ;;  %v517_v3 = vld [vmem:[%s1953_s27 + $0x3f0] sm:$0xff] }
  0x57   : > { %516 = vst [vmem:[%s1958_s10 + $0x1f0] sm:$0xff] %v515_v2  ;;  %518 = vst [vmem:[%s1958_s10 + $0x1f8] sm:$0xff] %v517_v3 }
  0x58 PF: > { %p1440_p0 = scmp.ge.s32.totalorder %s1811_s25, 1  ;;  %p523_p1 = scmp.lt.s32.totalorder %s1811_s25, 11 }
  0x5a   : > { %p524_p2 = pnand %p1440_p0, %p523_p1 }
  0x5b   : > { %s530_s0 = sand.u32 (!%p524_p2), 1, %s1787_s19   ;;  %s537_s28 = sand.u32 (!%p524_p2), 1, %s1779_s17  }
  0x5c   : > { %527 = sbr.rel (%p524_p2) target bundleno = 423 (0x1a7), region = 81  ;;  %s1441_s11 = sshll.u32 (!%p524_p2), %s530_s0, 5 }
  0x5d   : > { %s1442_s26 = sshll.u32 (!%p524_p2), %s537_s28, 9  ;;  %s558_s5 = sand.u32 (!%p524_p2), 1, %s1771_s15  }
  0x5e   : > { %s1444_s29 = sshll.u32 (!%p524_p2), %s1799_s22, 1  ;;  %s1443_s27 = sshll.u32 (!%p524_p2), %s558_s5, 4 }
  0x5f   : > { %p592_p3 = scmp.lt.s32.totalorder (!%p524_p2), %s1444_s29, 3  ;;  %s2101_s19 = scalar_lea.vmem (!%p524_p2), [#allocation3], %s1441_s11 }
  0x60   : > { %s2103_s17 = scalar_lea.vmem (!%p524_p2), [#allocation4], %s1442_s26  ;;  %s2105_s15 = scalar_lea.vmem (!%p524_p2), [#allocation5], %s1443_s27 }
  0x61   : > { %p1448_p4 = scmp.ne.s32.totalorder (!%p524_p2), %s1795_s21, 0 }
  0x63   : > { %s2261_s29 = smov (!%p592_p3, %s1444_s29), 3  ;;  %612 = sbr.rel (%p1448_p4) target bundleno = 106 (0x6a), region = 93 }
  0x64   : > { %s1445_s6 = sshll.u32 %s2261_s29, 3  ;;  %v1813_v4 = vmov (!%p1448_p4), 0.0  }
  0x65   : > { %s2094_s8 = scalar_lea.vmem %s2227_s3, %s1445_s6  ;;  %s2099_s24 = scalar_lea.vmem %s2228_s4, %s1445_s6  ;;  %613 = vst [vmem:[#allocation2] sm:$0xff] (!%p1448_p4), %v1813_v4  ;;  %614 = vst [vmem:[#allocation2 + $0x8] sm:$0xff] (!%p1448_p4), %v1813_v4 }
  0x66   : > { %615 = vst [vmem:[#allocation2 + $0x10] sm:$0xff] (!%p1448_p4), %v1813_v4  ;;  %616 = vst [vmem:[#allocation2 + $0x18] sm:$0xff] (!%p1448_p4), %v1813_v4 }
  0x6a PF: > { %v1623_v5 = vld [vmem:[%s2103_s17 + $0x4] ss:$8 sps:$4 sm:$0xff]   ;;  %v1627_v7 = vld [vmem:[%s2103_s17] ss:$8 sps:$4 sm:$0xff]   ;;  %v1629_v9 = vld [vmem:[%s2103_s17 + $0x14] ss:$8 sps:$4 sm:$0xff]  }
  0x6b   : > { %v1625_v6 = vld [vmem:[%s2103_s17 + $0x104] ss:$8 sps:$4 sm:$0xff]   ;;  %1029 = vmatprep.subr.bf16.mxu1 %v1623_v5  ;;  %v1628_v8 = vld [vmem:[%s2103_s17 + $0x100] ss:$8 sps:$4 sm:$0xff]   ;;  %v1631_v10 = vld [vmem:[%s2103_s17 + $0x114] ss:$8 sps:$4 sm:$0xff]  }
  0x6c   : > { %1072 = vmatprep.subr.bf16.mxu0 %v1625_v6  ;;  %1030 = vmatpush1.bf16.msra.mxu1 %v1627_v7  ;;  %v1633_v11 = vld [vmem:[%s2103_s17 + $0x10] ss:$8 sps:$4 sm:$0xff]   ;;  %v1635_v13 = vld [vmem:[%s2103_s17 + $0x24] ss:$8 sps:$4 sm:$0xff]   ;;  %v1639_v15 = vld [vmem:[%s2103_s17 + $0x20] ss:$8 sps:$4 sm:$0xff]  }
  0x6d   : > { %1073 = vmatpush1.bf16.msra.mxu0 %v1628_v8  ;;  %1031 = vmatprep.subr.bf16.mxu1 %v1629_v9  ;;  %v1634_v12 = vld [vmem:[%s2103_s17 + $0x110] ss:$8 sps:$4 sm:$0xff]   ;;  %v1637_v14 = vld [vmem:[%s2103_s17 + $0x124] ss:$8 sps:$4 sm:$0xff]   ;;  %v1640_v16 = vld [vmem:[%s2103_s17 + $0x120] ss:$8 sps:$4 sm:$0xff]  }
  0x6e   : > { %1074 = vmatprep.subr.bf16.mxu0 %v1631_v10  ;;  %v1641_v17 = vld [vmem:[%s2103_s17 + $0x34] ss:$8 sps:$4 sm:$0xff]   ;;  %v1645_v19 = vld [vmem:[%s2103_s17 + $0x30] ss:$8 sps:$4 sm:$0xff]   ;;  %v1647_v21 = vld [vmem:[%s2103_s17 + $0x44] ss:$8 sps:$4 sm:$0xff]  }
  0x6f   : > { %v1643_v18 = vld [vmem:[%s2103_s17 + $0x134] ss:$8 sps:$4 sm:$0xff]   ;;  %v1646_v20 = vld [vmem:[%s2103_s17 + $0x130] ss:$8 sps:$4 sm:$0xff]   ;;  %v1649_v22 = vld [vmem:[%s2103_s17 + $0x144] ss:$8 sps:$4 sm:$0xff]  }
  0x70   : > { %1032 = vmatpush1.bf16.msra.mxu1 %v1633_v11  ;;  %v1651_v23 = vld [vmem:[%s2103_s17 + $0x40] ss:$8 sps:$4 sm:$0xff]   ;;  %v1653_v25 = vld [vmem:[%s2103_s17 + $0x54] ss:$8 sps:$4 sm:$0xff]   ;;  %v1657_v27 = vld [vmem:[%s2103_s17 + $0x50] ss:$8 sps:$4 sm:$0xff]  }
  0x71   : > { %1075 = vmatpush1.bf16.msra.mxu0 %v1634_v12  ;;  %1033 = vmatprep.subr.bf16.mxu1 %v1635_v13  ;;  %v1652_v24 = vld [vmem:[%s2103_s17 + $0x140] ss:$8 sps:$4 sm:$0xff]   ;;  %v1655_v26 = vld [vmem:[%s2103_s17 + $0x154] ss:$8 sps:$4 sm:$0xff]   ;;  %v1658_v28 = vld [vmem:[%s2103_s17 + $0x150] ss:$8 sps:$4 sm:$0xff]  }
  0x72   : > { %1076 = vmatprep.subr.bf16.mxu0 %v1637_v14  ;;  %v1659_v29 = vld [vmem:[%s2103_s17 + $0x64] ss:$8 sps:$4 sm:$0xff]   ;;  %v1663_v31 = vld [vmem:[%s2103_s17 + $0x60] ss:$8 sps:$4 sm:$0xff]   ;;  %v1665_v33 = vld [vmem:[%s2103_s17 + $0x74] ss:$8 sps:$4 sm:$0xff]  }
  0x73   : > { %v1661_v30 = vld [vmem:[%s2103_s17 + $0x164] ss:$8 sps:$4 sm:$0xff]   ;;  %v1664_v32 = vld [vmem:[%s2103_s17 + $0x160] ss:$8 sps:$4 sm:$0xff]   ;;  %v1667_v34 = vld [vmem:[%s2103_s17 + $0x174] ss:$8 sps:$4 sm:$0xff]  }
  0x74   : > { %1034 = vmatpush1.bf16.msra.mxu1 %v1639_v15  ;;  %v1669_v35 = vld [vmem:[%s2103_s17 + $0x70] ss:$8 sps:$4 sm:$0xff]   ;;  %v1671_v37 = vld [vmem:[%s2103_s17 + $0x84] ss:$8 sps:$4 sm:$0xff]   ;;  %v1675_v39 = vld [vmem:[%s2103_s17 + $0x80] ss:$8 sps:$4 sm:$0xff]  }
  0x75   : > { %1077 = vmatpush1.bf16.msra.mxu0 %v1640_v16  ;;  %1035 = vmatprep.subr.bf16.mxu1 %v1641_v17  ;;  %v1670_v36 = vld [vmem:[%s2103_s17 + $0x170] ss:$8 sps:$4 sm:$0xff]   ;;  %v1673_v38 = vld [vmem:[%s2103_s17 + $0x184] ss:$8 sps:$4 sm:$0xff]   ;;  %v1676_v40 = vld [vmem:[%s2103_s17 + $0x180] ss:$8 sps:$4 sm:$0xff]  }
  0x76   : > { %1078 = vmatprep.subr.bf16.mxu0 %v1643_v18  ;;  %v1677_v41 = vld [vmem:[%s2103_s17 + $0x94] ss:$8 sps:$4 sm:$0xff]   ;;  %v1681_v43 = vld [vmem:[%s2103_s17 + $0x90] ss:$8 sps:$4 sm:$0xff]   ;;  %v1683_v45 = vld [vmem:[%s2103_s17 + $0xa4] ss:$8 sps:$4 sm:$0xff]  }
  0x77   : > { %v1679_v42 = vld [vmem:[%s2103_s17 + $0x194] ss:$8 sps:$4 sm:$0xff]   ;;  %v1682_v44 = vld [vmem:[%s2103_s17 + $0x190] ss:$8 sps:$4 sm:$0xff]   ;;  %v1685_v46 = vld [vmem:[%s2103_s17 + $0x1a4] ss:$8 sps:$4 sm:$0xff]  }
  0x78   : > { %1036 = vmatpush1.bf16.msra.mxu1 %v1645_v19  ;;  %v1687_v47 = vld [vmem:[%s2103_s17 + $0xa0] ss:$8 sps:$4 sm:$0xff]   ;;  %v1689_v49 = vld [vmem:[%s2103_s17 + $0xb4] ss:$8 sps:$4 sm:$0xff]   ;;  %v1693_v51 = vld [vmem:[%s2103_s17 + $0xb0] ss:$8 sps:$4 sm:$0xff]  }
  0x79   : > { %1079 = vmatpush1.bf16.msra.mxu0 %v1646_v20  ;;  %1037 = vmatprep.subr.bf16.mxu1 %v1647_v21  ;;  %v1688_v48 = vld [vmem:[%s2103_s17 + $0x1a0] ss:$8 sps:$4 sm:$0xff]   ;;  %v1691_v50 = vld [vmem:[%s2103_s17 + $0x1b4] ss:$8 sps:$4 sm:$0xff]   ;;  %v1694_v53 = vld [vmem:[%s2103_s17 + $0x1b0] ss:$8 sps:$4 sm:$0xff]  }
  0x7a   : > { %1080 = vmatprep.subr.bf16.mxu0 %v1649_v22  ;;  %v1721_v52 = vld [vmem:[%s2101_s19 + $0x4] ss:$16 sps:$4 sm:$0xff]   ;;  %v1724_v56 = vld [vmem:[%s2101_s19 + $0xc] ss:$16 sps:$4 sm:$0xff]   ;;  %v1699_v57 = vld [vmem:[%s2103_s17 + $0xc0] ss:$8 sps:$4 sm:$0xff]  }
  0x7b   : > { %v1695_v54 = vld [vmem:[%s2103_s17 + $0xc4] ss:$8 sps:$4 sm:$0xff]   ;;  %1061 = vmatprep.mubr.bf16.mxu1 %v1721_v52  ;;  %1104 = vmatprep.mubr.bf16.mxu0 %v1724_v56  ;;  %v1700_v58 = vld [vmem:[%s2103_s17 + $0x1c0] ss:$8 sps:$4 sm:$0xff]   ;;  %v1701_v59 = vld [vmem:[%s2103_s17 + $0xd4] ss:$8 sps:$4 sm:$0xff]  }
  0x7c   : > { %1038 = vmatpush1.bf16.msra.mxu1 %v1651_v23  ;;  %v1697_v55 = vld [vmem:[%s2103_s17 + $0x1c4] ss:$8 sps:$4 sm:$0xff]   ;;  %v1703_v60 = vld [vmem:[%s2103_s17 + $0x1d4] ss:$8 sps:$4 sm:$0xff]   ;;  %v1705_v61 = vld [vmem:[%s2103_s17 + $0xd0] ss:$8 sps:$4 sm:$0xff]  }
  0x7d   : > { %1081 = vmatpush1.bf16.msra.mxu0 %v1652_v24  ;;  %1039 = vmatprep.subr.bf16.mxu1 %v1653_v25  ;;  %v1706_v62 = vld [vmem:[%s2103_s17 + $0x1d0] ss:$8 sps:$4 sm:$0xff]   ;;  %v1707_v63 = vld [vmem:[%s2103_s17 + $0xe4] ss:$8 sps:$4 sm:$0xff]   ;;  %v1711_v1 = vld [vmem:[%s2103_s17 + $0xe0] ss:$8 sps:$4 sm:$0xff]  }
  0x7e   : > { %1082 = vmatprep.subr.bf16.mxu0 %v1655_v26  ;;  %v1709_v0 = vld [vmem:[%s2103_s17 + $0x1e4] ss:$8 sps:$4 sm:$0xff]   ;;  %v1712_v2 = vld [vmem:[%s2103_s17 + $0x1e0] ss:$8 sps:$4 sm:$0xff]   ;;  %v1713_v3 = vld [vmem:[%s2103_s17 + $0xf4] ss:$8 sps:$4 sm:$0xff]  }
  0x7f   : > { %v1715_v4 = vld [vmem:[%s2103_s17 + $0x1f4] ss:$8 sps:$4 sm:$0xff]   ;;  %v1717_v5 = vld [vmem:[%s2103_s17 + $0xf0] ss:$8 sps:$4 sm:$0xff]   ;;  %v617_v10 = vld [vmem:[#allocation2] sm:$0xff]  ;;  %p1517_p5 = scmp.ne.s32.totalorder %s1795_s21, 4 }
  0x80   : > { %1040 = vmatpush1.bf16.msra.mxu1 %v1657_v27  ;;  %v1718_v6 = vld [vmem:[%s2103_s17 + $0x1f0] ss:$8 sps:$4 sm:$0xff]   ;;  %v618_v14 = vld [vmem:[#allocation2 + $0x8] sm:$0xff] }
  0x81   : > { %1083 = vmatpush1.bf16.msra.mxu0 %v1658_v28  ;;  %1041 = vmatprep.subr.bf16.mxu1 %v1659_v29  ;;  %v1719_v7 = vld [vmem:[%s2101_s19] ss:$16 sps:$4 sm:$0xff]   ;;  %v1722_v8 = vld [vmem:[%s2101_s19 + $0x8] ss:$16 sps:$4 sm:$0xff]  }
  0x82   : > { %1084 = vmatprep.subr.bf16.mxu0 %v1661_v30  ;;  %v619_v18 = vld [vmem:[#allocation2 + $0x10] sm:$0xff]  ;;  %v620_v23 = vld [vmem:[#allocation2 + $0x18] sm:$0xff] }
  0x84   : > { %1042 = vmatpush1.bf16.msra.mxu1 %v1663_v31 }
  0x85   : > { %1085 = vmatpush1.bf16.msra.mxu0 %v1664_v32  ;;  %1043 = vmatprep.subr.bf16.mxu1 %v1665_v33 }
  0x86   : > { %1086 = vmatprep.subr.bf16.mxu0 %v1667_v34 }
  0x88   : > { %1044 = vmatpush1.bf16.msra.mxu1 %v1669_v35 }
  0x89   : > { %1087 = vmatpush1.bf16.msra.mxu0 %v1670_v36  ;;  %1045 = vmatprep.subr.bf16.mxu1 %v1671_v37 }
  0x8a   : > { %1088 = vmatprep.subr.bf16.mxu0 %v1673_v38 }
  0x8c   : > { %1046 = vmatpush1.bf16.msra.mxu1 %v1675_v39 }
  0x8d   : > { %1089 = vmatpush1.bf16.msra.mxu0 %v1676_v40  ;;  %1047 = vmatprep.subr.bf16.mxu1 %v1677_v41 }
  0x8e   : > { %1090 = vmatprep.subr.bf16.mxu0 %v1679_v42 }
  0x90   : > { %1048 = vmatpush1.bf16.msra.mxu1 %v1681_v43 }
  0x91   : > { %1091 = vmatpush1.bf16.msra.mxu0 %v1682_v44  ;;  %1049 = vmatprep.subr.bf16.mxu1 %v1683_v45 }
  0x92   : > { %1092 = vmatprep.subr.bf16.mxu0 %v1685_v46 }
  0x94   : > { %1050 = vmatpush1.bf16.msra.mxu1 %v1687_v47 }
  0x95   : > { %1093 = vmatpush1.bf16.msra.mxu0 %v1688_v48  ;;  %1051 = vmatprep.subr.bf16.mxu1 %v1689_v49 }
  0x96   : > { %1094 = vmatprep.subr.bf16.mxu0 %v1691_v50 }
  0x98   : > { %1052 = vmatpush1.bf16.msra.mxu1 %v1693_v51 }
  0x99   : > { %1095 = vmatpush1.bf16.msra.mxu0 %v1694_v53  ;;  %1053 = vmatprep.subr.bf16.mxu1 %v1695_v54 }
  0x9a   : > { %1096 = vmatprep.subr.bf16.mxu0 %v1697_v55 }
  0x9c   : > { %1054 = vmatpush1.bf16.msra.mxu1 %v1699_v57 }
  0x9d   : > { %1097 = vmatpush1.bf16.msra.mxu0 %v1700_v58  ;;  %1055 = vmatprep.subr.bf16.mxu1 %v1701_v59 }
  0x9e   : > { %1098 = vmatprep.subr.bf16.mxu0 %v1703_v60 }
  0xa0   : > { %1056 = vmatpush1.bf16.msra.mxu1 %v1705_v61 }
  0xa1   : > { %1099 = vmatpush1.bf16.msra.mxu0 %v1706_v62  ;;  %1057 = vmatprep.subr.bf16.mxu1 %v1707_v63 }
  0xa2   : > { %1100 = vmatprep.subr.bf16.mxu0 %v1709_v0 }
  0xa4   : > { %1058 = vmatpush1.bf16.msra.mxu1 %v1711_v1 }
  0xa5   : > { %1101 = vmatpush1.bf16.msra.mxu0 %v1712_v2  ;;  %1059 = vmatprep.subr.bf16.mxu1 %v1713_v3 }
  0xa6   : > { %1102 = vmatprep.subr.bf16.mxu0 %v1715_v4 }
  0xa8   : > { %1060 = vmatpush1.bf16.msra.mxu1 %v1717_v5 }
  0xa9   : > { %1103 = vmatpush1.bf16.msra.mxu0 %v1718_v6 }
  0xab   : > { %1062 = vmatmul.mubr.bf16.vlgmr.msra.gmra.mrb[0].mxu1 %v1719_v7 }
  0xac   : > { %1105 = vmatmul.mubr.bf16.vlgmr.msra.gmra.mrb[0].mxu0 %v1722_v8 }
 0x17e   : > { %v1063_v9 = vpop.f32.mrb[0].mxu1 }
 0x17f   : > { %v1106_v11 = vpop.f32.mrb[0].mxu0  ;;  %v1065_v13 = vpop.f32.mrb[1].mxu1 }
 0x180   : > { %v1107_v12 = vadd.f32 %v1106_v11, %v1063_v9  ;;  %v1108_v15 = vpop.f32.mrb[1].mxu0  ;;  %v1067_v17 = vpop.f32.mrb[2].mxu1 }
 0x181   : > { %v1109_v16 = vadd.f32 %v1108_v15, %v1065_v13  ;;  %v1110_v19 = vpop.f32.mrb[2].mxu0  ;;  %v1069_v22 = vpop.f32.mrb[3].mxu1  ;;  %1126 = sbr.rel (%p1517_p5) target bundleno = 416 (0x1a0), region = 97 }
 0x182   : > { %v1115_v20 = vadd.f32 %v1107_v12, %v617_v10  ;;  %v1111_v21 = vadd.f32 %v1110_v19, %v1067_v17  ;;  %v1112_v24 = vpop.f32.mrb[3].mxu0 }
 0x183   : > { %v1116_v25 = vadd.f32 %v1109_v16, %v618_v14  ;;  %v1113_v26 = vadd.f32 %v1112_v24, %v1069_v22 }
 0x184   : > { %1119 = vst [vmem:[#allocation2] sm:$0xff] %v1115_v20  ;;  %v1117_v27 = vadd.f32 %v1111_v21, %v619_v18 }
 0x185   : > { %1120 = vst [vmem:[#allocation2 + $0x8] sm:$0xff] %v1116_v25  ;;  %v1118_v28 = vadd.f32 %v1113_v26, %v620_v23 }
 0x186   : > { %1121 = vst [vmem:[#allocation2 + $0x10] sm:$0xff] %v1117_v27 }
 0x187   : > { %1122 = vst [vmem:[#allocation2 + $0x18] sm:$0xff] %v1118_v28 }
 0x18b   : > { %v1127_v29 = vld [vmem:[#allocation2] sm:$0xff] }
 0x18c   : > { %v1128_v31 = vld [vmem:[#allocation2 + $0x8] sm:$0xff]  ;;  %v1159_v33 = vmul.f32 %v1127_v29, %v1127_v29 }
 0x18d   : > { %v1129_v30 = vld [vmem:[#allocation2 + $0x10] sm:$0xff]  ;;  %v1527_v35 = vpack.c.bf16 %v1128_v31, %v1127_v29  ;;  %v1160_v37 = vmul.f32 %v1128_v31, %v1128_v31 }
 0x18e   : > { %v1145_v32 = vadd.f32 %v1129_v30, %v1127_v29  ;;  %v1161_v34 = vmul.f32 %v1129_v30, %v1129_v30  ;;  %v1130_v36 = vld [vmem:[#allocation2 + $0x18] sm:$0xff] }
 0x18f   : > { %v1528_v38 = vpack.c.bf16 %v1130_v36, %v1129_v30  ;;  %v1152_v39 = vadd.f32 %v1130_v36, %v1128_v31  ;;  %v1162_v40 = vmul.f32 %v1130_v36, %v1130_v36  ;;  %1143 = vst [vmem:[%s2105_s15] sm:$0xff] %v1527_v35 }
 0x190   : > { %v1146_v41 = vrot.slane %v1145_v32, 4  ;;  %v1163_v42 = vadd.f32 %v1161_v34, %v1159_v33 }
 0x191   : > { %1144 = vst [vmem:[%s2105_s15 + $0x8] sm:$0xff] %v1528_v38  ;;  %v1153_v43 = vrot.slane %v1152_v39, 4  ;;  %v1170_v44 = vadd.f32 %v1162_v40, %v1160_v37 }
 0x192   : > { %v1147_v45 = vadd.f32 %v1146_v41, %v1145_v32  ;;  %v1164_v46 = vrot.slane %v1163_v42, 4 }
 0x193   : > { %v1154_v47 = vadd.f32 %v1153_v43, %v1152_v39  ;;  %v1171_v48 = vrot.slane %v1170_v44, 4 }
 0x194   : > { %v1148_v49 = vrot.slane %v1147_v45, 2  ;;  %v1165_v50 = vadd.f32 %v1164_v46, %v1163_v42 }
 0x195   : > { %v1155_v51 = vrot.slane %v1154_v47, 2  ;;  %v1172_v52 = vadd.f32 %v1171_v48, %v1170_v44 }
 0x196   : > { %v1149_v53 = vadd.f32 %v1148_v49, %v1147_v45  ;;  %v1166_v54 = vrot.slane %v1165_v50, 2 }
 0x197   : > { %v1156_v55 = vadd.f32 %v1155_v51, %v1154_v47  ;;  %v1173_v56 = vrot.slane %v1172_v52, 2 }
 0x198   : > { %v1150_v57 = vrot.slane %v1149_v53, 1  ;;  %v1167_v58 = vadd.f32 %v1166_v54, %v1165_v50 }
 0x199   : > { %v1157_v59 = vrot.slane %v1156_v55, 1  ;;  %v1174_v60 = vadd.f32 %v1173_v56, %v1172_v52 }
 0x19a   : > { %v1151_v61 = vadd.f32 %v1150_v57, %v1149_v53  ;;  %v1168_v62 = vrot.slane %v1167_v58, 1 }
 0x19b   : > { %v1158_v63 = vadd.f32 %v1157_v59, %v1156_v55  ;;  %v1175_v0 = vrot.slane %v1174_v60, 1 }
 0x19c   : > { %1177 = vst [vmem:[%s2094_s8] sm:$0xff] %v1151_v61  ;;  %v1169_v1 = vadd.f32 %v1168_v62, %v1167_v58 }
 0x19d   : > { %1178 = vst [vmem:[%s2094_s8 + $0x8] sm:$0xff] %v1158_v63  ;;  %v1176_v2 = vadd.f32 %v1175_v0, %v1174_v60 }
 0x19e   : > { %1179 = vst [vmem:[%s2099_s24] sm:$0xff] %v1169_v1 }
 0x19f   : > { %1180 = vst [vmem:[%s2099_s24 + $0x8] sm:$0xff] %v1176_v2 }
 0x1a0 PF: > { %1205 = sbr.rel (!%p1933_p12) target bundleno = 423 (0x1a7), region = 101  ;;  %s1529_s1 = sshll.u32 (%p1933_p12), %s1799_s22, 3  ;;  %v1241_v3 = vld [vmem:[%s2105_s15] sm:$0xff] (%p1933_p12)  ;;  %v1243_v4 = vld [vmem:[%s2105_s15 + $0x8] sm:$0xff] (%p1933_p12) }
 0x1a1   : > { %s1211_s28 = scalar_lea.vmem (%p1933_p12), %s2226_s2, %s1529_s1 }
 0x1a2   : > { %1242 = vst [vmem:[%s1211_s28] sm:$0xff] (%p1933_p12), %v1241_v3  ;;  %1244 = vst [vmem:[%s1211_s28 + $0x10] sm:$0xff] (%p1933_p12), %v1243_v4 }
 0x1a7 PF: > { %s15_s25 = sadd.s32 1, %s1811_s25   ;;  %s2242_s22 = sld [smem:[#allocation6_spill]] }
 0x1a8   : > { %p12_p6 = scmp.ge.s32.totalorder %s15_s25, 12   ;;  %s2243_s24 = sld [smem:[#allocation7_spill]] }
 0x1a9   : > { %s2244_s14 = sld [smem:[#allocation8_spill]]  ;;  %s2245_s15 = smov %s1775_s16 }
 0x1aa   : > { %s2246_s16 = smov %s1931_s13  ;;  %s2247_s17 = smov %s1783_s18 }
 0x1ab   : > { %s2248_s18 = smov %s1928_s12  ;;  %s2249_s19 = smov %s1791_s20 }
 0x1ac   : > { %s2250_s20 = smov %s1914_s7  ;;  %s2251_s21 = smov %s1803_s23 }
 0x1ad   :  { %14 = sbr.rel (!%p12_p6) target bundleno = 9 (0x9), region = 202 }
 0x1ae   : > { %s2252_s23 = smov %s2243_s24 }
 0x1af   : > { %s2253_s24 = smov %s2244_s14 }

// kernel: forward.72
= control target key start
LH: loop header
LB: loop body
LE: loop exit
PB: predicated region body
PF: predicated region fallthrough
CT: control target
= control target key end

     0   :  { %s2224_s0 = inlined_call_operand.vmem [shape: bf16[16,4608], index: 0, kind: input, shape index: {}]   ;;  %s2225_s1 = inlined_call_operand.vmem [shape: bf16[4608,512], index: 1, kind: input, shape index: {}]   ;;  %s2226_s2 = inlined_call_operand.vmem [shape: bf16[16,512], index: 2, kind: output, shape index: {0}]   ;;  %s2227_s3 = inlined_call_operand.vmem [shape: f32[1,8,512], index: 3, kind: output, shape index: {1}]   ;;  %s2228_s4 = inlined_call_operand.vmem [shape: f32[1,8,512], index: 4, kind: output, shape index: {2}]  }
   0x1   :  { %2232 = sst [smem:[#allocation9_spill]] %s2224_s0 }
   0x2   :  { %2233 = sst [smem:[#allocation10_spill]] %s2225_s1 }
   0x3   :  { %s1839_s15 = smov 0   ;;  %s1841_s16 = smov 0  }
   0x4   :  { %s1843_s17 = smov 0   ;;  %s1845_s18 = smov 0  }
   0x5   :  { %s1847_s19 = smov 0   ;;  %s1849_s20 = smov 0  }
   0x6   :  { %s1851_s21 = smov 0   ;;  %s1853_s22 = smov 0  }
   0x7   :  { %s1855_s23 = smov 0   ;;  %s1857_s24 = smov 0  }
   0x8   :  { %s1859_s25 = smov 0  }
   0x9 LB: > { %2234 = sst [smem:[#allocation6_spill]] %s1807_s24  ;;  %s1428_s26 = sadd.s32 4294967295, %s1811_s25   ;;  %s1811_s25 = sphi %s1859_s25, %s15_s25   ;;  %s1807_s24 = sphi %s1857_s24, %s2253_s24   ;;  %s1803_s23 = sphi %s1855_s23, %s2252_s23   ;;  %s1799_s22 = sphi %s1853_s22, %s2242_s22   ;;  %s1795_s21 = sphi %s1851_s21, %s2251_s21   ;;  %s1791_s20 = sphi %s1849_s20, %s2250_s20   ;;  %s1787_s19 = sphi %s1847_s19, %s2249_s19   ;;  %s1783_s18 = sphi %s1845_s18, %s2248_s18   ;;  %s1779_s17 = sphi %s1843_s17, %s2247_s17   ;;  %s1775_s16 = sphi %s1841_s16, %s2246_s16   ;;  %s1771_s15 = sphi %s1839_s15, %s2245_s15  }
   0xa   : > { %s27_s27 = sadd.s32 1, %s1803_s23  ;;  %s30_s28 = sadd.s32 1, %s1807_s24 }
   0xb   : > { %p28_p0 = scmp.ge.s32.totalorder %s27_s27, 9  ;;  %s43_s29 = sadd.s32 1, %s1791_s20 }
   0xc   : > { %p50_p1 = scmp.ne.s32.totalorder %s1791_s20, %s1787_s19  ;;  %p51_p2 = scmp.eq.s32.totalorder %s1811_s25, 0 }
   0xd   : > { %s2255_s27 = smov (%p28_p0, %s27_s27), 0  ;;  %s2257_s28 = smov (!%p28_p0, %s30_s28), %s1807_s24 }
   0xe   : > { %2235 = sst [smem:[#allocation7_spill]] %s2255_s27  ;;  %s39_s30 = ssub.s32 %s1803_s23, %s2255_s27 }
   0xf   : > { %p32_p3 = scmp.ge.s32.totalorder %s2257_s28, 2  ;;  %p41_p4 = scmp.eq.s32.totalorder %s39_s30, 0 }
  0x10   : > { %p1906_p5 = por %p51_p2, %p50_p1  ;;  %s71_s6 = sadd.s32 1, %s1783_s18 }
  0x11   : > { %s2259_s28 = smov (%p32_p3, %s2257_s28), 0  ;;  %p78_p6 = scmp.ne.s32.totalorder %s1783_s18, %s1779_s17 }
  0x12   : > { %2237 = sst [smem:[#allocation8_spill]] %s2259_s28  ;;  %s67_s8 = ssub.s32 %s1807_s24, %s2259_s28 }
  0x13   : > { %s1914_s7 = scalar_select %p41_p4, %s1791_s20, %s43_s29  }
  0x14   : > { %s68_s9 = sor.u32 %s67_s8, %s39_s30  ;;  %p97_p7 = scmp.eq.s32.totalorder %s67_s8, 0 }
  0x15   : > { %p69_p8 = scmp.eq.s32.totalorder %s68_s9, 0  ;;  %p1920_p9 = por %p78_p6, %p51_p2 }
  0x16   : > { %s99_s11 = sadd.s32 1, %s1775_s16  ;;  %p109_p10 = scmp.ne.s32.totalorder %s1775_s16, %s1771_s15 }
  0x17   : > { %s1928_s12 = scalar_select %p69_p8, %s1783_s18, %s71_s6  }
  0x18   : > { %s1931_s13 = scalar_select %p97_p7, %s1775_s16, %s99_s11  }
  0x19   : > { %p110_p11 = scmp.eq.s32.totalorder %s1428_s26, 17  ;;  %p1431_p13 = scmp.ge.s32.totalorder %s1811_s25, 18 }
  0x1b   : > { %p1933_p12 = por %p110_p11, %p109_p10  ;;  %188 = sbr.rel (%p1431_p13) target bundleno = 88 (0x58), region = 16 }
  0x22   : > { %191 = sbr.rel (!%p1906_p5) target bundleno = 46 (0x2e), region = 20  ;;  %s193_s29 = sand.u32 (%p1906_p5), 1, %s1791_s20  }
  0x23   : > { %s1525_s30 = sshll.u32 (%p1906_p5), %s1803_s23, 4  ;;  %s1432_s8 = sshll.u32 (%p1906_p5), %s193_s29, 5 }
  0x24   : > { %s2240_s0 = sld [smem:[#allocation9_spill]] (%p1906_p5)  ;;  %s195_s26 = scalar_lea.vmem (%p1906_p5), [#allocation3], %s1432_s8 }
  0x2a   : > { %s201_s11 = scalar_lea.vmem %s2240_s0, %s1525_s30 }
  0x2b   : > { %v214_v0 = vld [vmem:[%s201_s11] sm:$0xff]  ;;  %v216_v1 = vld [vmem:[%s201_s11 + $0x8] sm:$0xff]  ;;  %v218_v2 = vld [vmem:[%s201_s11 + $0x90] sm:$0xff] }
  0x2c   : > { %215 = vst [vmem:[%s195_s26] sm:$0xff] %v214_v0  ;;  %217 = vst [vmem:[%s195_s26 + $0x8] sm:$0xff] %v216_v1  ;;  %v220_v3 = vld [vmem:[%s201_s11 + $0x98] sm:$0xff] }
  0x2d   : > { %219 = vst [vmem:[%s195_s26 + $0x10] sm:$0xff] %v218_v2  ;;  %221 = vst [vmem:[%s195_s26 + $0x18] sm:$0xff] %v220_v3 }
  0x2e PF: > { %227 = sbr.rel (!%p1920_p9) target bundleno = 88 (0x58), region = 43  ;;  %s229_s5 = sand.u32 (%p1920_p9), 1, %s1783_s18  }
  0x2f   : > { %s1437_s29 = sshll.u32 (%p1920_p9), %s1807_s24, 1  ;;  %s1435_s6 = sshll.u32 (%p1920_p9), %s229_s5, 9 }
  0x30   : > { %s1526_s30 = sshll.u32 (%p1920_p9), %s1803_s23, 8  ;;  %s2241_s1 = sld [smem:[#allocation10_spill]] (%p1920_p9) }
  0x31   : > { %s235_s9 = sadd.s32 (%p1920_p9), %s1526_s30, %s1437_s29  ;;  %s1958_s10 = scalar_lea.vmem (%p1920_p9), [#allocation4], %s1435_s6 }
  0x32   : > { %s1439_s0 = sshll.u32 (%p1920_p9), %s235_s9, 2 }
  0x36   : > { %s1953_s27 = scalar_lea.vmem %s2241_s1, %s1439_s0 }
  0x37   : > { %v391_v4 = vld [vmem:[%s1953_s27] sm:$0xff]  ;;  %v393_v5 = vld [vmem:[%s1953_s27 + $0x10] sm:$0xff] }
  0x38   : > { %v395_v6 = vld [vmem:[%s1953_s27 + $0x20] sm:$0xff]  ;;  %392 = vst [vmem:[%s1958_s10] sm:$0xff] %v391_v4  ;;  %394 = vst [vmem:[%s1958_s10 + $0x8] sm:$0xff] %v393_v5  ;;  %v397_v7 = vld [vmem:[%s1953_s27 + $0x30] sm:$0xff] }
  0x39   : > { %396 = vst [vmem:[%s1958_s10 + $0x10] sm:$0xff] %v395_v6  ;;  %v399_v8 = vld [vmem:[%s1953_s27 + $0x40] sm:$0xff]  ;;  %v401_v9 = vld [vmem:[%s1953_s27 + $0x50] sm:$0xff]  ;;  %398 = vst [vmem:[%s1958_s10 + $0x18] sm:$0xff] %v397_v7 }
  0x3a   : > { %400 = vst [vmem:[%s1958_s10 + $0x20] sm:$0xff] %v399_v8  ;;  %402 = vst [vmem:[%s1958_s10 + $0x28] sm:$0xff] %v401_v9  ;;  %v403_v10 = vld [vmem:[%s1953_s27 + $0x60] sm:$0xff]  ;;  %v405_v11 = vld [vmem:[%s1953_s27 + $0x70] sm:$0xff] }
  0x3b   : > { %v407_v12 = vld [vmem:[%s1953_s27 + $0x80] sm:$0xff]  ;;  %404 = vst [vmem:[%s1958_s10 + $0x30] sm:$0xff] %v403_v10  ;;  %406 = vst [vmem:[%s1958_s10 + $0x38] sm:$0xff] %v405_v11  ;;  %v409_v13 = vld [vmem:[%s1953_s27 + $0x90] sm:$0xff] }
  0x3c   : > { %408 = vst [vmem:[%s1958_s10 + $0x40] sm:$0xff] %v407_v12  ;;  %v411_v14 = vld [vmem:[%s1953_s27 + $0xa0] sm:$0xff]  ;;  %v413_v15 = vld [vmem:[%s1953_s27 + $0xb0] sm:$0xff]  ;;  %410 = vst [vmem:[%s1958_s10 + $0x48] sm:$0xff] %v409_v13 }
  0x3d   : > { %412 = vst [vmem:[%s1958_s10 + $0x50] sm:$0xff] %v411_v14  ;;  %414 = vst [vmem:[%s1958_s10 + $0x58] sm:$0xff] %v413_v15  ;;  %v415_v16 = vld [vmem:[%s1953_s27 + $0xc0] sm:$0xff]  ;;  %v417_v17 = vld [vmem:[%s1953_s27 + $0xd0] sm:$0xff] }
  0x3e   : > { %v419_v18 = vld [vmem:[%s1953_s27 + $0xe0] sm:$0xff]  ;;  %416 = vst [vmem:[%s1958_s10 + $0x60] sm:$0xff] %v415_v16  ;;  %418 = vst [vmem:[%s1958_s10 + $0x68] sm:$0xff] %v417_v17  ;;  %v421_v19 = vld [vmem:[%s1953_s27 + $0xf0] sm:$0xff] }
  0x3f   : > { %420 = vst [vmem:[%s1958_s10 + $0x70] sm:$0xff] %v419_v18  ;;  %v423_v20 = vld [vmem:[%s1953_s27 + $0x100] sm:$0xff]  ;;  %v425_v21 = vld [vmem:[%s1953_s27 + $0x110] sm:$0xff]  ;;  %422 = vst [vmem:[%s1958_s10 + $0x78] sm:$0xff] %v421_v19 }
  0x40   : > { %424 = vst [vmem:[%s1958_s10 + $0x80] sm:$0xff] %v423_v20  ;;  %426 = vst [vmem:[%s1958_s10 + $0x88] sm:$0xff] %v425_v21  ;;  %v427_v22 = vld [vmem:[%s1953_s27 + $0x120] sm:$0xff]  ;;  %v429_v23 = vld [vmem:[%s1953_s27 + $0x130] sm:$0xff] }
  0x41   : > { %v431_v24 = vld [vmem:[%s1953_s27 + $0x140] sm:$0xff]  ;;  %428 = vst [vmem:[%s1958_s10 + $0x90] sm:$0xff] %v427_v22  ;;  %430 = vst [vmem:[%s1958_s10 + $0x98] sm:$0xff] %v429_v23  ;;  %v433_v25 = vld [vmem:[%s1953_s27 + $0x150] sm:$0xff] }
  0x42   : > { %432 = vst [vmem:[%s1958_s10 + $0xa0] sm:$0xff] %v431_v24  ;;  %v435_v26 = vld [vmem:[%s1953_s27 + $0x160] sm:$0xff]  ;;  %v437_v27 = vld [vmem:[%s1953_s27 + $0x170] sm:$0xff]  ;;  %434 = vst [vmem:[%s1958_s10 + $0xa8] sm:$0xff] %v433_v25 }
  0x43   : > { %436 = vst [vmem:[%s1958_s10 + $0xb0] sm:$0xff] %v435_v26  ;;  %438 = vst [vmem:[%s1958_s10 + $0xb8] sm:$0xff] %v437_v27  ;;  %v439_v28 = vld [vmem:[%s1953_s27 + $0x180] sm:$0xff]  ;;  %v441_v29 = vld [vmem:[%s1953_s27 + $0x190] sm:$0xff] }
  0x44   : > { %v443_v30 = vld [vmem:[%s1953_s27 + $0x1a0] sm:$0xff]  ;;  %440 = vst [vmem:[%s1958_s10 + $0xc0] sm:$0xff] %v439_v28  ;;  %442 = vst [vmem:[%s1958_s10 + $0xc8] sm:$0xff] %v441_v29  ;;  %v445_v31 = vld [vmem:[%s1953_s27 + $0x1b0] sm:$0xff] }
  0x45   : > { %444 = vst [vmem:[%s1958_s10 + $0xd0] sm:$0xff] %v443_v30  ;;  %v447_v32 = vld [vmem:[%s1953_s27 + $0x1c0] sm:$0xff]  ;;  %v449_v33 = vld [vmem:[%s1953_s27 + $0x1d0] sm:$0xff]  ;;  %446 = vst [vmem:[%s1958_s10 + $0xd8] sm:$0xff] %v445_v31 }
  0x46   : > { %448 = vst [vmem:[%s1958_s10 + $0xe0] sm:$0xff] %v447_v32  ;;  %450 = vst [vmem:[%s1958_s10 + $0xe8] sm:$0xff] %v449_v33  ;;  %v451_v34 = vld [vmem:[%s1953_s27 + $0x1e0] sm:$0xff]  ;;  %v453_v35 = vld [vmem:[%s1953_s27 + $0x1f0] sm:$0xff] }
  0x47   : > { %v455_v36 = vld [vmem:[%s1953_s27 + $0x200] sm:$0xff]  ;;  %452 = vst [vmem:[%s1958_s10 + $0xf0] sm:$0xff] %v451_v34  ;;  %454 = vst [vmem:[%s1958_s10 + $0xf8] sm:$0xff] %v453_v35  ;;  %v457_v37 = vld [vmem:[%s1953_s27 + $0x210] sm:$0xff] }
  0x48   : > { %456 = vst [vmem:[%s1958_s10 + $0x100] sm:$0xff] %v455_v36  ;;  %v459_v38 = vld [vmem:[%s1953_s27 + $0x220] sm:$0xff]  ;;  %v461_v39 = vld [vmem:[%s1953_s27 + $0x230] sm:$0xff]  ;;  %458 = vst [vmem:[%s1958_s10 + $0x108] sm:$0xff] %v457_v37 }
  0x49   : > { %460 = vst [vmem:[%s1958_s10 + $0x110] sm:$0xff] %v459_v38  ;;  %462 = vst [vmem:[%s1958_s10 + $0x118] sm:$0xff] %v461_v39  ;;  %v463_v40 = vld [vmem:[%s1953_s27 + $0x240] sm:$0xff]  ;;  %v465_v41 = vld [vmem:[%s1953_s27 + $0x250] sm:$0xff] }
  0x4a   : > { %v467_v42 = vld [vmem:[%s1953_s27 + $0x260] sm:$0xff]  ;;  %464 = vst [vmem:[%s1958_s10 + $0x120] sm:$0xff] %v463_v40  ;;  %466 = vst [vmem:[%s1958_s10 + $0x128] sm:$0xff] %v465_v41  ;;  %v469_v43 = vld [vmem:[%s1953_s27 + $0x270] sm:$0xff] }
  0x4b   : > { %468 = vst [vmem:[%s1958_s10 + $0x130] sm:$0xff] %v467_v42  ;;  %v471_v44 = vld [vmem:[%s1953_s27 + $0x280] sm:$0xff]  ;;  %v473_v45 = vld [vmem:[%s1953_s27 + $0x290] sm:$0xff]  ;;  %470 = vst [vmem:[%s1958_s10 + $0x138] sm:$0xff] %v469_v43 }
  0x4c   : > { %472 = vst [vmem:[%s1958_s10 + $0x140] sm:$0xff] %v471_v44  ;;  %474 = vst [vmem:[%s1958_s10 + $0x148] sm:$0xff] %v473_v45  ;;  %v475_v46 = vld [vmem:[%s1953_s27 + $0x2a0] sm:$0xff]  ;;  %v477_v47 = vld [vmem:[%s1953_s27 + $0x2b0] sm:$0xff] }
  0x4d   : > { %v479_v48 = vld [vmem:[%s1953_s27 + $0x2c0] sm:$0xff]  ;;  %476 = vst [vmem:[%s1958_s10 + $0x150] sm:$0xff] %v475_v46  ;;  %478 = vst [vmem:[%s1958_s10 + $0x158] sm:$0xff] %v477_v47  ;;  %v481_v49 = vld [vmem:[%s1953_s27 + $0x2d0] sm:$0xff] }
  0x4e   : > { %480 = vst [vmem:[%s1958_s10 + $0x160] sm:$0xff] %v479_v48  ;;  %v483_v50 = vld [vmem:[%s1953_s27 + $0x2e0] sm:$0xff]  ;;  %v485_v51 = vld [vmem:[%s1953_s27 + $0x2f0] sm:$0xff]  ;;  %482 = vst [vmem:[%s1958_s10 + $0x168] sm:$0xff] %v481_v49 }
  0x4f   : > { %484 = vst [vmem:[%s1958_s10 + $0x170] sm:$0xff] %v483_v50  ;;  %486 = vst [vmem:[%s1958_s10 + $0x178] sm:$0xff] %v485_v51  ;;  %v487_v52 = vld [vmem:[%s1953_s27 + $0x300] sm:$0xff]  ;;  %v489_v53 = vld [vmem:[%s1953_s27 + $0x310] sm:$0xff] }
  0x50   : > { %v491_v54 = vld [vmem:[%s1953_s27 + $0x320] sm:$0xff]  ;;  %488 = vst [vmem:[%s1958_s10 + $0x180] sm:$0xff] %v487_v52  ;;  %490 = vst [vmem:[%s1958_s10 + $0x188] sm:$0xff] %v489_v53  ;;  %v493_v55 = vld [vmem:[%s1953_s27 + $0x330] sm:$0xff] }
  0x51   : > { %492 = vst [vmem:[%s1958_s10 + $0x190] sm:$0xff] %v491_v54  ;;  %v495_v56 = vld [vmem:[%s1953_s27 + $0x340] sm:$0xff]  ;;  %v497_v57 = vld [vmem:[%s1953_s27 + $0x350] sm:$0xff]  ;;  %494 = vst [vmem:[%s1958_s10 + $0x198] sm:$0xff] %v493_v55 }
  0x52   : > { %496 = vst [vmem:[%s1958_s10 + $0x1a0] sm:$0xff] %v495_v56  ;;  %498 = vst [vmem:[%s1958_s10 + $0x1a8] sm:$0xff] %v497_v57  ;;  %v499_v58 = vld [vmem:[%s1953_s27 + $0x360] sm:$0xff]  ;;  %v501_v59 = vld [vmem:[%s1953_s27 + $0x370] sm:$0xff] }
  0x53   : > { %v503_v60 = vld [vmem:[%s1953_s27 + $0x380] sm:$0xff]  ;;  %500 = vst [vmem:[%s1958_s10 + $0x1b0] sm:$0xff] %v499_v58  ;;  %502 = vst [vmem:[%s1958_s10 + $0x1b8] sm:$0xff] %v501_v59  ;;  %v505_v61 = vld [vmem:[%s1953_s27 + $0x390] sm:$0xff] }
  0x54   : > { %504 = vst [vmem:[%s1958_s10 + $0x1c0] sm:$0xff] %v503_v60  ;;  %v507_v62 = vld [vmem:[%s1953_s27 + $0x3a0] sm:$0xff]  ;;  %v509_v63 = vld [vmem:[%s1953_s27 + $0x3b0] sm:$0xff]  ;;  %506 = vst [vmem:[%s1958_s10 + $0x1c8] sm:$0xff] %v505_v61 }
  0x55   : > { %508 = vst [vmem:[%s1958_s10 + $0x1d0] sm:$0xff] %v507_v62  ;;  %510 = vst [vmem:[%s1958_s10 + $0x1d8] sm:$0xff] %v509_v63  ;;  %v511_v0 = vld [vmem:[%s1953_s27 + $0x3c0] sm:$0xff]  ;;  %v513_v1 = vld [vmem:[%s1953_s27 + $0x3d0] sm:$0xff] }
  0x56   : > { %v515_v2 = vld [vmem:[%s1953_s27 + $0x3e0] sm:$0xff]  ;;  %512 = vst [vmem:[%s1958_s10 + $0x1e0] sm:$0xff] %v511_v0  ;;  %514 = vst [vmem:[%s1958_s10 + $0x1e8] sm:$0xff] %v513_v1  ;;  %v517_v3 = vld [vmem:[%s1953_s27 + $0x3f0] sm:$0xff] }
  0x57   : > { %516 = vst [vmem:[%s1958_s10 + $0x1f0] sm:$0xff] %v515_v2  ;;  %518 = vst [vmem:[%s1958_s10 + $0x1f8] sm:$0xff] %v517_v3 }
  0x58 PF: > { %p1440_p0 = scmp.ge.s32.totalorder %s1811_s25, 1  ;;  %p523_p1 = scmp.lt.s32.totalorder %s1811_s25, 19 }
  0x5a   : > { %p524_p2 = pnand %p1440_p0, %p523_p1 }
  0x5b   : > { %s530_s0 = sand.u32 (!%p524_p2), 1, %s1787_s19   ;;  %s537_s28 = sand.u32 (!%p524_p2), 1, %s1779_s17  }
  0x5c   : > { %527 = sbr.rel (%p524_p2) target bundleno = 423 (0x1a7), region = 81  ;;  %s1441_s11 = sshll.u32 (!%p524_p2), %s530_s0, 5 }
  0x5d   : > { %s1442_s26 = sshll.u32 (!%p524_p2), %s537_s28, 9  ;;  %s558_s5 = sand.u32 (!%p524_p2), 1, %s1771_s15  }
  0x5e   : > { %s1444_s29 = sshll.u32 (!%p524_p2), %s1799_s22, 1  ;;  %s1443_s27 = sshll.u32 (!%p524_p2), %s558_s5, 4 }
  0x5f   : > { %p592_p3 = scmp.lt.s32.totalorder (!%p524_p2), %s1444_s29, 3  ;;  %s2101_s19 = scalar_lea.vmem (!%p524_p2), [#allocation3], %s1441_s11 }
  0x60   : > { %s2103_s17 = scalar_lea.vmem (!%p524_p2), [#allocation4], %s1442_s26  ;;  %s2105_s15 = scalar_lea.vmem (!%p524_p2), [#allocation5], %s1443_s27 }
  0x61   : > { %p1448_p4 = scmp.ne.s32.totalorder (!%p524_p2), %s1795_s21, 0 }
  0x63   : > { %s2261_s29 = smov (!%p592_p3, %s1444_s29), 3  ;;  %612 = sbr.rel (%p1448_p4) target bundleno = 106 (0x6a), region = 93 }
  0x64   : > { %s1445_s6 = sshll.u32 %s2261_s29, 3  ;;  %v1813_v4 = vmov (!%p1448_p4), 0.0  }
  0x65   : > { %s2094_s8 = scalar_lea.vmem %s2227_s3, %s1445_s6  ;;  %s2099_s24 = scalar_lea.vmem %s2228_s4, %s1445_s6  ;;  %613 = vst [vmem:[#allocation2] sm:$0xff] (!%p1448_p4), %v1813_v4  ;;  %614 = vst [vmem:[#allocation2 + $0x8] sm:$0xff] (!%p1448_p4), %v1813_v4 }
  0x66   : > { %615 = vst [vmem:[#allocation2 + $0x10] sm:$0xff] (!%p1448_p4), %v1813_v4  ;;  %616 = vst [vmem:[#allocation2 + $0x18] sm:$0xff] (!%p1448_p4), %v1813_v4 }
  0x6a PF: > { %v1623_v5 = vld [vmem:[%s2103_s17 + $0x4] ss:$8 sps:$4 sm:$0xff]   ;;  %v1627_v7 = vld [vmem:[%s2103_s17] ss:$8 sps:$4 sm:$0xff]   ;;  %v1629_v9 = vld [vmem:[%s2103_s17 + $0x14] ss:$8 sps:$4 sm:$0xff]  }
  0x6b   : > { %v1625_v6 = vld [vmem:[%s2103_s17 + $0x104] ss:$8 sps:$4 sm:$0xff]   ;;  %1029 = vmatprep.subr.bf16.mxu1 %v1623_v5  ;;  %v1628_v8 = vld [vmem:[%s2103_s17 + $0x100] ss:$8 sps:$4 sm:$0xff]   ;;  %v1631_v10 = vld [vmem:[%s2103_s17 + $0x114] ss:$8 sps:$4 sm:$0xff]  }
  0x6c   : > { %1072 = vmatprep.subr.bf16.mxu0 %v1625_v6  ;;  %1030 = vmatpush1.bf16.msra.mxu1 %v1627_v7  ;;  %v1633_v11 = vld [vmem:[%s2103_s17 + $0x10] ss:$8 sps:$4 sm:$0xff]   ;;  %v1635_v13 = vld [vmem:[%s2103_s17 + $0x24] ss:$8 sps:$4 sm:$0xff]   ;;  %v1639_v15 = vld [vmem:[%s2103_s17 + $0x20] ss:$8 sps:$4 sm:$0xff]  }
  0x6d   : > { %1073 = vmatpush1.bf16.msra.mxu0 %v1628_v8  ;;  %1031 = vmatprep.subr.bf16.mxu1 %v1629_v9  ;;  %v1634_v12 = vld [vmem:[%s2103_s17 + $0x110] ss:$8 sps:$4 sm:$0xff]   ;;  %v1637_v14 = vld [vmem:[%s2103_s17 + $0x124] ss:$8 sps:$4 sm:$0xff]   ;;  %v1640_v16 = vld [vmem:[%s2103_s17 + $0x120] ss:$8 sps:$4 sm:$0xff]  }
  0x6e   : > { %1074 = vmatprep.subr.bf16.mxu0 %v1631_v10  ;;  %v1641_v17 = vld [vmem:[%s2103_s17 + $0x34] ss:$8 sps:$4 sm:$0xff]   ;;  %v1645_v19 = vld [vmem:[%s2103_s17 + $0x30] ss:$8 sps:$4 sm:$0xff]   ;;  %v1647_v21 = vld [vmem:[%s2103_s17 + $0x44] ss:$8 sps:$4 sm:$0xff]  }
  0x6f   : > { %v1643_v18 = vld [vmem:[%s2103_s17 + $0x134] ss:$8 sps:$4 sm:$0xff]   ;;  %v1646_v20 = vld [vmem:[%s2103_s17 + $0x130] ss:$8 sps:$4 sm:$0xff]   ;;  %v1649_v22 = vld [vmem:[%s2103_s17 + $0x144] ss:$8 sps:$4 sm:$0xff]  }
  0x70   : > { %1032 = vmatpush1.bf16.msra.mxu1 %v1633_v11  ;;  %v1651_v23 = vld [vmem:[%s2103_s17 + $0x40] ss:$8 sps:$4 sm:$0xff]   ;;  %v1653_v25 = vld [vmem:[%s2103_s17 + $0x54] ss:$8 sps:$4 sm:$0xff]   ;;  %v1657_v27 = vld [vmem:[%s2103_s17 + $0x50] ss:$8 sps:$4 sm:$0xff]  }
  0x71   : > { %1075 = vmatpush1.bf16.msra.mxu0 %v1634_v12  ;;  %1033 = vmatprep.subr.bf16.mxu1 %v1635_v13  ;;  %v1652_v24 = vld [vmem:[%s2103_s17 + $0x140] ss:$8 sps:$4 sm:$0xff]   ;;  %v1655_v26 = vld [vmem:[%s2103_s17 + $0x154] ss:$8 sps:$4 sm:$0xff]   ;;  %v1658_v28 = vld [vmem:[%s2103_s17 + $0x150] ss:$8 sps:$4 sm:$0xff]  }
  0x72   : > { %1076 = vmatprep.subr.bf16.mxu0 %v1637_v14  ;;  %v1659_v29 = vld [vmem:[%s2103_s17 + $0x64] ss:$8 sps:$4 sm:$0xff]   ;;  %v1663_v31 = vld [vmem:[%s2103_s17 + $0x60] ss:$8 sps:$4 sm:$0xff]   ;;  %v1665_v33 = vld [vmem:[%s2103_s17 + $0x74] ss:$8 sps:$4 sm:$0xff]  }
  0x73   : > { %v1661_v30 = vld [vmem:[%s2103_s17 + $0x164] ss:$8 sps:$4 sm:$0xff]   ;;  %v1664_v32 = vld [vmem:[%s2103_s17 + $0x160] ss:$8 sps:$4 sm:$0xff]   ;;  %v1667_v34 = vld [vmem:[%s2103_s17 + $0x174] ss:$8 sps:$4 sm:$0xff]  }
  0x74   : > { %1034 = vmatpush1.bf16.msra.mxu1 %v1639_v15  ;;  %v1669_v35 = vld [vmem:[%s2103_s17 + $0x70] ss:$8 sps:$4 sm:$0xff]   ;;  %v1671_v37 = vld [vmem:[%s2103_s17 + $0x84] ss:$8 sps:$4 sm:$0xff]   ;;  %v1675_v39 = vld [vmem:[%s2103_s17 + $0x80] ss:$8 sps:$4 sm:$0xff]  }
  0x75   : > { %1077 = vmatpush1.bf16.msra.mxu0 %v1640_v16  ;;  %1035 = vmatprep.subr.bf16.mxu1 %v1641_v17  ;;  %v1670_v36 = vld [vmem:[%s2103_s17 + $0x170] ss:$8 sps:$4 sm:$0xff]   ;;  %v1673_v38 = vld [vmem:[%s2103_s17 + $0x184] ss:$8 sps:$4 sm:$0xff]   ;;  %v1676_v40 = vld [vmem:[%s2103_s17 + $0x180] ss:$8 sps:$4 sm:$0xff]  }
  0x76   : > { %1078 = vmatprep.subr.bf16.mxu0 %v1643_v18  ;;  %v1677_v41 = vld [vmem:[%s2103_s17 + $0x94] ss:$8 sps:$4 sm:$0xff]   ;;  %v1681_v43 = vld [vmem:[%s2103_s17 + $0x90] ss:$8 sps:$4 sm:$0xff]   ;;  %v1683_v45 = vld [vmem:[%s2103_s17 + $0xa4] ss:$8 sps:$4 sm:$0xff]  }
  0x77   : > { %v1679_v42 = vld [vmem:[%s2103_s17 + $0x194] ss:$8 sps:$4 sm:$0xff]   ;;  %v1682_v44 = vld [vmem:[%s2103_s17 + $0x190] ss:$8 sps:$4 sm:$0xff]   ;;  %v1685_v46 = vld [vmem:[%s2103_s17 + $0x1a4] ss:$8 sps:$4 sm:$0xff]  }
  0x78   : > { %1036 = vmatpush1.bf16.msra.mxu1 %v1645_v19  ;;  %v1687_v47 = vld [vmem:[%s2103_s17 + $0xa0] ss:$8 sps:$4 sm:$0xff]   ;;  %v1689_v49 = vld [vmem:[%s2103_s17 + $0xb4] ss:$8 sps:$4 sm:$0xff]   ;;  %v1693_v51 = vld [vmem:[%s2103_s17 + $0xb0] ss:$8 sps:$4 sm:$0xff]  }
  0x79   : > { %1079 = vmatpush1.bf16.msra.mxu0 %v1646_v20  ;;  %1037 = vmatprep.subr.bf16.mxu1 %v1647_v21  ;;  %v1688_v48 = vld [vmem:[%s2103_s17 + $0x1a0] ss:$8 sps:$4 sm:$0xff]   ;;  %v1691_v50 = vld [vmem:[%s2103_s17 + $0x1b4] ss:$8 sps:$4 sm:$0xff]   ;;  %v1694_v53 = vld [vmem:[%s2103_s17 + $0x1b0] ss:$8 sps:$4 sm:$0xff]  }
  0x7a   : > { %1080 = vmatprep.subr.bf16.mxu0 %v1649_v22  ;;  %v1721_v52 = vld [vmem:[%s2101_s19 + $0x4] ss:$16 sps:$4 sm:$0xff]   ;;  %v1724_v56 = vld [vmem:[%s2101_s19 + $0xc] ss:$16 sps:$4 sm:$0xff]   ;;  %v1699_v57 = vld [vmem:[%s2103_s17 + $0xc0] ss:$8 sps:$4 sm:$0xff]  }
  0x7b   : > { %v1695_v54 = vld [vmem:[%s2103_s17 + $0xc4] ss:$8 sps:$4 sm:$0xff]   ;;  %1061 = vmatprep.mubr.bf16.mxu1 %v1721_v52  ;;  %1104 = vmatprep.mubr.bf16.mxu0 %v1724_v56  ;;  %v1700_v58 = vld [vmem:[%s2103_s17 + $0x1c0] ss:$8 sps:$4 sm:$0xff]   ;;  %v1701_v59 = vld [vmem:[%s2103_s17 + $0xd4] ss:$8 sps:$4 sm:$0xff]  }
  0x7c   : > { %1038 = vmatpush1.bf16.msra.mxu1 %v1651_v23  ;;  %v1697_v55 = vld [vmem:[%s2103_s17 + $0x1c4] ss:$8 sps:$4 sm:$0xff]   ;;  %v1703_v60 = vld [vmem:[%s2103_s17 + $0x1d4] ss:$8 sps:$4 sm:$0xff]   ;;  %v1705_v61 = vld [vmem:[%s2103_s17 + $0xd0] ss:$8 sps:$4 sm:$0xff]  }
  0x7d   : > { %1081 = vmatpush1.bf16.msra.mxu0 %v1652_v24  ;;  %1039 = vmatprep.subr.bf16.mxu1 %v1653_v25  ;;  %v1706_v62 = vld [vmem:[%s2103_s17 + $0x1d0] ss:$8 sps:$4 sm:$0xff]   ;;  %v1707_v63 = vld [vmem:[%s2103_s17 + $0xe4] ss:$8 sps:$4 sm:$0xff]   ;;  %v1711_v1 = vld [vmem:[%s2103_s17 + $0xe0] ss:$8 sps:$4 sm:$0xff]  }
  0x7e   : > { %1082 = vmatprep.subr.bf16.mxu0 %v1655_v26  ;;  %v1709_v0 = vld [vmem:[%s2103_s17 + $0x1e4] ss:$8 sps:$4 sm:$0xff]   ;;  %v1712_v2 = vld [vmem:[%s2103_s17 + $0x1e0] ss:$8 sps:$4 sm:$0xff]   ;;  %v1713_v3 = vld [vmem:[%s2103_s17 + $0xf4] ss:$8 sps:$4 sm:$0xff]  }
  0x7f   : > { %v1715_v4 = vld [vmem:[%s2103_s17 + $0x1f4] ss:$8 sps:$4 sm:$0xff]   ;;  %v1717_v5 = vld [vmem:[%s2103_s17 + $0xf0] ss:$8 sps:$4 sm:$0xff]   ;;  %v617_v10 = vld [vmem:[#allocation2] sm:$0xff]  ;;  %p1517_p5 = scmp.ne.s32.totalorder %s1795_s21, 8 }
  0x80   : > { %1040 = vmatpush1.bf16.msra.mxu1 %v1657_v27  ;;  %v1718_v6 = vld [vmem:[%s2103_s17 + $0x1f0] ss:$8 sps:$4 sm:$0xff]   ;;  %v618_v14 = vld [vmem:[#allocation2 + $0x8] sm:$0xff] }
  0x81   : > { %1083 = vmatpush1.bf16.msra.mxu0 %v1658_v28  ;;  %1041 = vmatprep.subr.bf16.mxu1 %v1659_v29  ;;  %v1719_v7 = vld [vmem:[%s2101_s19] ss:$16 sps:$4 sm:$0xff]   ;;  %v1722_v8 = vld [vmem:[%s2101_s19 + $0x8] ss:$16 sps:$4 sm:$0xff]  }
  0x82   : > { %1084 = vmatprep.subr.bf16.mxu0 %v1661_v30  ;;  %v619_v18 = vld [vmem:[#allocation2 + $0x10] sm:$0xff]  ;;  %v620_v23 = vld [vmem:[#allocation2 + $0x18] sm:$0xff] }
  0x84   : > { %1042 = vmatpush1.bf16.msra.mxu1 %v1663_v31 }
  0x85   : > { %1085 = vmatpush1.bf16.msra.mxu0 %v1664_v32  ;;  %1043 = vmatprep.subr.bf16.mxu1 %v1665_v33 }
  0x86   : > { %1086 = vmatprep.subr.bf16.mxu0 %v1667_v34 }
  0x88   : > { %1044 = vmatpush1.bf16.msra.mxu1 %v1669_v35 }
  0x89   : > { %1087 = vmatpush1.bf16.msra.mxu0 %v1670_v36  ;;  %1045 = vmatprep.subr.bf16.mxu1 %v1671_v37 }
  0x8a   : > { %1088 = vmatprep.subr.bf16.mxu0 %v1673_v38 }
  0x8c   : > { %1046 = vmatpush1.bf16.msra.mxu1 %v1675_v39 }
  0x8d   : > { %1089 = vmatpush1.bf16.msra.mxu0 %v1676_v40  ;;  %1047 = vmatprep.subr.bf16.mxu1 %v1677_v41 }
  0x8e   : > { %1090 = vmatprep.subr.bf16.mxu0 %v1679_v42 }
  0x90   : > { %1048 = vmatpush1.bf16.msra.mxu1 %v1681_v43 }
  0x91   : > { %1091 = vmatpush1.bf16.msra.mxu0 %v1682_v44  ;;  %1049 = vmatprep.subr.bf16.mxu1 %v1683_v45 }
  0x92   : > { %1092 = vmatprep.subr.bf16.mxu0 %v1685_v46 }
  0x94   : > { %1050 = vmatpush1.bf16.msra.mxu1 %v1687_v47 }
  0x95   : > { %1093 = vmatpush1.bf16.msra.mxu0 %v1688_v48  ;;  %1051 = vmatprep.subr.bf16.mxu1 %v1689_v49 }
  0x96   : > { %1094 = vmatprep.subr.bf16.mxu0 %v1691_v50 }
  0x98   : > { %1052 = vmatpush1.bf16.msra.mxu1 %v1693_v51 }
  0x99   : > { %1095 = vmatpush1.bf16.msra.mxu0 %v1694_v53  ;;  %1053 = vmatprep.subr.bf16.mxu1 %v1695_v54 }
  0x9a   : > { %1096 = vmatprep.subr.bf16.mxu0 %v1697_v55 }
  0x9c   : > { %1054 = vmatpush1.bf16.msra.mxu1 %v1699_v57 }
  0x9d   : > { %1097 = vmatpush1.bf16.msra.mxu0 %v1700_v58  ;;  %1055 = vmatprep.subr.bf16.mxu1 %v1701_v59 }
  0x9e   : > { %1098 = vmatprep.subr.bf16.mxu0 %v1703_v60 }
  0xa0   : > { %1056 = vmatpush1.bf16.msra.mxu1 %v1705_v61 }
  0xa1   : > { %1099 = vmatpush1.bf16.msra.mxu0 %v1706_v62  ;;  %1057 = vmatprep.subr.bf16.mxu1 %v1707_v63 }
  0xa2   : > { %1100 = vmatprep.subr.bf16.mxu0 %v1709_v0 }
  0xa4   : > { %1058 = vmatpush1.bf16.msra.mxu1 %v1711_v1 }
  0xa5   : > { %1101 = vmatpush1.bf16.msra.mxu0 %v1712_v2  ;;  %1059 = vmatprep.subr.bf16.mxu1 %v1713_v3 }
  0xa6   : > { %1102 = vmatprep.subr.bf16.mxu0 %v1715_v4 }
  0xa8   : > { %1060 = vmatpush1.bf16.msra.mxu1 %v1717_v5 }
  0xa9   : > { %1103 = vmatpush1.bf16.msra.mxu0 %v1718_v6 }
  0xab   : > { %1062 = vmatmul.mubr.bf16.vlgmr.msra.gmra.mrb[0].mxu1 %v1719_v7 }
  0xac   : > { %1105 = vmatmul.mubr.bf16.vlgmr.msra.gmra.mrb[0].mxu0 %v1722_v8 }
 0x17e   : > { %v1063_v9 = vpop.f32.mrb[0].mxu1 }
 0x17f   : > { %v1106_v11 = vpop.f32.mrb[0].mxu0  ;;  %v1065_v13 = vpop.f32.mrb[1].mxu1 }
 0x180   : > { %v1107_v12 = vadd.f32 %v1106_v11, %v1063_v9  ;;  %v1108_v15 = vpop.f32.mrb[1].mxu0  ;;  %v1067_v17 = vpop.f32.mrb[2].mxu1 }
 0x181   : > { %v1109_v16 = vadd.f32 %v1108_v15, %v1065_v13  ;;  %v1110_v19 = vpop.f32.mrb[2].mxu0  ;;  %v1069_v22 = vpop.f32.mrb[3].mxu1  ;;  %1126 = sbr.rel (%p1517_p5) target bundleno = 416 (0x1a0), region = 97 }
 0x182   : > { %v1115_v20 = vadd.f32 %v1107_v12, %v617_v10  ;;  %v1111_v21 = vadd.f32 %v1110_v19, %v1067_v17  ;;  %v1112_v24 = vpop.f32.mrb[3].mxu0 }
 0x183   : > { %v1116_v25 = vadd.f32 %v1109_v16, %v618_v14  ;;  %v1113_v26 = vadd.f32 %v1112_v24, %v1069_v22 }
 0x184   : > { %1119 = vst [vmem:[#allocation2] sm:$0xff] %v1115_v20  ;;  %v1117_v27 = vadd.f32 %v1111_v21, %v619_v18 }
 0x185   : > { %1120 = vst [vmem:[#allocation2 + $0x8] sm:$0xff] %v1116_v25  ;;  %v1118_v28 = vadd.f32 %v1113_v26, %v620_v23 }
 0x186   : > { %1121 = vst [vmem:[#allocation2 + $0x10] sm:$0xff] %v1117_v27 }
 0x187   : > { %1122 = vst [vmem:[#allocation2 + $0x18] sm:$0xff] %v1118_v28 }
 0x18b   : > { %v1127_v29 = vld [vmem:[#allocation2] sm:$0xff] }
 0x18c   : > { %v1128_v31 = vld [vmem:[#allocation2 + $0x8] sm:$0xff]  ;;  %v1159_v33 = vmul.f32 %v1127_v29, %v1127_v29 }
 0x18d   : > { %v1129_v30 = vld [vmem:[#allocation2 + $0x10] sm:$0xff]  ;;  %v1527_v35 = vpack.c.bf16 %v1128_v31, %v1127_v29  ;;  %v1160_v37 = vmul.f32 %v1128_v31, %v1128_v31 }
 0x18e   : > { %v1145_v32 = vadd.f32 %v1129_v30, %v1127_v29  ;;  %v1161_v34 = vmul.f32 %v1129_v30, %v1129_v30  ;;  %v1130_v36 = vld [vmem:[#allocation2 + $0x18] sm:$0xff] }
 0x18f   : > { %v1528_v38 = vpack.c.bf16 %v1130_v36, %v1129_v30  ;;  %v1152_v39 = vadd.f32 %v1130_v36, %v1128_v31  ;;  %v1162_v40 = vmul.f32 %v1130_v36, %v1130_v36  ;;  %1143 = vst [vmem:[%s2105_s15] sm:$0xff] %v1527_v35 }
 0x190   : > { %v1146_v41 = vrot.slane %v1145_v32, 4  ;;  %v1163_v42 = vadd.f32 %v1161_v34, %v1159_v33 }
 0x191   : > { %1144 = vst [vmem:[%s2105_s15 + $0x8] sm:$0xff] %v1528_v38  ;;  %v1153_v43 = vrot.slane %v1152_v39, 4  ;;  %v1170_v44 = vadd.f32 %v1162_v40, %v1160_v37 }
 0x192   : > { %v1147_v45 = vadd.f32 %v1146_v41, %v1145_v32  ;;  %v1164_v46 = vrot.slane %v1163_v42, 4 }
 0x193   : > { %v1154_v47 = vadd.f32 %v1153_v43, %v1152_v39  ;;  %v1171_v48 = vrot.slane %v1170_v44, 4 }
 0x194   : > { %v1148_v49 = vrot.slane %v1147_v45, 2  ;;  %v1165_v50 = vadd.f32 %v1164_v46, %v1163_v42 }
 0x195   : > { %v1155_v51 = vrot.slane %v1154_v47, 2  ;;  %v1172_v52 = vadd.f32 %v1171_v48, %v1170_v44 }
 0x196   : > { %v1149_v53 = vadd.f32 %v1148_v49, %v1147_v45  ;;  %v1166_v54 = vrot.slane %v1165_v50, 2 }
 0x197   : > { %v1156_v55 = vadd.f32 %v1155_v51, %v1154_v47  ;;  %v1173_v56 = vrot.slane %v1172_v52, 2 }
 0x198   : > { %v1150_v57 = vrot.slane %v1149_v53, 1  ;;  %v1167_v58 = vadd.f32 %v1166_v54, %v1165_v50 }
 0x199   : > { %v1157_v59 = vrot.slane %v1156_v55, 1  ;;  %v1174_v60 = vadd.f32 %v1173_v56, %v1172_v52 }
 0x19a   : > { %v1151_v61 = vadd.f32 %v1150_v57, %v1149_v53  ;;  %v1168_v62 = vrot.slane %v1167_v58, 1 }
 0x19b   : > { %v1158_v63 = vadd.f32 %v1157_v59, %v1156_v55  ;;  %v1175_v0 = vrot.slane %v1174_v60, 1 }
 0x19c   : > { %1177 = vst [vmem:[%s2094_s8] sm:$0xff] %v1151_v61  ;;  %v1169_v1 = vadd.f32 %v1168_v62, %v1167_v58 }
 0x19d   : > { %1178 = vst [vmem:[%s2094_s8 + $0x8] sm:$0xff] %v1158_v63  ;;  %v1176_v2 = vadd.f32 %v1175_v0, %v1174_v60 }
 0x19e   : > { %1179 = vst [vmem:[%s2099_s24] sm:$0xff] %v1169_v1 }
 0x19f   : > { %1180 = vst [vmem:[%s2099_s24 + $0x8] sm:$0xff] %v1176_v2 }
 0x1a0 PF: > { %1205 = sbr.rel (!%p1933_p12) target bundleno = 423 (0x1a7), region = 101  ;;  %s1529_s1 = sshll.u32 (%p1933_p12), %s1799_s22, 3  ;;  %v1241_v3 = vld [vmem:[%s2105_s15] sm:$0xff] (%p1933_p12)  ;;  %v1243_v4 = vld [vmem:[%s2105_s15 + $0x8] sm:$0xff] (%p1933_p12) }
 0x1a1   : > { %s1211_s28 = scalar_lea.vmem (%p1933_p12), %s2226_s2, %s1529_s1 }
 0x1a2   : > { %1242 = vst [vmem:[%s1211_s28] sm:$0xff] (%p1933_p12), %v1241_v3  ;;  %1244 = vst [vmem:[%s1211_s28 + $0x10] sm:$0xff] (%p1933_p12), %v1243_v4 }
 0x1a7 PF: > { %s15_s25 = sadd.s32 1, %s1811_s25   ;;  %s2242_s22 = sld [smem:[#allocation6_spill]] }
 0x1a8   : > { %p12_p6 = scmp.ge.s32.totalorder %s15_s25, 20   ;;  %s2243_s24 = sld [smem:[#allocation7_spill]] }
 0x1a9   : > { %s2244_s14 = sld [smem:[#allocation8_spill]]  ;;  %s2245_s15 = smov %s1775_s16 }
 0x1aa   : > { %s2246_s16 = smov %s1931_s13  ;;  %s2247_s17 = smov %s1783_s18 }
 0x1ab   : > { %s2248_s18 = smov %s1928_s12  ;;  %s2249_s19 = smov %s1791_s20 }
 0x1ac   : > { %s2250_s20 = smov %s1914_s7  ;;  %s2251_s21 = smov %s1803_s23 }
 0x1ad   :  { %14 = sbr.rel (!%p12_p6) target bundleno = 9 (0x9), region = 202 }
 0x1ae   : > { %s2252_s23 = smov %s2243_s24 }
 0x1af   : > { %s2253_s24 = smov %s2244_s14 }

// kernel: forward.75
= control target key start
LH: loop header
LB: loop body
LE: loop exit
PB: predicated region body
PF: predicated region fallthrough
CT: control target
= control target key end

     0   :  { %v31_v0 = vlaneseq  ;;  %s224_s0 = inlined_call_operand.vmem [shape: bf16[16,512], index: 0, kind: input, shape index: {}]   ;;  %s225_s1 = inlined_call_operand.vmem [shape: f32[1,512], index: 1, kind: input, shape index: {}]   ;;  %s226_s2 = inlined_call_operand.vmem [shape: f32[1,512], index: 2, kind: input, shape index: {}]   ;;  %s227_s3 = inlined_call_operand.vmem [shape: bf16[16,512], index: 3, kind: input, shape index: {}]   ;;  %s228_s4 = inlined_call_operand.vmem [shape: bf16[16,512], index: 4, kind: output, shape index: {}]  }
   0x1   :  { %v17_v1 = vld [vmem:[%s224_s0] sm:$0xff]  ;;  %v18_v6 = vld [vmem:[%s224_s0 + $0x8] sm:$0xff]  ;;  %v19_v14 = vld [vmem:[%s224_s0 + $0x10] sm:$0xff] }
   0x2   :  { %v21_v2 = vunpack.c.l.bf16 %v17_v1  ;;  %v22_v3 = vunpack.c.h.bf16 %v17_v1  ;;  %v32_v4 = vshrl.u32 %v31_v0, 7  ;;  %v89_v5 = vld [vmem:[%s227_s3] sm:$0xff]  ;;  %v90_v7 = vld [vmem:[%s227_s3 + $0x8] sm:$0xff]  ;;  %v23_v12 = vunpack.c.l.bf16 %v18_v6  ;;  %v91_v27 = vld [vmem:[%s227_s3 + $0x10] sm:$0xff] }
   0x3   :  { %v29_v8 = vld [vmem:[%s225_s1] sm:$0xf]  ;;  %v93_v10 = vunpack.c.l.bf16 %v89_v5  ;;  %v94_v11 = vunpack.c.h.bf16 %v89_v5  ;;  %v24_v13 = vunpack.c.h.bf16 %v18_v6  ;;  %v95_v19 = vunpack.c.l.bf16 %v90_v7  ;;  %v20_v36 = vld [vmem:[%s224_s0 + $0x18] sm:$0xff] }
   0x4   :  { %v59_v9 = vld [vmem:[%s226_s2] sm:$0xf]  ;;  %v33_v15 = vsub.s32 0, %v32_v4  ;;  %v37_v16 = vsub.s32 1, %v32_v4  ;;  %v41_v17 = vsub.s32 2, %v32_v4  ;;  %v45_v18 = vsub.s32 3, %v32_v4 }
   0x5   :  { %v96_v20 = vunpack.c.h.bf16 %v90_v7  ;;  %v25_v21 = vunpack.c.l.bf16 %v19_v14  ;;  %v26_v22 = vunpack.c.h.bf16 %v19_v14  ;;  %v97_v39 = vunpack.c.l.bf16 %v91_v27  ;;  %v92_v57 = vld [vmem:[%s227_s3 + $0x18] sm:$0xff] }
   0x6   :  { %v34_v23 = vrot.slane %v29_v8, %v33_v15  ;;  %v38_v24 = vrot.slane %v29_v8, %v37_v16  ;;  %v64_v25 = vrot.slane %v59_v9, %v33_v15  ;;  %v68_v26 = vrot.slane %v59_v9, %v37_v16 }
   0x7   :  { %v42_v28 = vrot.slane %v29_v8, %v41_v17  ;;  %v46_v29 = vrot.slane %v29_v8, %v45_v18  ;;  %v72_v30 = vrot.slane %v59_v9, %v41_v17  ;;  %v76_v31 = vrot.slane %v59_v9, %v45_v18 }
   0x8   :  { %v51_v32 = vmul.f32 %v34_v23, %v21_v2  ;;  %v52_v33 = vmul.f32 %v38_v24, %v22_v3  ;;  %v55_v34 = vmul.f32 %v34_v23, %v25_v21  ;;  %v56_v35 = vmul.f32 %v38_v24, %v26_v22 }
   0x9   :  { %v53_v37 = vmul.f32 %v42_v28, %v23_v12  ;;  %v54_v38 = vmul.f32 %v46_v29, %v24_v13  ;;  %v98_v40 = vunpack.c.h.bf16 %v91_v27  ;;  %v27_v47 = vunpack.c.l.bf16 %v20_v36 }
   0xa   :  { %v81_v41 = vadd.f32 %v64_v25, %v51_v32  ;;  %v82_v42 = vadd.f32 %v68_v26, %v52_v33  ;;  %v85_v43 = vadd.f32 %v64_v25, %v55_v34  ;;  %v86_v44 = vadd.f32 %v68_v26, %v56_v35 }
   0xb   :  { %v83_v45 = vadd.f32 %v72_v30, %v53_v37  ;;  %v84_v46 = vadd.f32 %v76_v31, %v54_v38  ;;  %v28_v48 = vunpack.c.h.bf16 %v20_v36  ;;  %v57_v55 = vmul.f32 %v42_v28, %v27_v47 }
   0xc   :  { %v101_v49 = vadd.f32 %v93_v10, %v81_v41  ;;  %v102_v50 = vadd.f32 %v94_v11, %v82_v42  ;;  %v105_v51 = vadd.f32 %v97_v39, %v85_v43  ;;  %v106_v52 = vadd.f32 %v98_v40, %v86_v44 }
   0xd   :  { %v103_v53 = vadd.f32 %v95_v19, %v83_v45  ;;  %v104_v54 = vadd.f32 %v96_v20, %v84_v46  ;;  %v58_v56 = vmul.f32 %v46_v29, %v28_v48  ;;  %v87_v0 = vadd.f32 %v72_v30, %v57_v55 }
   0xe   :  { %v109_v58 = vmax.f32 %v101_v49, 0.0  ;;  %v110_v59 = vmax.f32 %v102_v50, 0.0  ;;  %v113_v60 = vmax.f32 %v105_v51, 0.0  ;;  %v114_v61 = vmax.f32 %v106_v52, 0.0 }
   0xf   :  { %v111_v62 = vmax.f32 %v103_v53, 0.0  ;;  %v112_v63 = vmax.f32 %v104_v54, 0.0  ;;  %v88_v1 = vadd.f32 %v76_v31, %v58_v56  ;;  %v99_v4 = vunpack.c.l.bf16 %v92_v57 }
  0x10   :  { %v153_v2 = vpack.c.bf16 %v110_v59, %v109_v58  ;;  %v155_v3 = vpack.c.bf16 %v114_v61, %v113_v60  ;;  %v100_v5 = vunpack.c.h.bf16 %v92_v57 }
  0x11   :  { %v154_v6 = vpack.c.bf16 %v112_v63, %v111_v62  ;;  %v107_v7 = vadd.f32 %v99_v4, %v87_v0 }
  0x12   :  { %141 = vst [vmem:[%s228_s4] sm:$0xff] %v153_v2  ;;  %143 = vst [vmem:[%s228_s4 + $0x10] sm:$0xff] %v155_v3  ;;  %v108_v8 = vadd.f32 %v100_v5, %v88_v1 }
  0x13   :  { %142 = vst [vmem:[%s228_s4 + $0x8] sm:$0xff] %v154_v6  ;;  %v115_v9 = vmax.f32 %v107_v7, 0.0 }
  0x14   :  { %v116_v10 = vmax.f32 %v108_v8, 0.0 }
  0x16   :  { %v156_v11 = vpack.c.bf16 %v116_v10, %v115_v9 }
  0x18   :  { %144 = vst [vmem:[%s228_s4 + $0x18] sm:$0xff] %v156_v11 }

</bundles_post_ra>
